<compile_context>
chip_gen: v5e
topology: v5e:2x2
jax: 0.10.0
libtpu: 0.0.40
codegen_flags: <defaults>
</compile_context>

<pallas_src>
import math

import jax
import jax.numpy as jnp
from jax.experimental import pallas as pl
from jax.experimental.pallas import tpu as pltpu

# Scalar "parameters" of the torch module, baked in as compile-time constants.
LENGTH_SCALE = 1.25
SIGNAL_VARIANCE = 0.9
NU = 2.5

_SQRT3_OVER_LS2 = math.sqrt(3.0) / (LENGTH_SCALE * LENGTH_SCALE)
_SV2 = SIGNAL_VARIANCE * SIGNAL_VARIANCE


def _matern_body(x1_ref, x2t_ref, x1sq_ref, x2sq_ref, o_ref):
    # x1_ref: (TM, D), x2t_ref: (D, TN), x1sq_ref: (TM, 1), x2sq_ref: (1, TN)
    a = x1_ref[...].astype(jnp.float32)
    bt = x2t_ref[...].astype(jnp.float32)

    # Cross inner products on the MXU in the natural (TM,K)x(K,TN) shape.
    ab = jnp.dot(a, bt, preferred_element_type=jnp.float32)          # (TM, TN)

    # Squared distance from precomputed norms; clamp at 0 so sqrt never sees a
    # tiny negative produced by cancellation (semantics unchanged for d2 > 0).
    d2 = jnp.maximum(x1sq_ref[...] + x2sq_ref[...] - 2.0 * ab, 0.0)  # (TM, TN)

    # Matern: sv^2 * (1 + sqrt(3*d2)/ls^2)^(-nu).
    t = _SQRT3_OVER_LS2 * jnp.sqrt(d2)
    if NU == 2.5:
        # (1+t)^(-2.5) = rsqrt(1+t)^5: 2 EUP pushes + 3 VPU muls per element
        # (1+t >= 1, so rsqrt is always finite).
        r = jax.lax.rsqrt(1.0 + t)
        r2 = r * r
        k = _SV2 * (r2 * r2 * r)
    else:
        # Fallback for arbitrary nu: 3 EUP pushes per element.
        k = _SV2 * jnp.exp(-NU * jnp.log(1.0 + t))
    o_ref[...] = k.astype(o_ref.dtype)


def matern_kernel(x1, x2, *, tm=256, tn=512):
    """Matern covariance (scalar lengthscale) via a fused Pallas TPU kernel.

    x1: [N, D], x2: [M, D]  ->  [N, M] float32 covariance matrix.
    """
    N, D = x1.shape
    M, D2 = x2.shape
    assert D == D2, "feature dims must match"

    tm = min(tm, N)
    tn = min(tn, M)

    # Keep the grid >= 2 along at least one "parallel" axis so v7x's two
    # TensorCores can both get work (no-op on v5e/v6e's single TC).
    if N // tm == 1 and M // tn == 1:
        if tn % 256 == 0:
            tn //= 2
        elif tm % 2 == 0 and tm > 8:
            tm //= 2

    assert N % tm == 0 and M % tn == 0, "small demo assumes divisible tiles"
    assert tn % 128 == 0 or tn == M, "keep output tiles lane-dense"

    x1 = x1.astype(jnp.float32)
    x2 = x2.astype(jnp.float32)
    # Hoisted out of the kernel: transposed RHS and row norms.
    x2t = x2.T                                              # [D, M]
    x1_sq = jnp.sum(x1 * x1, axis=-1, keepdims=True)        # [N, 1]
    x2_sq = jnp.sum(x2 * x2, axis=-1)[None, :]              # [1, M]

    grid = (N // tm, M // tn)

    # Advisory cost estimate (corrected per review):
    #   transcendentals: sqrt + rsqrt (or sqrt + log + exp for generic nu),
    #   x1 tile traffic is N*D (index_map constant across inner j axis),
    #   x2t re-fetched once per row-block.
    n_trans = 2 if NU == 2.5 else 3
    cost = pl.CostEstimate(
        flops=2 * N * M * D + 8 * N * M,
        transcendentals=n_trans * N * M,
        bytes_accessed=4 * (N * M + N * D + grid[0] * M * D + N + M),
    )

    # Double-buffered VMEM footprint estimate; only raise the scoped limit if
    # tiles are pushed beyond the 32 MiB default (v7x has 64 MiB physical).
    vmem_est = 2 * 4 * (tm * tn + tm * D + D * tn + tm + tn)
    vmem_limit = int(1.25 * vmem_est) if vmem_est > (32 << 20) else None

    return pl.pallas_call(
        _matern_body,
        out_shape=jax.ShapeDtypeStruct((N, M), jnp.float32),
        grid_spec=pltpu.PrefetchScalarGridSpec(
            num_scalar_prefetch=0,
            grid=grid,
            in_specs=[
                pl.BlockSpec((tm, D), lambda i, j: (i, 0)),   # x1 tile
                pl.BlockSpec((D, tn), lambda i, j: (0, j)),   # x2^T tile
                pl.BlockSpec((tm, 1), lambda i, j: (i, 0)),   # ||x1||^2 rows
                pl.BlockSpec((1, tn), lambda i, j: (0, j)),   # ||x2||^2 cols
            ],
            out_specs=pl.BlockSpec((tm, tn), lambda i, j: (i, j)),
        ),
        compiler_params=pltpu.CompilerParams(
            dimension_semantics=("parallel", "parallel"),
            vmem_limit_bytes=vmem_limit,
        ),
        cost_estimate=cost,
    )(x1, x2t, x1_sq, x2_sq)


def _reference(x1, x2):
    a = x1.astype(jnp.float32)
    b = x2.astype(jnp.float32)
    ab = a @ b.T
    d2 = jnp.maximum(
        jnp.sum(a * a, -1)[:, None] + jnp.sum(b * b, -1)[None, :] - 2.0 * ab, 0.0
    )
    t = _SQRT3_OVER_LS2 * jnp.sqrt(d2)
    return _SV2 * jnp.power(1.0 + t, -NU)


if __name__ == "__main__":
    key = jax.random.PRNGKey(0)
    k1, k2 = jax.random.split(key)
    N, M, D = 512, 512, 32
    x1 = jax.random.normal(k1, (N, D), dtype=jnp.float32)
    x2 = jax.random.normal(k2, (M, D), dtype=jnp.float32)

    out = matern_kernel(x1, x2)
    out = jax.block_until_ready(out)

    ref = _reference(x1, x2)
    assert out.shape == (N, M)
    assert bool(jnp.allclose(out, ref, atol=1e-3, rtol=1e-3)), float(
        jnp.max(jnp.abs(out - ref))
    )
    print("KERNEL_OK")
</pallas_src>

<mosaic_0001>
module attributes {stable_mosaic.version = 11 : i64} {
  func.func @_matern_body(%arg0: i32, %arg1: i32, %arg2: memref<256x32xf32, #tpu.memory_space<vmem>>, %arg3: memref<32x512xf32, #tpu.memory_space<vmem>>, %arg4: memref<256x1xf32, #tpu.memory_space<vmem>>, %arg5: memref<1x512xf32, #tpu.memory_space<vmem>>, %arg6: memref<256x512xf32, #tpu.memory_space<vmem>>) attributes {dimension_semantics = [#tpu.dimension_semantics<parallel>, #tpu.dimension_semantics<parallel>], iteration_bounds = array<i64: 2, 1>, scalar_prefetch = 0 : i64, scratch_operands = 0 : i64, tpu.core_type = #tpu.core_type<tc>, window_params = [{transform_indices = @transform_0, window_bounds = array<i64: 256, 32>}, {transform_indices = @transform_1, window_bounds = array<i64: 32, 512>}, {transform_indices = @transform_2, window_bounds = array<i64: 256, 1>}, {transform_indices = @transform_3, window_bounds = array<i64: 1, 512>}, {transform_indices = @transform_4, window_bounds = array<i64: 256, 512>}]} {
    %c0 = arith.constant 0 : index
    %c0_0 = arith.constant 0 : index
    %0 = vector.load %arg2[%c0, %c0_0] : memref<256x32xf32, #tpu.memory_space<vmem>>, vector<256x32xf32>
    %c0_1 = arith.constant 0 : index
    %c0_2 = arith.constant 0 : index
    %1 = vector.load %arg3[%c0_1, %c0_2] : memref<32x512xf32, #tpu.memory_space<vmem>>, vector<32x512xf32>
    %cst = arith.constant dense<0.000000e+00> : vector<256x512xf32>
    %2 = tpu.matmul %0, %1, %cst {dimension_numbers = #tpu.dot_dimension_numbers<[1], [0], [0], [1], [0, 0, 1, 1], [], []>} : vector<256x32xf32>, vector<32x512xf32>, vector<256x512xf32> -> vector<256x512xf32>
    %c0_3 = arith.constant 0 : index
    %c0_4 = arith.constant 0 : index
    %3 = vector.load %arg4[%c0_3, %c0_4] : memref<256x1xf32, #tpu.memory_space<vmem>>, vector<256x1xf32>
    %c0_5 = arith.constant 0 : index
    %c0_6 = arith.constant 0 : index
    %4 = vector.load %arg5[%c0_5, %c0_6] : memref<1x512xf32, #tpu.memory_space<vmem>>, vector<1x512xf32>
    %5 = vector.broadcast %3 : vector<256x1xf32> to vector<256x512xf32>
    %6 = vector.broadcast %4 : vector<1x512xf32> to vector<256x512xf32>
    %7 = arith.addf %5, %6 : vector<256x512xf32>
    %cst_7 = arith.constant 2.000000e+00 : f32
    %8 = vector.broadcast %cst_7 : f32 to vector<256x512xf32>
    %9 = arith.mulf %8, %2 : vector<256x512xf32>
    %10 = arith.subf %7, %9 : vector<256x512xf32>
    %cst_8 = arith.constant 0.000000e+00 : f32
    %11 = vector.broadcast %cst_8 : f32 to vector<256x512xf32>
    %12 = arith.maximumf %10, %11 : vector<256x512xf32>
    %13 = math.sqrt %12 : vector<256x512xf32>
    %cst_9 = arith.constant 1.10851252 : f32
    %14 = vector.broadcast %cst_9 : f32 to vector<256x512xf32>
    %15 = arith.mulf %14, %13 : vector<256x512xf32>
    %cst_10 = arith.constant 1.000000e+00 : f32
    %16 = vector.broadcast %cst_10 : f32 to vector<256x512xf32>
    %17 = arith.addf %16, %15 : vector<256x512xf32>
    %18 = math.rsqrt %17 : vector<256x512xf32>
    %19 = arith.mulf %18, %18 : vector<256x512xf32>
    %20 = arith.mulf %19, %19 : vector<256x512xf32>
    %21 = arith.mulf %20, %18 : vector<256x512xf32>
    %cst_11 = arith.constant 8.100000e-01 : f32
    %22 = vector.broadcast %cst_11 : f32 to vector<256x512xf32>
    %23 = arith.mulf %22, %21 : vector<256x512xf32>
    %c0_12 = arith.constant 0 : index
    %c0_13 = arith.constant 0 : index
    %24 = vector.load %arg6[%c0_12, %c0_13] : memref<256x512xf32, #tpu.memory_space<vmem>>, vector<256x512xf32>
    tpu.vector_store %arg6[%c0_12, %c0_13], %23 {strides = array<i32>} : memref<256x512xf32, #tpu.memory_space<vmem>>, vector<256x512xf32>,
    return
  }
  func.func @transform_0(%arg0: i32, %arg1: i32) -> (i32, i32) {
    %c0_i32 = arith.constant 0 : i32
    %c0_i32_0 = arith.constant 0 : i32
    return %arg0, %c0_i32 : i32, i32
  }
  func.func @transform_1(%arg0: i32, %arg1: i32) -> (i32, i32) {
    %c0_i32 = arith.constant 0 : i32
    %c0_i32_0 = arith.constant 0 : i32
    return %c0_i32, %arg1 : i32, i32
  }
  func.func @transform_2(%arg0: i32, %arg1: i32) -> (i32, i32) {
    %c0_i32 = arith.constant 0 : i32
    %c0_i32_0 = arith.constant 0 : i32
    return %arg0, %c0_i32 : i32, i32
  }
  func.func @transform_3(%arg0: i32, %arg1: i32) -> (i32, i32) {
    %c0_i32 = arith.constant 0 : i32
    %c0_i32_0 = arith.constant 0 : i32
    return %c0_i32, %arg1 : i32, i32
  }
  func.func @transform_4(%arg0: i32, %arg1: i32) -> (i32, i32) {
    %c0_i32 = arith.constant 0 : i32
    return %arg0, %arg1 : i32, i32
  }
}

</mosaic_0001>

<bundles_post_ra>
// kernel: tpu_custom_call.1
= control target key start
LH: loop header
LB: loop body
LE: loop exit
PB: predicated region body
PF: predicated region fallthrough
CT: control target
= control target key end

     0   :  { %9 = vsyncpa [#allocation3], 0  ;;  %s9657_s0 = inlined_call_operand.vmem [shape: f32[512,32], index: 0, kind: input, shape index: {}]   ;;  %s9658_s1 = inlined_call_operand.vmem [shape: f32[32,512], index: 1, kind: input, shape index: {}]   ;;  %s9659_s2 = inlined_call_operand.vmem [shape: f32[512,1], index: 2, kind: input, shape index: {}]   ;;  %s9660_s3 = inlined_call_operand.vmem [shape: f32[1,512], index: 3, kind: input, shape index: {}]   ;;  %s9661_s4 = inlined_call_operand.hbm [shape: f32[512,512], index: 4, kind: output, shape index: {}]  }
   0x1   :  { %11 = vsyncpa [#allocation3 + $0x1], 0  ;;  %s6260_s15 = smov 0   ;;  %s6262_s16 = smov 0  }
   0x2   :  { %s6264_s17 = smov 0   ;;  %s6266_s18 = smov 0  }
   0x3   :  { %s6268_s19 = smov 0   ;;  %s6270_s20 = smov 0  }
   0x4 LB: > { %s5431_s21 = sadd.s32 4294967295, %s6230_s20   ;;  %s5432_s22 = sadd.s32 4294967294, %s6230_s20   ;;  %s6230_s20 = sphi %s6270_s20, %s17_s20   ;;  %s6226_s19 = sphi %s6268_s19, %s9668_s19   ;;  %s6222_s18 = sphi %s6266_s18, %s9667_s18   ;;  %s6218_s17 = sphi %s6264_s17, %s9666_s17   ;;  %s6214_s16 = sphi %s6262_s16, %s9665_s16   ;;  %s6210_s15 = sphi %s6260_s15, %s9664_s15  }
   0x5   : > { %s29_s23 = sadd.s32 1, %s6226_s19  ;;  %s142_s24 = sadd.s32 1, %s6218_s17 }
   0x6   : > { %p31_p0 = scmp.ge.s32.totalorder %s29_s23, 2  ;;  %p152_p1 = scmp.ne.s32.totalorder %s6218_s17, %s6214_s16 }
   0x7   : > { %p153_p2 = scmp.eq.s32.totalorder %s5431_s21, 1  ;;  %p158_p3 = scmp.ne.s32.totalorder %s6214_s16, %s6210_s15 }
   0x8   : > { %s9670_s23 = smov (%p31_p0, %s29_s23), 0  ;;  %p159_p5 = scmp.eq.s32.totalorder %s5432_s22, 1 }
   0x9   : > { %p6300_p4 = por %p153_p2, %p152_p1  ;;  %s137_s26 = ssub.s32 %s6226_s19, %s9670_s23 }
   0xa   : > { %p5437_p6 = scmp.ge.s32.totalorder %s6230_s20, 1  ;;  %p140_p7 = scmp.eq.s32.totalorder %s137_s26, 0 }
   0xb   : > { %p6307_p8 = por %p159_p5, %p158_p3  ;;  %p212_p9 = scmp.lt.s32.totalorder %s6230_s20, 3 }
   0xc   : > { %s6313_s28 = scalar_select %p140_p7, %s6218_s17, %s142_s24  }
   0xd   : > { %p213_p10 = pnand %p5437_p6, %p212_p9 }
   0xe   : > { %s5439_s9 = sshll.u32 (!%p213_p10), %s6222_s18, 5  ;;  %s249_s14 = sand.u32 (!%p213_p10), 1, %s6214_s16  }
   0xf   : > { %216 = sbr.rel (%p213_p10) target bundleno = 1177 (0x499), region = 36  ;;  %p253_p11 = scmp.lt.s32.totalorder (!%p213_p10), %s5439_s9, 63 }
  0x10   : > { %s6684_s21 = sshll.u32 (!%p213_p10), %s249_s14, 10  ;;  %s5578_s24 = sshll.u32 (!%p213_p10), %s6222_s18, 10 }
  0x11   : > { %s6712_s22 = scalar_lea.vmem (!%p213_p10), [#allocation2], %s6684_s21  ;;  %s5315_s30 = scalar_lea.hbm (!%p213_p10), %s9661_s4, %s5578_s24 }
  0x12   : > { %s5318_s6 = sshll.u32 (!%p213_p10), %s5315_s30, 4  ;;  %s5301_s18 = scalar_lea.sflag (!%p213_p10), [#allocation3], %s249_s14  ;;  %s5319_s6 = int_to_ptr.hbm [resolvable:$true] %s5318_s6 }
  0x13   : > { %s6166_s7 = sshra.s32 (!%p213_p10), %s5319_s6, 4  ;;  %s6167_s7 = int_to_ptr.hbm [resolvable:$true] %s6166_s7 }
  0x14   : > { %v321_v0 = vld [vmem:[%s9658_s1 + $0x60] sm:$0xff]  ;;  %v322_v1 = vld [vmem:[%s9658_s1 + $0x68] sm:$0xff]  ;;  %v323_v2 = vld [vmem:[%s9658_s1 + $0x70] sm:$0xff]  ;;  %s9672_s9 = smov (!%p253_p11, %s5439_s9), 63  ;;  %vm325_vm0 = vcmask 261120   ;;  %v6232_v19 = vmov 0   ;;  %p6173_p1 = scmp.lt.s32.totalorder %s6167_s7, %s9661_s4 }
  0x15   : > { %434 = vmatpush.msra.mxu0 %v321_v0  ;;  %547 = vmatpush.msra.mxu1 %v322_v1  ;;  %v324_v3 = vld [vmem:[%s9658_s1 + $0x78] sm:$0xff]  ;;  %v317_v4 = vld [vmem:[%s9658_s1 + $0x40] sm:$0xff]  ;;  %v318_v5 = vld [vmem:[%s9658_s1 + $0x48] sm:$0xff]  ;;  %s5440_s5 = sshll.u32 %s9672_s9, 3 }
  0x16   : > { %660 = vmatpush.msra.mxu2 %v323_v2  ;;  %773 = vmatpush.msra.mxu3 %v324_v3  ;;  %v319_v6 = vld [vmem:[%s9658_s1 + $0x50] sm:$0xff]  ;;  %v320_v7 = vld [vmem:[%s9658_s1 + $0x58] sm:$0xff]  ;;  %v313_v8 = vld [vmem:[%s9658_s1 + $0x20] sm:$0xff]  ;;  %s6367_s8 = scalar_lea.vmem %s9657_s0, %s5440_s5  ;;  %s6372_s12 = scalar_lea.vmem %s9659_s2, %s5440_s5 }
  0x17   : > { %435 = vmatpush.msra.mxu0 %v317_v4  ;;  %548 = vmatpush.msra.mxu1 %v318_v5  ;;  %v314_v9 = vld [vmem:[%s9658_s1 + $0x28] sm:$0xff]  ;;  %v315_v10 = vld [vmem:[%s9658_s1 + $0x30] sm:$0xff]  ;;  %v316_v11 = vld [vmem:[%s9658_s1 + $0x38] sm:$0xff]  ;;  %s5316_s5 = sshll.u32 %s6712_s22, 4  ;;  %s5317_s5 = int_to_ptr.vmem [resolvable:$true] %s5316_s5 }
  0x18   : > { %661 = vmatpush.msra.mxu2 %v319_v6  ;;  %774 = vmatpush.msra.mxu3 %v320_v7  ;;  %v309_v12 = vld [vmem:[%s9658_s1] sm:$0xff]  ;;  %v310_v13 = vld [vmem:[%s9658_s1 + $0x8] sm:$0xff]  ;;  %v311_v14 = vld [vmem:[%s9658_s1 + $0x10] sm:$0xff] }
  0x19   : > { %436 = vmatpush.msra.mxu0 %v313_v8  ;;  %549 = vmatpush.msra.mxu1 %v314_v9  ;;  %v312_v15 = vld [vmem:[%s9658_s1 + $0x18] sm:$0xff]  ;;  %v277_v16 = vld [vmem:[%s6367_s8] sm:$0xff]  ;;  %v876_v18 = vld [vmem:[%s6372_s12 + $0x10] sm:$0xff] }
  0x1a   : > { %662 = vmatpush.msra.mxu2 %v315_v10  ;;  %775 = vmatpush.msra.mxu3 %v316_v11  ;;  %v874_v17 = vld [vmem:[%s6372_s12] sm:$0xff]  ;;  %v278_v20 = vld [vmem:[%s6367_s8 + $0x8] sm:$0xff]  ;;  %v877_v22 = vld [vmem:[%s6372_s12 + $0x18] sm:$0xff] }
  0x1b   : > { %437 = vmatpush.msra.mxu0 %v309_v12  ;;  %550 = vmatpush.msra.mxu1 %v310_v13  ;;  %v875_v21 = vld [vmem:[%s6372_s12 + $0x8] sm:$0xff]  ;;  %v279_v23 = vld [vmem:[%s6367_s8 + $0x10] sm:$0xff]  ;;  %v280_v24 = vld [vmem:[%s6367_s8 + $0x18] sm:$0xff] }
  0x1c   : > { %663 = vmatpush.msra.mxu2 %v311_v14  ;;  %776 = vmatpush.msra.mxu3 %v312_v15  ;;  %v880_v25 = vld [vmem:[%s6372_s12 + $0x30] sm:$0xff]  ;;  %v281_v26 = vld [vmem:[%s6367_s8 + $0x20] sm:$0xff]  ;;  %v881_v28 = vld [vmem:[%s6372_s12 + $0x38] sm:$0xff] }
  0x1d   : > { %5443 = vmatmul.msk.f32.vlgmr.msra.gmra.mxu0 %vm325_vm0, %v277_v16  ;;  %5475 = vmatmul.msk.f32.vlgmr.msra.gmra.mxu1 %vm325_vm0, %v277_v16  ;;  %v878_v27 = vld [vmem:[%s6372_s12 + $0x20] sm:$0xff]  ;;  %v282_v29 = vld [vmem:[%s6367_s8 + $0x28] sm:$0xff]  ;;  %v283_v31 = vld [vmem:[%s6367_s8 + $0x30] sm:$0xff] }
  0x1e   : > { %5507 = vmatmul.msk.f32.vlgmr.msra.gmra.mxu2 %vm325_vm0, %v277_v16  ;;  %5539 = vmatmul.msk.f32.vlgmr.msra.gmra.mxu3 %vm325_vm0, %v277_v16  ;;  %v879_v30 = vld [vmem:[%s6372_s12 + $0x28] sm:$0xff]  ;;  %v284_v33 = vld [vmem:[%s6367_s8 + $0x38] sm:$0xff]  ;;  %v884_v34 = vld [vmem:[%s6372_s12 + $0x50] sm:$0xff] }
  0x1f   : > { %5637 = vset.pattern.permute.xlu0 %v6232_v19  ;;  %5638 = vset.pattern.permute.xlu1 %v6232_v19  ;;  %v883_v32 = vld [vmem:[%s6372_s12 + $0x48] sm:$0xff]  ;;  %v285_v35 = vld [vmem:[%s6367_s8 + $0x40] sm:$0xff]  ;;  %v287_v39 = vld [vmem:[%s6367_s8 + $0x50] sm:$0xff] }
  0x20   : > { %909 = vperm.xlu0 %5637, %v874_v17   ;;  %919 = vperm.xlu1 %5638, %v876_v18   ;;  %v882_v36 = vld [vmem:[%s6372_s12 + $0x40] sm:$0xff]  ;;  %v286_v37 = vld [vmem:[%s6367_s8 + $0x48] sm:$0xff]  ;;  %v288_v41 = vld [vmem:[%s6367_s8 + $0x58] sm:$0xff] }
  0x21   : > { %5639 = vset.pattern.permute.xlu2 %v6232_v19  ;;  %v886_v38 = vld [vmem:[%s6372_s12 + $0x60] sm:$0xff]  ;;  %v887_v40 = vld [vmem:[%s6372_s12 + $0x68] sm:$0xff]  ;;  %v885_v42 = vld [vmem:[%s6372_s12 + $0x58] sm:$0xff] }
  0x22   : > { %929 = vperm.xlu2 %5639, %v878_v27   ;;  %v289_v43 = vld [vmem:[%s6367_s8 + $0x60] sm:$0xff]  ;;  %v889_v44 = vld [vmem:[%s6372_s12 + $0x78] sm:$0xff]  ;;  %v290_v45 = vld [vmem:[%s6367_s8 + $0x68] sm:$0xff] }
  0x23   : > { %v291_v46 = vld [vmem:[%s6367_s8 + $0x70] sm:$0xff]  ;;  %v890_v47 = vld [vmem:[%s6372_s12 + $0x80] sm:$0xff]  ;;  %v292_v48 = vld [vmem:[%s6367_s8 + $0x78] sm:$0xff] }
  0x24   : > { %v906_v49 = vld [vmem:[%s9660_s3] sm:$0xf]  ;;  %v294_v11 = vld [vmem:[%s6367_s8 + $0x88] sm:$0xff] }
  0x25   : > { %5444 = vmatmul.msk.f32.gmra.mxu0 %vm325_vm0, %v278_v20  ;;  %5476 = vmatmul.msk.f32.gmra.mxu1 %vm325_vm0, %v278_v20  ;;  %v6471_v51 = vperm.slane %v906_v49, 0  ;;  %v6473_v52 = vperm.slane %v906_v49, 1  ;;  %v293_v57 = vld [vmem:[%s6367_s8 + $0x80] sm:$0xff]  ;;  %v6480_v60 = vperm.slane %v906_v49, 2  ;;  %v6484_v63 = vperm.slane %v906_v49, 3 }
  0x26   : > { %5508 = vmatmul.msk.f32.gmra.mxu2 %vm325_vm0, %v278_v20  ;;  %5540 = vmatmul.msk.f32.gmra.mxu3 %vm325_vm0, %v278_v20 }
  0x28   : > { %914 = vperm.xlu0 %5637, %v875_v21   ;;  %924 = vperm.xlu1 %5638, %v877_v22  }
  0x2a   : > { %934 = vperm.xlu2 %5639, %v879_v30  }
  0x2d   : > { %5445 = vmatmul.msk.f32.gmra.mxu0 %vm325_vm0, %v279_v23  ;;  %5477 = vmatmul.msk.f32.gmra.mxu1 %vm325_vm0, %v279_v23 }
  0x2e   : > { %5509 = vmatmul.msk.f32.gmra.mxu2 %vm325_vm0, %v279_v23  ;;  %5541 = vmatmul.msk.f32.gmra.mxu3 %vm325_vm0, %v279_v23 }
  0x30   : > { %939 = vperm.xlu0 %5637, %v880_v25   ;;  %944 = vperm.xlu1 %5638, %v881_v28  }
  0x32   : > { %949 = vperm.xlu2 %5639, %v882_v36  }
  0x35   : > { %5446 = vmatmul.msk.f32.gmra.mxu0 %vm325_vm0, %v280_v24  ;;  %5478 = vmatmul.msk.f32.gmra.mxu1 %vm325_vm0, %v280_v24 }
  0x36   : > { %5510 = vmatmul.msk.f32.gmra.mxu2 %vm325_vm0, %v280_v24  ;;  %5542 = vmatmul.msk.f32.gmra.mxu3 %vm325_vm0, %v280_v24 }
  0x38   : > { %954 = vperm.xlu0 %5637, %v883_v32   ;;  %959 = vperm.xlu1 %5638, %v884_v34  }
  0x3a   : > { %964 = vperm.xlu2 %5639, %v885_v42  }
  0x3d   : > { %5447 = vmatmul.msk.f32.gmra.mxu0 %vm325_vm0, %v281_v26  ;;  %5479 = vmatmul.msk.f32.gmra.mxu1 %vm325_vm0, %v281_v26 }
  0x3e   : > { %5511 = vmatmul.msk.f32.gmra.mxu2 %vm325_vm0, %v281_v26  ;;  %5543 = vmatmul.msk.f32.gmra.mxu3 %vm325_vm0, %v281_v26 }
  0x40   : > { %969 = vperm.xlu0 %5637, %v886_v38   ;;  %974 = vperm.xlu1 %5638, %v887_v40  }
  0x45   : > { %5448 = vmatmul.msk.f32.gmra.mxu0 %vm325_vm0, %v282_v29  ;;  %5480 = vmatmul.msk.f32.gmra.mxu1 %vm325_vm0, %v282_v29 }
  0x46   : > { %5512 = vmatmul.msk.f32.gmra.mxu2 %vm325_vm0, %v282_v29  ;;  %5544 = vmatmul.msk.f32.gmra.mxu3 %vm325_vm0, %v282_v29 }
  0x48   : > { %984 = vperm.xlu0 %5637, %v889_v44   ;;  %989 = vperm.xlu1 %5638, %v890_v47  }
  0x4d   : > { %5449 = vmatmul.msk.f32.gmra.mxu0 %vm325_vm0, %v283_v31  ;;  %5481 = vmatmul.msk.f32.gmra.mxu1 %vm325_vm0, %v283_v31 }
  0x4e   : > { %5513 = vmatmul.msk.f32.gmra.mxu2 %vm325_vm0, %v283_v31  ;;  %5545 = vmatmul.msk.f32.gmra.mxu3 %vm325_vm0, %v283_v31 }
  0x55   : > { %5450 = vmatmul.msk.f32.gmra.mxu0 %vm325_vm0, %v284_v33  ;;  %5482 = vmatmul.msk.f32.gmra.mxu1 %vm325_vm0, %v284_v33 }
  0x56   : > { %5514 = vmatmul.msk.f32.gmra.mxu2 %vm325_vm0, %v284_v33  ;;  %5546 = vmatmul.msk.f32.gmra.mxu3 %vm325_vm0, %v284_v33 }
  0x5d   : > { %5451 = vmatmul.msk.f32.gmra.mxu0 %vm325_vm0, %v285_v35  ;;  %5483 = vmatmul.msk.f32.gmra.mxu1 %vm325_vm0, %v285_v35 }
  0x5e   : > { %5515 = vmatmul.msk.f32.gmra.mxu2 %vm325_vm0, %v285_v35  ;;  %5547 = vmatmul.msk.f32.gmra.mxu3 %vm325_vm0, %v285_v35 }
  0x65   : > { %5452 = vmatmul.msk.f32.gmra.mxu0 %vm325_vm0, %v286_v37  ;;  %5484 = vmatmul.msk.f32.gmra.mxu1 %vm325_vm0, %v286_v37 }
  0x66   : > { %5516 = vmatmul.msk.f32.gmra.mxu2 %vm325_vm0, %v286_v37  ;;  %5548 = vmatmul.msk.f32.gmra.mxu3 %vm325_vm0, %v286_v37 }
  0x6d   : > { %5453 = vmatmul.msk.f32.gmra.mxu0 %vm325_vm0, %v287_v39  ;;  %5485 = vmatmul.msk.f32.gmra.mxu1 %vm325_vm0, %v287_v39 }
  0x6e   : > { %5517 = vmatmul.msk.f32.gmra.mxu2 %vm325_vm0, %v287_v39  ;;  %5549 = vmatmul.msk.f32.gmra.mxu3 %vm325_vm0, %v287_v39 }
  0x75   : > { %5454 = vmatmul.msk.f32.gmra.mxu0 %vm325_vm0, %v288_v41  ;;  %5486 = vmatmul.msk.f32.gmra.mxu1 %vm325_vm0, %v288_v41 }
  0x76   : > { %5518 = vmatmul.msk.f32.gmra.mxu2 %vm325_vm0, %v288_v41  ;;  %5550 = vmatmul.msk.f32.gmra.mxu3 %vm325_vm0, %v288_v41 }
  0x7d   : > { %5455 = vmatmul.msk.f32.gmra.mxu0 %vm325_vm0, %v289_v43  ;;  %5487 = vmatmul.msk.f32.gmra.mxu1 %vm325_vm0, %v289_v43 }
  0x7e   : > { %5519 = vmatmul.msk.f32.gmra.mxu2 %vm325_vm0, %v289_v43  ;;  %5551 = vmatmul.msk.f32.gmra.mxu3 %vm325_vm0, %v289_v43 }
  0x85   : > { %5456 = vmatmul.msk.f32.gmra.mxu0 %vm325_vm0, %v290_v45  ;;  %5488 = vmatmul.msk.f32.gmra.mxu1 %vm325_vm0, %v290_v45 }
  0x86   : > { %5520 = vmatmul.msk.f32.gmra.mxu2 %vm325_vm0, %v290_v45  ;;  %5552 = vmatmul.msk.f32.gmra.mxu3 %vm325_vm0, %v290_v45 }
  0x8d   : > { %5457 = vmatmul.msk.f32.gmra.mxu0 %vm325_vm0, %v291_v46  ;;  %5489 = vmatmul.msk.f32.gmra.mxu1 %vm325_vm0, %v291_v46 }
  0x8e   : > { %5521 = vmatmul.msk.f32.gmra.mxu2 %vm325_vm0, %v291_v46  ;;  %5553 = vmatmul.msk.f32.gmra.mxu3 %vm325_vm0, %v291_v46 }
  0x92   : > { %v910_v50 = vpop.permute.xlu0 %909  ;;  %v6515_v29 = vpop.permute.xlu1 %919 }
  0x93   : > { %v1076_v53 = vadd.f32 %v6471_v51, %v910_v50  ;;  %v1077_v54 = vadd.f32 %v6473_v52, %v910_v50  ;;  %v1078_v3 = vadd.f32 %v6480_v60, %v910_v50  ;;  %v1079_v6 = vadd.f32 %v6484_v63, %v910_v50 }
  0x94   : > { %v6526_v37 = vadd.f32 %v6471_v51, %v6515_v29 }
  0x95   : > { %5458 = vmatmul.msk.f32.gmra.mxu0 %vm325_vm0, %v292_v48  ;;  %5490 = vmatmul.msk.f32.gmra.mxu1 %vm325_vm0, %v292_v48 }
  0x96   : > { %5522 = vmatmul.msk.f32.gmra.mxu2 %vm325_vm0, %v292_v48  ;;  %5554 = vmatmul.msk.f32.gmra.mxu3 %vm325_vm0, %v292_v48 }
  0x9a   : > { %v439_v55 = vpop.f32.mrf.mxu0  ;;  %v552_v56 = vpop.f32.mrf.mxu1 }
  0x9b   : > { %v1204_v58 = vmul.f32 2.0, %v439_v55  ;;  %v1205_v59 = vmul.f32 2.0, %v552_v56  ;;  %v915_v0 = vpop.permute.xlu0 %914  ;;  %v6538_v55 = vadd.f32 %v6473_v52, %v6515_v29 }
  0x9c   : > { %v1080_v7 = vadd.f32 %v6471_v51, %v915_v0  ;;  %v1081_v8 = vadd.f32 %v6473_v52, %v915_v0  ;;  %v1082_v33 = vadd.f32 %v6480_v60, %v915_v0  ;;  %v6520_v35 = vadd.f32 %v6484_v63, %v915_v0 }
  0x9d   : > { %v1332_v61 = vsub.f32 %v1076_v53, %v1204_v58  ;;  %v1333_v62 = vsub.f32 %v1077_v54, %v1205_v59  ;;  %5459 = vmatmul.msk.f32.gmra.mxu0 %vm325_vm0, %v293_v57  ;;  %5491 = vmatmul.msk.f32.gmra.mxu1 %vm325_vm0, %v293_v57 }
  0x9e   : > { %5523 = vmatmul.msk.f32.gmra.mxu2 %vm325_vm0, %v293_v57  ;;  %5555 = vmatmul.msk.f32.gmra.mxu3 %vm325_vm0, %v293_v57 }
  0x9f   : > { %v6488_v1 = vmax.f32 %v1332_v61, 0.0  ;;  %v6490_v2 = vmax.f32 %v1333_v62, 0.0 }
  0xa1   : > { %5640 = vrsqrt.f32 %v6488_v1  ;;  %v665_v4 = vpop.f32.mrf.mxu2  ;;  %v778_v5 = vpop.f32.mrf.mxu3  ;;  %vm1595_vm1 = vcmp.eq.f32.partialorder %v6488_v1, inf  ;;  %vm1597_vm2 = vcmp.eq.f32.partialorder %v6488_v1, 0.0  ;;  %v1598_v39 = vand.u32 2147483648, %v6488_v1 }
  0xa2   : > { %5642 = vrsqrt.f32 %v6490_v2  ;;  %v442_v9 = vpop.f32.mrf.mxu0  ;;  %v555_v10 = vpop.f32.mrf.mxu1  ;;  %v1206_v12 = vmul.f32 2.0, %v665_v4  ;;  %v1207_v13 = vmul.f32 2.0, %v778_v5  ;;  %vm1607_vm3 = vcmp.eq.f32.partialorder %v6490_v2, inf  ;;  %v295_v5 = vld [vmem:[%s6367_s8 + $0x90] sm:$0xff] }
  0xa3   : > { %v1208_v14 = vmul.f32 2.0, %v442_v9  ;;  %v1209_v15 = vmul.f32 2.0, %v555_v10  ;;  %vm1609_vm4 = vcmp.eq.f32.partialorder %v6490_v2, 0.0  ;;  %v1610_v46 = vand.u32 2147483648, %v6490_v2 }
  0xa4   : > { %v1334_v16 = vsub.f32 %v1078_v3, %v1206_v12  ;;  %v1335_v17 = vsub.f32 %v1079_v6, %v1207_v13 }
  0xa5   : > { %v1336_v18 = vsub.f32 %v1080_v7, %v1208_v14  ;;  %v1337_v19 = vsub.f32 %v1081_v8, %v1209_v15  ;;  %5460 = vmatmul.msk.f32.gmra.mxu0 %vm325_vm0, %v294_v11  ;;  %5492 = vmatmul.msk.f32.gmra.mxu1 %vm325_vm0, %v294_v11 }
  0xa6   : > { %5524 = vmatmul.msk.f32.gmra.mxu2 %vm325_vm0, %v294_v11  ;;  %v6502_v21 = vmax.f32 %v1334_v16, 0.0  ;;  %v6504_v22 = vmax.f32 %v1335_v17, 0.0  ;;  %5556 = vmatmul.msk.f32.gmra.mxu3 %vm325_vm0, %v294_v11  ;;  %v888_v17 = vld [vmem:[%s6372_s12 + $0x70] sm:$0xff] }
  0xa7   : > { %v5641_v20 = vpop.eup %5640  ;;  %v6506_v23 = vmax.f32 %v1336_v18, 0.0  ;;  %v6512_v27 = vmax.f32 %v1337_v19, 0.0  ;;  %979 = vperm.xlu2 %5639, %v888_v17  }
  0xa8   : > { %v5643_v24 = vpop.eup %5642  ;;  %v1589_v25 = vmul.f32 %v5641_v20, %v6488_v1  ;;  %5644 = vrsqrt.f32 %v6502_v21  ;;  %v1622_v53 = vand.u32 2147483648, %v6502_v21  ;;  %vm1619_vm5 = vcmp.eq.f32.partialorder %v6502_v21, inf }
  0xa9   : > { %v1601_v26 = vmul.f32 %v5643_v24, %v6490_v2  ;;  %5646 = vrsqrt.f32 %v6504_v22  ;;  %v668_v31 = vpop.f32.mrf.mxu2  ;;  %v781_v34 = vpop.f32.mrf.mxu3  ;;  %v1634_v3 = vand.u32 2147483648, %v6504_v22  ;;  %vm1621_vm6 = vcmp.eq.f32.partialorder %v6502_v21, 0.0 }
  0xaa   : > { %v1590_v28 = vmul.f32 %v5641_v20, %v1589_v25  ;;  %5648 = vrsqrt.f32 %v6506_v23  ;;  %v1210_v40 = vmul.f32 2.0, %v668_v31  ;;  %v1211_v43 = vmul.f32 2.0, %v781_v34  ;;  %v445_v16 = vpop.f32.mrf.mxu0 }
  0xab   : > { %v1602_v30 = vmul.f32 %v5643_v24, %v1601_v26  ;;  %5650 = vrsqrt.f32 %v6512_v27  ;;  %vm1631_vm7 = vcmp.eq.f32.partialorder %v6504_v22, inf  ;;  %vm1633_vm8 = vcmp.eq.f32.partialorder %v6504_v22, 0.0 }
  0xac   : > { %v1591_v32 = vmul.f32 0.5, %v1590_v28  ;;  %v1338_v48 = vsub.f32 %v1082_v33, %v1210_v40  ;;  %v1339_v4 = vsub.f32 %v6520_v35, %v1211_v43  ;;  %vm1643_vm9 = vcmp.eq.f32.partialorder %v6506_v23, inf }
  0xad   : > { %v1603_v36 = vmul.f32 0.5, %v1602_v30  ;;  %5461 = vmatmul.msk.f32.gmra.mxu0 %vm325_vm0, %v295_v5  ;;  %5493 = vmatmul.msk.f32.gmra.mxu1 %vm325_vm0, %v295_v5  ;;  %vm1645_vm10 = vcmp.eq.f32.partialorder %v6506_v23, 0.0  ;;  %v1212_v34 = vmul.f32 2.0, %v445_v16  ;;  %vm1655_vm11 = vcmp.eq.f32.partialorder %v6512_v27, inf }
  0xae   : > { %v1592_v38 = vsub.f32 1.5, %v1591_v32  ;;  %v5645_v41 = vpop.eup %5644  ;;  %v6542_v59 = vmax.f32 %v1338_v48, 0.0  ;;  %5525 = vmatmul.msk.f32.gmra.mxu2 %vm325_vm0, %v295_v5  ;;  %5557 = vmatmul.msk.f32.gmra.mxu3 %vm325_vm0, %v295_v5  ;;  %v6574_v30 = vmax.f32 %v1339_v4, 0.0  ;;  %vm1657_vm12 = vcmp.eq.f32.partialorder %v6512_v27, 0.0 }
  0xaf   : > { %v1604_v42 = vsub.f32 1.5, %v1603_v36  ;;  %v5647_v44 = vpop.eup %5646  ;;  %v1613_v47 = vmul.f32 %v5645_v41, %v6502_v21  ;;  %v1340_v48 = vsub.f32 %v6526_v37, %v1212_v34 }
  0xb0   : > { %v1593_v45 = vmul.f32 %v5641_v20, %v1592_v38  ;;  %v5649_v49 = vpop.eup %5648  ;;  %v1625_v54 = vmul.f32 %v5647_v44, %v6504_v22  ;;  %5652 = vrsqrt.f32 %v6542_v59  ;;  %v1646_v20 = vand.u32 2147483648, %v6506_v23 }
  0xb1   : > { %v1605_v50 = vmul.f32 %v5643_v24, %v1604_v42  ;;  %v1614_v57 = vmul.f32 %v5645_v41, %v1613_v47  ;;  %v1637_v58 = vmul.f32 %v5649_v49, %v6506_v23  ;;  %v5651_v61 = vpop.eup %5650  ;;  %vm1667_vm13 = vcmp.eq.f32.partialorder %v6542_v59, inf }
  0xb2   : > { %v1594_v56 = vmul.f32 %v1593_v45, %v6488_v1  ;;  %v1626_v0 = vmul.f32 %v5647_v44, %v1625_v54  ;;  %v1649_v9 = vmul.f32 %v5651_v61, %v6512_v27  ;;  %vm1669_vm15 = vcmp.eq.f32.partialorder %v6542_v59, 0.0 }
  0xb3   : > { %v1606_v62 = vmul.f32 %v1605_v50, %v6490_v2  ;;  %v1615_v7 = vmul.f32 0.5, %v1614_v57  ;;  %v1638_v8 = vmul.f32 %v5649_v49, %v1637_v58  ;;  %v1658_v58 = vand.u32 2147483648, %v6512_v27 }
  0xb4   : > { %v1596_v6 = vsel %vm1595_vm1, %v6488_v1, %v1594_v56  ;;  %v1627_v12 = vmul.f32 0.5, %v1626_v0  ;;  %v1650_v24 = vmul.f32 %v5651_v61, %v1649_v9  ;;  %v1670_v9 = vand.u32 2147483648, %v6542_v59 }
  0xb5   : > { %v1599_v10 = vsel %vm1597_vm2, %v1598_v39, %v1596_v6  ;;  %v1608_v11 = vsel %vm1607_vm3, %v6490_v2, %v1606_v62  ;;  %v1616_v14 = vsub.f32 1.5, %v1615_v7  ;;  %v1639_v15 = vmul.f32 0.5, %v1638_v8  ;;  %v558_v2 = vpop.f32.mrf.mxu1 }
  0xb6   : > { %v3124_v13 = vmul.f32 1.1085125, %v1599_v10  ;;  %v1611_v1 = vsel %vm1609_vm4, %v1610_v46, %v1608_v11  ;;  %v1628_v19 = vsub.f32 1.5, %v1627_v12  ;;  %v1651_v33 = vmul.f32 0.5, %v1650_v24  ;;  %v5653_v38 = vpop.eup %5652 }
  0xb7   : > { %v3125_v18 = vmul.f32 1.1085125, %v1611_v1  ;;  %v1617_v26 = vmul.f32 %v5645_v41, %v1616_v14  ;;  %v1640_v28 = vsub.f32 1.5, %v1639_v15  ;;  %v6584_v41 = vmul.f32 2.0, %v558_v2 }
  0xb8   : > { %v6572_v25 = vadd.f32 1.0, %v3124_v13  ;;  %v1629_v32 = vmul.f32 %v5647_v44, %v1628_v19  ;;  %v1652_v40 = vsub.f32 1.5, %v1651_v33  ;;  %v1661_v44 = vmul.f32 %v5653_v38, %v6542_v59 }
  0xb9   : > { %v6576_v31 = vadd.f32 1.0, %v3125_v18  ;;  %v1618_v35 = vmul.f32 %v1617_v26, %v6502_v21  ;;  %v1641_v36 = vmul.f32 %v5649_v49, %v1640_v28  ;;  %v6619_v6 = vmax.f32 %v1340_v48, 0.0 }
  0xba   : > { %5654 = vrsqrt.f32 %v6572_v25  ;;  %v1630_v39 = vmul.f32 %v1629_v32, %v6504_v22  ;;  %v1653_v47 = vmul.f32 %v5651_v61, %v1652_v40  ;;  %v1662_v56 = vmul.f32 %v5653_v38, %v1661_v44 }
  0xbb   : > { %5656 = vrsqrt.f32 %v6576_v31  ;;  %v1620_v42 = vsel %vm1619_vm5, %v6502_v21, %v1618_v35  ;;  %v1642_v43 = vmul.f32 %v1641_v36, %v6506_v23  ;;  %vm3386_vm14 = vweird.f32 %v6572_v25 }
  0xbc   : > { %5658 = vrsqrt.f32 %v6574_v30  ;;  %v1623_v45 = vsel %vm1621_vm6, %v1622_v53, %v1620_v42  ;;  %v1632_v46 = vsel %vm1631_vm7, %v6504_v22, %v1630_v39  ;;  %v1654_v53 = vmul.f32 %v1653_v47, %v6512_v27 }
  0xbd   : > { %v3126_v49 = vmul.f32 1.1085125, %v1623_v45  ;;  %v1635_v50 = vsel %vm1633_vm8, %v1634_v3, %v1632_v46  ;;  %v1644_v54 = vsel %vm1643_vm9, %v6506_v23, %v1642_v43  ;;  %v1663_v0 = vmul.f32 0.5, %v1662_v56  ;;  %v892_v56 = vld [vmem:[%s6372_s12 + $0x90] sm:$0xff] }
  0xbe   : > { %v3127_v57 = vmul.f32 1.1085125, %v1635_v50  ;;  %v1647_v21 = vsel %vm1645_vm10, %v1646_v20, %v1644_v54  ;;  %v1341_v22 = vsub.f32 %v6538_v55, %v6584_v41  ;;  %v1656_v23 = vsel %vm1655_vm11, %v6512_v27, %v1654_v53  ;;  %v893_v54 = vld [vmem:[%s6372_s12 + $0x98] sm:$0xff]  ;;  %999 = vperm.xlu0 %5637, %v892_v56   ;;  %v784_v56 = vpop.f32.mrf.mxu3 }
  0xbf   : > { %v6609_v62 = vadd.f32 1.0, %v3126_v49  ;;  %v3128_v37 = vmul.f32 1.1085125, %v1647_v21  ;;  %v1659_v13 = vsel %vm1657_vm12, %v1658_v58, %v1656_v23  ;;  %v1664_v1 = vsub.f32 1.5, %v1663_v0  ;;  %1004 = vperm.xlu1 %5638, %v893_v54  }
  0xc0   : > { %v5655_v61 = vpop.eup %5654  ;;  %v6614_v5 = vadd.f32 1.0, %v3127_v57  ;;  %vm3396_vm1 = vweird.f32 %v6576_v31  ;;  %v3129_v16 = vmul.f32 1.1085125, %v1659_v13  ;;  %v1682_v20 = vand.u32 2147483648, %v6574_v30 }
  0xc1   : > { %v5657_v3 = vpop.eup %5656  ;;  %v3381_v4 = vmul.f32 %v5655_v61, %v6572_v25  ;;  %5660 = vrsqrt.f32 %v6609_v62  ;;  %v6629_v11 = vadd.f32 1.0, %v3128_v37  ;;  %v1665_v18 = vmul.f32 %v5653_v38, %v1664_v1 }
  0xc2   : > { %v6621_v7 = vpop.eup %5658  ;;  %v3391_v8 = vmul.f32 %v5657_v3, %v6576_v31  ;;  %5662 = vrsqrt.f32 %v6614_v5  ;;  %vm3387_vm2 = vweird.f32 %v5655_v61  ;;  %vm3397_vm3 = vweird.f32 %v5657_v3  ;;  %v296_v31 = vld [vmem:[%s6367_s8 + $0x98] sm:$0xff] }
  0xc3   : > { %v3382_v10 = vmul.f32 %v5655_v61, %v3381_v4  ;;  %v1673_v14 = vmul.f32 %v6621_v7, %v6574_v30  ;;  %5664 = vrsqrt.f32 %v6629_v11  ;;  %v6640_v24 = vadd.f32 1.0, %v3129_v16  ;;  %vm3388_vm5 = vmor %vm3386_vm14, %vm3387_vm2  ;;  %5462 = vmatmul.msk.f32.gmra.mxu0 %vm325_vm0, %v296_v31  ;;  %5494 = vmatmul.msk.f32.gmra.mxu1 %vm325_vm0, %v296_v31 }
  0xc4   : > { %v3392_v12 = vmul.f32 %v5657_v3, %v3391_v8  ;;  %v1666_v2 = vmul.f32 %v1665_v18, %v6542_v59  ;;  %5666 = vrsqrt.f32 %v6619_v6  ;;  %vm3406_vm4 = vweird.f32 %v6609_v62  ;;  %vm3398_vm8 = vmor %vm3396_vm1, %vm3397_vm3  ;;  %5526 = vmatmul.msk.f32.gmra.mxu2 %vm325_vm0, %v296_v31  ;;  %5558 = vmatmul.msk.f32.gmra.mxu3 %vm325_vm0, %v296_v31 }
  0xc5   : > { %v3383_v15 = vmul.f32 0.5, %v3382_v10  ;;  %v1674_v19 = vmul.f32 %v6621_v7, %v1673_v14  ;;  %5668 = vrsqrt.f32 %v6640_v24  ;;  %vm3416_vm7 = vweird.f32 %v6614_v5 }
  0xc6   : > { %v3393_v17 = vmul.f32 0.5, %v3392_v12  ;;  %v1668_v42 = vsel %vm1667_vm13, %v6542_v59, %v1666_v2  ;;  %vm3426_vm9 = vweird.f32 %v6629_v11  ;;  %vm1679_vm11 = vcmp.eq.f32.partialorder %v6574_v30, inf }
  0xc7   : > { %v3384_v27 = vsub.f32 1.5, %v3383_v15  ;;  %v6642_v26 = vpop.eup %5660  ;;  %v1675_v32 = vmul.f32 0.5, %v1674_v19  ;;  %v1671_v50 = vsel %vm1669_vm15, %v1670_v9, %v1668_v42  ;;  %vm1681_vm13 = vcmp.eq.f32.partialorder %v6574_v30, 0.0 }
  0xc8   : > { %v3394_v28 = vsub.f32 1.5, %v3393_v17  ;;  %v6646_v33 = vpop.eup %5662  ;;  %v3401_v35 = vmul.f32 %v6642_v26, %v6609_v62  ;;  %vm3407_vm6 = vweird.f32 %v6642_v26  ;;  %vm3436_vm1 = vweird.f32 %v6640_v24 }
  0xc9   : > { %v3385_v34 = vmul.f32 %v5655_v61, %v3384_v27  ;;  %v3411_v38 = vmul.f32 %v6646_v33, %v6614_v5  ;;  %v6658_v39 = vpop.eup %5664  ;;  %v1676_v43 = vsub.f32 1.5, %v1675_v32  ;;  %vm3417_vm10 = vweird.f32 %v6646_v33  ;;  %vm3408_vm14 = vmor %vm3406_vm4, %vm3407_vm6 }
  0xca   : > { %v3395_v36 = vmul.f32 %v5657_v3, %v3394_v28  ;;  %v3402_v25 = vmul.f32 %v6642_v26, %v3401_v35  ;;  %v3421_v47 = vmul.f32 %v6658_v39, %v6629_v11  ;;  %v6680_v57 = vpop.eup %5666  ;;  %vm3427_vm12 = vweird.f32 %v6658_v39  ;;  %vm3418_vm15 = vmor %vm3416_vm7, %vm3417_vm10 }
  0xcb   : > { %v3389_v40 = vsel %vm3388_vm5, %v5655_v61, %v3385_v34  ;;  %v3412_v46 = vmul.f32 %v6646_v33, %v3411_v38  ;;  %v3130_v61 = vmul.f32 1.1085125, %v1671_v50  ;;  %v5669_v59 = vpop.eup %5668  ;;  %v1685_v1 = vmul.f32 %v6680_v57, %v6619_v6  ;;  %vm3428_vm2 = vmor %vm3426_vm9, %vm3427_vm12 }
  0xcc   : > { %v4660_v44 = vmul.f32 %v3389_v40, %v3389_v40  ;;  %v3399_v45 = vsel %vm3398_vm8, %v5657_v3, %v3395_v36  ;;  %v3403_v49 = vmul.f32 0.5, %v3402_v25  ;;  %v3422_v58 = vmul.f32 %v6658_v39, %v3421_v47 }
  0xcd   : > { %v4661_v48 = vmul.f32 %v3399_v45, %v3399_v45  ;;  %v3413_v53 = vmul.f32 0.5, %v3412_v46  ;;  %v1677_v3 = vmul.f32 %v6621_v7, %v1676_v43  ;;  %v3431_v9 = vmul.f32 %v5669_v59, %v6640_v24 }
  0xce   : > { %v4788_v21 = vmul.f32 %v4660_v44, %v4660_v44  ;;  %v3404_v0 = vsub.f32 1.5, %v3403_v49  ;;  %v3423_v8 = vmul.f32 0.5, %v3422_v58  ;;  %v6695_v13 = vadd.f32 1.0, %v3130_v61  ;;  %v671_v49 = vpop.f32.mrf.mxu2 }
  0xcf   : > { %v4789_v37 = vmul.f32 %v4661_v48, %v4661_v48  ;;  %v3414_v23 = vsub.f32 1.5, %v3413_v53  ;;  %v3432_v16 = vmul.f32 %v5669_v59, %v3431_v9  ;;  %v1678_v5 = vmul.f32 %v1677_v3, %v6574_v30 }
  0xd0   : > { %v4916_v4 = vmul.f32 %v4788_v21, %v3389_v40  ;;  %v3405_v12 = vmul.f32 %v6642_v26, %v3404_v0  ;;  %v3424_v15 = vsub.f32 1.5, %v3423_v8  ;;  %5670 = vrsqrt.f32 %v6695_v13 }
  0xd1   : > { %v4917_v10 = vmul.f32 %v4789_v37, %v3399_v45  ;;  %v3415_v7 = vmul.f32 %v6646_v33, %v3414_v23  ;;  %v1686_v2 = vmul.f32 %v6680_v57, %v1685_v1  ;;  %v6727_v32 = vmax.f32 %v1341_v22, 0.0  ;;  %v448_v1 = vpop.f32.mrf.mxu0 }
  0xd2   : > { %v5044_v14 = vmul.f32 0.81, %v4916_v4  ;;  %v3409_v18 = vsel %vm3408_vm14, %v6642_v26, %v3405_v12  ;;  %v3425_v27 = vmul.f32 %v6658_v39, %v3424_v15  ;;  %v3433_v26 = vmul.f32 0.5, %v3432_v16  ;;  %v6760_v12 = vpop.permute.xlu1 %924 }
  0xd3   : > { %v5045_v17 = vmul.f32 0.81, %v4917_v10  ;;  %v4662_v62 = vmul.f32 %v3409_v18, %v3409_v18  ;;  %v3419_v19 = vsel %vm3418_vm15, %v6646_v33, %v3415_v7  ;;  %vm3437_vm3 = vweird.f32 %v5669_v59 }
  0xd4   : > { %5172 = vst [vmem:[%s6712_s22] sm:$0xff] %v5044_v14  ;;  %v4663_v28 = vmul.f32 %v3419_v19, %v3419_v19  ;;  %v3429_v34 = vsel %vm3428_vm2, %v6658_v39, %v3425_v27  ;;  %v3434_v35 = vsub.f32 1.5, %v3433_v26  ;;  %v1680_v11 = vsel %vm1679_vm11, %v6574_v30, %v1678_v5  ;;  %vm3438_vm4 = vmor %vm3436_vm1, %vm3437_vm3 }
  0xd5   : > { %5173 = vst [vmem:[%s6712_s22 + $0x8] sm:$0xff] %v5045_v17  ;;  %v4790_v33 = vmul.f32 %v4662_v62, %v4662_v62  ;;  %v4664_v38 = vmul.f32 %v3429_v34, %v3429_v34  ;;  %v1687_v40 = vmul.f32 0.5, %v1686_v2  ;;  %v1683_v55 = vsel %vm1681_vm13, %v1682_v20, %v1680_v11  ;;  %v561_v62 = vpop.f32.mrf.mxu1 }
  0xd6   : > { %v4791_v36 = vmul.f32 %v4663_v28, %v4663_v28  ;;  %v3435_v42 = vmul.f32 %v5669_v59, %v3434_v35  ;;  %5672 = vrsqrt.f32 %v6727_v32  ;;  %v5671_v41 = vpop.eup %5670  ;;  %v3131_v43 = vmul.f32 1.1085125, %v1683_v55 }
  0xd7   : > { %v4918_v25 = vmul.f32 %v4790_v33, %v3409_v18  ;;  %v4792_v39 = vmul.f32 %v4664_v38, %v4664_v38  ;;  %v1688_v44 = vsub.f32 1.5, %v1687_v40  ;;  %v3441_v47 = vmul.f32 %v5671_v41, %v6695_v13 }
  0xd8   : > { %v4919_v22 = vmul.f32 %v4791_v36, %v3419_v19  ;;  %v3439_v46 = vsel %vm3438_vm4, %v5669_v59, %v3435_v42  ;;  %v6741_v20 = vadd.f32 1.0, %v3131_v43  ;;  %vm1691_vm5 = vcmp.eq.f32.partialorder %v6619_v6, inf  ;;  %v674_v42 = vpop.f32.mrf.mxu2 }
  0xd9   : > { %v5046_v45 = vmul.f32 0.81, %v4918_v25  ;;  %v4920_v48 = vmul.f32 %v4792_v39, %v3429_v34  ;;  %v4665_v30 = vmul.f32 %v3439_v46, %v3439_v46  ;;  %v3442_v50 = vmul.f32 %v5671_v41, %v3441_v47 }
  0xda   : > { %v5047_v31 = vmul.f32 0.81, %v4919_v22  ;;  %v1689_v54 = vmul.f32 %v6680_v57, %v1688_v44  ;;  %v1086_v24 = vadd.f32 %v6480_v60, %v6515_v29  ;;  %5674 = vrsqrt.f32 %v6741_v20 }
  0xdb   : > { %5174 = vst [vmem:[%s6712_s22 + $0x10] sm:$0xff] %v5046_v45  ;;  %v5048_v21 = vmul.f32 0.81, %v4920_v48  ;;  %v4793_v53 = vmul.f32 %v4665_v30, %v4665_v30  ;;  %vm1693_vm6 = vcmp.eq.f32.partialorder %v6619_v6, 0.0  ;;  %v3443_v61 = vmul.f32 0.5, %v3442_v50 }
  0xdc   : > { %5175 = vst [vmem:[%s6712_s22 + $0x18] sm:$0xff] %v5047_v31  ;;  %v5673_v58 = vpop.eup %5672  ;;  %v1690_v59 = vmul.f32 %v1689_v54, %v6619_v6  ;;  %v1694_v37 = vand.u32 2147483648, %v6619_v6  ;;  %v1214_v57 = vmul.f32 2.0, %v671_v49  ;;  %v1087_v4 = vadd.f32 %v6484_v63, %v6515_v29 }
  0xdd   : > { %5176 = vst [vmem:[%s6712_s22 + $0x20] sm:$0xff] %v5048_v21  ;;  %v4921_v0 = vmul.f32 %v4793_v53, %v3439_v46  ;;  %v1697_v3 = vmul.f32 %v5673_v58, %v6727_v32  ;;  %v1215_v23 = vmul.f32 2.0, %v784_v56  ;;  %v3444_v8 = vsub.f32 1.5, %v3443_v61 }
  0xde   : > { %vm3447_vm7 = vweird.f32 %v5671_v41  ;;  %v1692_v9 = vsel %vm1691_vm5, %v6619_v6, %v1690_v59  ;;  %v1342_v10 = vsub.f32 %v1086_v24, %v1214_v57  ;;  %vm3446_vm8 = vweird.f32 %v6695_v13 }
  0xdf   : > { %v5049_v14 = vmul.f32 0.81, %v4921_v0  ;;  %v1695_v7 = vsel %vm1693_vm6, %v1694_v37, %v1692_v9  ;;  %v1698_v15 = vmul.f32 %v5673_v58, %v1697_v3  ;;  %v1343_v16 = vsub.f32 %v1087_v4, %v1215_v23  ;;  %vm3448_vm9 = vmor %vm3446_vm8, %vm3447_vm7  ;;  %v297_v37 = vld [vmem:[%s6367_s8 + $0xa0] sm:$0xff]  ;;  %v896_v4 = vld [vmem:[%s6372_s12 + $0xb0] sm:$0xff] }
  0xe0   : > { %v3445_v17 = vmul.f32 %v5671_v41, %v3444_v8  ;;  %v3132_v29 = vmul.f32 1.1085125, %v1695_v7  ;;  %v6765_v18 = vmax.f32 %v1342_v10, 0.0  ;;  %v5675_v19 = vpop.eup %5674  ;;  %v1088_v6 = vadd.f32 %v6471_v51, %v6760_v12  ;;  %5463 = vmatmul.msk.f32.gmra.mxu0 %vm325_vm0, %v297_v37  ;;  %5495 = vmatmul.msk.f32.gmra.mxu1 %vm325_vm0, %v297_v37  ;;  %v895_v23 = vld [vmem:[%s6372_s12 + $0xa8] sm:$0xff] }
  0xe1   : > { %5177 = vst [vmem:[%s6712_s22 + $0x28] sm:$0xff] %v5049_v14  ;;  %v1699_v27 = vmul.f32 0.5, %v1698_v15  ;;  %v6769_v26 = vmax.f32 %v1343_v16, 0.0  ;;  %v1216_v28 = vmul.f32 2.0, %v448_v1  ;;  %v3451_v2 = vmul.f32 %v5675_v19, %v6741_v20  ;;  %5527 = vmatmul.msk.f32.gmra.mxu2 %vm325_vm0, %v297_v37  ;;  %5559 = vmatmul.msk.f32.gmra.mxu3 %vm325_vm0, %v297_v37  ;;  %v787_v14 = vpop.f32.mrf.mxu3 }
  0xe2   : > { %v3449_v5 = vsel %vm3448_vm9, %v5671_v41, %v3445_v17  ;;  %v6774_v33 = vadd.f32 1.0, %v3132_v29  ;;  %v1089_v13 = vadd.f32 %v6473_v52, %v6760_v12  ;;  %5676 = vrsqrt.f32 %v6765_v18  ;;  %1019 = vperm.xlu1 %5638, %v896_v4   ;;  %1014 = vperm.xlu0 %5637, %v895_v23  }
  0xe3   : > { %v4666_v34 = vmul.f32 %v3449_v5, %v3449_v5  ;;  %v1700_v35 = vsub.f32 1.5, %v1699_v27  ;;  %v1217_v36 = vmul.f32 2.0, %v561_v62  ;;  %v3452_v38 = vmul.f32 %v5675_v19, %v3451_v2 }
  0xe4   : > { %5678 = vrsqrt.f32 %v6774_v33  ;;  %vm3456_vm10 = vweird.f32 %v6741_v20  ;;  %vm1703_vm11 = vcmp.eq.f32.partialorder %v6727_v32, inf  ;;  %vm1705_vm12 = vcmp.eq.f32.partialorder %v6727_v32, 0.0 }
  0xe5   : > { %v4794_v11 = vmul.f32 %v4666_v34, %v4666_v34  ;;  %v1701_v40 = vmul.f32 %v5673_v58, %v1700_v35  ;;  %5680 = vrsqrt.f32 %v6769_v26  ;;  %v3453_v25 = vmul.f32 0.5, %v3452_v38 }
  0xe6   : > { %v1344_v22 = vsub.f32 %v1088_v6, %v1216_v28  ;;  %v1345_v39 = vsub.f32 %v1089_v13, %v1217_v36  ;;  %vm3457_vm13 = vweird.f32 %v5675_v19  ;;  %v1706_v44 = vand.u32 2147483648, %v6727_v32 }
  0xe7   : > { %v4922_v55 = vmul.f32 %v4794_v11, %v3449_v5  ;;  %v1702_v41 = vmul.f32 %v1701_v40, %v6727_v32  ;;  %v3454_v43 = vsub.f32 1.5, %v3453_v25  ;;  %v1090_v45 = vadd.f32 %v6480_v60, %v6760_v12  ;;  %vm3458_vm14 = vmor %vm3456_vm10, %vm3457_vm13 }
  0xe8   : > { %v5677_v46 = vpop.eup %5676  ;;  %v6789_v48 = vmax.f32 %v1344_v22, 0.0  ;;  %v1218_v30 = vmul.f32 2.0, %v674_v42  ;;  %v6796_v56 = vmax.f32 %v1345_v39, 0.0  ;;  %vm1715_vm15 = vcmp.eq.f32.partialorder %v6765_v18, inf }
  0xe9   : > { %v5050_v47 = vmul.f32 0.81, %v4922_v55  ;;  %v1704_v31 = vsel %vm1703_vm11, %v6727_v32, %v1702_v41  ;;  %v3455_v50 = vmul.f32 %v5675_v19, %v3454_v43  ;;  %v1709_v24 = vmul.f32 %v5677_v46, %v6765_v18 }
  0xea   : > { %v6791_v49 = vpop.eup %5678  ;;  %v1707_v54 = vsel %vm1705_vm12, %v1706_v44, %v1704_v31  ;;  %5682 = vrsqrt.f32 %v6789_v48  ;;  %v1346_v20 = vsub.f32 %v1090_v45, %v1218_v30  ;;  %vm3466_vm1 = vweird.f32 %v6774_v33 }
  0xeb   : > { %v5681_v21 = vpop.eup %5680  ;;  %5178 = vst [vmem:[%s6712_s22 + $0x30] sm:$0xff] %v5050_v47  ;;  %v3461_v53 = vmul.f32 %v6791_v49, %v6774_v33  ;;  %v3133_v58 = vmul.f32 1.1085125, %v1707_v54  ;;  %v3459_v32 = vsel %vm3458_vm14, %v5675_v19, %v3455_v50  ;;  %v1710_v61 = vmul.f32 %v5677_v46, %v1709_v24 }
  0xec   : > { %v1721_v59 = vmul.f32 %v5681_v21, %v6769_v26  ;;  %v4667_v57 = vmul.f32 %v3459_v32, %v3459_v32  ;;  %5684 = vrsqrt.f32 %v6796_v56  ;;  %vm1717_vm2 = vcmp.eq.f32.partialorder %v6765_v18, 0.0 }
  0xed   : > { %v3462_v0 = vmul.f32 %v6791_v49, %v3461_v53  ;;  %v6808_v3 = vadd.f32 1.0, %v3133_v58  ;;  %v1711_v8 = vmul.f32 0.5, %v1710_v61  ;;  %v1718_v15 = vand.u32 2147483648, %v6765_v18 }
  0xee   : > { %v1722_v9 = vmul.f32 %v5681_v21, %v1721_v59  ;;  %v4795_v10 = vmul.f32 %v4667_v57, %v4667_v57  ;;  %v1091_v17 = vadd.f32 %v6484_v63, %v6760_v12  ;;  %vm3467_vm3 = vweird.f32 %v6791_v49 }
  0xef   : > { %v3463_v1 = vmul.f32 0.5, %v3462_v0  ;;  %5686 = vrsqrt.f32 %v6808_v3  ;;  %v1712_v7 = vsub.f32 1.5, %v1711_v8  ;;  %v6825_v27 = vmax.f32 %v1346_v20, 0.0  ;;  %vm3468_vm5 = vmor %vm3466_vm1, %vm3467_vm3 }
  0xf0   : > { %v1723_v16 = vmul.f32 0.5, %v1722_v9  ;;  %v5683_v29 = vpop.eup %5682  ;;  %v4923_v62 = vmul.f32 %v4795_v10, %v3459_v32  ;;  %v1219_v2 = vmul.f32 2.0, %v787_v14  ;;  %vm1727_vm4 = vcmp.eq.f32.partialorder %v6769_v26, inf  ;;  %v6864_v10 = vpop.permute.xlu2 %929 }
  0xf1   : > { %v3464_v19 = vsub.f32 1.5, %v3463_v1  ;;  %v1713_v6 = vmul.f32 %v5677_v46, %v1712_v7  ;;  %v1733_v5 = vmul.f32 %v5683_v29, %v6789_v48  ;;  %5688 = vrsqrt.f32 %v6825_v27  ;;  %v451_v1 = vpop.f32.mrf.mxu0 }
  0xf2   : > { %v1724_v28 = vsub.f32 1.5, %v1723_v16  ;;  %v5051_v13 = vmul.f32 0.81, %v4923_v62  ;;  %v5685_v12 = vpop.eup %5684  ;;  %vm1729_vm6 = vcmp.eq.f32.partialorder %v6769_v26, 0.0  ;;  %v1730_v25 = vand.u32 2147483648, %v6769_v26  ;;  %v564_v16 = vpop.f32.mrf.mxu1 }
  0xf3   : > { %v3465_v34 = vmul.f32 %v6791_v49, %v3464_v19  ;;  %v1714_v35 = vmul.f32 %v1713_v6, %v6765_v18  ;;  %v1734_v38 = vmul.f32 %v5683_v29, %v1733_v5  ;;  %v1745_v42 = vmul.f32 %v5685_v12, %v6796_v56 }
  0xf4   : > { %v1725_v36 = vmul.f32 %v5681_v21, %v1724_v28  ;;  %5179 = vst [vmem:[%s6712_s22 + $0x38] sm:$0xff] %v5051_v13  ;;  %v1347_v55 = vsub.f32 %v1091_v17, %v1219_v2  ;;  %vm1739_vm7 = vcmp.eq.f32.partialorder %v6789_v48, inf  ;;  %v1742_v39 = vand.u32 2147483648, %v6789_v48 }
  0xf5   : > { %v5687_v11 = vpop.eup %5686  ;;  %v3469_v40 = vsel %vm3468_vm5, %v6791_v49, %v3465_v34  ;;  %v1716_v33 = vsel %vm1715_vm15, %v6765_v18, %v1714_v35  ;;  %v1735_v45 = vmul.f32 0.5, %v1734_v38  ;;  %vm1741_vm8 = vcmp.eq.f32.partialorder %v6789_v48, 0.0 }
  0xf6   : > { %v4668_v41 = vmul.f32 %v3469_v40, %v3469_v40  ;;  %v3471_v22 = vmul.f32 %v5687_v11, %v6808_v3  ;;  %v1719_v43 = vsel %vm1717_vm2, %v1718_v15, %v1716_v33  ;;  %v1726_v44 = vmul.f32 %v1725_v36, %v6769_v26 }
  0xf7   : > { %v1746_v46 = vmul.f32 %v5685_v12, %v1745_v42  ;;  %vm3476_vm9 = vweird.f32 %v6808_v3  ;;  %v3134_v30 = vmul.f32 1.1085125, %v1719_v43  ;;  %v5689_v49 = vpop.eup %5688  ;;  %v1736_v54 = vsub.f32 1.5, %v1735_v45 }
  0xf8   : > { %v4796_v47 = vmul.f32 %v4668_v41, %v4668_v41  ;;  %v3472_v31 = vmul.f32 %v5687_v11, %v3471_v22  ;;  %v1728_v50 = vsel %vm1727_vm4, %v6769_v26, %v1726_v44  ;;  %v6853_v18 = vmax.f32 %v1347_v55, 0.0 }
  0xf9   : > { %v1747_v24 = vmul.f32 0.5, %v1746_v46  ;;  %v6855_v58 = vadd.f32 1.0, %v3134_v30  ;;  %v1731_v32 = vsel %vm1729_vm6, %v1730_v25, %v1728_v50  ;;  %v1737_v59 = vmul.f32 %v5683_v29, %v1736_v54  ;;  %v298_v50 = vld [vmem:[%s6367_s8 + $0xa8] sm:$0xff] }
  0xfa   : > { %v4924_v21 = vmul.f32 %v4796_v47, %v3469_v40  ;;  %v3473_v53 = vmul.f32 0.5, %v3472_v31  ;;  %v3135_v61 = vmul.f32 1.1085125, %v1731_v32  ;;  %v1757_v57 = vmul.f32 %v5689_v49, %v6825_v27  ;;  %5464 = vmatmul.msk.f32.gmra.mxu0 %vm325_vm0, %v298_v50  ;;  %5496 = vmatmul.msk.f32.gmra.mxu1 %vm325_vm0, %v298_v50  ;;  %v898_v32 = vld [vmem:[%s6372_s12 + $0xc0] sm:$0xff] }
  0xfb   : > { %v1748_v37 = vsub.f32 1.5, %v1747_v24  ;;  %vm3477_vm10 = vweird.f32 %v5687_v11  ;;  %5690 = vrsqrt.f32 %v6855_v58  ;;  %v1738_v23 = vmul.f32 %v1737_v59, %v6789_v48  ;;  %5528 = vmatmul.msk.f32.gmra.mxu2 %vm325_vm0, %v298_v50  ;;  %5560 = vmatmul.msk.f32.gmra.mxu3 %vm325_vm0, %v298_v50 }
  0xfc   : > { %v5052_v0 = vmul.f32 0.81, %v4924_v21  ;;  %v3474_v20 = vsub.f32 1.5, %v3473_v53  ;;  %v6861_v4 = vadd.f32 1.0, %v3135_v61  ;;  %v1758_v9 = vmul.f32 %v5689_v49, %v1757_v57  ;;  %vm3478_vm13 = vmor %vm3476_vm9, %vm3477_vm10  ;;  %v899_v53 = vld [vmem:[%s6372_s12 + $0xc8] sm:$0xff]  ;;  %1029 = vperm.xlu0 %5637, %v898_v32  }
  0xfd   : > { %v1749_v8 = vmul.f32 %v5685_v12, %v1748_v37  ;;  %vm1751_vm11 = vcmp.eq.f32.partialorder %v6796_v56, inf  ;;  %vm1753_vm12 = vcmp.eq.f32.partialorder %v6796_v56, 0.0  ;;  %5692 = vrsqrt.f32 %v6853_v18  ;;  %1034 = vperm.xlu1 %5638, %v899_v53  }
  0xfe   : > { %5180 = vst [vmem:[%s6712_s22 + $0x40] sm:$0xff] %v5052_v0  ;;  %v3475_v26 = vmul.f32 %v5687_v11, %v3474_v20  ;;  %5694 = vrsqrt.f32 %v6861_v4  ;;  %v1740_v14 = vsel %vm1739_vm7, %v6789_v48, %v1738_v23  ;;  %v1754_v15 = vand.u32 2147483648, %v6796_v56  ;;  %v891_v20 = vld [vmem:[%s6372_s12 + $0x88] sm:$0xff] }
  0xff   : > { %v1750_v7 = vmul.f32 %v1749_v8, %v6796_v56  ;;  %v1743_v29 = vsel %vm1741_vm8, %v1742_v39, %v1740_v14  ;;  %v1759_v62 = vmul.f32 0.5, %v1758_v9  ;;  %v1092_v3 = vadd.f32 %v6471_v51, %v6864_v10  ;;  %994 = vperm.xlu2 %5639, %v891_v20  }
 0x100   : > { %v3479_v17 = vsel %vm3478_vm13, %v5687_v11, %v3475_v26  ;;  %v3136_v6 = vmul.f32 1.1085125, %v1743_v29  ;;  %v1220_v5 = vmul.f32 2.0, %v451_v1  ;;  %v1093_v48 = vadd.f32 %v6473_v52, %v6864_v10 }
 0x101   : > { %v4669_v19 = vmul.f32 %v3479_v17, %v3479_v17  ;;  %v1752_v28 = vsel %vm1751_vm11, %v6796_v56, %v1750_v7  ;;  %v6885_v2 = vpop.eup %5690  ;;  %v1760_v34 = vsub.f32 1.5, %v1759_v62  ;;  %v1221_v12 = vmul.f32 2.0, %v564_v16 }
 0x102   : > { %v1755_v13 = vsel %vm1753_vm12, %v1754_v15, %v1752_v28  ;;  %v3481_v36 = vmul.f32 %v6885_v2, %v6855_v58  ;;  %v6893_v38 = vadd.f32 1.0, %v3136_v6  ;;  %vm1763_vm14 = vcmp.eq.f32.partialorder %v6825_v27, inf }
 0x103   : > { %v4797_v35 = vmul.f32 %v4669_v19, %v4669_v19  ;;  %v6896_v11 = vpop.eup %5692  ;;  %v3137_v40 = vmul.f32 1.1085125, %v1755_v13  ;;  %v1761_v25 = vmul.f32 %v5689_v49, %v1760_v34  ;;  %vm1765_vm15 = vcmp.eq.f32.partialorder %v6825_v27, 0.0 }
 0x104   : > { %v1348_v56 = vsub.f32 %v1092_v3, %v1220_v5  ;;  %v6899_v42 = vpop.eup %5694  ;;  %v3482_v41 = vmul.f32 %v6885_v2, %v3481_v36  ;;  %5696 = vrsqrt.f32 %v6893_v38  ;;  %v1766_v22 = vand.u32 2147483648, %v6825_v27 }
 0x105   : > { %v4925_v55 = vmul.f32 %v4797_v35, %v3479_v17  ;;  %v3491_v33 = vmul.f32 %v6899_v42, %v6861_v4  ;;  %v6906_v39 = vadd.f32 1.0, %v3137_v40  ;;  %v1762_v43 = vmul.f32 %v1761_v25, %v6825_v27 }
 0x106   : > { %v1349_v44 = vsub.f32 %v1093_v48, %v1221_v12  ;;  %v3483_v46 = vmul.f32 0.5, %v3482_v41  ;;  %v1769_v47 = vmul.f32 %v6896_v11, %v6853_v18  ;;  %v6911_v31 = vmax.f32 %v1348_v56, 0.0 }
 0x107   : > { %v5053_v45 = vmul.f32 0.81, %v4925_v55  ;;  %vm3487_vm1 = vweird.f32 %v6885_v2  ;;  %v3492_v30 = vmul.f32 %v6899_v42, %v3491_v33  ;;  %5698 = vrsqrt.f32 %v6906_v39 }
 0x108   : > { %v1764_v49 = vsel %vm1763_vm14, %v6825_v27, %v1762_v43  ;;  %v3484_v54 = vsub.f32 1.5, %v3483_v46  ;;  %v1770_v21 = vmul.f32 %v6896_v11, %v1769_v47  ;;  %5700 = vrsqrt.f32 %v6911_v31 }
 0x109   : > { %5181 = vst [vmem:[%s6712_s22 + $0x48] sm:$0xff] %v5053_v45  ;;  %v1767_v24 = vsel %vm1765_vm15, %v1766_v22, %v1764_v49  ;;  %vm3486_vm2 = vweird.f32 %v6855_v58  ;;  %v3493_v61 = vmul.f32 0.5, %v3492_v30  ;;  %vm1775_vm3 = vcmp.eq.f32.partialorder %v6853_v18, inf }
 0x10a   : > { %v3138_v59 = vmul.f32 1.1085125, %v1767_v24  ;;  %v5697_v27 = vpop.eup %5696  ;;  %v3485_v37 = vmul.f32 %v6885_v2, %v3484_v54  ;;  %vm3496_vm4 = vweird.f32 %v6861_v4  ;;  %v1771_v57 = vmul.f32 0.5, %v1770_v21  ;;  %vm3488_vm6 = vmor %vm3486_vm2, %vm3487_vm1 }
 0x10b   : > { %vm1777_vm5 = vcmp.eq.f32.partialorder %v6853_v18, 0.0  ;;  %v6936_v0 = vmax.f32 %v1349_v44, 0.0  ;;  %v3494_v23 = vsub.f32 1.5, %v3493_v61  ;;  %vm3497_vm7 = vweird.f32 %v6899_v42  ;;  %v677_v44 = vpop.f32.mrf.mxu2 }
 0x10c   : > { %v3501_v8 = vmul.f32 %v5697_v27, %v6893_v38  ;;  %v6945_v9 = vadd.f32 1.0, %v3138_v59  ;;  %v3489_v26 = vsel %vm3488_vm6, %v6885_v2, %v3485_v37  ;;  %v1772_v1 = vsub.f32 1.5, %v1771_v57  ;;  %vm3498_vm8 = vmor %vm3496_vm4, %vm3497_vm7  ;;  %v790_v37 = vpop.f32.mrf.mxu3 }
 0x10d   : > { %v1778_v14 = vand.u32 2147483648, %v6853_v18  ;;  %5702 = vrsqrt.f32 %v6936_v0  ;;  %v5699_v7 = vpop.eup %5698  ;;  %v4670_v15 = vmul.f32 %v3489_v26, %v3489_v26  ;;  %v3495_v58 = vmul.f32 %v6899_v42, %v3494_v23 }
 0x10e   : > { %v3502_v16 = vmul.f32 %v5697_v27, %v3501_v8  ;;  %5704 = vrsqrt.f32 %v6945_v9  ;;  %v5701_v17 = vpop.eup %5700  ;;  %vm3506_vm9 = vweird.f32 %v6893_v38  ;;  %v3511_v29 = vmul.f32 %v5699_v7, %v6906_v39 }
 0x10f   : > { %vm3516_vm10 = vweird.f32 %v6906_v39  ;;  %v1773_v62 = vmul.f32 %v6896_v11, %v1772_v1  ;;  %v4798_v3 = vmul.f32 %v4670_v15, %v4670_v15  ;;  %v3499_v19 = vsel %vm3498_vm8, %v6899_v42, %v3495_v58 }
 0x110   : > { %v3503_v6 = vmul.f32 0.5, %v3502_v16  ;;  %v1781_v28 = vmul.f32 %v5701_v17, %v6911_v31  ;;  %v4671_v5 = vmul.f32 %v3499_v19, %v3499_v19  ;;  %v3512_v2 = vmul.f32 %v5699_v7, %v3511_v29  ;;  %v454_v16 = vpop.f32.mrf.mxu0 }
 0x111   : > { %v1774_v13 = vmul.f32 %v1773_v62, %v6853_v18  ;;  %v1790_v4 = vand.u32 2147483648, %v6911_v31  ;;  %v4926_v34 = vmul.f32 %v4798_v3, %v3489_v26  ;;  %vm3507_vm11 = vweird.f32 %v5697_v27 }
 0x112   : > { %v3504_v48 = vsub.f32 1.5, %v3503_v6  ;;  %v1782_v12 = vmul.f32 %v5701_v17, %v1781_v28  ;;  %v4799_v36 = vmul.f32 %v4671_v5, %v4671_v5  ;;  %v3513_v11 = vmul.f32 0.5, %v3512_v2  ;;  %vm3508_vm15 = vmor %vm3506_vm9, %vm3507_vm11 }
 0x113   : > { %v6962_v35 = vpop.eup %5702  ;;  %vm3517_vm12 = vweird.f32 %v5699_v7  ;;  %v1776_v40 = vsel %vm1775_vm3, %v6853_v18, %v1774_v13  ;;  %vm1787_vm13 = vcmp.eq.f32.partialorder %v6911_v31, inf  ;;  %v5054_v56 = vmul.f32 0.81, %v4926_v34 }
 0x114   : > { %v5705_v25 = vpop.eup %5704  ;;  %v3505_v42 = vmul.f32 %v5697_v27, %v3504_v48  ;;  %v1779_v55 = vsel %vm1777_vm5, %v1778_v14, %v1776_v40  ;;  %v1783_v41 = vmul.f32 0.5, %v1782_v12  ;;  %vm1789_vm14 = vcmp.eq.f32.partialorder %v6911_v31, 0.0  ;;  %vm3518_vm1 = vmor %vm3516_vm10, %vm3517_vm12  ;;  %v6991_v14 = vpop.permute.xlu2 %934 }
 0x115   : > { %v4927_v22 = vmul.f32 %v4799_v36, %v3499_v19  ;;  %v3514_v33 = vsub.f32 1.5, %v3513_v11  ;;  %v3521_v43 = vmul.f32 %v5705_v25, %v6945_v9  ;;  %v1094_v45 = vadd.f32 %v6480_v60, %v6864_v10  ;;  %5182 = vst [vmem:[%s6712_s22 + $0x50] sm:$0xff] %v5054_v56  ;;  %v567_v11 = vpop.f32.mrf.mxu1 }
 0x116   : > { %v3509_v46 = vsel %vm3508_vm15, %v5697_v27, %v3505_v42  ;;  %v3139_v18 = vmul.f32 1.1085125, %v1779_v55  ;;  %v1784_v47 = vsub.f32 1.5, %v1783_v41  ;;  %v1793_v30 = vmul.f32 %v6962_v35, %v6936_v0 }
 0x117   : > { %v5055_v49 = vmul.f32 0.81, %v4927_v22  ;;  %v4672_v50 = vmul.f32 %v3509_v46, %v3509_v46  ;;  %v3515_v54 = vmul.f32 %v5699_v7, %v3514_v33  ;;  %v3522_v38 = vmul.f32 %v5705_v25, %v3521_v43 }
 0x118   : > { %v6983_v24 = vadd.f32 1.0, %v3139_v18  ;;  %v1785_v21 = vmul.f32 %v5701_v17, %v1784_v47  ;;  %v1794_v53 = vmul.f32 %v6962_v35, %v1793_v30  ;;  %v1222_v32 = vmul.f32 2.0, %v677_v44 }
 0x119   : > { %5183 = vst [vmem:[%s6712_s22 + $0x58] sm:$0xff] %v5055_v49  ;;  %v4800_v61 = vmul.f32 %v4672_v50, %v4672_v50  ;;  %v3519_v59 = vsel %vm3518_vm1, %v5699_v7, %v3515_v54  ;;  %v3523_v27 = vmul.f32 0.5, %v3522_v38  ;;  %vm3527_vm2 = vweird.f32 %v5705_v25  ;;  %v680_v38 = vpop.f32.mrf.mxu2 }
 0x11a   : > { %v4673_v57 = vmul.f32 %v3519_v59, %v3519_v59  ;;  %5706 = vrsqrt.f32 %v6983_v24  ;;  %v1786_v20 = vmul.f32 %v1785_v21, %v6911_v31  ;;  %v1095_v39 = vadd.f32 %v6484_v63, %v6864_v10 }
 0x11b   : > { %v4928_v23 = vmul.f32 %v4800_v61, %v3509_v46  ;;  %v3524_v8 = vsub.f32 1.5, %v3523_v27  ;;  %v1795_v26 = vmul.f32 0.5, %v1794_v53  ;;  %v1350_v1 = vsub.f32 %v1094_v45, %v1222_v32 }
 0x11c   : > { %v4801_v15 = vmul.f32 %v4673_v57, %v4673_v57  ;;  %vm3526_vm3 = vweird.f32 %v6945_v9  ;;  %v1788_v7 = vsel %vm1787_vm13, %v6911_v31, %v1786_v20  ;;  %v1223_v58 = vmul.f32 2.0, %v790_v37 }
 0x11d   : > { %v5056_v17 = vmul.f32 0.81, %v4928_v23  ;;  %v3525_v29 = vmul.f32 %v5705_v25, %v3524_v8  ;;  %v1791_v10 = vsel %vm1789_vm14, %v1790_v4, %v1788_v7  ;;  %v1796_v62 = vsub.f32 1.5, %v1795_v26  ;;  %vm3528_vm4 = vmor %vm3526_vm3, %vm3527_vm2  ;;  %v793_v8 = vpop.f32.mrf.mxu3  ;;  %v299_v26 = vld [vmem:[%s6367_s8 + $0xb0] sm:$0xff] }
 0x11e   : > { %v4929_v3 = vmul.f32 %v4801_v15, %v3519_v59  ;;  %v3140_v19 = vmul.f32 1.1085125, %v1791_v10  ;;  %v7000_v6 = vmax.f32 %v1350_v1, 0.0  ;;  %v1096_v9 = vadd.f32 %v6471_v51, %v6991_v14  ;;  %5465 = vmatmul.msk.f32.gmra.mxu0 %vm325_vm0, %v299_v26  ;;  %5497 = vmatmul.msk.f32.gmra.mxu1 %vm325_vm0, %v299_v26 }
 0x11f   : > { %5184 = vst [vmem:[%s6712_s22 + $0x60] sm:$0xff] %v5056_v17  ;;  %v3529_v28 = vsel %vm3528_vm4, %v5705_v25, %v3525_v29  ;;  %v1797_v5 = vmul.f32 %v6962_v35, %v1796_v62  ;;  %v1351_v2 = vsub.f32 %v1095_v39, %v1223_v58  ;;  %v1224_v13 = vmul.f32 2.0, %v454_v16  ;;  %v902_v58 = vld [vmem:[%s6372_s12 + $0xe0] sm:$0xff]  ;;  %v901_v16 = vld [vmem:[%s6372_s12 + $0xd8] sm:$0xff]  ;;  %5529 = vmatmul.msk.f32.gmra.mxu2 %vm325_vm0, %v299_v26 }
 0x120   : > { %v5707_v34 = vpop.eup %5706  ;;  %v5057_v31 = vmul.f32 0.81, %v4929_v3  ;;  %v4674_v4 = vmul.f32 %v3529_v28, %v3529_v28  ;;  %v7006_v48 = vadd.f32 1.0, %v3140_v19  ;;  %5708 = vrsqrt.f32 %v7000_v6  ;;  %5561 = vmatmul.msk.f32.gmra.mxu3 %vm325_vm0, %v299_v26  ;;  %1049 = vperm.xlu1 %5638, %v902_v58  }
 0x121   : > { %v3531_v12 = vmul.f32 %v5707_v34, %v6983_v24  ;;  %v1798_v36 = vmul.f32 %v1797_v5, %v6936_v0  ;;  %vm1799_vm5 = vcmp.eq.f32.partialorder %v6936_v0, inf  ;;  %vm1801_vm6 = vcmp.eq.f32.partialorder %v6936_v0, 0.0  ;;  %1044 = vperm.xlu0 %5637, %v901_v16  }
 0x122   : > { %5185 = vst [vmem:[%s6712_s22 + $0x68] sm:$0xff] %v5057_v31  ;;  %v4802_v40 = vmul.f32 %v4674_v4, %v4674_v4  ;;  %5710 = vrsqrt.f32 %v7006_v48  ;;  %v1802_v35 = vand.u32 2147483648, %v6936_v0  ;;  %v7017_v42 = vmax.f32 %v1351_v2, 0.0 }
 0x123   : > { %v3532_v25 = vmul.f32 %v5707_v34, %v3531_v12  ;;  %v1800_v56 = vsel %vm1799_vm5, %v6936_v0, %v1798_v36  ;;  %v1097_v55 = vadd.f32 %v6473_v52, %v6991_v14  ;;  %v1352_v33 = vsub.f32 %v1096_v9, %v1224_v13 }
 0x124   : > { %v4930_v41 = vmul.f32 %v4802_v40, %v3529_v28  ;;  %v1803_v22 = vsel %vm1801_vm6, %v1802_v35, %v1800_v56  ;;  %v1225_v43 = vmul.f32 2.0, %v567_v11  ;;  %5712 = vrsqrt.f32 %v7017_v42 }
 0x125   : > { %v3533_v44 = vmul.f32 0.5, %v3532_v25  ;;  %v3141_v45 = vmul.f32 1.1085125, %v1803_v22  ;;  %vm3537_vm7 = vweird.f32 %v5707_v34  ;;  %v7022_v47 = vmax.f32 %v1352_v33, 0.0 }
 0x126   : > { %v5709_v46 = vpop.eup %5708  ;;  %v5058_v18 = vmul.f32 0.81, %v4930_v41  ;;  %v1353_v50 = vsub.f32 %v1097_v55, %v1225_v43  ;;  %vm3536_vm8 = vweird.f32 %v6983_v24  ;;  %v1098_v59 = vadd.f32 %v6480_v60, %v6991_v14 }
 0x127   : > { %v3534_v0 = vsub.f32 1.5, %v3533_v44  ;;  %v7024_v30 = vadd.f32 1.0, %v3141_v45  ;;  %v1805_v49 = vmul.f32 %v5709_v46, %v7000_v6  ;;  %5714 = vrsqrt.f32 %v7022_v47  ;;  %vm3538_vm9 = vmor %vm3536_vm8, %vm3537_vm7 }
 0x128   : > { %v7027_v54 = vpop.eup %5710  ;;  %5186 = vst [vmem:[%s6712_s22 + $0x70] sm:$0xff] %v5058_v18  ;;  %v7035_v61 = vmax.f32 %v1353_v50, 0.0  ;;  %vm3546_vm10 = vweird.f32 %v7006_v48  ;;  %vm1811_vm11 = vcmp.eq.f32.partialorder %v7000_v6, inf  ;;  %v1226_v24 = vmul.f32 2.0, %v680_v38 }
 0x129   : > { %v3535_v21 = vmul.f32 %v5707_v34, %v3534_v0  ;;  %v3541_v53 = vmul.f32 %v7027_v54, %v7006_v48  ;;  %5716 = vrsqrt.f32 %v7024_v30  ;;  %v1806_v32 = vmul.f32 %v5709_v46, %v1805_v49 }
 0x12a   : > { %v7039_v27 = vpop.eup %5712  ;;  %5718 = vrsqrt.f32 %v7035_v61  ;;  %vm1813_vm12 = vcmp.eq.f32.partialorder %v7000_v6, 0.0  ;;  %v1814_v15 = vand.u32 2147483648, %v7000_v6  ;;  %v7052_v7 = vadd.f32 %v6484_v63, %v6991_v14 }
 0x12b   : > { %v3539_v37 = vsel %vm3538_vm9, %v5707_v34, %v3535_v21  ;;  %v3542_v57 = vmul.f32 %v7027_v54, %v3541_v53  ;;  %v1807_v39 = vmul.f32 0.5, %v1806_v32  ;;  %v1817_v23 = vmul.f32 %v7039_v27, %v7017_v42 }
 0x12c   : > { %v4675_v20 = vmul.f32 %v3539_v37, %v3539_v37  ;;  %v1354_v3 = vsub.f32 %v1098_v59, %v1226_v24  ;;  %vm3547_vm13 = vweird.f32 %v7027_v54  ;;  %v1227_v28 = vmul.f32 2.0, %v793_v8 }
 0x12d   : > { %v3543_v1 = vmul.f32 0.5, %v3542_v57  ;;  %v5715_v17 = vpop.eup %5714  ;;  %v1808_v10 = vsub.f32 1.5, %v1807_v39  ;;  %v1818_v62 = vmul.f32 %v7039_v27, %v1817_v23  ;;  %vm1823_vm14 = vcmp.eq.f32.partialorder %v7017_v42, inf  ;;  %vm3548_vm15 = vmor %vm3546_vm10, %vm3547_vm13 }
 0x12e   : > { %v4803_v29 = vmul.f32 %v4675_v20, %v4675_v20  ;;  %v1829_v14 = vmul.f32 %v5715_v17, %v7022_v47  ;;  %v1826_v34 = vand.u32 2147483648, %v7017_v42  ;;  %v7067_v36 = vmax.f32 %v1354_v3, 0.0 }
 0x12f   : > { %v5717_v19 = vpop.eup %5716  ;;  %v3544_v9 = vsub.f32 1.5, %v3543_v1  ;;  %v1809_v13 = vmul.f32 %v5709_v46, %v1808_v10  ;;  %v1819_v4 = vmul.f32 0.5, %v1818_v62  ;;  %vm1825_vm1 = vcmp.eq.f32.partialorder %v7017_v42, 0.0 }
 0x130   : > { %v4931_v5 = vmul.f32 %v4803_v29, %v3539_v37  ;;  %v3551_v2 = vmul.f32 %v5717_v19, %v7024_v30  ;;  %v1830_v12 = vmul.f32 %v5715_v17, %v1829_v14  ;;  %v5719_v11 = vpop.eup %5718  ;;  %vm1835_vm2 = vcmp.eq.f32.partialorder %v7022_v47, inf  ;;  %v457_v29 = vpop.f32.mrf.mxu0 }
 0x131   : > { %v3545_v31 = vmul.f32 %v7027_v54, %v3544_v9  ;;  %v1810_v25 = vmul.f32 %v1809_v13, %v7000_v6  ;;  %v1355_v56 = vsub.f32 %v7052_v7, %v1227_v28  ;;  %v1820_v41 = vsub.f32 1.5, %v1819_v4  ;;  %v7106_v7 = vpop.permute.xlu0 %939 }
 0x132   : > { %v5059_v40 = vmul.f32 0.81, %v4931_v5  ;;  %v3552_v35 = vmul.f32 %v5717_v19, %v3551_v2  ;;  %v1831_v22 = vmul.f32 0.5, %v1830_v12  ;;  %vm1837_vm3 = vcmp.eq.f32.partialorder %v7022_v47, 0.0 }
 0x133   : > { %v3549_v55 = vsel %vm3548_vm15, %v7027_v54, %v3545_v31  ;;  %v1841_v33 = vmul.f32 %v5719_v11, %v7035_v61  ;;  %v1812_v44 = vsel %vm1811_vm11, %v7000_v6, %v1810_v25  ;;  %5720 = vrsqrt.f32 %v7067_v36 }
 0x134   : > { %5187 = vst [vmem:[%s6712_s22 + $0x78] sm:$0xff] %v5059_v40  ;;  %v4676_v48 = vmul.f32 %v3549_v55, %v3549_v55  ;;  %v3553_v43 = vmul.f32 0.5, %v3552_v35  ;;  %v1815_v45 = vsel %vm1813_vm12, %v1814_v15, %v1812_v44  ;;  %v1821_v46 = vmul.f32 %v7039_v27, %v1820_v41 }
 0x135   : > { %v1832_v18 = vsub.f32 1.5, %v1831_v22  ;;  %v1842_v0 = vmul.f32 %v5719_v11, %v1841_v33  ;;  %vm3557_vm4 = vweird.f32 %v5717_v19  ;;  %v3142_v54 = vmul.f32 1.1085125, %v1815_v45 }
 0x136   : > { %v4804_v49 = vmul.f32 %v4676_v48, %v4676_v48  ;;  %v3554_v50 = vsub.f32 1.5, %v3553_v43  ;;  %v1822_v38 = vmul.f32 %v1821_v46, %v7017_v42  ;;  %v1838_v53 = vand.u32 2147483648, %v7022_v47 }
 0x137   : > { %v1833_v21 = vmul.f32 %v5715_v17, %v1832_v18  ;;  %v1843_v32 = vmul.f32 0.5, %v1842_v0  ;;  %vm3556_vm5 = vweird.f32 %v7024_v30  ;;  %v7091_v6 = vadd.f32 1.0, %v3142_v54 }
 0x138   : > { %v4932_v59 = vmul.f32 %v4804_v49, %v3549_v55  ;;  %v3555_v37 = vmul.f32 %v5717_v19, %v3554_v50  ;;  %vm3558_vm6 = vmor %vm3556_vm5, %vm3557_vm4  ;;  %v1824_v27 = vsel %vm1823_vm14, %v7017_v42, %v1822_v38  ;;  %v7097_v20 = vmax.f32 %v1355_v56, 0.0 }
 0x139   : > { %v1834_v57 = vmul.f32 %v1833_v21, %v7022_v47  ;;  %v1844_v24 = vsub.f32 1.5, %v1843_v32  ;;  %v5721_v39 = vpop.eup %5720  ;;  %5722 = vrsqrt.f32 %v7091_v6  ;;  %vm1847_vm7 = vcmp.eq.f32.partialorder %v7035_v61, inf }
 0x13a   : > { %v5060_v23 = vmul.f32 0.81, %v4932_v59  ;;  %v3559_v8 = vsel %vm3558_vm6, %v5717_v19, %v3555_v37  ;;  %v1827_v26 = vsel %vm1825_vm1, %v1826_v34, %v1824_v27  ;;  %v1853_v17 = vmul.f32 %v5721_v39, %v7067_v36 }
 0x13b   : > { %v4677_v30 = vmul.f32 %v3559_v8, %v3559_v8  ;;  %v1836_v1 = vsel %vm1835_vm2, %v7022_v47, %v1834_v57  ;;  %v1845_v15 = vmul.f32 %v5719_v11, %v1844_v24  ;;  %v3143_v58 = vmul.f32 1.1085125, %v1827_v26  ;;  %v570_v11 = vpop.f32.mrf.mxu1 }
 0x13c   : > { %5188 = vst [vmem:[%s6712_s22 + $0x80] sm:$0xff] %v5060_v23  ;;  %v1839_v16 = vsel %vm1837_vm3, %v1838_v53, %v1836_v1  ;;  %5724 = vrsqrt.f32 %v7097_v20  ;;  %vm1849_vm8 = vcmp.eq.f32.partialorder %v7035_v61, 0.0  ;;  %v1850_v19 = vand.u32 2147483648, %v7035_v61  ;;  %v683_v53 = vpop.f32.mrf.mxu2  ;;  %v300_v23 = vld [vmem:[%s6367_s8 + $0xb8] sm:$0xff] }
 0x13d   : > { %v4805_v10 = vmul.f32 %v4677_v30, %v4677_v30  ;;  %v3144_v42 = vmul.f32 1.1085125, %v1839_v16  ;;  %v1846_v62 = vmul.f32 %v1845_v15, %v7035_v61  ;;  %v7115_v3 = vadd.f32 1.0, %v3143_v58  ;;  %5466 = vmatmul.msk.f32.gmra.mxu0 %vm325_vm0, %v300_v23  ;;  %5498 = vmatmul.msk.f32.gmra.mxu1 %vm325_vm0, %v300_v23  ;;  %v905_v15 = vld [vmem:[%s6372_s12 + $0xf8] sm:$0xff] }
 0x13e   : > { %v1854_v9 = vmul.f32 %v5721_v39, %v1853_v17  ;;  %v1100_v47 = vadd.f32 %v6471_v51, %v7106_v7  ;;  %v1228_v2 = vmul.f32 2.0, %v457_v29  ;;  %vm1859_vm9 = vcmp.eq.f32.partialorder %v7067_v36, inf  ;;  %5530 = vmatmul.msk.f32.gmra.mxu2 %vm325_vm0, %v300_v23  ;;  %5562 = vmatmul.msk.f32.gmra.mxu3 %vm325_vm0, %v300_v23 }
 0x13f   : > { %v4933_v14 = vmul.f32 %v4805_v10, %v3559_v8  ;;  %v7120_v28 = vadd.f32 1.0, %v3144_v42  ;;  %v1848_v5 = vsel %vm1847_vm7, %v7035_v61, %v1846_v62  ;;  %v5723_v13 = vpop.eup %5722  ;;  %5726 = vrsqrt.f32 %v7115_v3  ;;  %1064 = vperm.xlu1 %5638, %v905_v15  }
 0x140   : > { %v1851_v34 = vsel %vm1849_vm8, %v1850_v19, %v1848_v5  ;;  %v1855_v31 = vmul.f32 0.5, %v1854_v9  ;;  %v3561_v12 = vmul.f32 %v5723_v13, %v7091_v6  ;;  %v1356_v56 = vsub.f32 %v1100_v47, %v1228_v2 }
 0x141   : > { %v5061_v4 = vmul.f32 0.81, %v4933_v14  ;;  %5728 = vrsqrt.f32 %v7120_v28  ;;  %v3145_v35 = vmul.f32 1.1085125, %v1851_v34  ;;  %vm1861_vm10 = vcmp.eq.f32.partialorder %v7067_v36, 0.0 }
 0x142   : > { %v5725_v40 = vpop.eup %5724  ;;  %v1856_v25 = vsub.f32 1.5, %v1855_v31  ;;  %v3562_v61 = vmul.f32 %v5723_v13, %v3561_v12  ;;  %v1101_v41 = vadd.f32 %v6473_v52, %v7106_v7  ;;  %v7136_v48 = vmax.f32 %v1356_v56, 0.0 }
 0x143   : > { %5189 = vst [vmem:[%s6712_s22 + $0x88] sm:$0xff] %v5061_v4  ;;  %v1865_v55 = vmul.f32 %v5725_v40, %v7097_v20  ;;  %v7134_v22 = vadd.f32 1.0, %v3145_v35  ;;  %v1229_v43 = vmul.f32 2.0, %v570_v11  ;;  %vm3566_vm11 = vweird.f32 %v7091_v6 }
 0x144   : > { %v1857_v33 = vmul.f32 %v5721_v39, %v1856_v25  ;;  %v3563_v44 = vmul.f32 0.5, %v3562_v61  ;;  %v1862_v45 = vand.u32 2147483648, %v7067_v36  ;;  %vm1871_vm12 = vcmp.eq.f32.partialorder %v7097_v20, inf }
 0x145   : > { %v1866_v46 = vmul.f32 %v5725_v40, %v1865_v55  ;;  %v7140_v18 = vpop.eup %5726  ;;  %5730 = vrsqrt.f32 %v7134_v22  ;;  %v1874_v49 = vand.u32 2147483648, %v7097_v20  ;;  %vm3567_vm13 = vweird.f32 %v5723_v13 }
 0x146   : > { %v1858_v0 = vmul.f32 %v1857_v33, %v7067_v36  ;;  %v3564_v54 = vsub.f32 1.5, %v3563_v44  ;;  %v3571_v38 = vmul.f32 %v7140_v18, %v7115_v3  ;;  %vm3576_vm14 = vweird.f32 %v7115_v3  ;;  %vm3568_vm2 = vmor %vm3566_vm11, %vm3567_vm13 }
 0x147   : > { %v7146_v50 = vpop.eup %5728  ;;  %v1867_v21 = vmul.f32 0.5, %v1866_v46  ;;  %vm1873_vm15 = vcmp.eq.f32.partialorder %v7097_v20, 0.0  ;;  %vm3586_vm1 = vweird.f32 %v7120_v28  ;;  %5732 = vrsqrt.f32 %v7136_v48 }
 0x148   : > { %v3581_v32 = vmul.f32 %v7146_v50, %v7120_v28  ;;  %v1860_v59 = vsel %vm1859_vm9, %v7067_v36, %v1858_v0  ;;  %v1357_v37 = vsub.f32 %v1101_v41, %v1229_v43  ;;  %v3565_v27 = vmul.f32 %v5723_v13, %v3564_v54  ;;  %v904_v36 = vld [vmem:[%s6372_s12 + $0xf0] sm:$0xff] }
 0x149   : > { %v3572_v57 = vmul.f32 %v7140_v18, %v3571_v38  ;;  %v1863_v24 = vsel %vm1861_vm10, %v1862_v45, %v1860_v59  ;;  %v1868_v39 = vsub.f32 1.5, %v1867_v21  ;;  %v1102_v26 = vadd.f32 %v6480_v60, %v7106_v7  ;;  %1059 = vperm.xlu0 %5637, %v904_v36  }
 0x14a   : > { %v3582_v8 = vmul.f32 %v7146_v50, %v3581_v32  ;;  %v3146_v30 = vmul.f32 1.1085125, %v1863_v24  ;;  %v1230_v1 = vmul.f32 2.0, %v683_v53  ;;  %v3569_v58 = vsel %vm3568_vm2, %v5723_v13, %v3565_v27  ;;  %v796_v24 = vpop.f32.mrf.mxu3 }
 0x14b   : > { %v3573_v16 = vmul.f32 0.5, %v3572_v57  ;;  %vm3577_vm3 = vweird.f32 %v7140_v18  ;;  %v1869_v17 = vmul.f32 %v5725_v40, %v1868_v39  ;;  %v5731_v6 = vpop.eup %5730  ;;  %v4678_v29 = vmul.f32 %v3569_v58, %v3569_v58 }
 0x14c   : > { %v3583_v10 = vmul.f32 0.5, %v3582_v8  ;;  %v7176_v42 = vadd.f32 1.0, %v3146_v30  ;;  %v7178_v62 = vmax.f32 %v1357_v37, 0.0  ;;  %vm3587_vm4 = vweird.f32 %v7146_v50  ;;  %vm3578_vm5 = vmor %vm3576_vm14, %vm3577_vm3 }
 0x14d   : > { %v3574_v19 = vsub.f32 1.5, %v3573_v16  ;;  %v3591_v9 = vmul.f32 %v5731_v6, %v7134_v22  ;;  %v1870_v47 = vmul.f32 %v1869_v17, %v7097_v20  ;;  %v5733_v14 = vpop.eup %5732  ;;  %v4806_v5 = vmul.f32 %v4678_v29, %v4678_v29  ;;  %vm3588_vm6 = vmor %vm3586_vm1, %vm3587_vm4 }
 0x14e   : > { %v3584_v2 = vsub.f32 1.5, %v3583_v10  ;;  %5734 = vrsqrt.f32 %v7176_v42  ;;  %v1358_v13 = vsub.f32 %v1102_v26, %v1230_v1  ;;  %v1877_v12 = vmul.f32 %v5733_v14, %v7136_v48  ;;  %v7217_v26 = vpop.permute.xlu1 %944  ;;  %v460_v1 = vpop.f32.mrf.mxu0 }
 0x14f   : > { %v3575_v34 = vmul.f32 %v7140_v18, %v3574_v19  ;;  %v3592_v31 = vmul.f32 %v5731_v6, %v3591_v9  ;;  %v1872_v4 = vsel %vm1871_vm12, %v7097_v20, %v1870_v47  ;;  %v4934_v11 = vmul.f32 %v4806_v5, %v3569_v58 }
 0x150   : > { %v3585_v40 = vmul.f32 %v7146_v50, %v3584_v2  ;;  %v1875_v35 = vsel %vm1873_vm15, %v1874_v49, %v1872_v4  ;;  %5736 = vrsqrt.f32 %v7178_v62  ;;  %v1878_v55 = vmul.f32 %v5733_v14, %v1877_v12 }
 0x151   : > { %v3579_v25 = vsel %vm3578_vm5, %v7140_v18, %v3575_v34  ;;  %v3593_v56 = vmul.f32 0.5, %v3592_v31  ;;  %v3147_v61 = vmul.f32 1.1085125, %v1875_v35  ;;  %v5062_v3 = vmul.f32 0.81, %v4934_v11 }
 0x152   : > { %v4679_v41 = vmul.f32 %v3579_v25, %v3579_v25  ;;  %v3589_v33 = vsel %vm3588_vm6, %v7146_v50, %v3585_v40  ;;  %vm3597_vm7 = vweird.f32 %v5731_v6  ;;  %v1879_v45 = vmul.f32 0.5, %v1878_v55 }
 0x153   : > { %v4680_v20 = vmul.f32 %v3589_v33, %v3589_v33  ;;  %v3594_v43 = vsub.f32 1.5, %v3593_v56  ;;  %v7203_v44 = vadd.f32 1.0, %v3147_v61  ;;  %5190 = vst [vmem:[%s6712_s22 + $0x90] sm:$0xff] %v5062_v3  ;;  %vm3596_vm8 = vweird.f32 %v7134_v22 }
 0x154   : > { %v5735_v46 = vpop.eup %5734  ;;  %v4807_v18 = vmul.f32 %v4679_v41, %v4679_v41  ;;  %v7207_v28 = vmax.f32 %v1358_v13, 0.0  ;;  %vm1883_vm9 = vcmp.eq.f32.partialorder %v7136_v48, inf  ;;  %vm3598_vm10 = vmor %vm3596_vm8, %vm3597_vm7  ;;  %v1880_v21 = vsub.f32 1.5, %v1879_v45 }
 0x155   : > { %v4808_v0 = vmul.f32 %v4680_v20, %v4680_v20  ;;  %v3595_v49 = vmul.f32 %v5731_v6, %v3594_v43  ;;  %v3601_v54 = vmul.f32 %v5735_v46, %v7176_v42  ;;  %5738 = vrsqrt.f32 %v7203_v44 }
 0x156   : > { %v5737_v50 = vpop.eup %5736  ;;  %v4935_v38 = vmul.f32 %v4807_v18, %v3579_v25  ;;  %vm1885_vm11 = vcmp.eq.f32.partialorder %v7136_v48, 0.0  ;;  %v1881_v57 = vmul.f32 %v5733_v14, %v1880_v21  ;;  %5740 = vrsqrt.f32 %v7207_v28  ;;  %v686_v21 = vpop.f32.mrf.mxu2 }
 0x157   : > { %v4936_v53 = vmul.f32 %v4808_v0, %v3589_v33  ;;  %v3599_v22 = vsel %vm3598_vm10, %v5731_v6, %v3595_v49  ;;  %v3602_v32 = vmul.f32 %v5735_v46, %v3601_v54  ;;  %v1889_v59 = vmul.f32 %v5737_v50, %v7178_v62  ;;  %v573_v0 = vpop.f32.mrf.mxu1 }
 0x158   : > { %v5063_v37 = vmul.f32 0.81, %v4935_v38  ;;  %v4681_v27 = vmul.f32 %v3599_v22, %v3599_v22  ;;  %v1886_v8 = vand.u32 2147483648, %v7136_v48  ;;  %vm3606_vm12 = vweird.f32 %v7176_v42 }
 0x159   : > { %v5064_v39 = vmul.f32 0.81, %v4936_v53  ;;  %v3603_v23 = vmul.f32 0.5, %v3602_v32  ;;  %v1890_v30 = vmul.f32 %v5737_v50, %v1889_v59  ;;  %vm3607_vm13 = vweird.f32 %v5735_v46 }
 0x15a   : > { %5191 = vst [vmem:[%s6712_s22 + $0x98] sm:$0xff] %v5063_v37  ;;  %v4809_v15 = vmul.f32 %v4681_v27, %v4681_v27  ;;  %v1882_v36 = vmul.f32 %v1881_v57, %v7136_v48  ;;  %v1103_v17 = vadd.f32 %v6484_v63, %v7106_v7  ;;  %v1231_v6 = vmul.f32 2.0, %v796_v24  ;;  %vm3608_vm15 = vmor %vm3606_vm12, %vm3607_vm13 }
 0x15b   : > { %5192 = vst [vmem:[%s6712_s22 + $0xa0] sm:$0xff] %v5064_v39  ;;  %v3604_v58 = vsub.f32 1.5, %v3603_v23  ;;  %v1891_v16 = vmul.f32 0.5, %v1890_v30  ;;  %v5739_v29 = vpop.eup %5738  ;;  %v1104_v9 = vadd.f32 %v6471_v51, %v7217_v26  ;;  %v1232_v47 = vmul.f32 2.0, %v460_v1 }
 0x15c   : > { %v4937_v10 = vmul.f32 %v4809_v15, %v3599_v22  ;;  %v1884_v19 = vsel %vm1883_vm9, %v7136_v48, %v1882_v36  ;;  %v3611_v5 = vmul.f32 %v5739_v29, %v7203_v44  ;;  %vm1895_vm14 = vcmp.eq.f32.partialorder %v7178_v62, inf  ;;  %v5741_v7 = vpop.eup %5740 }
 0x15d   : > { %v3605_v14 = vmul.f32 %v5735_v46, %v3604_v58  ;;  %v1887_v2 = vsel %vm1885_vm11, %v1886_v8, %v1884_v19  ;;  %v1892_v31 = vsub.f32 1.5, %v1891_v16  ;;  %v1359_v4 = vsub.f32 %v1103_v17, %v1231_v6  ;;  %v301_v58 = vld [vmem:[%s6367_s8 + $0xc0] sm:$0xff] }
 0x15e   : > { %v5065_v13 = vmul.f32 0.81, %v4937_v10  ;;  %v3148_v34 = vmul.f32 1.1085125, %v1887_v2  ;;  %v3612_v11 = vmul.f32 %v5739_v29, %v3611_v5  ;;  %v1901_v40 = vmul.f32 %v5741_v7, %v7207_v28  ;;  %5467 = vmatmul.msk.f32.gmra.mxu0 %vm325_vm0, %v301_v58  ;;  %5499 = vmatmul.msk.f32.gmra.mxu1 %vm325_vm0, %v301_v58  ;;  %v894_v19 = vld [vmem:[%s6372_s12 + $0xa0] sm:$0xff] }
 0x15f   : > { %v3609_v12 = vsel %vm3608_vm15, %v5735_v46, %v3605_v14  ;;  %v1360_v35 = vsub.f32 %v1104_v9, %v1232_v47  ;;  %v1893_v56 = vmul.f32 %v5737_v50, %v1892_v31  ;;  %v7241_v61 = vmax.f32 %v1359_v4, 0.0  ;;  %5531 = vmatmul.msk.f32.gmra.mxu2 %vm325_vm0, %v301_v58  ;;  %5563 = vmatmul.msk.f32.gmra.mxu3 %vm325_vm0, %v301_v58  ;;  %v799_v31 = vpop.f32.mrf.mxu3  ;;  %v463_v58 = vpop.f32.mrf.mxu0 }
 0x160   : > { %5193 = vst [vmem:[%s6712_s22 + $0xa8] sm:$0xff] %v5065_v13  ;;  %v4682_v25 = vmul.f32 %v3609_v12, %v3609_v12  ;;  %v7239_v48 = vadd.f32 1.0, %v3148_v34  ;;  %v3613_v55 = vmul.f32 0.5, %v3612_v11  ;;  %vm1897_vm1 = vcmp.eq.f32.partialorder %v7178_v62, 0.0  ;;  %1009 = vperm.xlu2 %5639, %v894_v19  }
 0x161   : > { %v1902_v42 = vmul.f32 %v5741_v7, %v1901_v40  ;;  %v7244_v3 = vmax.f32 %v1360_v35, 0.0  ;;  %v1894_v33 = vmul.f32 %v1893_v56, %v7178_v62  ;;  %v1898_v20 = vand.u32 2147483648, %v7178_v62 }
 0x162   : > { %v4810_v41 = vmul.f32 %v4682_v25, %v4682_v25  ;;  %5742 = vrsqrt.f32 %v7239_v48  ;;  %v3614_v43 = vsub.f32 1.5, %v3613_v55  ;;  %vm3617_vm2 = vweird.f32 %v5739_v29 }
 0x163   : > { %v1903_v45 = vmul.f32 0.5, %v1902_v42  ;;  %5744 = vrsqrt.f32 %v7241_v61  ;;  %vm3616_vm3 = vweird.f32 %v7203_v44  ;;  %v1896_v18 = vsel %vm1895_vm14, %v7178_v62, %v1894_v33 }
 0x164   : > { %v4938_v46 = vmul.f32 %v4810_v41, %v3609_v12  ;;  %v1105_v49 = vadd.f32 %v6473_v52, %v7217_v26  ;;  %v3615_v54 = vmul.f32 %v5739_v29, %v3614_v43  ;;  %v1899_v50 = vsel %vm1897_vm1, %v1898_v20, %v1896_v18  ;;  %vm3618_vm4 = vmor %vm3616_vm3, %vm3617_vm2 }
 0x165   : > { %v1904_v38 = vsub.f32 1.5, %v1903_v45  ;;  %5746 = vrsqrt.f32 %v7244_v3  ;;  %v3149_v44 = vmul.f32 1.1085125, %v1899_v50  ;;  %vm1907_vm5 = vcmp.eq.f32.partialorder %v7207_v28, inf }
 0x166   : > { %v5066_v53 = vmul.f32 0.81, %v4938_v46  ;;  %v3619_v22 = vsel %vm3618_vm4, %v5739_v29, %v3615_v54  ;;  %v1233_v59 = vmul.f32 2.0, %v573_v0  ;;  %v1106_v62 = vadd.f32 %v6480_v60, %v7217_v26  ;;  %v7306_v54 = vpop.permute.xlu2 %949 }
 0x167   : > { %v1905_v32 = vmul.f32 %v5741_v7, %v1904_v38  ;;  %v4683_v27 = vmul.f32 %v3619_v22, %v3619_v22  ;;  %v7261_v57 = vadd.f32 1.0, %v3149_v44  ;;  %v1234_v24 = vmul.f32 2.0, %v686_v21 }
 0x168   : > { %v5743_v37 = vpop.eup %5742  ;;  %5194 = vst [vmem:[%s6712_s22 + $0xb0] sm:$0xff] %v5066_v53  ;;  %vm1909_vm6 = vcmp.eq.f32.partialorder %v7207_v28, 0.0  ;;  %v1361_v30 = vsub.f32 %v1105_v49, %v1233_v59  ;;  %v1910_v15 = vand.u32 2147483648, %v7207_v28  ;;  %vm3626_vm7 = vweird.f32 %v7239_v48 }
 0x169   : > { %v5745_v39 = vpop.eup %5744  ;;  %v3621_v23 = vmul.f32 %v5743_v37, %v7239_v48  ;;  %v1906_v8 = vmul.f32 %v1905_v32, %v7207_v28  ;;  %v4811_v1 = vmul.f32 %v4683_v27, %v4683_v27  ;;  %5748 = vrsqrt.f32 %v7261_v57 }
 0x16a   : > { %v1913_v36 = vmul.f32 %v5745_v39, %v7241_v61  ;;  %v7275_v29 = vmax.f32 %v1361_v30, 0.0  ;;  %v1362_v10 = vsub.f32 %v1106_v62, %v1234_v24  ;;  %vm1919_vm8 = vcmp.eq.f32.partialorder %v7241_v61, inf }
 0x16b   : > { %v5747_v16 = vpop.eup %5746  ;;  %v3622_v17 = vmul.f32 %v5743_v37, %v3621_v23  ;;  %v1908_v6 = vsel %vm1907_vm5, %v7207_v28, %v1906_v8  ;;  %v4939_v9 = vmul.f32 %v4811_v1, %v3619_v22  ;;  %vm3627_vm9 = vweird.f32 %v5743_v37 }
 0x16c   : > { %v1911_v47 = vsel %vm1909_vm6, %v1910_v15, %v1908_v6  ;;  %v1914_v14 = vmul.f32 %v5745_v39, %v1913_v36  ;;  %v1925_v5 = vmul.f32 %v5747_v16, %v7244_v3  ;;  %5750 = vrsqrt.f32 %v7275_v29  ;;  %vm3628_vm11 = vmor %vm3626_vm7, %vm3627_vm9 }
 0x16d   : > { %v3623_v2 = vmul.f32 0.5, %v3622_v17  ;;  %v3150_v7 = vmul.f32 1.1085125, %v1911_v47  ;;  %v5067_v13 = vmul.f32 0.81, %v4939_v9  ;;  %v7290_v11 = vmax.f32 %v1362_v10, 0.0 }
 0x16e   : > { %v1915_v34 = vmul.f32 0.5, %v1914_v14  ;;  %v1926_v28 = vmul.f32 %v5747_v16, %v1925_v5  ;;  %vm1921_vm10 = vcmp.eq.f32.partialorder %v7241_v61, 0.0  ;;  %v1107_v56 = vadd.f32 %v6484_v63, %v7217_v26 }
 0x16f   : > { %v3624_v4 = vsub.f32 1.5, %v3623_v2  ;;  %v7288_v12 = vadd.f32 1.0, %v3150_v7  ;;  %v5749_v40 = vpop.eup %5748  ;;  %5195 = vst [vmem:[%s6712_s22 + $0xb8] sm:$0xff] %v5067_v13  ;;  %v1235_v41 = vmul.f32 2.0, %v799_v31  ;;  %v1922_v20 = vand.u32 2147483648, %v7241_v61 }
 0x170   : > { %v1916_v35 = vsub.f32 1.5, %v1915_v34  ;;  %v1927_v25 = vmul.f32 0.5, %v1926_v28  ;;  %v3631_v42 = vmul.f32 %v5749_v40, %v7261_v57  ;;  %vm1931_vm12 = vcmp.eq.f32.partialorder %v7244_v3, inf }
 0x171   : > { %v3625_v55 = vmul.f32 %v5743_v37, %v3624_v4  ;;  %5752 = vrsqrt.f32 %v7288_v12  ;;  %vm1933_vm13 = vcmp.eq.f32.partialorder %v7244_v3, 0.0  ;;  %vm3636_vm14 = vweird.f32 %v7261_v57 }
 0x172   : > { %v1917_v33 = vmul.f32 %v5745_v39, %v1916_v35  ;;  %v1928_v43 = vsub.f32 1.5, %v1927_v25  ;;  %5754 = vrsqrt.f32 %v7290_v11  ;;  %v5751_v45 = vpop.eup %5750  ;;  %v3632_v18 = vmul.f32 %v5749_v40, %v3631_v42 }
 0x173   : > { %v3629_v46 = vsel %vm3628_vm11, %v5743_v37, %v3625_v55  ;;  %v1937_v48 = vmul.f32 %v5751_v45, %v7275_v29  ;;  %v1934_v38 = vand.u32 2147483648, %v7244_v3  ;;  %v1363_v21 = vsub.f32 %v1107_v56, %v1235_v41 }
 0x174   : > { %v4684_v26 = vmul.f32 %v3629_v46, %v3629_v46  ;;  %v1918_v0 = vmul.f32 %v1917_v33, %v7241_v61  ;;  %v1929_v49 = vmul.f32 %v5747_v16, %v1928_v43  ;;  %v3633_v50 = vmul.f32 0.5, %v3632_v18 }
 0x175   : > { %v1938_v32 = vmul.f32 %v5751_v45, %v1937_v48  ;;  %vm3637_vm15 = vweird.f32 %v5749_v40  ;;  %v1108_v62 = vadd.f32 %v6471_v51, %v7306_v54  ;;  %v7319_v30 = vmax.f32 %v1363_v21, 0.0 }
 0x176   : > { %v4812_v53 = vmul.f32 %v4684_v26, %v4684_v26  ;;  %v1920_v44 = vsel %vm1919_vm8, %v7241_v61, %v1918_v0  ;;  %v1930_v22 = vmul.f32 %v1929_v49, %v7244_v3  ;;  %v3634_v37 = vsub.f32 1.5, %v3633_v50  ;;  %vm3638_vm1 = vmor %vm3636_vm14, %vm3637_vm15 }
 0x177   : > { %v5753_v59 = vpop.eup %5752  ;;  %v1923_v27 = vsel %vm1921_vm10, %v1922_v20, %v1920_v44  ;;  %v1939_v36 = vmul.f32 0.5, %v1938_v32  ;;  %v1236_v7 = vmul.f32 2.0, %v463_v58  ;;  %vm1943_vm3 = vcmp.eq.f32.partialorder %v7275_v29, inf }
 0x178   : > { %v5755_v24 = vpop.eup %5754  ;;  %v4940_v39 = vmul.f32 %v4812_v53, %v3629_v46  ;;  %v3641_v23 = vmul.f32 %v5753_v59, %v7288_v12  ;;  %v3151_v8 = vmul.f32 1.1085125, %v1923_v27  ;;  %v3635_v1 = vmul.f32 %v5749_v40, %v3634_v37  ;;  %v576_v46 = vpop.f32.mrf.mxu1 }
 0x179   : > { %v1932_v15 = vsel %vm1931_vm12, %v7244_v3, %v1930_v22  ;;  %v1949_v61 = vmul.f32 %v5755_v24, %v7290_v11  ;;  %v1940_v47 = vsub.f32 1.5, %v1939_v36  ;;  %vm3647_vm2 = vweird.f32 %v5753_v59 }
 0x17a   : > { %v5068_v16 = vmul.f32 0.81, %v4940_v39  ;;  %v3642_v17 = vmul.f32 %v5753_v59, %v3641_v23  ;;  %v7327_v6 = vadd.f32 1.0, %v3151_v8  ;;  %v1935_v10 = vsel %vm1933_vm13, %v1934_v38, %v1932_v15  ;;  %v302_v39 = vld [vmem:[%s6367_s8 + $0xc8] sm:$0xff]  ;;  %v897_v15 = vld [vmem:[%s6372_s12 + $0xb8] sm:$0xff] }
 0x17b   : > { %v3639_v19 = vsel %vm3638_vm1, %v5749_v40, %v3635_v1  ;;  %v3152_v9 = vmul.f32 1.1085125, %v1935_v10  ;;  %v1950_v14 = vmul.f32 %v5755_v24, %v1949_v61  ;;  %v1941_v57 = vmul.f32 %v5751_v45, %v1940_v47  ;;  %5468 = vmatmul.msk.f32.gmra.mxu0 %vm325_vm0, %v302_v39  ;;  %5500 = vmatmul.msk.f32.gmra.mxu1 %vm325_vm0, %v302_v39 }
 0x17c   : > { %5196 = vst [vmem:[%s6712_s22 + $0xc0] sm:$0xff] %v5068_v16  ;;  %v4685_v5 = vmul.f32 %v3639_v19, %v3639_v19  ;;  %v3643_v2 = vmul.f32 0.5, %v3642_v17  ;;  %5756 = vrsqrt.f32 %v7327_v6  ;;  %v1946_v4 = vand.u32 2147483648, %v7275_v29  ;;  %5532 = vmatmul.msk.f32.gmra.mxu2 %vm325_vm0, %v302_v39  ;;  %5564 = vmatmul.msk.f32.gmra.mxu3 %vm325_vm0, %v302_v39 }
 0x17d   : > { %v7333_v13 = vadd.f32 1.0, %v3152_v9  ;;  %v1951_v34 = vmul.f32 0.5, %v1950_v14  ;;  %5758 = vrsqrt.f32 %v7319_v30  ;;  %v1942_v3 = vmul.f32 %v1941_v57, %v7275_v29  ;;  %1024 = vperm.xlu2 %5639, %v897_v15  }
 0x17e   : > { %v4813_v28 = vmul.f32 %v4685_v5, %v4685_v5  ;;  %v3644_v31 = vsub.f32 1.5, %v3643_v2  ;;  %vm3646_vm4 = vweird.f32 %v7288_v12  ;;  %v1364_v56 = vsub.f32 %v1108_v62, %v1236_v7 }
 0x17f   : > { %5760 = vrsqrt.f32 %v7333_v13  ;;  %v1952_v40 = vsub.f32 1.5, %v1951_v34  ;;  %vm3648_vm5 = vmor %vm3646_vm4, %vm3647_vm2  ;;  %v1944_v55 = vsel %vm1943_vm3, %v7275_v29, %v1942_v3  ;;  %vm1945_vm6 = vcmp.eq.f32.partialorder %v7275_v29, 0.0 }
 0x180   : > { %v4941_v35 = vmul.f32 %v4813_v28, %v3639_v19  ;;  %v3645_v25 = vmul.f32 %v5753_v59, %v3644_v31  ;;  %vm1955_vm7 = vcmp.eq.f32.partialorder %v7290_v11, inf  ;;  %v1947_v43 = vsel %vm1945_vm6, %v1946_v4, %v1944_v55 }
 0x181   : > { %v1953_v42 = vmul.f32 %v5755_v24, %v1952_v40  ;;  %v7346_v45 = vmax.f32 %v1364_v56, 0.0  ;;  %v3153_v0 = vmul.f32 1.1085125, %v1947_v43  ;;  %vm1957_vm8 = vcmp.eq.f32.partialorder %v7290_v11, 0.0  ;;  %v689_v24 = vpop.f32.mrf.mxu2 }
 0x182   : > { %v7344_v41 = vpop.eup %5756  ;;  %v5069_v33 = vmul.f32 0.81, %v4941_v35  ;;  %v3649_v20 = vsel %vm3648_vm5, %v5753_v59, %v3645_v25  ;;  %v1109_v48 = vadd.f32 %v6473_v52, %v7306_v54  ;;  %v1237_v44 = vmul.f32 2.0, %v576_v46 }
 0x183   : > { %v5759_v18 = vpop.eup %5758  ;;  %v4686_v12 = vmul.f32 %v3649_v20, %v3649_v20  ;;  %v3651_v26 = vmul.f32 %v7344_v41, %v7327_v6  ;;  %v1954_v29 = vmul.f32 %v1953_v42, %v7290_v11  ;;  %5762 = vrsqrt.f32 %v7346_v45 }
 0x184   : > { %5197 = vst [vmem:[%s6712_s22 + $0xc8] sm:$0xff] %v5069_v33  ;;  %v1961_v49 = vmul.f32 %v5759_v18, %v7319_v30  ;;  %v7358_v53 = vadd.f32 1.0, %v3153_v0  ;;  %v1958_v59 = vand.u32 2147483648, %v7290_v11  ;;  %vm3656_vm9 = vweird.f32 %v7327_v6 }
 0x185   : > { %v5761_v50 = vpop.eup %5760  ;;  %v4814_v38 = vmul.f32 %v4686_v12, %v4686_v12  ;;  %v3652_v21 = vmul.f32 %v7344_v41, %v3651_v26  ;;  %v1956_v32 = vsel %vm1955_vm7, %v7290_v11, %v1954_v29  ;;  %vm3657_vm10 = vweird.f32 %v7344_v41 }
 0x186   : > { %v3661_v22 = vmul.f32 %v5761_v50, %v7333_v13  ;;  %v1962_v37 = vmul.f32 %v5759_v18, %v1961_v49  ;;  %5764 = vrsqrt.f32 %v7358_v53  ;;  %v1959_v8 = vsel %vm1957_vm8, %v1958_v59, %v1956_v32  ;;  %vm3658_vm13 = vmor %vm3656_vm9, %vm3657_vm10 }
 0x187   : > { %v4942_v27 = vmul.f32 %v4814_v38, %v3649_v20  ;;  %v3653_v62 = vmul.f32 0.5, %v3652_v21  ;;  %vm1967_vm11 = vcmp.eq.f32.partialorder %v7319_v30, inf  ;;  %v3154_v58 = vmul.f32 1.1085125, %v1959_v8  ;;  %v7424_v8 = vpop.permute.xlu0 %954 }
 0x188   : > { %v3662_v23 = vmul.f32 %v5761_v50, %v3661_v22  ;;  %v1963_v1 = vmul.f32 0.5, %v1962_v37  ;;  %vm1969_vm12 = vcmp.eq.f32.partialorder %v7319_v30, 0.0  ;;  %v1365_v16 = vsub.f32 %v1109_v48, %v1237_v44 }
 0x189   : > { %v5070_v36 = vmul.f32 0.81, %v4942_v27  ;;  %v3654_v61 = vsub.f32 1.5, %v3653_v62  ;;  %v5763_v11 = vpop.eup %5762  ;;  %v1110_v19 = vadd.f32 %v6480_v60, %v7306_v54  ;;  %v1238_v9 = vmul.f32 2.0, %v689_v24 }
 0x18a   : > { %v3663_v17 = vmul.f32 0.5, %v3662_v23  ;;  %v1964_v10 = vsub.f32 1.5, %v1963_v1  ;;  %v7382_v14 = vadd.f32 1.0, %v3154_v58  ;;  %v1973_v5 = vmul.f32 %v5763_v11, %v7346_v45  ;;  %v466_v58 = vpop.f32.mrf.mxu0 }
 0x18b   : > { %5198 = vst [vmem:[%s6712_s22 + $0xd0] sm:$0xff] %v5070_v36  ;;  %v3655_v47 = vmul.f32 %v7344_v41, %v3654_v61  ;;  %v7385_v2 = vmax.f32 %v1365_v16, 0.0  ;;  %vm3666_vm14 = vweird.f32 %v7333_v13  ;;  %vm3667_vm15 = vweird.f32 %v5761_v50 }
 0x18c   : > { %v3664_v7 = vsub.f32 1.5, %v3663_v17  ;;  %v1965_v57 = vmul.f32 %v5759_v18, %v1964_v10  ;;  %v5765_v34 = vpop.eup %5764  ;;  %5766 = vrsqrt.f32 %v7382_v14  ;;  %v1970_v31 = vand.u32 2147483648, %v7319_v30  ;;  %vm3668_vm1 = vmor %vm3666_vm14, %vm3667_vm15 }
 0x18d   : > { %v3659_v28 = vsel %vm3658_vm13, %v7344_v41, %v3655_v47  ;;  %v1974_v3 = vmul.f32 %v5763_v11, %v1973_v5  ;;  %v3671_v35 = vmul.f32 %v5765_v34, %v7358_v53  ;;  %v1366_v25 = vsub.f32 %v1110_v19, %v1238_v9 }
 0x18e   : > { %v4687_v4 = vmul.f32 %v3659_v28, %v3659_v28  ;;  %v3665_v40 = vmul.f32 %v5761_v50, %v3664_v7  ;;  %v1966_v6 = vmul.f32 %v1965_v57, %v7319_v30  ;;  %vm1979_vm2 = vcmp.eq.f32.partialorder %v7346_v45, inf }
 0x18f   : > { %v1975_v56 = vmul.f32 0.5, %v1974_v3  ;;  %5768 = vrsqrt.f32 %v7385_v2  ;;  %v3672_v42 = vmul.f32 %v5765_v34, %v3671_v35  ;;  %vm3676_vm3 = vweird.f32 %v7358_v53 }
 0x190   : > { %v4815_v13 = vmul.f32 %v4687_v4, %v4687_v4  ;;  %v3669_v55 = vsel %vm3668_vm1, %v5761_v50, %v3665_v40  ;;  %v1968_v33 = vsel %vm1967_vm11, %v7319_v30, %v1966_v6  ;;  %v1982_v43 = vand.u32 2147483648, %v7346_v45  ;;  %v802_v50 = vpop.f32.mrf.mxu3 }
 0x191   : > { %v4688_v41 = vmul.f32 %v3669_v55, %v3669_v55  ;;  %v1976_v20 = vsub.f32 1.5, %v1975_v56  ;;  %v3673_v18 = vmul.f32 0.5, %v3672_v42  ;;  %v1971_v12 = vsel %vm1969_vm12, %v1970_v31, %v1968_v33 }
 0x192   : > { %v4943_v46 = vmul.f32 %v4815_v13, %v3659_v28  ;;  %v7406_v26 = vmax.f32 %v1366_v25, 0.0  ;;  %v5767_v0 = vpop.eup %5766  ;;  %v3155_v49 = vmul.f32 1.1085125, %v1971_v12  ;;  %v1111_v38 = vadd.f32 %v6484_v63, %v7306_v54  ;;  %v579_v13 = vpop.f32.mrf.mxu1 }
 0x193   : > { %v4816_v29 = vmul.f32 %v4688_v41, %v4688_v41  ;;  %v1977_v48 = vmul.f32 %v5763_v11, %v1976_v20  ;;  %v3674_v44 = vsub.f32 1.5, %v3673_v18  ;;  %vm3677_vm4 = vweird.f32 %v5765_v34 }
 0x194   : > { %v5071_v21 = vmul.f32 0.81, %v4943_v46  ;;  %v3681_v22 = vmul.f32 %v5767_v0, %v7382_v14  ;;  %v7411_v30 = vadd.f32 1.0, %v3155_v49  ;;  %5770 = vrsqrt.f32 %v7406_v26  ;;  %vm3678_vm5 = vmor %vm3676_vm3, %vm3677_vm4 }
 0x195   : > { %v5769_v32 = vpop.eup %5768  ;;  %v4944_v59 = vmul.f32 %v4816_v29, %v3669_v55  ;;  %v1978_v37 = vmul.f32 %v1977_v48, %v7346_v45  ;;  %v3675_v27 = vmul.f32 %v5765_v34, %v3674_v44  ;;  %v1239_v54 = vmul.f32 2.0, %v802_v50 }
 0x196   : > { %5199 = vst [vmem:[%s6712_s22 + $0xd8] sm:$0xff] %v5071_v21  ;;  %v3682_v62 = vmul.f32 %v5767_v0, %v3681_v22  ;;  %v1985_v24 = vmul.f32 %v5769_v32, %v7385_v2  ;;  %5772 = vrsqrt.f32 %v7411_v30  ;;  %vm1981_vm6 = vcmp.eq.f32.partialorder %v7346_v45, 0.0  ;;  %v692_v22 = vpop.f32.mrf.mxu2 }
 0x197   : > { %v5072_v39 = vmul.f32 0.81, %v4944_v59  ;;  %v1980_v23 = vsel %vm1979_vm2, %v7346_v45, %v1978_v37  ;;  %v3679_v1 = vsel %vm3678_vm5, %v5765_v34, %v3675_v27  ;;  %vm3687_vm7 = vweird.f32 %v5767_v0 }
 0x198   : > { %v3683_v15 = vmul.f32 0.5, %v3682_v62  ;;  %v1983_v36 = vsel %vm1981_vm6, %v1982_v43, %v1980_v23  ;;  %v1986_v61 = vmul.f32 %v5769_v32, %v1985_v24  ;;  %v4689_v16 = vmul.f32 %v3679_v1, %v3679_v1 }
 0x199   : > { %5200 = vst [vmem:[%s6712_s22 + $0xe0] sm:$0xff] %v5072_v39  ;;  %v3156_v53 = vmul.f32 1.1085125, %v1983_v36  ;;  %v1367_v10 = vsub.f32 %v1111_v38, %v1239_v54  ;;  %v1112_v19 = vadd.f32 %v6471_v51, %v7424_v8  ;;  %vm3686_vm8 = vweird.f32 %v7382_v14  ;;  %v303_v36 = vld [vmem:[%s6367_s8 + $0xd0] sm:$0xff] }
 0x19a   : > { %v3684_v11 = vsub.f32 1.5, %v3683_v15  ;;  %v1987_v17 = vmul.f32 0.5, %v1986_v61  ;;  %v5771_v9 = vpop.eup %5770  ;;  %v4817_v47 = vmul.f32 %v4689_v16, %v4689_v16  ;;  %v1240_v5 = vmul.f32 2.0, %v466_v58  ;;  %vm3688_vm9 = vmor %vm3686_vm8, %vm3687_vm7  ;;  %5469 = vmatmul.msk.f32.gmra.mxu0 %vm325_vm0, %v303_v36  ;;  %5501 = vmatmul.msk.f32.gmra.mxu1 %vm325_vm0, %v303_v36  ;;  %v900_v16 = vld [vmem:[%s6372_s12 + $0xd0] sm:$0xff] }
 0x19b   : > { %v7430_v45 = vadd.f32 1.0, %v3156_v53  ;;  %v1997_v34 = vmul.f32 %v5771_v9, %v7406_v26  ;;  %v7433_v28 = vmax.f32 %v1367_v10, 0.0  ;;  %vm1991_vm10 = vcmp.eq.f32.partialorder %v7385_v2, inf  ;;  %5533 = vmatmul.msk.f32.gmra.mxu2 %vm325_vm0, %v303_v36  ;;  %5565 = vmatmul.msk.f32.gmra.mxu3 %vm325_vm0, %v303_v36 }
 0x19c   : > { %v3685_v7 = vmul.f32 %v5767_v0, %v3684_v11  ;;  %v1988_v57 = vsub.f32 1.5, %v1987_v17  ;;  %v5773_v31 = vpop.eup %5772  ;;  %v4945_v3 = vmul.f32 %v4817_v47, %v3679_v1  ;;  %v1368_v4 = vsub.f32 %v1112_v19, %v1240_v5  ;;  %1039 = vperm.xlu2 %5639, %v900_v16  }
 0x19d   : > { %5774 = vrsqrt.f32 %v7430_v45  ;;  %v3691_v40 = vmul.f32 %v5773_v31, %v7411_v30  ;;  %vm1993_vm11 = vcmp.eq.f32.partialorder %v7385_v2, 0.0  ;;  %v1998_v56 = vmul.f32 %v5771_v9, %v1997_v34 }
 0x19e   : > { %v3689_v14 = vsel %vm3688_vm9, %v5767_v0, %v3685_v7  ;;  %v1989_v35 = vmul.f32 %v5769_v32, %v1988_v57  ;;  %v5073_v25 = vmul.f32 0.81, %v4945_v3  ;;  %5776 = vrsqrt.f32 %v7433_v28 }
 0x19f   : > { %v4690_v6 = vmul.f32 %v3689_v14, %v3689_v14  ;;  %v3692_v55 = vmul.f32 %v5773_v31, %v3691_v40  ;;  %v1994_v41 = vand.u32 2147483648, %v7385_v2  ;;  %vm2003_vm12 = vcmp.eq.f32.partialorder %v7406_v26, inf }
 0x1a0   : > { %v1990_v42 = vmul.f32 %v1989_v35, %v7385_v2  ;;  %5201 = vst [vmem:[%s6712_s22 + $0xe8] sm:$0xff] %v5073_v25  ;;  %vm3696_vm13 = vweird.f32 %v7411_v30  ;;  %v1999_v20 = vmul.f32 0.5, %v1998_v56  ;;  %v7446_v43 = vmax.f32 %v1368_v4, 0.0 }
 0x1a1   : > { %v4818_v33 = vmul.f32 %v4690_v6, %v4690_v6  ;;  %v3693_v46 = vmul.f32 0.5, %v3692_v55  ;;  %v1113_v12 = vadd.f32 %v6473_v52, %v7424_v8  ;;  %v1241_v0 = vmul.f32 2.0, %v579_v13 }
 0x1a2   : > { %v1992_v18 = vsel %vm1991_vm10, %v7385_v2, %v1990_v42  ;;  %v2000_v50 = vsub.f32 1.5, %v1999_v20  ;;  %5778 = vrsqrt.f32 %v7446_v43  ;;  %vm3697_vm14 = vweird.f32 %v5773_v31 }
 0x1a3   : > { %v5775_v29 = vpop.eup %5774  ;;  %v4946_v49 = vmul.f32 %v4818_v33, %v3689_v14  ;;  %v1995_v48 = vsel %vm1993_vm11, %v1994_v41, %v1992_v18  ;;  %v3694_v38 = vsub.f32 1.5, %v3693_v46  ;;  %vm2005_vm15 = vcmp.eq.f32.partialorder %v7406_v26, 0.0  ;;  %vm3698_vm1 = vmor %vm3696_vm13, %vm3697_vm14  ;;  %v805_v33 = vpop.f32.mrf.mxu3 }
 0x1a4   : > { %v3701_v21 = vmul.f32 %v5775_v29, %v7430_v45  ;;  %v3157_v44 = vmul.f32 1.1085125, %v1995_v48  ;;  %v5777_v32 = vpop.eup %5776  ;;  %v2001_v37 = vmul.f32 %v5771_v9, %v2000_v50  ;;  %v1114_v2 = vadd.f32 %v6480_v60, %v7424_v8 }
 0x1a5   : > { %v5074_v59 = vmul.f32 0.81, %v4946_v49  ;;  %v3695_v27 = vmul.f32 %v5773_v31, %v3694_v38  ;;  %v2009_v54 = vmul.f32 %v5777_v32, %v7433_v28  ;;  %v2006_v23 = vand.u32 2147483648, %v7406_v26 }
 0x1a6   : > { %v3702_v62 = vmul.f32 %v5775_v29, %v3701_v21  ;;  %v7460_v24 = vadd.f32 1.0, %v3157_v44  ;;  %v2002_v39 = vmul.f32 %v2001_v37, %v7406_v26  ;;  %v1369_v1 = vsub.f32 %v1113_v12, %v1241_v0  ;;  %v7501_v0 = vpop.permute.xlu1 %959 }
 0x1a7   : > { %5202 = vst [vmem:[%s6712_s22 + $0xf0] sm:$0xff] %v5074_v59  ;;  %v1242_v15 = vmul.f32 2.0, %v692_v22  ;;  %v3699_v61 = vsel %vm3698_vm1, %v5773_v31, %v3695_v27  ;;  %vm3707_vm2 = vweird.f32 %v5775_v29  ;;  %v2010_v17 = vmul.f32 %v5777_v32, %v2009_v54  ;;  %v469_v22 = vpop.f32.mrf.mxu0 }
 0x1a8   : > { %v3703_v58 = vmul.f32 0.5, %v3702_v62  ;;  %5780 = vrsqrt.f32 %v7460_v24  ;;  %v5779_v53 = vpop.eup %5778  ;;  %v4691_v30 = vmul.f32 %v3699_v61, %v3699_v61  ;;  %v2004_v11 = vsel %vm2003_vm12, %v7406_v26, %v2002_v39 }
 0x1a9   : > { %v7476_v10 = vmax.f32 %v1369_v1, 0.0  ;;  %v2007_v9 = vsel %vm2005_vm15, %v2006_v23, %v2004_v11  ;;  %v2021_v47 = vmul.f32 %v5779_v53, %v7446_v43  ;;  %v1370_v5 = vsub.f32 %v1114_v2, %v1242_v15 }
 0x1aa   : > { %v3704_v19 = vsub.f32 1.5, %v3703_v58  ;;  %v4819_v7 = vmul.f32 %v4691_v30, %v4691_v30  ;;  %v3158_v57 = vmul.f32 1.1085125, %v2007_v9  ;;  %v2011_v34 = vmul.f32 0.5, %v2010_v17 }
 0x1ab   : > { %5782 = vrsqrt.f32 %v7476_v10  ;;  %vm3706_vm3 = vweird.f32 %v7430_v45  ;;  %vm2015_vm4 = vcmp.eq.f32.partialorder %v7433_v28, inf  ;;  %v2022_v3 = vmul.f32 %v5779_v53, %v2021_v47 }
 0x1ac   : > { %v3705_v31 = vmul.f32 %v5775_v29, %v3704_v19  ;;  %v4947_v4 = vmul.f32 %v4819_v7, %v3699_v61  ;;  %vm3708_vm5 = vmor %vm3706_vm3, %vm3707_vm2  ;;  %v7487_v26 = vadd.f32 1.0, %v3158_v57  ;;  %v2012_v14 = vsub.f32 1.5, %v2011_v34 }
 0x1ad   : > { %vm2017_vm6 = vcmp.eq.f32.partialorder %v7433_v28, 0.0  ;;  %v2018_v25 = vand.u32 2147483648, %v7433_v28  ;;  %v2023_v6 = vmul.f32 0.5, %v2022_v3  ;;  %v7491_v56 = vmax.f32 %v1370_v5, 0.0 }
 0x1ae   : > { %v5781_v40 = vpop.eup %5780  ;;  %v3709_v35 = vsel %vm3708_vm5, %v5775_v29, %v3705_v31  ;;  %v5075_v45 = vmul.f32 0.81, %v4947_v4  ;;  %vm2027_vm7 = vcmp.eq.f32.partialorder %v7446_v43, inf  ;;  %5784 = vrsqrt.f32 %v7487_v26 }
 0x1af   : > { %v4692_v13 = vmul.f32 %v3709_v35, %v3709_v35  ;;  %v3711_v55 = vmul.f32 %v5781_v40, %v7460_v24  ;;  %v2013_v42 = vmul.f32 %v5777_v32, %v2012_v14  ;;  %v2024_v41 = vsub.f32 1.5, %v2023_v6 }
 0x1b0   : > { %vm2029_vm8 = vcmp.eq.f32.partialorder %v7446_v43, 0.0  ;;  %5203 = vst [vmem:[%s6712_s22 + $0xf8] sm:$0xff] %v5075_v45  ;;  %5786 = vrsqrt.f32 %v7491_v56  ;;  %v1115_v12 = vadd.f32 %v6484_v63, %v7424_v8  ;;  %v2030_v48 = vand.u32 2147483648, %v7446_v43 }
 0x1b1   : > { %v5783_v20 = vpop.eup %5782  ;;  %v4820_v46 = vmul.f32 %v4692_v13, %v4692_v13  ;;  %v3712_v18 = vmul.f32 %v5781_v40, %v3711_v55  ;;  %v2014_v29 = vmul.f32 %v2013_v42, %v7433_v28  ;;  %v2025_v49 = vmul.f32 %v5779_v53, %v2024_v41  ;;  %v582_v55 = vpop.f32.mrf.mxu1 }
 0x1b2   : > { %v2033_v50 = vmul.f32 %v5783_v20, %v7476_v10  ;;  %vm3717_vm9 = vweird.f32 %v5781_v40  ;;  %v1243_v44 = vmul.f32 2.0, %v805_v33  ;;  %v1116_v37 = vadd.f32 %v6471_v51, %v7501_v0 }
 0x1b3   : > { %v4948_v38 = vmul.f32 %v4820_v46, %v3709_v35  ;;  %v3713_v21 = vmul.f32 0.5, %v3712_v18  ;;  %v2016_v32 = vsel %vm2015_vm4, %v7433_v28, %v2014_v29  ;;  %v2026_v8 = vmul.f32 %v2025_v49, %v7446_v43 }
 0x1b4   : > { %v2034_v59 = vmul.f32 %v5783_v20, %v2033_v50  ;;  %v2019_v62 = vsel %vm2017_vm6, %v2018_v25, %v2016_v32  ;;  %v1371_v54 = vsub.f32 %v1115_v12, %v1243_v44  ;;  %v5785_v39 = vpop.eup %5784  ;;  %v1244_v36 = vmul.f32 2.0, %v469_v22  ;;  %v304_v32 = vld [vmem:[%s6367_s8 + $0xd8] sm:$0xff] }
 0x1b5   : > { %v5076_v2 = vmul.f32 0.81, %v4948_v38  ;;  %v3714_v27 = vsub.f32 1.5, %v3713_v21  ;;  %v3159_v23 = vmul.f32 1.1085125, %v2019_v62  ;;  %v2028_v1 = vsel %vm2027_vm7, %v7446_v43, %v2026_v8  ;;  %5470 = vmatmul.msk.f32.gmra.mxu0 %vm325_vm0, %v304_v32  ;;  %5502 = vmatmul.msk.f32.gmra.mxu1 %vm325_vm0, %v304_v32 }
 0x1b6   : > { %v2035_v15 = vmul.f32 0.5, %v2034_v59  ;;  %v5787_v61 = vpop.eup %5786  ;;  %vm3716_vm10 = vweird.f32 %v7460_v24  ;;  %v3721_v16 = vmul.f32 %v5785_v39, %v7487_v26  ;;  %v2031_v28 = vsel %vm2029_vm8, %v2030_v48, %v2028_v1  ;;  %5534 = vmatmul.msk.f32.gmra.mxu2 %vm325_vm0, %v304_v32  ;;  %5566 = vmatmul.msk.f32.gmra.mxu3 %vm325_vm0, %v304_v32 }
 0x1b7   : > { %5204 = vst [vmem:[%s6712_s22 + $0x100] sm:$0xff] %v5076_v2  ;;  %v3715_v58 = vmul.f32 %v5781_v40, %v3714_v27  ;;  %vm3718_vm11 = vmor %vm3716_vm10, %vm3717_vm9  ;;  %v7523_v53 = vadd.f32 1.0, %v3159_v23  ;;  %v3160_v30 = vmul.f32 1.1085125, %v2031_v28  ;;  %v2045_v17 = vmul.f32 %v5787_v61, %v7491_v56  ;;  %v903_v27 = vld [vmem:[%s6372_s12 + $0xe8] sm:$0xff]  ;;  %s6172_s12 = scalar_lea.hbm %s9661_s4, 2048 }
 0x1b8   : > { %v2036_v11 = vsub.f32 1.5, %v2035_v15  ;;  %v3722_v9 = vmul.f32 %v5785_v39, %v3721_v16  ;;  %vm2039_vm12 = vcmp.eq.f32.partialorder %v7476_v10, inf  ;;  %v7527_v47 = vmax.f32 %v1371_v54, 0.0  ;;  %1054 = vperm.xlu2 %5639, %v903_v27  }
 0x1b9   : > { %v3719_v19 = vsel %vm3718_vm11, %v5781_v40, %v3715_v58  ;;  %5788 = vrsqrt.f32 %v7523_v53  ;;  %v7530_v5 = vadd.f32 1.0, %v3160_v30  ;;  %v1372_v43 = vsub.f32 %v1116_v37, %v1244_v36 }
 0x1ba   : > { %v4693_v24 = vmul.f32 %v3719_v19, %v3719_v19  ;;  %v3723_v7 = vmul.f32 0.5, %v3722_v9  ;;  %v2037_v57 = vmul.f32 %v5783_v20, %v2036_v11  ;;  %v2046_v34 = vmul.f32 %v5787_v61, %v2045_v17 }
 0x1bb   : > { %5790 = vrsqrt.f32 %v7527_v47  ;;  %vm2041_vm13 = vcmp.eq.f32.partialorder %v7476_v10, 0.0  ;;  %v2042_v3 = vand.u32 2147483648, %v7476_v10  ;;  %vm3727_vm14 = vweird.f32 %v5785_v39 }
 0x1bc   : > { %v4821_v31 = vmul.f32 %v4693_v24, %v4693_v24  ;;  %5792 = vrsqrt.f32 %v7530_v5  ;;  %v3724_v4 = vsub.f32 1.5, %v3723_v7  ;;  %v2038_v14 = vmul.f32 %v2037_v57, %v7476_v10 }
 0x1bd   : > { %v2047_v40 = vmul.f32 0.5, %v2046_v34  ;;  %vm3726_vm15 = vweird.f32 %v7487_v26  ;;  %vm2051_vm1 = vcmp.eq.f32.partialorder %v7491_v56, inf  ;;  %v7539_v25 = vmax.f32 %v1372_v43, 0.0 }
 0x1be   : > { %v4949_v35 = vmul.f32 %v4821_v31, %v3719_v19  ;;  %v3725_v6 = vmul.f32 %v5785_v39, %v3724_v4  ;;  %v2040_v45 = vsel %vm2039_vm12, %v7476_v10, %v2038_v14  ;;  %vm2053_vm2 = vcmp.eq.f32.partialorder %v7491_v56, 0.0  ;;  %vm3728_vm3 = vmor %vm3726_vm15, %vm3727_vm14 }
 0x1bf   : > { %v2048_v13 = vsub.f32 1.5, %v2047_v40  ;;  %v7545_v42 = vpop.eup %5788  ;;  %v2043_v26 = vsel %vm2041_vm13, %v2042_v3, %v2040_v45  ;;  %v2054_v33 = vand.u32 2147483648, %v7491_v56  ;;  %5794 = vrsqrt.f32 %v7539_v25  ;;  %v695_v40 = vpop.f32.mrf.mxu2 }
 0x1c0   : > { %v5077_v41 = vmul.f32 0.81, %v4949_v35  ;;  %v3729_v46 = vsel %vm3728_vm3, %v5785_v39, %v3725_v6  ;;  %v3731_v18 = vmul.f32 %v7545_v42, %v7523_v53  ;;  %vm3736_vm4 = vweird.f32 %v7523_v53 }
 0x1c1   : > { %v5791_v20 = vpop.eup %5790  ;;  %v3161_v12 = vmul.f32 1.1085125, %v2043_v26  ;;  %v1117_v29 = vadd.f32 %v6473_v52, %v7501_v0  ;;  %v4694_v10 = vmul.f32 %v3729_v46, %v3729_v46  ;;  %v2049_v48 = vmul.f32 %v5787_v61, %v2048_v13 }
 0x1c2   : > { %v5793_v49 = vpop.eup %5792  ;;  %5205 = vst [vmem:[%s6712_s22 + $0x108] sm:$0xff] %v5077_v41  ;;  %v2057_v50 = vmul.f32 %v5791_v20, %v7527_v47  ;;  %v1245_v38 = vmul.f32 2.0, %v582_v55  ;;  %v3732_v21 = vmul.f32 %v7545_v42, %v3731_v18  ;;  %vm3746_vm5 = vweird.f32 %v7530_v5 }
 0x1c3   : > { %v3741_v44 = vmul.f32 %v5793_v49, %v7530_v5  ;;  %v7561_v22 = vadd.f32 1.0, %v3161_v12  ;;  %v4822_v8 = vmul.f32 %v4694_v10, %v4694_v10  ;;  %v2050_v59 = vmul.f32 %v2049_v48, %v7491_v56 }
 0x1c4   : > { %v2058_v37 = vmul.f32 %v5791_v20, %v2057_v50  ;;  %v2066_v2 = vand.u32 2147483648, %v7527_v47  ;;  %v3733_v62 = vmul.f32 0.5, %v3732_v21  ;;  %vm3737_vm6 = vweird.f32 %v7545_v42 }
 0x1c5   : > { %v3742_v54 = vmul.f32 %v5793_v49, %v3741_v44  ;;  %5796 = vrsqrt.f32 %v7561_v22  ;;  %v5795_v39 = vpop.eup %5794  ;;  %v4950_v23 = vmul.f32 %v4822_v8, %v3729_v46  ;;  %v2052_v1 = vsel %vm2051_vm1, %v7491_v56, %v2050_v59  ;;  %vm3738_vm10 = vmor %vm3736_vm4, %vm3737_vm6 }
 0x1c6   : > { %v2059_v15 = vmul.f32 0.5, %v2058_v37  ;;  %vm2063_vm7 = vcmp.eq.f32.partialorder %v7527_v47, inf  ;;  %v1373_v36 = vsub.f32 %v1117_v29, %v1245_v38  ;;  %v3734_v61 = vsub.f32 1.5, %v3733_v62 }
 0x1c7   : > { %v3743_v58 = vmul.f32 0.5, %v3742_v54  ;;  %v2055_v16 = vsel %vm2053_vm2, %v2054_v33, %v2052_v1  ;;  %vm2065_vm8 = vcmp.eq.f32.partialorder %v7527_v47, 0.0  ;;  %v2069_v28 = vmul.f32 %v5795_v39, %v7539_v25 }
 0x1c8   : > { %v5078_v30 = vmul.f32 0.81, %v4950_v23  ;;  %v3162_v11 = vmul.f32 1.1085125, %v2055_v16  ;;  %v2060_v17 = vsub.f32 1.5, %v2059_v15  ;;  %v7581_v19 = vmax.f32 %v1373_v36, 0.0 }
 0x1c9   : > { %v3735_v9 = vmul.f32 %v7545_v42, %v3734_v61  ;;  %v3744_v24 = vsub.f32 1.5, %v3743_v58  ;;  %vm3747_vm9 = vweird.f32 %v5793_v49  ;;  %v2070_v43 = vmul.f32 %v5795_v39, %v2069_v28 }
 0x1ca   : > { %5206 = vst [vmem:[%s6712_s22 + $0x110] sm:$0xff] %v5078_v30  ;;  %v7589_v56 = vadd.f32 1.0, %v3162_v11  ;;  %v2061_v7 = vmul.f32 %v5791_v20, %v2060_v17  ;;  %vm2075_vm11 = vcmp.eq.f32.partialorder %v7539_v25, inf  ;;  %5798 = vrsqrt.f32 %v7581_v19  ;;  %vm3748_vm13 = vmor %vm3746_vm5, %vm3747_vm9  ;;  %v808_v20 = vpop.f32.mrf.mxu3  ;;  %v7631_v30 = vpop.permute.xlu2 %964 }
 0x1cb   : > { %v5797_v57 = vpop.eup %5796  ;;  %v3739_v34 = vsel %vm3738_vm10, %v7545_v42, %v3735_v9  ;;  %v3745_v31 = vmul.f32 %v5793_v49, %v3744_v24  ;;  %v2071_v3 = vmul.f32 0.5, %v2070_v43  ;;  %vm2077_vm12 = vcmp.eq.f32.partialorder %v7539_v25, 0.0  ;;  %v585_v17 = vpop.f32.mrf.mxu1 }
 0x1cc   : > { %v4695_v4 = vmul.f32 %v3739_v34, %v3739_v34  ;;  %v3751_v53 = vmul.f32 %v5797_v57, %v7561_v22  ;;  %5800 = vrsqrt.f32 %v7589_v56  ;;  %v2078_v14 = vand.u32 2147483648, %v7539_v25 }
 0x1cd   : > { %v3749_v35 = vsel %vm3748_vm13, %v5793_v49, %v3745_v31  ;;  %v2062_v6 = vmul.f32 %v2061_v7, %v7527_v47  ;;  %v2072_v45 = vsub.f32 1.5, %v2071_v3  ;;  %v1118_v13 = vadd.f32 %v6480_v60, %v7501_v0 }
 0x1ce   : > { %v4823_v55 = vmul.f32 %v4695_v4, %v4695_v4  ;;  %v4696_v42 = vmul.f32 %v3749_v35, %v3749_v35  ;;  %v3752_v41 = vmul.f32 %v5797_v57, %v3751_v53  ;;  %vm3757_vm14 = vweird.f32 %v5797_v57 }
 0x1cf   : > { %v2064_v5 = vsel %vm2063_vm7, %v7527_v47, %v2062_v6  ;;  %v2073_v26 = vmul.f32 %v5795_v39, %v2072_v45  ;;  %v1246_v33 = vmul.f32 2.0, %v695_v40  ;;  %v1119_v46 = vadd.f32 %v6484_v63, %v7501_v0 }
 0x1d0   : > { %v5799_v18 = vpop.eup %5798  ;;  %v4951_v12 = vmul.f32 %v4823_v55, %v3739_v34  ;;  %v4824_v29 = vmul.f32 %v4696_v42, %v4696_v42  ;;  %v3753_v49 = vmul.f32 0.5, %v3752_v41  ;;  %v2067_v10 = vsel %vm2065_vm8, %v2066_v2, %v2064_v5 }
 0x1d1   : > { %v3163_v48 = vmul.f32 1.1085125, %v2067_v10  ;;  %v2074_v50 = vmul.f32 %v2073_v26, %v7539_v25  ;;  %v2081_v38 = vmul.f32 %v5799_v18, %v7581_v19  ;;  %v1374_v21 = vsub.f32 %v1118_v13, %v1246_v33 }
 0x1d2   : > { %v5801_v44 = vpop.eup %5800  ;;  %v5079_v32 = vmul.f32 0.81, %v4951_v12  ;;  %v4952_v8 = vmul.f32 %v4824_v29, %v3749_v35  ;;  %v3754_v0 = vsub.f32 1.5, %v3753_v49  ;;  %v1247_v59 = vmul.f32 2.0, %v808_v20 }
 0x1d3   : > { %vm3756_vm15 = vweird.f32 %v7561_v22  ;;  %v3761_v37 = vmul.f32 %v5801_v44, %v7589_v56  ;;  %v7616_v27 = vadd.f32 1.0, %v3163_v48  ;;  %v2076_v47 = vsel %vm2075_vm11, %v7539_v25, %v2074_v50  ;;  %v472_v25 = vpop.f32.mrf.mxu0 }
 0x1d4   : > { %5207 = vst [vmem:[%s6712_s22 + $0x118] sm:$0xff] %v5079_v32  ;;  %v5080_v2 = vmul.f32 0.81, %v4952_v8  ;;  %v3755_v62 = vmul.f32 %v5797_v57, %v3754_v0  ;;  %v2079_v54 = vsel %vm2077_vm12, %v2078_v14, %v2076_v47  ;;  %v2082_v39 = vmul.f32 %v5799_v18, %v2081_v38  ;;  %vm3758_vm1 = vmor %vm3756_vm15, %vm3757_vm14 }
 0x1d5   : > { %v3762_v23 = vmul.f32 %v5801_v44, %v3761_v37  ;;  %5802 = vrsqrt.f32 %v7616_v27  ;;  %v3164_v22 = vmul.f32 1.1085125, %v2079_v54  ;;  %v7627_v36 = vmax.f32 %v1374_v21, 0.0 }
 0x1d6   : > { %5208 = vst [vmem:[%s6712_s22 + $0x120] sm:$0xff] %v5080_v2  ;;  %v3759_v1 = vsel %vm3758_vm1, %v5797_v57, %v3755_v62  ;;  %v2083_v15 = vmul.f32 0.5, %v2082_v39  ;;  %v1375_v61 = vsub.f32 %v1119_v46, %v1247_v59  ;;  %vm3766_vm2 = vweird.f32 %v7589_v56 }
 0x1d7   : > { %v4697_v58 = vmul.f32 %v3759_v1, %v3759_v1  ;;  %v3763_v16 = vmul.f32 0.5, %v3762_v23  ;;  %v7629_v28 = vadd.f32 1.0, %v3164_v22  ;;  %5804 = vrsqrt.f32 %v7627_v36  ;;  %v698_v22 = vpop.f32.mrf.mxu2 }
 0x1d8   : > { %v2084_v11 = vsub.f32 1.5, %v2083_v15  ;;  %vm3767_vm3 = vweird.f32 %v5801_v44  ;;  %v7636_v7 = vmax.f32 %v1375_v61, 0.0  ;;  %v1120_v57 = vadd.f32 %v6471_v51, %v7631_v30 }
 0x1d9   : > { %v4825_v9 = vmul.f32 %v4697_v58, %v4697_v58  ;;  %v3764_v24 = vsub.f32 1.5, %v3763_v16  ;;  %5806 = vrsqrt.f32 %v7629_v28  ;;  %v1248_v34 = vmul.f32 2.0, %v472_v25  ;;  %vm3768_vm4 = vmor %vm3766_vm2, %vm3767_vm3 }
 0x1da   : > { %v2085_v43 = vmul.f32 %v5799_v18, %v2084_v11  ;;  %v1121_v53 = vadd.f32 %v6473_v52, %v7631_v30  ;;  %v1249_v14 = vmul.f32 2.0, %v585_v17  ;;  %5808 = vrsqrt.f32 %v7636_v7 }
 0x1db   : > { %v5803_v31 = vpop.eup %5802  ;;  %v4953_v3 = vmul.f32 %v4825_v9, %v3759_v1  ;;  %v3765_v4 = vmul.f32 %v5801_v44, %v3764_v24  ;;  %vm2087_vm5 = vcmp.eq.f32.partialorder %v7581_v19, inf  ;;  %v2090_v13 = vand.u32 2147483648, %v7581_v19  ;;  %v305_v1 = vld [vmem:[%s6367_s8 + $0xe0] sm:$0xff] }
 0x1dc   : > { %v3771_v40 = vmul.f32 %v5803_v31, %v7616_v27  ;;  %v2086_v35 = vmul.f32 %v2085_v43, %v7581_v19  ;;  %vm2089_vm6 = vcmp.eq.f32.partialorder %v7581_v19, 0.0  ;;  %v1376_v20 = vsub.f32 %v1120_v57, %v1248_v34  ;;  %5471 = vmatmul.msk.f32.gmra.mxu0 %vm325_vm0, %v305_v1  ;;  %5503 = vmatmul.msk.f32.gmra.mxu1 %vm325_vm0, %v305_v1 }
 0x1dd   : > { %v5081_v6 = vmul.f32 0.81, %v4953_v3  ;;  %v3769_v45 = vsel %vm3768_vm4, %v5801_v44, %v3765_v4  ;;  %v5805_v55 = vpop.eup %5804  ;;  %v1377_v46 = vsub.f32 %v1121_v53, %v1249_v14  ;;  %vm3776_vm7 = vweird.f32 %v7616_v27  ;;  %v811_v27 = vpop.f32.mrf.mxu3  ;;  %5535 = vmatmul.msk.f32.gmra.mxu2 %vm325_vm0, %v305_v1  ;;  %5567 = vmatmul.msk.f32.gmra.mxu3 %vm325_vm0, %v305_v1 }
 0x1de   : > { %v4698_v42 = vmul.f32 %v3769_v45, %v3769_v45  ;;  %v3772_v41 = vmul.f32 %v5803_v31, %v3771_v40  ;;  %v2088_v5 = vsel %vm2087_vm5, %v7581_v19, %v2086_v35  ;;  %v2093_v33 = vmul.f32 %v5805_v55, %v7627_v36 }
 0x1df   : > { %v5807_v56 = vpop.eup %5806  ;;  %5209 = vst [vmem:[%s6712_s22 + $0x128] sm:$0xff] %v5081_v6  ;;  %v2091_v26 = vsel %vm2089_vm6, %v2090_v13, %v2088_v5  ;;  %vm3777_vm8 = vweird.f32 %v5803_v31  ;;  %v7655_v48 = vmax.f32 %v1376_v20, 0.0  ;;  %vm2099_vm9 = vcmp.eq.f32.partialorder %v7627_v36, inf }
 0x1e0   : > { %v4826_v18 = vmul.f32 %v4698_v42, %v4698_v42  ;;  %v3773_v12 = vmul.f32 0.5, %v3772_v41  ;;  %v3781_v29 = vmul.f32 %v5807_v56, %v7629_v28  ;;  %v3165_v49 = vmul.f32 1.1085125, %v2091_v26  ;;  %v5809_v50 = vpop.eup %5808  ;;  %vm3778_vm11 = vmor %vm3776_vm7, %vm3777_vm8 }
 0x1e1   : > { %v2094_v10 = vmul.f32 %v5805_v55, %v2093_v33  ;;  %v7658_v44 = vmax.f32 %v1377_v46, 0.0  ;;  %v2105_v0 = vmul.f32 %v5809_v50, %v7636_v7  ;;  %5810 = vrsqrt.f32 %v7655_v48 }
 0x1e2   : > { %v4954_v19 = vmul.f32 %v4826_v18, %v3769_v45  ;;  %v3774_v38 = vsub.f32 1.5, %v3773_v12  ;;  %v3782_v21 = vmul.f32 %v5807_v56, %v3781_v29  ;;  %v7660_v32 = vadd.f32 1.0, %v3165_v49 }
 0x1e3   : > { %v2095_v8 = vmul.f32 0.5, %v2094_v10  ;;  %vm2101_vm10 = vcmp.eq.f32.partialorder %v7627_v36, 0.0  ;;  %vm3786_vm12 = vweird.f32 %v7629_v28  ;;  %v2106_v62 = vmul.f32 %v5809_v50, %v2105_v0 }
 0x1e4   : > { %v5082_v59 = vmul.f32 0.81, %v4954_v19  ;;  %v3775_v37 = vmul.f32 %v5803_v31, %v3774_v38  ;;  %v3783_v47 = vmul.f32 0.5, %v3782_v21  ;;  %5812 = vrsqrt.f32 %v7660_v32 }
 0x1e5   : > { %v2096_v2 = vsub.f32 1.5, %v2095_v8  ;;  %vm3787_vm13 = vweird.f32 %v5807_v56  ;;  %v2102_v23 = vand.u32 2147483648, %v7627_v36  ;;  %v2107_v58 = vmul.f32 0.5, %v2106_v62 }
 0x1e6   : > { %5210 = vst [vmem:[%s6712_s22 + $0x130] sm:$0xff] %v5082_v59  ;;  %v3779_v54 = vsel %vm3778_vm11, %v5803_v31, %v3775_v37  ;;  %v3784_v39 = vsub.f32 1.5, %v3783_v47  ;;  %5814 = vrsqrt.f32 %v7658_v44  ;;  %vm2111_vm14 = vcmp.eq.f32.partialorder %v7636_v7, inf  ;;  %vm3788_vm1 = vmor %vm3786_vm12, %vm3787_vm13  ;;  %v7709_v37 = vpop.permute.xlu0 %969  ;;  %v475_v47 = vpop.f32.mrf.mxu0 }
 0x1e7   : > { %v4699_v15 = vmul.f32 %v3779_v54, %v3779_v54  ;;  %v2097_v61 = vmul.f32 %v5805_v55, %v2096_v2  ;;  %vm2113_vm15 = vcmp.eq.f32.partialorder %v7636_v7, 0.0  ;;  %v1122_v25 = vadd.f32 %v6480_v60, %v7631_v30  ;;  %v5811_v11 = vpop.eup %5810 }
 0x1e8   : > { %v3785_v16 = vmul.f32 %v5807_v56, %v3784_v39  ;;  %v2108_v24 = vsub.f32 1.5, %v2107_v58  ;;  %v1250_v43 = vmul.f32 2.0, %v698_v22  ;;  %v2117_v34 = vmul.f32 %v5811_v11, %v7655_v48 }
 0x1e9   : > { %v4827_v17 = vmul.f32 %v4699_v15, %v4699_v15  ;;  %v2098_v9 = vmul.f32 %v2097_v61, %v7627_v36  ;;  %v1123_v31 = vadd.f32 %v6484_v63, %v7631_v30  ;;  %v1251_v3 = vmul.f32 2.0, %v811_v27 }
 0x1ea   : > { %v3789_v57 = vsel %vm3788_vm1, %v5807_v56, %v3785_v16  ;;  %v5813_v4 = vpop.eup %5812  ;;  %v2109_v40 = vmul.f32 %v5809_v50, %v2108_v24  ;;  %v2114_v45 = vand.u32 2147483648, %v7636_v7  ;;  %v2118_v13 = vmul.f32 %v5811_v11, %v2117_v34 }
 0x1eb   : > { %v4955_v53 = vmul.f32 %v4827_v17, %v3779_v54  ;;  %v4700_v14 = vmul.f32 %v3789_v57, %v3789_v57  ;;  %v2100_v28 = vsel %vm2099_vm9, %v7627_v36, %v2098_v9  ;;  %v3791_v35 = vmul.f32 %v5813_v4, %v7660_v32 }
 0x1ec   : > { %v2103_v6 = vsel %vm2101_vm10, %v2102_v23, %v2100_v28  ;;  %v5815_v55 = vpop.eup %5814  ;;  %v2110_v5 = vmul.f32 %v2109_v40, %v7636_v7  ;;  %v2119_v26 = vmul.f32 0.5, %v2118_v13  ;;  %v1378_v20 = vsub.f32 %v1122_v25, %v1250_v43 }
 0x1ed   : > { %v5083_v30 = vmul.f32 0.81, %v4955_v53  ;;  %v4828_v42 = vmul.f32 %v4700_v14, %v4700_v14  ;;  %v3166_v41 = vmul.f32 1.1085125, %v2103_v6  ;;  %v3792_v56 = vmul.f32 %v5813_v4, %v3791_v35 }
 0x1ee   : > { %v2129_v33 = vmul.f32 %v5815_v55, %v7658_v44  ;;  %v2112_v36 = vsel %vm2111_vm14, %v7636_v7, %v2110_v5  ;;  %v1379_v12 = vsub.f32 %v1123_v31, %v1251_v3  ;;  %v2120_v10 = vsub.f32 1.5, %v2119_v26 }
 0x1ef   : > { %5211 = vst [vmem:[%s6712_s22 + $0x138] sm:$0xff] %v5083_v30  ;;  %v4956_v46 = vmul.f32 %v4828_v42, %v3789_v57  ;;  %v7699_v18 = vadd.f32 1.0, %v3166_v41  ;;  %v3793_v29 = vmul.f32 0.5, %v3792_v56  ;;  %v2115_v49 = vsel %vm2113_vm15, %v2114_v45, %v2112_v36  ;;  %v588_v41 = vpop.f32.mrf.mxu1 }
 0x1f0   : > { %v2130_v50 = vmul.f32 %v5815_v55, %v2129_v33  ;;  %vm3797_vm2 = vweird.f32 %v5813_v4  ;;  %v3167_v38 = vmul.f32 1.1085125, %v2115_v49  ;;  %v2121_v8 = vmul.f32 %v5811_v11, %v2120_v10  ;;  %v701_v10 = vpop.f32.mrf.mxu2 }
 0x1f1   : > { %v5084_v19 = vmul.f32 0.81, %v4956_v46  ;;  %5816 = vrsqrt.f32 %v7699_v18  ;;  %v3794_v21 = vsub.f32 1.5, %v3793_v29  ;;  %v7707_v59 = vmax.f32 %v1378_v20, 0.0 }
 0x1f2   : > { %v2131_v0 = vmul.f32 0.5, %v2130_v50  ;;  %vm3796_vm3 = vweird.f32 %v7660_v32  ;;  %v7713_v7 = vadd.f32 1.0, %v3167_v38  ;;  %vm2123_vm4 = vcmp.eq.f32.partialorder %v7655_v48, inf }
 0x1f3   : > { %5212 = vst [vmem:[%s6712_s22 + $0x140] sm:$0xff] %v5084_v19  ;;  %v7716_v2 = vmax.f32 %v1379_v12, 0.0  ;;  %v3795_v62 = vmul.f32 %v5813_v4, %v3794_v21  ;;  %v2122_v54 = vmul.f32 %v2121_v8, %v7655_v48  ;;  %5818 = vrsqrt.f32 %v7707_v59  ;;  %vm3798_vm5 = vmor %vm3796_vm3, %vm3797_vm2 }
 0x1f4   : > { %v2132_v39 = vsub.f32 1.5, %v2131_v0  ;;  %5820 = vrsqrt.f32 %v7713_v7  ;;  %v2126_v23 = vand.u32 2147483648, %v7655_v48  ;;  %v1124_v32 = vadd.f32 %v6471_v51, %v7709_v37 }
 0x1f5   : > { %v1252_v22 = vmul.f32 2.0, %v475_v47  ;;  %v3799_v1 = vsel %vm3798_vm5, %v5813_v4, %v3795_v62  ;;  %v2124_v15 = vsel %vm2123_vm4, %v7655_v48, %v2122_v54  ;;  %vm2125_vm6 = vcmp.eq.f32.partialorder %v7655_v48, 0.0 }
 0x1f6   : > { %v2133_v61 = vmul.f32 %v5815_v55, %v2132_v39  ;;  %v4701_v27 = vmul.f32 %v3799_v1, %v3799_v1  ;;  %v2127_v16 = vsel %vm2125_vm6, %v2126_v23, %v2124_v15  ;;  %5822 = vrsqrt.f32 %v7716_v2 }
 0x1f7   : > { %v5817_v58 = vpop.eup %5816  ;;  %v3168_v11 = vmul.f32 1.1085125, %v2127_v16  ;;  %vm2135_vm7 = vcmp.eq.f32.partialorder %v7658_v44, inf  ;;  %vm2137_vm8 = vcmp.eq.f32.partialorder %v7658_v44, 0.0  ;;  %v2138_v24 = vand.u32 2147483648, %v7658_v44 }
 0x1f8   : > { %v3801_v25 = vmul.f32 %v5817_v58, %v7699_v18  ;;  %v2134_v17 = vmul.f32 %v2133_v61, %v7658_v44  ;;  %v4829_v9 = vmul.f32 %v4701_v27, %v4701_v27  ;;  %v1380_v43 = vsub.f32 %v1124_v32, %v1252_v22  ;;  %v306_v22 = vld [vmem:[%s6367_s8 + $0xe8] sm:$0xff] }
 0x1f9   : > { %v5819_v48 = vpop.eup %5818  ;;  %vm3806_vm9 = vweird.f32 %v7699_v18  ;;  %v7734_v34 = vadd.f32 1.0, %v3168_v11  ;;  %vm3816_vm10 = vweird.f32 %v7713_v7  ;;  %vm3807_vm11 = vweird.f32 %v5817_v58  ;;  %5472 = vmatmul.msk.f32.gmra.mxu0 %vm325_vm0, %v306_v22  ;;  %5504 = vmatmul.msk.f32.gmra.mxu1 %vm325_vm0, %v306_v22 }
 0x1fa   : > { %v3802_v57 = vmul.f32 %v5817_v58, %v3801_v25  ;;  %v2136_v31 = vsel %vm2135_vm7, %v7658_v44, %v2134_v17  ;;  %v5821_v3 = vpop.eup %5820  ;;  %v4957_v4 = vmul.f32 %v4829_v9, %v3799_v1  ;;  %v2141_v14 = vmul.f32 %v5819_v48, %v7707_v59  ;;  %vm3808_vm14 = vmor %vm3806_vm9, %vm3807_vm11  ;;  %5536 = vmatmul.msk.f32.gmra.mxu2 %vm325_vm0, %v306_v22 }
 0x1fb   : > { %v2139_v53 = vsel %vm2137_vm8, %v2138_v24, %v2136_v31  ;;  %v7738_v28 = vmax.f32 %v1380_v43, 0.0  ;;  %v3811_v35 = vmul.f32 %v5821_v3, %v7713_v7  ;;  %5824 = vrsqrt.f32 %v7734_v34  ;;  %5568 = vmatmul.msk.f32.gmra.mxu3 %vm325_vm0, %v306_v22 }
 0x1fc   : > { %v3803_v40 = vmul.f32 0.5, %v3802_v57  ;;  %v5823_v6 = vpop.eup %5822  ;;  %v5085_v45 = vmul.f32 0.81, %v4957_v4  ;;  %v3169_v13 = vmul.f32 1.1085125, %v2139_v53  ;;  %v2142_v44 = vmul.f32 %v5819_v48, %v2141_v14 }
 0x1fd   : > { %v3812_v30 = vmul.f32 %v5821_v3, %v3811_v35  ;;  %vm2147_vm12 = vcmp.eq.f32.partialorder %v7707_v59, inf  ;;  %v2153_v42 = vmul.f32 %v5823_v6, %v7716_v2  ;;  %5826 = vrsqrt.f32 %v7738_v28 }
 0x1fe   : > { %v3804_v55 = vsub.f32 1.5, %v3803_v40  ;;  %5213 = vst [vmem:[%s6712_s22 + $0x148] sm:$0xff] %v5085_v45  ;;  %v7747_v5 = vadd.f32 1.0, %v3169_v13  ;;  %v2143_v56 = vmul.f32 0.5, %v2142_v44  ;;  %vm2149_vm13 = vcmp.eq.f32.partialorder %v7707_v59, 0.0 }
 0x1ff   : > { %v2150_v26 = vand.u32 2147483648, %v7707_v59  ;;  %v3813_v20 = vmul.f32 0.5, %v3812_v30  ;;  %v2154_v46 = vmul.f32 %v5823_v6, %v2153_v42  ;;  %v1125_v36 = vadd.f32 %v6473_v52, %v7709_v37 }
 0x200   : > { %v3805_v33 = vmul.f32 %v5817_v58, %v3804_v55  ;;  %5828 = vrsqrt.f32 %v7747_v5  ;;  %v2144_v12 = vsub.f32 1.5, %v2143_v56  ;;  %vm2159_vm15 = vcmp.eq.f32.partialorder %v7716_v2, inf }
 0x201   : > { %v2162_v29 = vand.u32 2147483648, %v7716_v2  ;;  %v1253_v49 = vmul.f32 2.0, %v588_v41  ;;  %v5825_v50 = vpop.eup %5824  ;;  %v3814_v38 = vsub.f32 1.5, %v3813_v20  ;;  %vm3817_vm1 = vweird.f32 %v5821_v3 }
 0x202   : > { %v3809_v19 = vsel %vm3808_vm14, %v5817_v58, %v3805_v33  ;;  %v2155_v21 = vmul.f32 0.5, %v2154_v46  ;;  %vm2161_vm2 = vcmp.eq.f32.partialorder %v7716_v2, 0.0  ;;  %v3821_v18 = vmul.f32 %v5825_v50, %v7734_v34  ;;  %vm3818_vm4 = vmor %vm3816_vm10, %vm3817_vm1 }
 0x203   : > { %v4702_v8 = vmul.f32 %v3809_v19, %v3809_v19  ;;  %vm3826_vm3 = vweird.f32 %v7734_v34  ;;  %v2145_v0 = vmul.f32 %v5819_v48, %v2144_v12  ;;  %v1126_v47 = vadd.f32 %v6480_v60, %v7709_v37  ;;  %v5827_v62 = vpop.eup %5826 }
 0x204   : > { %v3815_v54 = vmul.f32 %v5821_v3, %v3814_v38  ;;  %v2156_v39 = vsub.f32 1.5, %v2155_v21  ;;  %v1381_v23 = vsub.f32 %v1125_v36, %v1253_v49  ;;  %v1254_v32 = vmul.f32 2.0, %v701_v10 }
 0x205   : > { %v4830_v1 = vmul.f32 %v4702_v8, %v4702_v8  ;;  %v3822_v15 = vmul.f32 %v5825_v50, %v3821_v18  ;;  %vm3827_vm5 = vweird.f32 %v5825_v50  ;;  %v2146_v61 = vmul.f32 %v2145_v0, %v7707_v59 }
 0x206   : > { %v3819_v58 = vsel %vm3818_vm4, %v5821_v3, %v3815_v54  ;;  %v2157_v27 = vmul.f32 %v5823_v6, %v2156_v39  ;;  %v2165_v16 = vmul.f32 %v5827_v62, %v7738_v28  ;;  %v7771_v25 = vmax.f32 %v1381_v23, 0.0  ;;  %v5829_v11 = vpop.eup %5828  ;;  %vm3828_vm6 = vmor %vm3826_vm3, %vm3827_vm5 }
 0x207   : > { %v4958_v17 = vmul.f32 %v4830_v1, %v3809_v19  ;;  %v4703_v7 = vmul.f32 %v3819_v58, %v3819_v58  ;;  %v3823_v9 = vmul.f32 0.5, %v3822_v15  ;;  %v2148_v24 = vsel %vm2147_vm12, %v7707_v59, %v2146_v61  ;;  %v7807_v19 = vpop.permute.xlu1 %974 }
 0x208   : > { %v3831_v43 = vmul.f32 %v5829_v11, %v7747_v5  ;;  %v2151_v48 = vsel %vm2149_vm13, %v2150_v26, %v2148_v24  ;;  %v2158_v57 = vmul.f32 %v2157_v27, %v7716_v2  ;;  %v1382_v31 = vsub.f32 %v1126_v47, %v1254_v32 }
 0x209   : > { %v5086_v3 = vmul.f32 0.81, %v4958_v17  ;;  %v4831_v4 = vmul.f32 %v4703_v7, %v4703_v7  ;;  %v3824_v53 = vsub.f32 1.5, %v3823_v9  ;;  %v3170_v14 = vmul.f32 1.1085125, %v2151_v48 }
 0x20a   : > { %v3832_v40 = vmul.f32 %v5829_v11, %v3831_v43  ;;  %v2160_v35 = vsel %vm2159_vm15, %v7716_v2, %v2158_v57  ;;  %v2166_v6 = vmul.f32 %v5827_v62, %v2165_v16  ;;  %5830 = vrsqrt.f32 %v7771_v25 }
 0x20b   : > { %5214 = vst [vmem:[%s6712_s22 + $0x150] sm:$0xff] %v5086_v3  ;;  %v4959_v45 = vmul.f32 %v4831_v4, %v3819_v58  ;;  %v3825_v59 = vmul.f32 %v5825_v50, %v3824_v53  ;;  %v7788_v13 = vadd.f32 1.0, %v3170_v14  ;;  %v2163_v44 = vsel %vm2161_vm2, %v2162_v29, %v2160_v35  ;;  %v814_v29 = vpop.f32.mrf.mxu3 }
 0x20c   : > { %v3833_v55 = vmul.f32 0.5, %v3832_v40  ;;  %v3171_v30 = vmul.f32 1.1085125, %v2163_v44  ;;  %v2167_v42 = vmul.f32 0.5, %v2166_v6  ;;  %vm3837_vm7 = vweird.f32 %v5829_v11 }
 0x20d   : > { %v5087_v41 = vmul.f32 0.81, %v4959_v45  ;;  %v3829_v56 = vsel %vm3828_vm6, %v5825_v50, %v3825_v59  ;;  %5832 = vrsqrt.f32 %v7788_v13  ;;  %v7799_v2 = vmax.f32 %v1382_v31, 0.0  ;;  %v591_v45 = vpop.f32.mrf.mxu1 }
 0x20e   : > { %v4704_v26 = vmul.f32 %v3829_v56, %v3829_v56  ;;  %v3834_v33 = vsub.f32 1.5, %v3833_v55  ;;  %v7796_v20 = vadd.f32 1.0, %v3171_v30  ;;  %v2168_v46 = vsub.f32 1.5, %v2167_v42 }
 0x20f   : > { %5215 = vst [vmem:[%s6712_s22 + $0x158] sm:$0xff] %v5087_v41  ;;  %vm3836_vm8 = vweird.f32 %v7747_v5  ;;  %v1127_v50 = vadd.f32 %v6484_v63, %v7709_v37  ;;  %vm2171_vm10 = vcmp.eq.f32.partialorder %v7738_v28, inf  ;;  %vm2173_vm11 = vcmp.eq.f32.partialorder %v7738_v28, 0.0 }
 0x210   : > { %v5831_v36 = vpop.eup %5830  ;;  %v4832_v12 = vmul.f32 %v4704_v26, %v4704_v26  ;;  %v3835_v34 = vmul.f32 %v5829_v11, %v3834_v33  ;;  %5834 = vrsqrt.f32 %v7796_v20  ;;  %vm3838_vm9 = vmor %vm3836_vm8, %vm3837_vm7  ;;  %v2169_v49 = vmul.f32 %v5827_v62, %v2168_v46  ;;  %v478_v62 = vpop.f32.mrf.mxu0 }
 0x211   : > { %v2177_v10 = vmul.f32 %v5831_v36, %v7771_v25  ;;  %5836 = vrsqrt.f32 %v7799_v2  ;;  %v1255_v47 = vmul.f32 2.0, %v814_v29  ;;  %v2174_v37 = vand.u32 2147483648, %v7738_v28 }
 0x212   : > { %v4960_v38 = vmul.f32 %v4832_v12, %v3829_v56  ;;  %v3839_v21 = vsel %vm3838_vm9, %v5829_v11, %v3835_v34  ;;  %v2170_v18 = vmul.f32 %v2169_v49, %v7738_v28  ;;  %v1128_v23 = vadd.f32 %v6471_v51, %v7807_v19 }
 0x213   : > { %v5833_v5 = vpop.eup %5832  ;;  %v4705_v8 = vmul.f32 %v3839_v21, %v3839_v21  ;;  %v2178_v0 = vmul.f32 %v5831_v36, %v2177_v10  ;;  %vm2183_vm12 = vcmp.eq.f32.partialorder %v7771_v25, inf  ;;  %v1383_v15 = vsub.f32 %v1127_v50, %v1255_v47 }
 0x214   : > { %v5088_v54 = vmul.f32 0.81, %v4960_v38  ;;  %v3841_v39 = vmul.f32 %v5833_v5, %v7788_v13  ;;  %v2172_v22 = vsel %vm2171_vm10, %v7738_v28, %v2170_v18  ;;  %vm3846_vm13 = vweird.f32 %v7788_v13 }
 0x215   : > { %v4833_v32 = vmul.f32 %v4705_v8, %v4705_v8  ;;  %v2179_v1 = vmul.f32 0.5, %v2178_v0  ;;  %v2175_v27 = vsel %vm2173_vm11, %v2174_v37, %v2172_v22  ;;  %v1256_v16 = vmul.f32 2.0, %v478_v62 }
 0x216   : > { %v5835_v61 = vpop.eup %5834  ;;  %5216 = vst [vmem:[%s6712_s22 + $0x160] sm:$0xff] %v5088_v54  ;;  %v3842_v58 = vmul.f32 %v5833_v5, %v3841_v39  ;;  %vm3847_vm14 = vweird.f32 %v5833_v5  ;;  %v3172_v9 = vmul.f32 1.1085125, %v2175_v27  ;;  %v7824_v57 = vmax.f32 %v1383_v15, 0.0 }
 0x217   : > { %v5837_v11 = vpop.eup %5836  ;;  %v4961_v17 = vmul.f32 %v4833_v32, %v3839_v21  ;;  %v3851_v7 = vmul.f32 %v5835_v61, %v7796_v20  ;;  %v2180_v43 = vsub.f32 1.5, %v2179_v1  ;;  %v1384_v28 = vsub.f32 %v1128_v23, %v1256_v16  ;;  %vm3848_vm2 = vmor %vm3846_vm13, %vm3847_vm14 }
 0x218   : > { %v3843_v24 = vmul.f32 0.5, %v3842_v58  ;;  %v2189_v48 = vmul.f32 %v5837_v11, %v7799_v2  ;;  %v7826_v4 = vadd.f32 1.0, %v3172_v9  ;;  %5838 = vrsqrt.f32 %v7824_v57 }
 0x219   : > { %v5089_v31 = vmul.f32 0.81, %v4961_v17  ;;  %v3852_v3 = vmul.f32 %v5835_v61, %v3851_v7  ;;  %v2181_v14 = vmul.f32 %v5831_v36, %v2180_v43  ;;  %vm2185_vm15 = vcmp.eq.f32.partialorder %v7771_v25, 0.0 }
 0x21a   : > { %v3844_v53 = vsub.f32 1.5, %v3843_v24  ;;  %v2190_v40 = vmul.f32 %v5837_v11, %v2189_v48  ;;  %5840 = vrsqrt.f32 %v7826_v4  ;;  %v2186_v6 = vand.u32 2147483648, %v7771_v25  ;;  %v817_v24 = vpop.f32.mrf.mxu3 }
 0x21b   : > { %5217 = vst [vmem:[%s6712_s22 + $0x168] sm:$0xff] %v5089_v31  ;;  %v3853_v35 = vmul.f32 0.5, %v3852_v3  ;;  %vm3856_vm1 = vweird.f32 %v7796_v20  ;;  %v2182_v44 = vmul.f32 %v2181_v14, %v7771_v25  ;;  %vm3857_vm3 = vweird.f32 %v5835_v61  ;;  %v307_v20 = vld [vmem:[%s6367_s8 + $0xf0] sm:$0xff] }
 0x21c   : > { %v3845_v59 = vmul.f32 %v5833_v5, %v3844_v53  ;;  %v2191_v55 = vmul.f32 0.5, %v2190_v40  ;;  %v7838_v42 = vmax.f32 %v1384_v28, 0.0  ;;  %v1129_v41 = vadd.f32 %v6473_v52, %v7807_v19  ;;  %vm3858_vm4 = vmor %vm3856_vm1, %vm3857_vm3  ;;  %5473 = vmatmul.msk.f32.gmra.mxu0 %vm325_vm0, %v307_v20  ;;  %5505 = vmatmul.msk.f32.gmra.mxu1 %vm325_vm0, %v307_v20 }
 0x21d   : > { %v3854_v30 = vsub.f32 1.5, %v3853_v35  ;;  %v2184_v26 = vsel %vm2183_vm12, %v7771_v25, %v2182_v44  ;;  %v1257_v46 = vmul.f32 2.0, %v591_v45  ;;  %vm2195_vm5 = vcmp.eq.f32.partialorder %v7799_v2, inf  ;;  %5537 = vmatmul.msk.f32.gmra.mxu2 %vm325_vm0, %v307_v20  ;;  %5569 = vmatmul.msk.f32.gmra.mxu3 %vm325_vm0, %v307_v20 }
 0x21e   : > { %v3849_v56 = vsel %vm3848_vm2, %v5833_v5, %v3845_v59  ;;  %v2192_v33 = vsub.f32 1.5, %v2191_v55  ;;  %v2187_v13 = vsel %vm2185_vm15, %v2186_v6, %v2184_v26  ;;  %5842 = vrsqrt.f32 %v7838_v42  ;;  %v5839_v34 = vpop.eup %5838 }
 0x21f   : > { %v4706_v36 = vmul.f32 %v3849_v56, %v3849_v56  ;;  %v3855_v12 = vmul.f32 %v5835_v61, %v3854_v30  ;;  %v3173_v29 = vmul.f32 1.1085125, %v2187_v13  ;;  %vm2197_vm6 = vcmp.eq.f32.partialorder %v7799_v2, 0.0 }
 0x220   : > { %v2193_v49 = vmul.f32 %v5837_v11, %v2192_v33  ;;  %v5841_v10 = vpop.eup %5840  ;;  %v2201_v21 = vmul.f32 %v5839_v34, %v7824_v57  ;;  %v2198_v18 = vand.u32 2147483648, %v7799_v2  ;;  %v1385_v54 = vsub.f32 %v1129_v41, %v1257_v46  ;;  %v704_v11 = vpop.f32.mrf.mxu2 }
 0x221   : > { %v4834_v50 = vmul.f32 %v4706_v36, %v4706_v36  ;;  %v3859_v38 = vsel %vm3858_vm4, %v5835_v61, %v3855_v12  ;;  %v3861_v5 = vmul.f32 %v5841_v10, %v7826_v4  ;;  %v7854_v8 = vadd.f32 1.0, %v3173_v29 }
 0x222   : > { %v4707_v25 = vmul.f32 %v3859_v38, %v3859_v38  ;;  %v2194_v47 = vmul.f32 %v2193_v49, %v7799_v2  ;;  %v2202_v62 = vmul.f32 %v5839_v34, %v2201_v21  ;;  %vm3866_vm7 = vweird.f32 %v7826_v4 }
 0x223   : > { %v4962_v0 = vmul.f32 %v4834_v50, %v3849_v56  ;;  %v3862_v37 = vmul.f32 %v5841_v10, %v3861_v5  ;;  %5844 = vrsqrt.f32 %v7854_v8  ;;  %vm2207_vm8 = vcmp.eq.f32.partialorder %v7824_v57, inf }
 0x224   : > { %v4835_v39 = vmul.f32 %v4707_v25, %v4707_v25  ;;  %v5843_v23 = vpop.eup %5842  ;;  %v2196_v22 = vsel %vm2195_vm5, %v7799_v2, %v2194_v47  ;;  %v2203_v1 = vmul.f32 0.5, %v2202_v62  ;;  %v7868_v15 = vmax.f32 %v1385_v54, 0.0 }
 0x225   : > { %v5090_v32 = vmul.f32 0.81, %v4962_v0  ;;  %v3863_v58 = vmul.f32 0.5, %v3862_v37  ;;  %v2199_v27 = vsel %vm2197_vm6, %v2198_v18, %v2196_v22  ;;  %v2213_v16 = vmul.f32 %v5843_v23, %v7838_v42 }
 0x226   : > { %v4963_v61 = vmul.f32 %v4835_v39, %v3859_v38  ;;  %v3174_v17 = vmul.f32 1.1085125, %v2199_v27  ;;  %v2204_v7 = vsub.f32 1.5, %v2203_v1  ;;  %5846 = vrsqrt.f32 %v7868_v15  ;;  %v481_v27 = vpop.f32.mrf.mxu0 }
 0x227   : > { %5218 = vst [vmem:[%s6712_s22 + $0x170] sm:$0xff] %v5090_v32  ;;  %v1130_v9 = vadd.f32 %v6480_v60, %v7807_v19  ;;  %v3864_v48 = vsub.f32 1.5, %v3863_v58  ;;  %vm3867_vm9 = vweird.f32 %v5841_v10  ;;  %v2214_v31 = vmul.f32 %v5843_v23, %v2213_v16 }
 0x228   : > { %v5091_v43 = vmul.f32 0.81, %v4963_v61  ;;  %v7878_v3 = vadd.f32 1.0, %v3174_v17  ;;  %v2205_v2 = vmul.f32 %v5839_v34, %v2204_v7  ;;  %vm2209_vm10 = vcmp.eq.f32.partialorder %v7824_v57, 0.0  ;;  %vm3868_vm11 = vmor %vm3866_vm7, %vm3867_vm9  ;;  %v594_v7 = vpop.f32.mrf.mxu1 }
 0x229   : > { %v1258_v28 = vmul.f32 2.0, %v704_v11  ;;  %v5845_v53 = vpop.eup %5844  ;;  %v3865_v14 = vmul.f32 %v5841_v10, %v3864_v48  ;;  %v2215_v40 = vmul.f32 0.5, %v2214_v31  ;;  %v1131_v35 = vadd.f32 %v6484_v63, %v7807_v19 }
 0x22a   : > { %5219 = vst [vmem:[%s6712_s22 + $0x178] sm:$0xff] %v5091_v43  ;;  %v1259_v6 = vmul.f32 2.0, %v817_v24  ;;  %v3871_v45 = vmul.f32 %v5845_v53, %v7854_v8  ;;  %5848 = vrsqrt.f32 %v7878_v3  ;;  %v2210_v59 = vand.u32 2147483648, %v7824_v57 }
 0x22b   : > { %vm2219_vm12 = vcmp.eq.f32.partialorder %v7838_v42, inf  ;;  %v3869_v44 = vsel %vm3868_vm11, %v5841_v10, %v3865_v14  ;;  %v2206_v55 = vmul.f32 %v2205_v2, %v7824_v57  ;;  %v2216_v30 = vsub.f32 1.5, %v2215_v40 }
 0x22c   : > { %v1386_v41 = vsub.f32 %v1130_v9, %v1258_v28  ;;  %v5847_v56 = vpop.eup %5846  ;;  %v4708_v26 = vmul.f32 %v3869_v44, %v3869_v44  ;;  %v3872_v19 = vmul.f32 %v5845_v53, %v3871_v45  ;;  %vm2221_vm13 = vcmp.eq.f32.partialorder %v7838_v42, 0.0 }
 0x22d   : > { %v1387_v4 = vsub.f32 %v1131_v35, %v1259_v6  ;;  %v2208_v33 = vsel %vm2207_vm8, %v7824_v57, %v2206_v55  ;;  %v2217_v46 = vmul.f32 %v5843_v23, %v2216_v30  ;;  %v2225_v36 = vmul.f32 %v5847_v56, %v7868_v15 }
 0x22e   : > { %v7896_v12 = vmax.f32 %v1386_v41, 0.0  ;;  %v4836_v13 = vmul.f32 %v4708_v26, %v4708_v26  ;;  %v3873_v34 = vmul.f32 0.5, %v3872_v19  ;;  %v2211_v29 = vsel %vm2209_vm10, %v2210_v59, %v2208_v33 }
 0x22f   : > { %v2222_v49 = vand.u32 2147483648, %v7838_v42  ;;  %v3175_v10 = vmul.f32 1.1085125, %v2211_v29  ;;  %v2218_v50 = vmul.f32 %v2217_v46, %v7838_v42  ;;  %v2226_v38 = vmul.f32 %v5847_v56, %v2225_v36 }
 0x230   : > { %5850 = vrsqrt.f32 %v7896_v12  ;;  %v5849_v21 = vpop.eup %5848  ;;  %v4964_v25 = vmul.f32 %v4836_v13, %v3869_v44  ;;  %v3874_v5 = vsub.f32 1.5, %v3873_v34  ;;  %vm3877_vm14 = vweird.f32 %v5845_v53 }
 0x231   : > { %v7903_v18 = vmax.f32 %v1387_v4, 0.0  ;;  %vm3876_vm15 = vweird.f32 %v7854_v8  ;;  %v3881_v57 = vmul.f32 %v5849_v21, %v7878_v3  ;;  %v7907_v20 = vadd.f32 1.0, %v3175_v10 }
 0x232   : > { %v2220_v0 = vsel %vm2219_vm12, %v7838_v42, %v2218_v50  ;;  %v5092_v47 = vmul.f32 0.81, %v4964_v25  ;;  %v3875_v62 = vmul.f32 %v5845_v53, %v3874_v5  ;;  %v2227_v39 = vmul.f32 0.5, %v2226_v38  ;;  %vm3878_vm1 = vmor %vm3876_vm15, %vm3877_vm14  ;;  %v7921_v42 = vpop.permute.xlu2 %979 }
 0x233   : > { %v2223_v54 = vsel %vm2221_vm13, %v2222_v49, %v2220_v0  ;;  %v3882_v37 = vmul.f32 %v5849_v21, %v3881_v57  ;;  %5852 = vrsqrt.f32 %v7907_v20  ;;  %vm2231_vm2 = vcmp.eq.f32.partialorder %v7868_v15, inf  ;;  %v707_v0 = vpop.f32.mrf.mxu2 }
 0x234   : > { %v3176_v23 = vmul.f32 1.1085125, %v2223_v54  ;;  %5220 = vst [vmem:[%s6712_s22 + $0x180] sm:$0xff] %v5092_v47  ;;  %v3879_v8 = vsel %vm3878_vm1, %v5845_v53, %v3875_v62  ;;  %v2228_v32 = vsub.f32 1.5, %v2227_v39  ;;  %5854 = vrsqrt.f32 %v7903_v18  ;;  %v308_v39 = vld [vmem:[%s6367_s8 + $0xf8] sm:$0xff]  ;;  %s6168_s8 = scalar_lea.hbm %s6167_s7, 1024 }
 0x235   : > { %v4709_v1 = vmul.f32 %v3879_v8, %v3879_v8  ;;  %v3883_v61 = vmul.f32 0.5, %v3882_v37  ;;  %vm2233_vm3 = vcmp.eq.f32.partialorder %v7868_v15, 0.0  ;;  %vm3886_vm4 = vweird.f32 %v7878_v3  ;;  %5474 = vmatmul.msk.f32.gmra.mxu0 %vm325_vm0, %v308_v39  ;;  %5506 = vmatmul.msk.f32.gmra.mxu1 %vm325_vm0, %v308_v39  ;;  %p6169_p12 = scmp.ne.s32.totalorder %s6167_s7, %s6168_s8  ;;  %p6174_p2 = scmp.lt.s32.totalorder %s6172_s12, %s6168_s8 }
 0x236   : > { %v5851_v22 = vpop.eup %5850  ;;  %v7918_v58 = vadd.f32 1.0, %v3176_v23  ;;  %v2229_v16 = vmul.f32 %v5847_v56, %v2228_v32  ;;  %v2234_v11 = vand.u32 2147483648, %v7868_v15  ;;  %vm3887_vm5 = vweird.f32 %v5849_v21  ;;  %5538 = vmatmul.msk.f32.gmra.mxu2 %vm325_vm0, %v308_v39  ;;  %5570 = vmatmul.msk.f32.gmra.mxu3 %vm325_vm0, %v308_v39 }
 0x237   : > { %v2237_v17 = vmul.f32 %v5851_v22, %v7896_v12  ;;  %v4837_v9 = vmul.f32 %v4709_v1, %v4709_v1  ;;  %v3884_v24 = vsub.f32 1.5, %v3883_v61  ;;  %v1132_v31 = vadd.f32 %v6471_v51, %v7921_v42  ;;  %vm3888_vm6 = vmor %vm3886_vm4, %vm3887_vm5  ;;  %p6170_p13 = pnand %p6169_p12, %p6300_p4  ;;  %p6175_p3 = por %p6174_p2, %p6173_p1 }
 0x238   : > { %5856 = vrsqrt.f32 %v7918_v58  ;;  %v2230_v43 = vmul.f32 %v2229_v16, %v7868_v15  ;;  %v1260_v2 = vmul.f32 2.0, %v481_v27  ;;  %v1133_v40 = vadd.f32 %v6473_v52, %v7921_v42 }
 0x239   : > { %v2238_v48 = vmul.f32 %v5851_v22, %v2237_v17  ;;  %v5853_v28 = vpop.eup %5852  ;;  %v4965_v53 = vmul.f32 %v4837_v9, %v3879_v8  ;;  %v3885_v14 = vmul.f32 %v5849_v21, %v3884_v24  ;;  %v1261_v35 = vmul.f32 2.0, %v594_v7  ;;  %p6171_p0 = pneg %p6170_p13 }
 0x23a   : > { %v5855_v6 = vpop.eup %5854  ;;  %v3891_v45 = vmul.f32 %v5853_v28, %v7907_v20  ;;  %vm3896_vm7 = vweird.f32 %v7907_v20  ;;  %v2232_v59 = vsel %vm2231_vm2, %v7868_v15, %v2230_v43  ;;  %vm2243_vm8 = vcmp.eq.f32.partialorder %v7896_v12, inf }
 0x23b   : > { %v2239_v44 = vmul.f32 0.5, %v2238_v48  ;;  %v5093_v55 = vmul.f32 0.81, %v4965_v53  ;;  %v3889_v30 = vsel %vm3888_vm6, %v5849_v21, %v3885_v14  ;;  %v2235_v41 = vsel %vm2233_vm3, %v2234_v11, %v2232_v59  ;;  %p6176_p5 = pnand %p6175_p3, %p6171_p0 }
 0x23c   : > { %vm2245_vm9 = vcmp.eq.f32.partialorder %v7896_v12, 0.0  ;;  %v2249_v3 = vmul.f32 %v5855_v6, %v7903_v18  ;;  %v4710_v56 = vmul.f32 %v3889_v30, %v3889_v30  ;;  %v3892_v26 = vmul.f32 %v5853_v28, %v3891_v45 }
 0x23d   : > { %v3177_v19 = vmul.f32 1.1085125, %v2235_v41  ;;  %v2240_v4 = vsub.f32 1.5, %v2239_v44  ;;  %5221 = vst [vmem:[%s6712_s22 + $0x188] sm:$0xff] %v5093_v55  ;;  %v2246_v46 = vand.u32 2147483648, %v7896_v12  ;;  %v1388_v13 = vsub.f32 %v1132_v31, %v1260_v2 }
 0x23e   : > { %v5857_v33 = vpop.eup %5856  ;;  %v2250_v36 = vmul.f32 %v5855_v6, %v2249_v3  ;;  %v1389_v34 = vsub.f32 %v1133_v40, %v1261_v35  ;;  %v4838_v29 = vmul.f32 %v4710_v56, %v4710_v56  ;;  %v3893_v49 = vmul.f32 0.5, %v3892_v26 }
 0x23f   : > { %v3901_v15 = vmul.f32 %v5857_v33, %v7918_v58  ;;  %vm2255_vm10 = vcmp.eq.f32.partialorder %v7903_v18, inf  ;;  %v7948_v10 = vadd.f32 1.0, %v3177_v19  ;;  %v2241_v50 = vmul.f32 %v5851_v22, %v2240_v4 }
 0x240   : > { %v2251_v38 = vmul.f32 0.5, %v2250_v36  ;;  %v7950_v21 = vmax.f32 %v1388_v13, 0.0  ;;  %v4966_v25 = vmul.f32 %v4838_v29, %v3889_v30  ;;  %v3894_v5 = vsub.f32 1.5, %v3893_v49 }
 0x241   : > { %vm3897_vm11 = vweird.f32 %v5853_v28  ;;  %v3902_v57 = vmul.f32 %v5857_v33, %v3901_v15  ;;  %5858 = vrsqrt.f32 %v7948_v10  ;;  %v2242_v47 = vmul.f32 %v2241_v50, %v7896_v12 }
 0x242   : > { %v2252_v62 = vsub.f32 1.5, %v2251_v38  ;;  %v7954_v54 = vmax.f32 %v1389_v34, 0.0  ;;  %v5094_v37 = vmul.f32 0.81, %v4966_v25  ;;  %v3895_v23 = vmul.f32 %v5853_v28, %v3894_v5  ;;  %vm3898_vm12 = vmor %vm3896_vm7, %vm3897_vm11  ;;  %v8001_v5 = vpop.permute.xlu0 %984 }
 0x243   : > { %v3903_v8 = vmul.f32 0.5, %v3902_v57  ;;  %5860 = vrsqrt.f32 %v7950_v21  ;;  %v2244_v32 = vsel %vm2243_vm8, %v7896_v12, %v2242_v47  ;;  %v1134_v1 = vadd.f32 %v6480_v60, %v7921_v42 }
 0x244   : > { %v2253_v22 = vmul.f32 %v5855_v6, %v2252_v62  ;;  %v1262_v61 = vmul.f32 2.0, %v707_v0  ;;  %5222 = vst [vmem:[%s6712_s22 + $0x190] sm:$0xff] %v5094_v37  ;;  %v3899_v27 = vsel %vm3898_vm12, %v5853_v28, %v3895_v23  ;;  %vm3907_vm13 = vweird.f32 %v5857_v33  ;;  %v484_v62 = vpop.f32.mrf.mxu0 }
 0x245   : > { %v3904_v16 = vsub.f32 1.5, %v3903_v8  ;;  %v2247_v20 = vsel %vm2245_vm9, %v2246_v46, %v2244_v32  ;;  %v4711_v11 = vmul.f32 %v3899_v27, %v3899_v27  ;;  %5862 = vrsqrt.f32 %v7954_v54 }
 0x246   : > { %v3178_v17 = vmul.f32 1.1085125, %v2247_v20  ;;  %v2254_v7 = vmul.f32 %v2253_v22, %v7903_v18  ;;  %vm3906_vm14 = vweird.f32 %v7918_v58  ;;  %vm2257_vm15 = vcmp.eq.f32.partialorder %v7903_v18, 0.0  ;;  %v820_v58 = vpop.f32.mrf.mxu3 }
 0x247   : > { %v3905_v9 = vmul.f32 %v5857_v33, %v3904_v16  ;;  %v2258_v24 = vand.u32 2147483648, %v7903_v18  ;;  %v5859_v43 = vpop.eup %5858  ;;  %v4839_v48 = vmul.f32 %v4711_v11, %v4711_v11  ;;  %vm3908_vm0 = vmor %vm3906_vm14, %vm3907_vm13  ;;  %v1390_v2 = vsub.f32 %v1134_v1, %v1262_v61 }
 0x248   : > { %v7977_v31 = vadd.f32 1.0, %v3178_v17  ;;  %v2256_v12 = vsel %vm2255_vm10, %v7903_v18, %v2254_v7  ;;  %v3911_v14 = vmul.f32 %v5859_v43, %v7948_v10  ;;  %v1135_v3 = vadd.f32 %v6484_v63, %v7921_v42 }
 0x249   : > { %v5861_v28 = vpop.eup %5860  ;;  %v3909_v53 = vsel %vm3908_vm0, %v5857_v33, %v3905_v9  ;;  %v2259_v40 = vsel %vm2257_vm15, %v2258_v24, %v2256_v12  ;;  %v4967_v35 = vmul.f32 %v4839_v48, %v3899_v27  ;;  %v7985_v55 = vmax.f32 %v1390_v2, 0.0 }
 0x24a   : > { %v4712_v6 = vmul.f32 %v3909_v53, %v3909_v53  ;;  %5864 = vrsqrt.f32 %v7977_v31  ;;  %v3912_v45 = vmul.f32 %v5859_v43, %v3911_v14  ;;  %v3179_v59 = vmul.f32 1.1085125, %v2259_v40 }
 0x24b   : > { %v2261_v44 = vmul.f32 %v5861_v28, %v7950_v21  ;;  %v5863_v30 = vpop.eup %5862  ;;  %v5095_v18 = vmul.f32 0.81, %v4967_v35  ;;  %v1263_v56 = vmul.f32 2.0, %v820_v58  ;;  %vm3916_vm1 = vweird.f32 %v7948_v10 }
 0x24c   : > { %v4840_v41 = vmul.f32 %v4712_v6, %v4712_v6  ;;  %v3913_v26 = vmul.f32 0.5, %v3912_v45  ;;  %v7989_v19 = vadd.f32 1.0, %v3179_v59  ;;  %v2273_v33 = vmul.f32 %v5863_v30, %v7954_v54 }
 0x24d   : > { %v2262_v4 = vmul.f32 %v5861_v28, %v2261_v44  ;;  %5223 = vst [vmem:[%s6712_s22 + $0x198] sm:$0xff] %v5095_v18  ;;  %vm2267_vm2 = vcmp.eq.f32.partialorder %v7950_v21, inf  ;;  %5866 = vrsqrt.f32 %v7985_v55  ;;  %vm3917_vm3 = vweird.f32 %v5859_v43  ;;  %v597_v44 = vpop.f32.mrf.mxu1 }
 0x24e   : > { %v4968_v46 = vmul.f32 %v4840_v41, %v3909_v53  ;;  %v3914_v36 = vsub.f32 1.5, %v3913_v26  ;;  %5868 = vrsqrt.f32 %v7989_v19  ;;  %vm2269_vm4 = vcmp.eq.f32.partialorder %v7950_v21, 0.0  ;;  %vm3918_vm6 = vmor %vm3916_vm1, %vm3917_vm3 }
 0x24f   : > { %v2263_v42 = vmul.f32 0.5, %v2262_v4  ;;  %v2270_v29 = vand.u32 2147483648, %v7950_v21  ;;  %v2274_v49 = vmul.f32 %v5863_v30, %v2273_v33  ;;  %v1391_v15 = vsub.f32 %v1135_v3, %v1263_v56 }
 0x250   : > { %v5865_v13 = vpop.eup %5864  ;;  %v5096_v34 = vmul.f32 0.81, %v4968_v46  ;;  %v3915_v50 = vmul.f32 %v5859_v43, %v3914_v36  ;;  %vm2279_vm5 = vcmp.eq.f32.partialorder %v7954_v54, inf  ;;  %vm2281_vm7 = vcmp.eq.f32.partialorder %v7954_v54, 0.0 }
 0x251   : > { %v3921_v38 = vmul.f32 %v5865_v13, %v7977_v31  ;;  %v2264_v25 = vsub.f32 1.5, %v2263_v42  ;;  %v2275_v57 = vmul.f32 0.5, %v2274_v49  ;;  %v2282_v0 = vand.u32 2147483648, %v7954_v54 }
 0x252   : > { %5224 = vst [vmem:[%s6712_s22 + $0x1a0] sm:$0xff] %v5096_v34  ;;  %v8009_v47 = vmax.f32 %v1391_v15, 0.0  ;;  %v3919_v39 = vsel %vm3918_vm6, %v5859_v43, %v3915_v50  ;;  %vm3926_vm8 = vweird.f32 %v7977_v31  ;;  %v1136_v10 = vadd.f32 %v6471_v51, %v8001_v5 }
 0x253   : > { %v3922_v37 = vmul.f32 %v5865_v13, %v3921_v38  ;;  %v2265_v23 = vmul.f32 %v5861_v28, %v2264_v25  ;;  %v5867_v8 = vpop.eup %5866  ;;  %v4713_v32 = vmul.f32 %v3919_v39, %v3919_v39  ;;  %v2276_v22 = vsub.f32 1.5, %v2275_v57  ;;  %v710_v38 = vpop.f32.mrf.mxu2 }
 0x254   : > { %5870 = vrsqrt.f32 %v8009_v47  ;;  %v5869_v1 = vpop.eup %5868  ;;  %v2285_v16 = vmul.f32 %v5867_v8, %v7985_v55  ;;  %v1264_v20 = vmul.f32 2.0, %v484_v62  ;;  %vm3927_vm9 = vweird.f32 %v5865_v13 }
 0x255   : > { %v3923_v61 = vmul.f32 0.5, %v3922_v37  ;;  %v2266_v27 = vmul.f32 %v2265_v23, %v7950_v21  ;;  %v4841_v11 = vmul.f32 %v4713_v32, %v4713_v32  ;;  %v3931_v17 = vmul.f32 %v5869_v1, %v7989_v19  ;;  %vm3928_vm11 = vmor %vm3926_vm8, %vm3927_vm9 }
 0x256   : > { %vm3936_vm10 = vweird.f32 %v7989_v19  ;;  %v2277_v7 = vmul.f32 %v5863_v30, %v2276_v22  ;;  %v2286_v43 = vmul.f32 %v5867_v8, %v2285_v16  ;;  %v1137_v48 = vadd.f32 %v6473_v52, %v8001_v5 }
 0x257   : > { %v3924_v9 = vsub.f32 1.5, %v3923_v61  ;;  %v2268_v24 = vsel %vm2267_vm2, %v7950_v21, %v2266_v27  ;;  %v4969_v12 = vmul.f32 %v4841_v11, %v3919_v39  ;;  %v3932_v2 = vmul.f32 %v5869_v1, %v3931_v17 }
 0x258   : > { %v2271_v28 = vsel %vm2269_vm4, %v2270_v29, %v2268_v24  ;;  %v2278_v53 = vmul.f32 %v2277_v7, %v7954_v54  ;;  %v2287_v58 = vmul.f32 0.5, %v2286_v43  ;;  %v1392_v35 = vsub.f32 %v1136_v10, %v1264_v20 }
 0x259   : > { %v3925_v14 = vmul.f32 %v5865_v13, %v3924_v9  ;;  %v3180_v40 = vmul.f32 1.1085125, %v2271_v28  ;;  %v5097_v45 = vmul.f32 0.81, %v4969_v12  ;;  %v3933_v59 = vmul.f32 0.5, %v3932_v2  ;;  %v823_v12 = vpop.f32.mrf.mxu3 }
 0x25a   : > { %v5871_v6 = vpop.eup %5870  ;;  %vm3937_vm12 = vweird.f32 %v5869_v1  ;;  %v2280_v21 = vsel %vm2279_vm5, %v7954_v54, %v2278_v53  ;;  %v2288_v3 = vsub.f32 1.5, %v2287_v58  ;;  %v8040_v46 = vmax.f32 %v1392_v35, 0.0 }
 0x25b   : > { %v3929_v30 = vsel %vm3928_vm11, %v5865_v13, %v3925_v14  ;;  %v8033_v18 = vadd.f32 1.0, %v3180_v40  ;;  %v2283_v41 = vsel %vm2281_vm7, %v2282_v0, %v2280_v21  ;;  %5225 = vst [vmem:[%s6712_s22 + $0x1a8] sm:$0xff] %v5097_v45  ;;  %v3934_v26 = vsub.f32 1.5, %v3933_v59  ;;  %vm3938_vm13 = vmor %vm3936_vm10, %vm3937_vm12 }
 0x25c   : > { %v4714_v56 = vmul.f32 %v3929_v30, %v3929_v30  ;;  %v3181_v4 = vmul.f32 1.1085125, %v2283_v41  ;;  %v2297_v31 = vmul.f32 %v5871_v6, %v8009_v47  ;;  %v2289_v33 = vmul.f32 %v5867_v8, %v2288_v3 }
 0x25d   : > { %5872 = vrsqrt.f32 %v8033_v18  ;;  %v1265_v36 = vmul.f32 2.0, %v597_v44  ;;  %v3935_v13 = vmul.f32 %v5869_v1, %v3934_v26  ;;  %vm2291_vm14 = vcmp.eq.f32.partialorder %v7985_v55, inf }
 0x25e   : > { %v4842_v42 = vmul.f32 %v4714_v56, %v4714_v56  ;;  %v8042_v34 = vadd.f32 1.0, %v3181_v4  ;;  %v2298_v29 = vmul.f32 %v5871_v6, %v2297_v31  ;;  %v2290_v54 = vmul.f32 %v2289_v33, %v7985_v55 }
 0x25f   : > { %5874 = vrsqrt.f32 %v8040_v46  ;;  %v3939_v15 = vsel %vm3938_vm13, %v5869_v1, %v3935_v13  ;;  %v2294_v50 = vand.u32 2147483648, %v7985_v55  ;;  %vm2293_vm15 = vcmp.eq.f32.partialorder %v7985_v55, 0.0 }
 0x260   : > { %v4970_v49 = vmul.f32 %v4842_v42, %v3929_v30  ;;  %5876 = vrsqrt.f32 %v8042_v34  ;;  %v4715_v25 = vmul.f32 %v3939_v15, %v3939_v15  ;;  %v2292_v57 = vsel %vm2291_vm14, %v7985_v55, %v2290_v54 }
 0x261   : > { %v2299_v19 = vmul.f32 0.5, %v2298_v29  ;;  %v2295_v62 = vsel %vm2293_vm15, %v2294_v50, %v2292_v57  ;;  %v1393_v39 = vsub.f32 %v1137_v48, %v1265_v36  ;;  %v1138_v37 = vadd.f32 %v6480_v60, %v8001_v5 }
 0x262   : > { %v5098_v0 = vmul.f32 0.81, %v4970_v49  ;;  %v4843_v8 = vmul.f32 %v4715_v25, %v4715_v25  ;;  %v3182_v32 = vmul.f32 1.1085125, %v2295_v62  ;;  %v1266_v10 = vmul.f32 2.0, %v710_v38 }
 0x263   : > { %v5873_v23 = vpop.eup %5872  ;;  %v2300_v22 = vsub.f32 1.5, %v2299_v19  ;;  %vm2303_vm0 = vcmp.eq.f32.partialorder %v8009_v47, inf  ;;  %v8059_v61 = vmax.f32 %v1393_v39, 0.0  ;;  %vm2305_vm1 = vcmp.eq.f32.partialorder %v8009_v47, 0.0 }
 0x264   : > { %5226 = vst [vmem:[%s6712_s22 + $0x1b0] sm:$0xff] %v5098_v0  ;;  %v3941_v1 = vmul.f32 %v5873_v23, %v8033_v18  ;;  %v4971_v27 = vmul.f32 %v4843_v8, %v3939_v15  ;;  %v8061_v16 = vadd.f32 1.0, %v3182_v32  ;;  %v1394_v11 = vsub.f32 %v1138_v37, %v1266_v10 }
 0x265   : > { %v5875_v55 = vpop.eup %5874  ;;  %v2301_v20 = vmul.f32 %v5871_v6, %v2300_v22  ;;  %5878 = vrsqrt.f32 %v8059_v61  ;;  %v2306_v48 = vand.u32 2147483648, %v8009_v47  ;;  %vm3946_vm2 = vweird.f32 %v8033_v18 }
 0x266   : > { %v5877_v17 = vpop.eup %5876  ;;  %v3942_v7 = vmul.f32 %v5873_v23, %v3941_v1  ;;  %v2309_v9 = vmul.f32 %v5875_v55, %v8040_v46  ;;  %v5099_v24 = vmul.f32 0.81, %v4971_v27  ;;  %5880 = vrsqrt.f32 %v8061_v16 }
 0x267   : > { %v3951_v43 = vmul.f32 %v5877_v17, %v8042_v34  ;;  %v2302_v28 = vmul.f32 %v2301_v20, %v8009_v47  ;;  %vm3947_vm3 = vweird.f32 %v5873_v23  ;;  %v8072_v40 = vmax.f32 %v1394_v11, 0.0  ;;  %v8111_v11 = vpop.permute.xlu1 %989 }
 0x268   : > { %v3943_v2 = vmul.f32 0.5, %v3942_v7  ;;  %v2310_v53 = vmul.f32 %v5875_v55, %v2309_v9  ;;  %5227 = vst [vmem:[%s6712_s22 + $0x1b8] sm:$0xff] %v5099_v24  ;;  %v1139_v58 = vadd.f32 %v6484_v63, %v8001_v5  ;;  %vm2315_vm4 = vcmp.eq.f32.partialorder %v8040_v46, inf  ;;  %vm3948_vm7 = vmor %vm3946_vm2, %vm3947_vm3 }
 0x269   : > { %v3952_v14 = vmul.f32 %v5877_v17, %v3951_v43  ;;  %v2304_v6 = vsel %vm2303_vm0, %v8009_v47, %v2302_v28  ;;  %v1267_v59 = vmul.f32 2.0, %v823_v12  ;;  %vm3956_vm5 = vweird.f32 %v8042_v34 }
 0x26a   : > { %v3944_v35 = vsub.f32 1.5, %v3943_v2  ;;  %v2311_v45 = vmul.f32 0.5, %v2310_v53  ;;  %v2307_v44 = vsel %vm2305_vm1, %v2306_v48, %v2304_v6  ;;  %vm2317_vm6 = vcmp.eq.f32.partialorder %v8040_v46, 0.0  ;;  %v487_v2 = vpop.f32.mrf.mxu0 }
 0x26b   : > { %v3953_v21 = vmul.f32 0.5, %v3952_v14  ;;  %5882 = vrsqrt.f32 %v8072_v40  ;;  %v5879_v5 = vpop.eup %5878  ;;  %v3183_v41 = vmul.f32 1.1085125, %v2307_v44  ;;  %v2318_v56 = vand.u32 2147483648, %v8040_v46 }
 0x26c   : > { %v3945_v30 = vmul.f32 %v5873_v23, %v3944_v35  ;;  %v2312_v3 = vsub.f32 1.5, %v2311_v45  ;;  %v5881_v26 = vpop.eup %5880  ;;  %vm3957_vm8 = vweird.f32 %v5877_v17  ;;  %v2321_v47 = vmul.f32 %v5879_v5, %v8059_v61 }
 0x26d   : > { %v3954_v4 = vsub.f32 1.5, %v3953_v21  ;;  %v1395_v31 = vsub.f32 %v1139_v58, %v1267_v59  ;;  %v3961_v36 = vmul.f32 %v5881_v26, %v8061_v16  ;;  %vm3966_vm9 = vweird.f32 %v8061_v16  ;;  %vm3958_vm10 = vmor %vm3956_vm5, %vm3957_vm8 }
 0x26e   : > { %v3949_v33 = vsel %vm3948_vm7, %v5873_v23, %v3945_v30  ;;  %v8092_v42 = vadd.f32 1.0, %v3183_v41  ;;  %v2313_v54 = vmul.f32 %v5875_v55, %v2312_v3  ;;  %v2322_v49 = vmul.f32 %v5879_v5, %v2321_v47 }
 0x26f   : > { %v4716_v13 = vmul.f32 %v3949_v33, %v3949_v33  ;;  %v3955_v29 = vmul.f32 %v5877_v17, %v3954_v4  ;;  %v3962_v18 = vmul.f32 %v5881_v26, %v3961_v36  ;;  %v2330_v15 = vand.u32 2147483648, %v8059_v61 }
 0x270   : > { %5884 = vrsqrt.f32 %v8092_v42  ;;  %v8098_v50 = vmax.f32 %v1395_v31, 0.0  ;;  %v2314_v19 = vmul.f32 %v2313_v54, %v8040_v46  ;;  %v2323_v0 = vmul.f32 0.5, %v2322_v49 }
 0x271   : > { %v5883_v38 = vpop.eup %5882  ;;  %v4844_v25 = vmul.f32 %v4716_v13, %v4716_v13  ;;  %v3959_v57 = vsel %vm3958_vm10, %v5877_v17, %v3955_v29  ;;  %vm2327_vm11 = vcmp.eq.f32.partialorder %v8059_v61, inf  ;;  %v3963_v39 = vmul.f32 0.5, %v3962_v18 }
 0x272   : > { %v4717_v62 = vmul.f32 %v3959_v57, %v3959_v57  ;;  %vm2329_vm12 = vcmp.eq.f32.partialorder %v8059_v61, 0.0  ;;  %v2333_v34 = vmul.f32 %v5883_v38, %v8072_v40  ;;  %5886 = vrsqrt.f32 %v8098_v50 }
 0x273   : > { %v4972_v37 = vmul.f32 %v4844_v25, %v3949_v33  ;;  %vm3967_vm13 = vweird.f32 %v5881_v26  ;;  %v2316_v23 = vsel %vm2315_vm4, %v8040_v46, %v2314_v19  ;;  %v2324_v8 = vsub.f32 1.5, %v2323_v0 }
 0x274   : > { %v4845_v32 = vmul.f32 %v4717_v62, %v4717_v62  ;;  %v3964_v22 = vsub.f32 1.5, %v3963_v39  ;;  %v2319_v10 = vsel %vm2317_vm6, %v2318_v56, %v2316_v23  ;;  %v2334_v1 = vmul.f32 %v5883_v38, %v2333_v34  ;;  %vm3968_vm0 = vmor %vm3966_vm9, %vm3967_vm13  ;;  %v713_v23 = vpop.f32.mrf.mxu2 }
 0x275   : > { %v5100_v55 = vmul.f32 0.81, %v4972_v37  ;;  %v3184_v27 = vmul.f32 1.1085125, %v2319_v10  ;;  %v2325_v20 = vmul.f32 %v5879_v5, %v2324_v8  ;;  %vm2339_vm14 = vcmp.eq.f32.partialorder %v8072_v40, inf  ;;  %v600_v5 = vpop.f32.mrf.mxu1 }
 0x276   : > { %v5885_v17 = vpop.eup %5884  ;;  %v4973_v7 = vmul.f32 %v4845_v32, %v3959_v57  ;;  %v3965_v9 = vmul.f32 %v5881_v26, %v3964_v22  ;;  %v2335_v24 = vmul.f32 0.5, %v2334_v1  ;;  %vm2341_vm15 = vcmp.eq.f32.partialorder %v8072_v40, 0.0 }
 0x277   : > { %5228 = vst [vmem:[%s6712_s22 + $0x1c0] sm:$0xff] %v5100_v55  ;;  %v3971_v46 = vmul.f32 %v5885_v17, %v8092_v42  ;;  %v8119_v43 = vadd.f32 1.0, %v3184_v27  ;;  %v2326_v48 = vmul.f32 %v2325_v20, %v8059_v61  ;;  %v2342_v12 = vand.u32 2147483648, %v8072_v40 }
 0x278   : > { %v5887_v28 = vpop.eup %5886  ;;  %v5101_v53 = vmul.f32 0.81, %v4973_v7  ;;  %v3969_v14 = vsel %vm3968_vm0, %v5881_v26, %v3965_v9  ;;  %v2336_v58 = vsub.f32 1.5, %v2335_v24  ;;  %v1140_v35 = vadd.f32 %v6471_v51, %v8111_v11  ;;  %v826_v9 = vpop.f32.mrf.mxu3 }
 0x279   : > { %v4718_v6 = vmul.f32 %v3969_v14, %v3969_v14  ;;  %v3972_v16 = vmul.f32 %v5885_v17, %v3971_v46  ;;  %vm3976_vm1 = vweird.f32 %v8092_v42  ;;  %5888 = vrsqrt.f32 %v8119_v43 }
 0x27a   : > { %5229 = vst [vmem:[%s6712_s22 + $0x1c8] sm:$0xff] %v5101_v53  ;;  %v2328_v45 = vsel %vm2327_vm11, %v8059_v61, %v2326_v48  ;;  %v2337_v59 = vmul.f32 %v5883_v38, %v2336_v58  ;;  %v2345_v21 = vmul.f32 %v5887_v28, %v8098_v50  ;;  %v1268_v44 = vmul.f32 2.0, %v487_v2 }
 0x27b   : > { %v4846_v30 = vmul.f32 %v4718_v6, %v4718_v6  ;;  %v3973_v41 = vmul.f32 0.5, %v3972_v16  ;;  %v2331_v3 = vsel %vm2329_vm12, %v2330_v15, %v2328_v45  ;;  %v1141_v56 = vadd.f32 %v6473_v52, %v8111_v11  ;;  %v8174_v16 = vpop.permute.xlu2 %994  ;;  %v490_v45 = vpop.f32.mrf.mxu0 }
 0x27c   : > { %v3185_v26 = vmul.f32 1.1085125, %v2331_v3  ;;  %v2338_v4 = vmul.f32 %v2337_v59, %v8072_v40  ;;  %v2346_v47 = vmul.f32 %v5887_v28, %v2345_v21  ;;  %v1396_v31 = vsub.f32 %v1140_v35, %v1268_v44 }
 0x27d   : > { %v4974_v33 = vmul.f32 %v4846_v30, %v3969_v14  ;;  %v3974_v36 = vsub.f32 1.5, %v3973_v41  ;;  %vm3977_vm2 = vweird.f32 %v5885_v17  ;;  %v1269_v13 = vmul.f32 2.0, %v600_v5 }
 0x27e   : > { %v8137_v29 = vadd.f32 1.0, %v3185_v26  ;;  %v2340_v61 = vsel %vm2339_vm14, %v8072_v40, %v2338_v4  ;;  %v2347_v54 = vmul.f32 0.5, %v2346_v47  ;;  %v8142_v49 = vmax.f32 %v1396_v31, 0.0  ;;  %vm3978_vm3 = vmor %vm3976_vm1, %vm3977_vm2 }
 0x27f   : > { %v5889_v18 = vpop.eup %5888  ;;  %v5102_v15 = vmul.f32 0.81, %v4974_v33  ;;  %v3975_v38 = vmul.f32 %v5885_v17, %v3974_v36  ;;  %v2343_v25 = vsel %vm2341_vm15, %v2342_v12, %v2340_v61  ;;  %v1397_v57 = vsub.f32 %v1141_v56, %v1269_v13 }
 0x280   : > { %v3981_v19 = vmul.f32 %v5889_v18, %v8119_v43  ;;  %5890 = vrsqrt.f32 %v8137_v29  ;;  %v3186_v62 = vmul.f32 1.1085125, %v2343_v25  ;;  %v2348_v39 = vsub.f32 1.5, %v2347_v54 }
 0x281   : > { %5230 = vst [vmem:[%s6712_s22 + $0x1d0] sm:$0xff] %v5102_v15  ;;  %v3979_v0 = vsel %vm3978_vm3, %v5885_v17, %v3975_v38  ;;  %5892 = vrsqrt.f32 %v8142_v49  ;;  %vm2351_vm4 = vcmp.eq.f32.partialorder %v8098_v50, inf  ;;  %v8155_v42 = vmax.f32 %v1397_v57, 0.0 }
 0x282   : > { %v4719_v34 = vmul.f32 %v3979_v0, %v3979_v0  ;;  %v3982_v37 = vmul.f32 %v5889_v18, %v3981_v19  ;;  %v8152_v8 = vadd.f32 1.0, %v3186_v62  ;;  %v2349_v40 = vmul.f32 %v5887_v28, %v2348_v39 }
 0x283   : > { %vm2353_vm5 = vcmp.eq.f32.partialorder %v8098_v50, 0.0  ;;  %v2354_v10 = vand.u32 2147483648, %v8098_v50  ;;  %v1142_v55 = vadd.f32 %v6480_v60, %v8111_v11  ;;  %v1270_v27 = vmul.f32 2.0, %v713_v23 }
 0x284   : > { %v4847_v32 = vmul.f32 %v4719_v34, %v4719_v34  ;;  %v3983_v22 = vmul.f32 0.5, %v3982_v37  ;;  %5894 = vrsqrt.f32 %v8152_v8  ;;  %v2350_v1 = vmul.f32 %v2349_v40, %v8098_v50 }
 0x285   : > { %vm3987_vm6 = vweird.f32 %v5889_v18  ;;  %5896 = vrsqrt.f32 %v8155_v42  ;;  %vm3986_vm7 = vweird.f32 %v8119_v43  ;;  %v1143_v12 = vadd.f32 %v6484_v63, %v8111_v11 }
 0x286   : > { %v5891_v20 = vpop.eup %5890  ;;  %v4975_v17 = vmul.f32 %v4847_v32, %v3979_v0  ;;  %v3984_v7 = vsub.f32 1.5, %v3983_v22  ;;  %v2352_v48 = vsel %vm2351_vm4, %v8098_v50, %v2350_v1  ;;  %vm3988_vm8 = vmor %vm3986_vm7, %vm3987_vm6  ;;  %v1398_v43 = vsub.f32 %v1142_v55, %v1270_v27 }
 0x287   : > { %v5893_v24 = vpop.eup %5892  ;;  %v3991_v46 = vmul.f32 %v5891_v20, %v8137_v29  ;;  %v2355_v53 = vsel %vm2353_vm5, %v2354_v10, %v2352_v48  ;;  %v1271_v6 = vmul.f32 2.0, %v826_v9  ;;  %vm3996_vm9 = vweird.f32 %v8137_v29 }
 0x288   : > { %v5103_v2 = vmul.f32 0.81, %v4975_v17  ;;  %v3985_v28 = vmul.f32 %v5889_v18, %v3984_v7  ;;  %v2357_v14 = vmul.f32 %v5893_v24, %v8142_v49  ;;  %v3187_v35 = vmul.f32 1.1085125, %v2355_v53 }
 0x289   : > { %v3992_v58 = vmul.f32 %v5891_v20, %v3991_v46  ;;  %vm3997_vm10 = vweird.f32 %v5891_v20  ;;  %v8180_v30 = vmax.f32 %v1398_v43, 0.0  ;;  %v1144_v26 = vadd.f32 %v6471_v51, %v8174_v16 }
 0x28a   : > { %5231 = vst [vmem:[%s6712_s22 + $0x1d8] sm:$0xff] %v5103_v2  ;;  %v3989_v59 = vsel %vm3988_vm8, %v5889_v18, %v3985_v28  ;;  %v2358_v11 = vmul.f32 %v5893_v24, %v2357_v14  ;;  %v5895_v21 = vpop.eup %5894  ;;  %v8178_v5 = vadd.f32 1.0, %v3187_v35  ;;  %v1272_v4 = vmul.f32 2.0, %v490_v45  ;;  %vm3998_vm13 = vmor %vm3996_vm9, %vm3997_vm10 }
 0x28b   : > { %v4720_v44 = vmul.f32 %v3989_v59, %v3989_v59  ;;  %v3993_v50 = vmul.f32 0.5, %v3992_v58  ;;  %v5897_v41 = vpop.eup %5896  ;;  %v4001_v3 = vmul.f32 %v5895_v21, %v8152_v8  ;;  %v1399_v33 = vsub.f32 %v1143_v12, %v1271_v6 }
 0x28c   : > { %v2359_v56 = vmul.f32 0.5, %v2358_v11  ;;  %5898 = vrsqrt.f32 %v8178_v5  ;;  %v2369_v61 = vmul.f32 %v5897_v41, %v8155_v42  ;;  %vm2363_vm11 = vcmp.eq.f32.partialorder %v8142_v49, inf  ;;  %v603_v11 = vpop.f32.mrf.mxu1 }
 0x28d   : > { %v4848_v47 = vmul.f32 %v4720_v44, %v4720_v44  ;;  %v3994_v31 = vsub.f32 1.5, %v3993_v50  ;;  %v4002_v36 = vmul.f32 %v5895_v21, %v4001_v3  ;;  %5900 = vrsqrt.f32 %v8180_v30 }
 0x28e   : > { %v2360_v13 = vsub.f32 1.5, %v2359_v56  ;;  %vm2365_vm12 = vcmp.eq.f32.partialorder %v8142_v49, 0.0  ;;  %vm4007_vm14 = vweird.f32 %v5895_v21  ;;  %v2370_v25 = vmul.f32 %v5897_v41, %v2369_v61 }
 0x28f   : > { %v4976_v54 = vmul.f32 %v4848_v47, %v3989_v59  ;;  %v3995_v18 = vmul.f32 %v5891_v20, %v3994_v31  ;;  %v4003_v15 = vmul.f32 0.5, %v4002_v36  ;;  %v8193_v0 = vmax.f32 %v1399_v33, 0.0  ;;  %v716_v31 = vpop.f32.mrf.mxu2 }
 0x290   : > { %v2361_v38 = vmul.f32 %v5893_v24, %v2360_v13  ;;  %v1400_v62 = vsub.f32 %v1144_v26, %v1272_v4  ;;  %v2371_v23 = vmul.f32 0.5, %v2370_v25  ;;  %vm4006_vm15 = vweird.f32 %v8152_v8 }
 0x291   : > { %v5104_v57 = vmul.f32 0.81, %v4976_v54  ;;  %v3999_v19 = vsel %vm3998_vm13, %v5891_v20, %v3995_v18  ;;  %v4004_v34 = vsub.f32 1.5, %v4003_v15  ;;  %v2366_v29 = vand.u32 2147483648, %v8142_v49  ;;  %vm4008_vm2 = vmor %vm4006_vm15, %vm4007_vm14 }
 0x292   : > { %v4721_v39 = vmul.f32 %v3999_v19, %v3999_v19  ;;  %v2362_v37 = vmul.f32 %v2361_v38, %v8142_v49  ;;  %v5899_v40 = vpop.eup %5898  ;;  %vm2375_vm0 = vcmp.eq.f32.partialorder %v8155_v42, inf  ;;  %5902 = vrsqrt.f32 %v8193_v0 }
 0x293   : > { %5232 = vst [vmem:[%s6712_s22 + $0x1e0] sm:$0xff] %v5104_v57  ;;  %v5901_v32 = vpop.eup %5900  ;;  %v4005_v10 = vmul.f32 %v5895_v21, %v4004_v34  ;;  %v4011_v1 = vmul.f32 %v5899_v40, %v8178_v5  ;;  %vm2377_vm1 = vcmp.eq.f32.partialorder %v8155_v42, 0.0  ;;  %v2372_v8 = vsub.f32 1.5, %v2371_v23 }
 0x294   : > { %v4849_v22 = vmul.f32 %v4721_v39, %v4721_v39  ;;  %v2364_v55 = vsel %vm2363_vm11, %v8142_v49, %v2362_v37  ;;  %v2381_v27 = vmul.f32 %v5901_v32, %v8180_v30  ;;  %v8208_v20 = vmax.f32 %v1400_v62, 0.0 }
 0x295   : > { %v4009_v7 = vsel %vm4008_vm2, %v5895_v21, %v4005_v10  ;;  %v4012_v9 = vmul.f32 %v5899_v40, %v4011_v1  ;;  %v2367_v24 = vsel %vm2365_vm12, %v2366_v29, %v2364_v55  ;;  %v2373_v12 = vmul.f32 %v5897_v41, %v2372_v8 }
 0x296   : > { %v4977_v17 = vmul.f32 %v4849_v22, %v3999_v19  ;;  %v4722_v46 = vmul.f32 %v4009_v7, %v4009_v7  ;;  %v3188_v48 = vmul.f32 1.1085125, %v2367_v24  ;;  %v2382_v2 = vmul.f32 %v5901_v32, %v2381_v27 }
 0x297   : > { %v4013_v53 = vmul.f32 0.5, %v4012_v9  ;;  %v2378_v14 = vand.u32 2147483648, %v8155_v42  ;;  %5904 = vrsqrt.f32 %v8208_v20  ;;  %v2374_v6 = vmul.f32 %v2373_v12, %v8155_v42 }
 0x298   : > { %v5105_v28 = vmul.f32 0.81, %v4977_v17  ;;  %v5903_v58 = vpop.eup %5902  ;;  %v4850_v35 = vmul.f32 %v4722_v46, %v4722_v46  ;;  %v8214_v43 = vadd.f32 1.0, %v3188_v48  ;;  %v2383_v45 = vmul.f32 0.5, %v2382_v2 }
 0x299   : > { %v4014_v49 = vsub.f32 1.5, %v4013_v53  ;;  %vm4016_vm3 = vweird.f32 %v8178_v5  ;;  %vm4017_vm4 = vweird.f32 %v5899_v40  ;;  %v2393_v59 = vmul.f32 %v5903_v58, %v8193_v0 }
 0x29a   : > { %5233 = vst [vmem:[%s6712_s22 + $0x1e8] sm:$0xff] %v5105_v28  ;;  %v4978_v21 = vmul.f32 %v4850_v35, %v4009_v7  ;;  %5906 = vrsqrt.f32 %v8214_v43  ;;  %v2376_v44 = vsel %vm2375_vm0, %v8155_v42, %v2374_v6  ;;  %vm2387_vm5 = vcmp.eq.f32.partialorder %v8180_v30, inf  ;;  %vm4018_vm6 = vmor %vm4016_vm3, %vm4017_vm4  ;;  %v829_v35 = vpop.f32.mrf.mxu3 }
 0x29b   : > { %v4015_v50 = vmul.f32 %v5899_v40, %v4014_v49  ;;  %v2379_v41 = vsel %vm2377_vm1, %v2378_v14, %v2376_v44  ;;  %v2384_v3 = vsub.f32 1.5, %v2383_v45  ;;  %v2394_v5 = vmul.f32 %v5903_v58, %v2393_v59 }
 0x29c   : > { %v5106_v56 = vmul.f32 0.81, %v4978_v21  ;;  %v3189_v26 = vmul.f32 1.1085125, %v2379_v41  ;;  %v1145_v4 = vadd.f32 %v6473_v52, %v8174_v16  ;;  %v1273_v47 = vmul.f32 2.0, %v603_v11 }
 0x29d   : > { %v5905_v33 = vpop.eup %5904  ;;  %v4019_v36 = vsel %vm4018_vm6, %v5899_v40, %v4015_v50  ;;  %v2385_v13 = vmul.f32 %v5901_v32, %v2384_v3  ;;  %vm2389_vm7 = vcmp.eq.f32.partialorder %v8180_v30, 0.0  ;;  %v2395_v61 = vmul.f32 0.5, %v2394_v5 }
 0x29e   : > { %5234 = vst [vmem:[%s6712_s22 + $0x1f0] sm:$0xff] %v5106_v56  ;;  %v4723_v54 = vmul.f32 %v4019_v36, %v4019_v36  ;;  %v8231_v42 = vadd.f32 1.0, %v3189_v26  ;;  %v2405_v18 = vmul.f32 %v5905_v33, %v8208_v20  ;;  %v1401_v15 = vsub.f32 %v1145_v4, %v1273_v47 }
 0x29f   : > { %v2386_v38 = vmul.f32 %v2385_v13, %v8180_v30  ;;  %v2396_v25 = vsub.f32 1.5, %v2395_v61  ;;  %v1146_v57 = vadd.f32 %v6480_v60, %v8174_v16  ;;  %v1274_v19 = vmul.f32 2.0, %v716_v31 }
 0x2a0   : > { %v5907_v62 = vpop.eup %5906  ;;  %v4851_v39 = vmul.f32 %v4723_v54, %v4723_v54  ;;  %5908 = vrsqrt.f32 %v8231_v42  ;;  %v2390_v34 = vand.u32 2147483648, %v8180_v30  ;;  %v2406_v37 = vmul.f32 %v5905_v33, %v2405_v18 }
 0x2a1   : > { %v4021_v23 = vmul.f32 %v5907_v62, %v8214_v43  ;;  %v2388_v40 = vsel %vm2387_vm5, %v8180_v30, %v2386_v38  ;;  %v2397_v29 = vmul.f32 %v5903_v58, %v2396_v25  ;;  %vm2399_vm8 = vcmp.eq.f32.partialorder %v8193_v0, inf }
 0x2a2   : > { %v4979_v32 = vmul.f32 %v4851_v39, %v4019_v36  ;;  %v2391_v22 = vsel %vm2389_vm7, %v2390_v34, %v2388_v40  ;;  %v2407_v10 = vmul.f32 0.5, %v2406_v37  ;;  %v8246_v1 = vmax.f32 %v1401_v15, 0.0 }
 0x2a3   : > { %v4022_v55 = vmul.f32 %v5907_v62, %v4021_v23  ;;  %v3190_v8 = vmul.f32 1.1085125, %v2391_v22  ;;  %v2398_v27 = vmul.f32 %v2397_v29, %v8193_v0  ;;  %v1402_v17 = vsub.f32 %v1146_v57, %v1274_v19  ;;  %v493_v22 = vpop.f32.mrf.mxu0 }
 0x2a4   : > { %v5107_v7 = vmul.f32 0.81, %v4979_v32  ;;  %v2402_v9 = vand.u32 2147483648, %v8193_v0  ;;  %v2408_v24 = vsub.f32 1.5, %v2407_v10  ;;  %5910 = vrsqrt.f32 %v8246_v1  ;;  %v8291_v32 = vpop.permute.xlu0 %999 }
 0x2a5   : > { %v4023_v46 = vmul.f32 0.5, %v4022_v55  ;;  %v8251_v48 = vadd.f32 1.0, %v3190_v8  ;;  %v2400_v30 = vsel %vm2399_vm8, %v8193_v0, %v2398_v27  ;;  %vm2401_vm9 = vcmp.eq.f32.partialorder %v8193_v0, 0.0 }
 0x2a6   : > { %v5909_v12 = vpop.eup %5908  ;;  %5235 = vst [vmem:[%s6712_s22 + $0x1f8] sm:$0xff] %v5107_v7  ;;  %v2403_v2 = vsel %vm2401_vm9, %v2402_v9, %v2400_v30  ;;  %v2409_v28 = vmul.f32 %v5905_v33, %v2408_v24  ;;  %vm2411_vm10 = vcmp.eq.f32.partialorder %v8208_v20, inf  ;;  %v8257_v53 = vmax.f32 %v1402_v17, 0.0  ;;  %v606_v17 = vpop.f32.mrf.mxu1 }
 0x2a7   : > { %v4024_v14 = vsub.f32 1.5, %v4023_v46  ;;  %vm4027_vm11 = vweird.f32 %v5907_v62  ;;  %v4031_v58 = vmul.f32 %v5909_v12, %v8231_v42  ;;  %5912 = vrsqrt.f32 %v8251_v48 }
 0x2a8   : > { %v3191_v6 = vmul.f32 1.1085125, %v2403_v2  ;;  %v2410_v45 = vmul.f32 %v2409_v28, %v8208_v20  ;;  %v2414_v0 = vand.u32 2147483648, %v8208_v20  ;;  %5914 = vrsqrt.f32 %v8257_v53 }
 0x2a9   : > { %v4025_v49 = vmul.f32 %v5907_v62, %v4024_v14  ;;  %vm4026_vm12 = vweird.f32 %v8214_v43  ;;  %v4032_v59 = vmul.f32 %v5909_v12, %v4031_v58  ;;  %v1147_v11 = vadd.f32 %v6484_v63, %v8174_v16 }
 0x2aa   : > { %v5911_v21 = vpop.eup %5910  ;;  %vm4028_vm13 = vmor %vm4026_vm12, %vm4027_vm11  ;;  %v8267_v44 = vadd.f32 1.0, %v3191_v6  ;;  %v2412_v50 = vsel %vm2411_vm10, %v8208_v20, %v2410_v45  ;;  %vm2413_vm14 = vcmp.eq.f32.partialorder %v8208_v20, 0.0  ;;  %v1275_v41 = vmul.f32 2.0, %v829_v35 }
 0x2ab   : > { %v4029_v3 = vsel %vm4028_vm13, %v5907_v62, %v4025_v49  ;;  %v4033_v5 = vmul.f32 0.5, %v4032_v59  ;;  %v2415_v56 = vsel %vm2413_vm14, %v2414_v0, %v2412_v50  ;;  %v2417_v43 = vmul.f32 %v5911_v21, %v8246_v1 }
 0x2ac   : > { %v4724_v26 = vmul.f32 %v4029_v3, %v4029_v3  ;;  %vm4036_vm15 = vweird.f32 %v8231_v42  ;;  %5916 = vrsqrt.f32 %v8267_v44  ;;  %v3192_v16 = vmul.f32 1.1085125, %v2415_v56 }
 0x2ad   : > { %v5913_v4 = vpop.eup %5912  ;;  %v4034_v47 = vsub.f32 1.5, %v4033_v5  ;;  %vm4037_vm0 = vweird.f32 %v5909_v12  ;;  %v2418_v31 = vmul.f32 %v5911_v21, %v2417_v43  ;;  %v1403_v33 = vsub.f32 %v1147_v11, %v1275_v41 }
 0x2ae   : > { %v5915_v36 = vpop.eup %5914  ;;  %v4852_v13 = vmul.f32 %v4724_v26, %v4724_v26  ;;  %v4041_v20 = vmul.f32 %v5913_v4, %v8251_v48  ;;  %v8277_v61 = vadd.f32 1.0, %v3192_v16  ;;  %vm2423_vm1 = vcmp.eq.f32.partialorder %v8246_v1, inf  ;;  %vm4038_vm3 = vmor %vm4036_vm15, %vm4037_vm0 }
 0x2af   : > { %v2426_v54 = vand.u32 2147483648, %v8246_v1  ;;  %v4035_v18 = vmul.f32 %v5909_v12, %v4034_v47  ;;  %v2419_v15 = vmul.f32 0.5, %v2418_v31  ;;  %vm2425_vm2 = vcmp.eq.f32.partialorder %v8246_v1, 0.0 }
 0x2b0   : > { %v2429_v38 = vmul.f32 %v5915_v36, %v8257_v53  ;;  %v8283_v25 = vmax.f32 %v1403_v33, 0.0  ;;  %v4980_v57 = vmul.f32 %v4852_v13, %v4029_v3  ;;  %v4042_v19 = vmul.f32 %v5913_v4, %v4041_v20 }
 0x2b1   : > { %vm4046_vm4 = vweird.f32 %v8251_v48  ;;  %5918 = vrsqrt.f32 %v8277_v61  ;;  %v4039_v62 = vsel %vm4038_vm3, %v5909_v12, %v4035_v18  ;;  %v2420_v39 = vsub.f32 1.5, %v2419_v15 }
 0x2b2   : > { %v2430_v34 = vmul.f32 %v5915_v36, %v2429_v38  ;;  %5920 = vrsqrt.f32 %v8283_v25  ;;  %v5917_v37 = vpop.eup %5916  ;;  %v5108_v23 = vmul.f32 0.81, %v4980_v57  ;;  %v4725_v40 = vmul.f32 %v4039_v62, %v4039_v62 }
 0x2b3   : > { %v4043_v29 = vmul.f32 0.5, %v4042_v19  ;;  %v2438_v42 = vand.u32 2147483648, %v8257_v53  ;;  %v4051_v10 = vmul.f32 %v5917_v37, %v8267_v44  ;;  %vm4056_vm5 = vweird.f32 %v8267_v44 }
 0x2b4   : > { %v2421_v55 = vmul.f32 %v5911_v21, %v2420_v39  ;;  %v2431_v8 = vmul.f32 0.5, %v2430_v34  ;;  %vm2435_vm6 = vcmp.eq.f32.partialorder %v8257_v53, inf  ;;  %v1148_v27 = vadd.f32 %v6471_v51, %v8291_v32  ;;  %5236 = vst [vmem:[%s6712_s22 + $0x200] sm:$0xff] %v5108_v23 }
 0x2b5   : > { %v4853_v7 = vmul.f32 %v4725_v40, %v4725_v40  ;;  %v4044_v9 = vsub.f32 1.5, %v4043_v29  ;;  %vm4047_vm7 = vweird.f32 %v5913_v4  ;;  %vm4057_vm8 = vweird.f32 %v5917_v37 }
 0x2b6   : > { %v4052_v24 = vmul.f32 %v5917_v37, %v4051_v10  ;;  %v2422_v46 = vmul.f32 %v2421_v55, %v8246_v1  ;;  %v2432_v30 = vsub.f32 1.5, %v2431_v8  ;;  %vm2437_vm9 = vcmp.eq.f32.partialorder %v8257_v53, 0.0  ;;  %vm4048_vm10 = vmor %vm4046_vm4, %vm4047_vm7  ;;  %v832_v10 = vpop.f32.mrf.mxu3 }
 0x2b7   : > { %v1276_v12 = vmul.f32 2.0, %v493_v22  ;;  %v5919_v2 = vpop.eup %5918  ;;  %v4981_v28 = vmul.f32 %v4853_v7, %v4039_v62  ;;  %v4045_v14 = vmul.f32 %v5913_v4, %v4044_v9  ;;  %v1149_v58 = vadd.f32 %v6473_v52, %v8291_v32  ;;  %vm4058_vm12 = vmor %vm4056_vm5, %vm4057_vm8 }
 0x2b8   : > { %v1277_v35 = vmul.f32 2.0, %v606_v17  ;;  %v5921_v6 = vpop.eup %5920  ;;  %v4053_v45 = vmul.f32 0.5, %v4052_v24  ;;  %v4061_v0 = vmul.f32 %v5919_v2, %v8277_v61  ;;  %vm4067_vm11 = vweird.f32 %v5919_v2 }
 0x2b9   : > { %v2424_v49 = vsel %vm2423_vm1, %v8246_v1, %v2422_v46  ;;  %v5109_v59 = vmul.f32 0.81, %v4981_v28  ;;  %v4049_v11 = vsel %vm4048_vm10, %v5913_v4, %v4045_v14  ;;  %v2433_v50 = vmul.f32 %v5915_v36, %v2432_v30 }
 0x2ba   : > { %v2427_v21 = vsel %vm2425_vm2, %v2426_v54, %v2424_v49  ;;  %v4726_v41 = vmul.f32 %v4049_v11, %v4049_v11  ;;  %v4054_v3 = vsub.f32 1.5, %v4053_v45  ;;  %v4062_v5 = vmul.f32 %v5919_v2, %v4061_v0  ;;  %v8353_v49 = vpop.permute.xlu1 %1004 }
 0x2bb   : > { %v3193_v56 = vmul.f32 1.1085125, %v2427_v21  ;;  %5237 = vst [vmem:[%s6712_s22 + $0x208] sm:$0xff] %v5109_v59  ;;  %v2434_v48 = vmul.f32 %v2433_v50, %v8257_v53  ;;  %v2441_v43 = vmul.f32 %v5921_v6, %v8283_v25  ;;  %v1404_v26 = vsub.f32 %v1148_v27, %v1276_v12 }
 0x2bc   : > { %v1405_v16 = vsub.f32 %v1149_v58, %v1277_v35  ;;  %v4854_v47 = vmul.f32 %v4726_v41, %v4726_v41  ;;  %v4055_v31 = vmul.f32 %v5917_v37, %v4054_v3  ;;  %v4063_v33 = vmul.f32 0.5, %v4062_v5 }
 0x2bd   : > { %v8315_v13 = vadd.f32 1.0, %v3193_v56  ;;  %v2436_v1 = vsel %vm2435_vm6, %v8257_v53, %v2434_v48  ;;  %v2442_v4 = vmul.f32 %v5921_v6, %v2441_v43  ;;  %v8323_v36 = vmax.f32 %v1404_v26, 0.0 }
 0x2be   : > { %v8325_v20 = vmax.f32 %v1405_v16, 0.0  ;;  %v4982_v54 = vmul.f32 %v4854_v47, %v4049_v11  ;;  %v4059_v18 = vsel %vm4058_vm12, %v5917_v37, %v4055_v31  ;;  %v4064_v15 = vsub.f32 1.5, %v4063_v33  ;;  %v496_v11 = vpop.f32.mrf.mxu0 }
 0x2bf   : > { %5922 = vrsqrt.f32 %v8315_v13  ;;  %v4727_v38 = vmul.f32 %v4059_v18, %v4059_v18  ;;  %vm4066_vm13 = vweird.f32 %v8277_v61  ;;  %v2439_v44 = vsel %vm2437_vm9, %v2438_v42, %v2436_v1  ;;  %v719_v42 = vpop.f32.mrf.mxu2 }
 0x2c0   : > { %v2443_v57 = vmul.f32 0.5, %v2442_v4  ;;  %v5110_v19 = vmul.f32 0.81, %v4982_v54  ;;  %v4065_v62 = vmul.f32 %v5919_v2, %v4064_v15  ;;  %v3194_v39 = vmul.f32 1.1085125, %v2439_v44  ;;  %vm4068_vm14 = vmor %vm4066_vm13, %vm4067_vm11 }
 0x2c1   : > { %5924 = vrsqrt.f32 %v8323_v36  ;;  %v4855_v34 = vmul.f32 %v4727_v38, %v4727_v38  ;;  %vm2447_vm15 = vcmp.eq.f32.partialorder %v8283_v25, inf  ;;  %vm2449_vm0 = vcmp.eq.f32.partialorder %v8283_v25, 0.0 }
 0x2c2   : > { %v2444_v23 = vsub.f32 1.5, %v2443_v57  ;;  %5238 = vst [vmem:[%s6712_s22 + $0x210] sm:$0xff] %v5110_v19  ;;  %v4069_v37 = vsel %vm4068_vm14, %v5919_v2, %v4065_v62  ;;  %v8334_v40 = vadd.f32 1.0, %v3194_v39  ;;  %5926 = vrsqrt.f32 %v8325_v20 }
 0x2c3   : > { %v4983_v61 = vmul.f32 %v4855_v34, %v4059_v18  ;;  %v4728_v29 = vmul.f32 %v4069_v37, %v4069_v37  ;;  %v2450_v17 = vand.u32 2147483648, %v8283_v25  ;;  %v1150_v24 = vadd.f32 %v6480_v60, %v8291_v32 }
 0x2c4   : > { %v2445_v53 = vmul.f32 %v5921_v6, %v2444_v23  ;;  %5928 = vrsqrt.f32 %v8334_v40  ;;  %v1278_v46 = vmul.f32 2.0, %v719_v42  ;;  %v1151_v30 = vadd.f32 %v6484_v63, %v8291_v32 }
 0x2c5   : > { %v5923_v22 = vpop.eup %5922  ;;  %v5111_v55 = vmul.f32 0.81, %v4983_v61  ;;  %v4856_v8 = vmul.f32 %v4728_v29, %v4728_v29  ;;  %v1279_v14 = vmul.f32 2.0, %v832_v10  ;;  %vm4076_vm1 = vweird.f32 %v8315_v13  ;;  %v609_v29 = vpop.f32.mrf.mxu1 }
 0x2c6   : > { %v4071_v27 = vmul.f32 %v5923_v22, %v8315_v13  ;;  %v2446_v9 = vmul.f32 %v2445_v53, %v8283_v25  ;;  %vm4077_vm2 = vweird.f32 %v5923_v22  ;;  %v1406_v6 = vsub.f32 %v1150_v24, %v1278_v46 }
 0x2c7   : > { %v5925_v7 = vpop.eup %5924  ;;  %5239 = vst [vmem:[%s6712_s22 + $0x218] sm:$0xff] %v5111_v55  ;;  %v4984_v12 = vmul.f32 %v4856_v8, %v4069_v37  ;;  %vm2459_vm3 = vcmp.eq.f32.partialorder %v8323_v36, inf  ;;  %v1152_v5 = vadd.f32 %v6471_v51, %v8353_v49  ;;  %v1280_v47 = vmul.f32 2.0, %v496_v11  ;;  %vm4078_vm5 = vmor %vm4076_vm1, %vm4077_vm2 }
 0x2c8   : > { %v4072_v2 = vmul.f32 %v5923_v22, %v4071_v27  ;;  %v2453_v28 = vmul.f32 %v5925_v7, %v8323_v36  ;;  %v5927_v58 = vpop.eup %5926  ;;  %v2448_v35 = vsel %vm2447_vm15, %v8283_v25, %v2446_v9  ;;  %v8359_v3 = vmax.f32 %v1406_v6, 0.0 }
 0x2c9   : > { %v5112_v45 = vmul.f32 0.81, %v4984_v12  ;;  %v2451_v32 = vsel %vm2449_vm0, %v2450_v17, %v2448_v35  ;;  %v2465_v41 = vmul.f32 %v5927_v58, %v8325_v20  ;;  %v1407_v25 = vsub.f32 %v1151_v30, %v1279_v14 }
 0x2ca   : > { %v4073_v0 = vmul.f32 0.5, %v4072_v2  ;;  %v2454_v59 = vmul.f32 %v5925_v7, %v2453_v28  ;;  %v5929_v21 = vpop.eup %5928  ;;  %v3195_v50 = vmul.f32 1.1085125, %v2451_v32  ;;  %5930 = vrsqrt.f32 %v8359_v3 }
 0x2cb   : > { %5240 = vst [vmem:[%s6712_s22 + $0x220] sm:$0xff] %v5112_v45  ;;  %v4081_v48 = vmul.f32 %v5929_v21, %v8334_v40  ;;  %v2466_v16 = vmul.f32 %v5927_v58, %v2465_v41  ;;  %vm2461_vm4 = vcmp.eq.f32.partialorder %v8323_v36, 0.0  ;;  %v2462_v4 = vand.u32 2147483648, %v8323_v36 }
 0x2cc   : > { %v4074_v56 = vsub.f32 1.5, %v4073_v0  ;;  %v2455_v43 = vmul.f32 0.5, %v2454_v59  ;;  %v8365_v26 = vadd.f32 1.0, %v3195_v50  ;;  %vm2471_vm6 = vcmp.eq.f32.partialorder %v8325_v20, inf }
 0x2cd   : > { %v4082_v33 = vmul.f32 %v5929_v21, %v4081_v48  ;;  %v2467_v54 = vmul.f32 0.5, %v2466_v16  ;;  %v8375_v44 = vmax.f32 %v1407_v25, 0.0  ;;  %vm4086_vm7 = vweird.f32 %v8334_v40 }
 0x2ce   : > { %v4075_v31 = vmul.f32 %v5923_v22, %v4074_v56  ;;  %v2456_v1 = vsub.f32 1.5, %v2455_v43  ;;  %5932 = vrsqrt.f32 %v8365_v26  ;;  %v1408_v62 = vsub.f32 %v1152_v5, %v1280_v47 }
 0x2cf   : > { %v4083_v15 = vmul.f32 0.5, %v4082_v33  ;;  %v2468_v19 = vsub.f32 1.5, %v2467_v54  ;;  %vm4087_vm8 = vweird.f32 %v5929_v21  ;;  %5934 = vrsqrt.f32 %v8375_v44  ;;  %v722_v33 = vpop.f32.mrf.mxu2 }
 0x2d0   : > { %v4079_v18 = vsel %vm4078_vm5, %v5923_v22, %v4075_v31  ;;  %v2457_v38 = vmul.f32 %v5925_v7, %v2456_v1  ;;  %v5931_v34 = vpop.eup %5930  ;;  %vm2473_vm9 = vcmp.eq.f32.partialorder %v8325_v20, 0.0  ;;  %v2474_v61 = vand.u32 2147483648, %v8325_v20  ;;  %vm4088_vm10 = vmor %vm4086_vm7, %vm4087_vm8 }
 0x2d1   : > { %v4729_v57 = vmul.f32 %v4079_v18, %v4079_v18  ;;  %v4084_v39 = vsub.f32 1.5, %v4083_v15  ;;  %v2469_v37 = vmul.f32 %v5927_v58, %v2468_v19  ;;  %v2477_v22 = vmul.f32 %v5931_v34, %v8359_v3 }
 0x2d2   : > { %v2458_v13 = vmul.f32 %v2457_v38, %v8323_v36  ;;  %v8386_v10 = vmax.f32 %v1408_v62, 0.0  ;;  %v1153_v7 = vadd.f32 %v6473_v52, %v8353_v49  ;;  %v1281_v30 = vmul.f32 2.0, %v609_v29 }
 0x2d3   : > { %v4857_v23 = vmul.f32 %v4729_v57, %v4729_v57  ;;  %v4085_v53 = vmul.f32 %v5929_v21, %v4084_v39  ;;  %v2470_v17 = vmul.f32 %v2469_v37, %v8325_v20  ;;  %v2478_v28 = vmul.f32 %v5931_v34, %v2477_v22 }
 0x2d4   : > { %v2460_v42 = vsel %vm2459_vm3, %v8323_v36, %v2458_v13  ;;  %v5933_v55 = vpop.eup %5932  ;;  %5936 = vrsqrt.f32 %v8386_v10  ;;  %vm2483_vm11 = vcmp.eq.f32.partialorder %v8359_v3, inf  ;;  %vm2485_vm12 = vcmp.eq.f32.partialorder %v8359_v3, 0.0 }
 0x2d5   : > { %v4985_v8 = vmul.f32 %v4857_v23, %v4079_v18  ;;  %v2463_v27 = vsel %vm2461_vm4, %v2462_v4, %v2460_v42  ;;  %v4089_v9 = vsel %vm4088_vm10, %v5929_v21, %v4085_v53  ;;  %v4091_v24 = vmul.f32 %v5933_v55, %v8365_v26  ;;  %v5935_v36 = vpop.eup %5934 }
 0x2d6   : > { %v3196_v46 = vmul.f32 1.1085125, %v2463_v27  ;;  %v4730_v2 = vmul.f32 %v4089_v9, %v4089_v9  ;;  %v2472_v40 = vsel %vm2471_vm6, %v8325_v20, %v2470_v17  ;;  %v2479_v0 = vmul.f32 0.5, %v2478_v28  ;;  %v835_v27 = vpop.f32.mrf.mxu3 }
 0x2d7   : > { %v5113_v12 = vmul.f32 0.81, %v4985_v8  ;;  %v4092_v14 = vmul.f32 %v5933_v55, %v4091_v24  ;;  %v2475_v35 = vsel %vm2473_vm9, %v2474_v61, %v2472_v40  ;;  %v2489_v32 = vmul.f32 %v5935_v36, %v8375_v44 }
 0x2d8   : > { %v8400_v58 = vadd.f32 1.0, %v3196_v46  ;;  %v4858_v6 = vmul.f32 %v4730_v2, %v4730_v2  ;;  %v3197_v45 = vmul.f32 1.1085125, %v2475_v35  ;;  %v2480_v20 = vsub.f32 1.5, %v2479_v0 }
 0x2d9   : > { %5241 = vst [vmem:[%s6712_s22 + $0x228] sm:$0xff] %v5113_v12  ;;  %v4093_v59 = vmul.f32 0.5, %v4092_v14  ;;  %v2490_v50 = vmul.f32 %v5935_v36, %v2489_v32  ;;  %vm4096_vm13 = vweird.f32 %v8365_v26  ;;  %vm4097_vm14 = vweird.f32 %v5933_v55 }
 0x2da   : > { %5938 = vrsqrt.f32 %v8400_v58  ;;  %v4986_v11 = vmul.f32 %v4858_v6, %v4089_v9  ;;  %v8410_v21 = vadd.f32 1.0, %v3197_v45  ;;  %v1409_v5 = vsub.f32 %v1153_v7, %v1281_v30  ;;  %v5937_v25 = vpop.eup %5936  ;;  %vm4098_vm0 = vmor %vm4096_vm13, %vm4097_vm14 }
 0x2db   : > { %v4094_v41 = vsub.f32 1.5, %v4093_v59  ;;  %v2481_v48 = vmul.f32 %v5931_v34, %v2480_v20  ;;  %v2486_v43 = vand.u32 2147483648, %v8359_v3  ;;  %v2491_v47 = vmul.f32 0.5, %v2490_v50 }
 0x2dc   : > { %v5114_v56 = vmul.f32 0.81, %v4986_v11  ;;  %5940 = vrsqrt.f32 %v8410_v21  ;;  %vm2495_vm15 = vcmp.eq.f32.partialorder %v8375_v44, inf  ;;  %v8416_v31 = vmax.f32 %v1409_v5, 0.0 }
 0x2dd   : > { %v4095_v16 = vmul.f32 %v5933_v55, %v4094_v41  ;;  %v2482_v26 = vmul.f32 %v2481_v48, %v8359_v3  ;;  %vm2497_vm1 = vcmp.eq.f32.partialorder %v8375_v44, 0.0  ;;  %v2498_v1 = vand.u32 2147483648, %v8375_v44 }
 0x2de   : > { %5242 = vst [vmem:[%s6712_s22 + $0x230] sm:$0xff] %v5114_v56  ;;  %v2501_v4 = vmul.f32 %v5937_v25, %v8386_v10  ;;  %v2492_v15 = vsub.f32 1.5, %v2491_v47  ;;  %5942 = vrsqrt.f32 %v8416_v31  ;;  %v1154_v38 = vadd.f32 %v6480_v60, %v8353_v49 }
 0x2df   : > { %v4099_v18 = vsel %vm4098_vm0, %v5933_v55, %v4095_v16  ;;  %v2484_v62 = vsel %vm2483_vm11, %v8359_v3, %v2482_v26  ;;  %v1282_v39 = vmul.f32 2.0, %v722_v33  ;;  %vm4106_vm2 = vweird.f32 %v8400_v58 }
 0x2e0   : > { %v5939_v54 = vpop.eup %5938  ;;  %v4731_v57 = vmul.f32 %v4099_v18, %v4099_v18  ;;  %v2487_v13 = vsel %vm2485_vm12, %v2486_v43, %v2484_v62  ;;  %v2493_v34 = vmul.f32 %v5935_v36, %v2492_v15  ;;  %v2502_v23 = vmul.f32 %v5937_v25, %v2501_v4  ;;  %v8473_v15 = vpop.permute.xlu2 %1009 }
 0x2e1   : > { %v4101_v19 = vmul.f32 %v5939_v54, %v8400_v58  ;;  %v3198_v53 = vmul.f32 1.1085125, %v2487_v13  ;;  %vm2507_vm3 = vcmp.eq.f32.partialorder %v8386_v10, inf  ;;  %v2510_v42 = vand.u32 2147483648, %v8386_v10 }
 0x2e2   : > { %v5941_v37 = vpop.eup %5940  ;;  %v4859_v61 = vmul.f32 %v4731_v57, %v4731_v57  ;;  %v2494_v55 = vmul.f32 %v2493_v34, %v8375_v44  ;;  %v2503_v8 = vmul.f32 0.5, %v2502_v23  ;;  %vm2509_vm4 = vcmp.eq.f32.partialorder %v8386_v10, 0.0 }
 0x2e3   : > { %v4102_v29 = vmul.f32 %v5939_v54, %v4101_v19  ;;  %v4111_v22 = vmul.f32 %v5941_v37, %v8410_v21  ;;  %v1155_v3 = vadd.f32 %v6484_v63, %v8353_v49  ;;  %v8440_v9 = vadd.f32 1.0, %v3198_v53 }
 0x2e4   : > { %v4987_v17 = vmul.f32 %v4859_v61, %v4099_v18  ;;  %v1410_v24 = vsub.f32 %v1154_v38, %v1282_v39  ;;  %v5943_v46 = vpop.eup %5942  ;;  %vm4107_vm5 = vweird.f32 %v5939_v54  ;;  %v2496_v12 = vsel %vm2495_vm15, %v8375_v44, %v2494_v55  ;;  %v499_v38 = vpop.f32.mrf.mxu0 }
 0x2e5   : > { %v4103_v7 = vmul.f32 0.5, %v4102_v29  ;;  %v4112_v30 = vmul.f32 %v5941_v37, %v4111_v22  ;;  %v2504_v2 = vsub.f32 1.5, %v2503_v8  ;;  %5944 = vrsqrt.f32 %v8440_v9  ;;  %vm4108_vm7 = vmor %vm4106_vm2, %vm4107_vm5 }
 0x2e6   : > { %v5115_v40 = vmul.f32 0.81, %v4987_v17  ;;  %v1283_v36 = vmul.f32 2.0, %v835_v27  ;;  %v2499_v14 = vsel %vm2497_vm1, %v2498_v1, %v2496_v12  ;;  %v2513_v6 = vmul.f32 %v5943_v46, %v8416_v31 }
 0x2e7   : > { %v4104_v28 = vsub.f32 1.5, %v4103_v7  ;;  %v4113_v49 = vmul.f32 0.5, %v4112_v30  ;;  %v2505_v35 = vmul.f32 %v5937_v25, %v2504_v2  ;;  %vm4116_vm6 = vweird.f32 %v8410_v21 }
 0x2e8   : > { %5243 = vst [vmem:[%s6712_s22 + $0x238] sm:$0xff] %v5115_v40  ;;  %v3199_v0 = vmul.f32 1.1085125, %v2499_v14  ;;  %v8451_v32 = vmax.f32 %v1410_v24, 0.0  ;;  %vm4117_vm8 = vweird.f32 %v5941_v37  ;;  %v2514_v44 = vmul.f32 %v5943_v46, %v2513_v6  ;;  %v612_v14 = vpop.f32.mrf.mxu1 }
 0x2e9   : > { %v4105_v45 = vmul.f32 %v5939_v54, %v4104_v28  ;;  %v4114_v59 = vsub.f32 1.5, %v4113_v49  ;;  %v2506_v11 = vmul.f32 %v2505_v35, %v8386_v10  ;;  %v1411_v41 = vsub.f32 %v1155_v3, %v1283_v36  ;;  %vm4118_vm9 = vmor %vm4116_vm6, %vm4117_vm8 }
 0x2ea   : > { %v8457_v50 = vadd.f32 1.0, %v3199_v0  ;;  %5946 = vrsqrt.f32 %v8451_v32  ;;  %v2515_v43 = vmul.f32 0.5, %v2514_v44  ;;  %vm2519_vm10 = vcmp.eq.f32.partialorder %v8416_v31, inf }
 0x2eb   : > { %v4109_v20 = vsel %vm4108_vm7, %v5939_v54, %v4105_v45  ;;  %v4115_v56 = vmul.f32 %v5941_v37, %v4114_v59  ;;  %v2508_v48 = vsel %vm2507_vm3, %v8386_v10, %v2506_v11  ;;  %v5945_v58 = vpop.eup %5944  ;;  %vm2521_vm11 = vcmp.eq.f32.partialorder %v8416_v31, 0.0 }
 0x2ec   : > { %v4732_v5 = vmul.f32 %v4109_v20, %v4109_v20  ;;  %5948 = vrsqrt.f32 %v8457_v50  ;;  %v2511_v25 = vsel %vm2509_vm4, %v2510_v42, %v2508_v48  ;;  %v4121_v33 = vmul.f32 %v5945_v58, %v8440_v9 }
 0x2ed   : > { %v4119_v47 = vsel %vm4118_vm9, %v5941_v37, %v4115_v56  ;;  %v3200_v1 = vmul.f32 1.1085125, %v2511_v25  ;;  %v2516_v4 = vsub.f32 1.5, %v2515_v43  ;;  %v2522_v54 = vand.u32 2147483648, %v8416_v31 }
 0x2ee   : > { %v4860_v16 = vmul.f32 %v4732_v5, %v4732_v5  ;;  %v4733_v26 = vmul.f32 %v4119_v47, %v4119_v47  ;;  %v4122_v18 = vmul.f32 %v5945_v58, %v4121_v33  ;;  %vm4126_vm12 = vweird.f32 %v8440_v9 }
 0x2ef   : > { %v8475_v10 = vmax.f32 %v1411_v41, 0.0  ;;  %v8477_v62 = vadd.f32 1.0, %v3200_v1  ;;  %v2517_v39 = vmul.f32 %v5943_v46, %v2516_v4  ;;  %v1156_v13 = vadd.f32 %v6471_v51, %v8473_v15  ;;  %v725_v1 = vpop.f32.mrf.mxu2 }
 0x2f0   : > { %v4988_v21 = vmul.f32 %v4860_v16, %v4109_v20  ;;  %v5947_v57 = vpop.eup %5946  ;;  %v4861_v19 = vmul.f32 %v4733_v26, %v4733_v26  ;;  %v4123_v23 = vmul.f32 0.5, %v4122_v18  ;;  %v1284_v42 = vmul.f32 2.0, %v499_v38 }
 0x2f1   : > { %v2525_v37 = vmul.f32 %v5947_v57, %v8451_v32  ;;  %5950 = vrsqrt.f32 %v8475_v10  ;;  %v2518_v53 = vmul.f32 %v2517_v39, %v8416_v31  ;;  %vm4127_vm13 = vweird.f32 %v5945_v58 }
 0x2f2   : > { %v5116_v34 = vmul.f32 0.81, %v4988_v21  ;;  %v5949_v61 = vpop.eup %5948  ;;  %v4989_v29 = vmul.f32 %v4861_v19, %v4119_v47  ;;  %5952 = vrsqrt.f32 %v8477_v62  ;;  %v4124_v22 = vsub.f32 1.5, %v4123_v23  ;;  %vm4128_vm0 = vmor %vm4126_vm12, %vm4127_vm13 }
 0x2f3   : > { %v4131_v55 = vmul.f32 %v5949_v61, %v8457_v50  ;;  %v2526_v8 = vmul.f32 %v5947_v57, %v2525_v37  ;;  %vm4136_vm14 = vweird.f32 %v8457_v50  ;;  %v2520_v3 = vsel %vm2519_vm10, %v8416_v31, %v2518_v53  ;;  %v838_v37 = vpop.f32.mrf.mxu3 }
 0x2f4   : > { %5244 = vst [vmem:[%s6712_s22 + $0x240] sm:$0xff] %v5116_v34  ;;  %v5117_v27 = vmul.f32 0.81, %v4989_v29  ;;  %vm2531_vm15 = vcmp.eq.f32.partialorder %v8451_v32, inf  ;;  %v4125_v17 = vmul.f32 %v5945_v58, %v4124_v22  ;;  %v2523_v24 = vsel %vm2521_vm11, %v2522_v54, %v2520_v3 }
 0x2f5   : > { %v4132_v7 = vmul.f32 %v5949_v61, %v4131_v55  ;;  %v2527_v46 = vmul.f32 0.5, %v2526_v8  ;;  %v3201_v30 = vmul.f32 1.1085125, %v2523_v24  ;;  %vm2533_vm1 = vcmp.eq.f32.partialorder %v8451_v32, 0.0 }
 0x2f6   : > { %5245 = vst [vmem:[%s6712_s22 + $0x248] sm:$0xff] %v5117_v27  ;;  %v2534_v12 = vand.u32 2147483648, %v8451_v32  ;;  %v1412_v2 = vsub.f32 %v1156_v13, %v1284_v42  ;;  %v4129_v28 = vsel %vm4128_vm0, %v5945_v58, %v4125_v17  ;;  %v1157_v31 = vadd.f32 %v6473_v52, %v8473_v15 }
 0x2f7   : > { %v5951_v40 = vpop.eup %5950  ;;  %v4133_v36 = vmul.f32 0.5, %v4132_v7  ;;  %v2528_v49 = vsub.f32 1.5, %v2527_v46  ;;  %v4734_v6 = vmul.f32 %v4129_v28, %v4129_v28  ;;  %v8501_v45 = vadd.f32 1.0, %v3201_v30 }
 0x2f8   : > { %v5953_v35 = vpop.eup %5952  ;;  %v2537_v9 = vmul.f32 %v5951_v40, %v8475_v10  ;;  %v8504_v0 = vmax.f32 %v1412_v2, 0.0  ;;  %vm4137_vm2 = vweird.f32 %v5949_v61  ;;  %vm4146_vm3 = vweird.f32 %v8477_v62 }
 0x2f9   : > { %v4134_v59 = vsub.f32 1.5, %v4133_v36  ;;  %v4141_v11 = vmul.f32 %v5953_v35, %v8477_v62  ;;  %v2529_v44 = vmul.f32 %v5947_v57, %v2528_v49  ;;  %v4862_v20 = vmul.f32 %v4734_v6, %v4734_v6  ;;  %vm4138_vm4 = vmor %vm4136_vm14, %vm4137_vm2 }
 0x2fa   : > { %5954 = vrsqrt.f32 %v8501_v45  ;;  %v2538_v41 = vmul.f32 %v5951_v40, %v2537_v9  ;;  %v1285_v5 = vmul.f32 2.0, %v612_v14  ;;  %vm2543_vm5 = vcmp.eq.f32.partialorder %v8475_v10, inf  ;;  %v502_v9 = vpop.f32.mrf.mxu0 }
 0x2fb   : > { %v4135_v56 = vmul.f32 %v5949_v61, %v4134_v59  ;;  %v4142_v48 = vmul.f32 %v5953_v35, %v4141_v11  ;;  %v2530_v43 = vmul.f32 %v2529_v44, %v8451_v32  ;;  %5956 = vrsqrt.f32 %v8504_v0  ;;  %v8546_v11 = vpop.permute.xlu0 %1014 }
 0x2fc   : > { %v4990_v58 = vmul.f32 %v4862_v20, %v4129_v28  ;;  %v2539_v25 = vmul.f32 0.5, %v2538_v41  ;;  %vm2545_vm6 = vcmp.eq.f32.partialorder %v8475_v10, 0.0  ;;  %v2546_v26 = vand.u32 2147483648, %v8475_v10 }
 0x2fd   : > { %v4139_v16 = vsel %vm4138_vm4, %v5949_v61, %v4135_v56  ;;  %v4143_v47 = vmul.f32 0.5, %v4142_v48  ;;  %v2532_v33 = vsel %vm2531_vm15, %v8451_v32, %v2530_v43  ;;  %vm4147_vm7 = vweird.f32 %v5953_v35 }
 0x2fe   : > { %v5118_v4 = vmul.f32 0.81, %v4990_v58  ;;  %v4735_v54 = vmul.f32 %v4139_v16, %v4139_v16  ;;  %v2535_v50 = vsel %vm2533_vm1, %v2534_v12, %v2532_v33  ;;  %v2540_v21 = vsub.f32 1.5, %v2539_v25  ;;  %vm4148_vm8 = vmor %vm4146_vm3, %vm4147_vm7 }
 0x2ff   : > { %v4144_v18 = vsub.f32 1.5, %v4143_v47  ;;  %v3202_v38 = vmul.f32 1.1085125, %v2535_v50  ;;  %v1413_v57 = vsub.f32 %v1157_v31, %v1285_v5  ;;  %v1158_v34 = vadd.f32 %v6480_v60, %v8473_v15 }
 0x300   : > { %v5955_v19 = vpop.eup %5954  ;;  %5246 = vst [vmem:[%s6712_s22 + $0x250] sm:$0xff] %v5118_v4  ;;  %v4863_v39 = vmul.f32 %v4735_v54, %v4735_v54  ;;  %v2541_v13 = vmul.f32 %v5951_v40, %v2540_v21  ;;  %v1286_v23 = vmul.f32 2.0, %v725_v1  ;;  %v1159_v42 = vadd.f32 %v6484_v63, %v8473_v15 }
 0x301   : > { %v5957_v61 = vpop.eup %5956  ;;  %v4145_v29 = vmul.f32 %v5953_v35, %v4144_v18  ;;  %v4151_v53 = vmul.f32 %v5955_v19, %v8501_v45  ;;  %v8525_v32 = vadd.f32 1.0, %v3202_v38  ;;  %v8534_v27 = vmax.f32 %v1413_v57, 0.0 }
 0x302   : > { %v4991_v22 = vmul.f32 %v4863_v39, %v4139_v16  ;;  %v2542_v55 = vmul.f32 %v2541_v13, %v8475_v10  ;;  %v2549_v8 = vmul.f32 %v5957_v61, %v8504_v0  ;;  %v1287_v7 = vmul.f32 2.0, %v838_v37 }
 0x303   : > { %v4149_v3 = vsel %vm4148_vm8, %v5953_v35, %v4145_v29  ;;  %v4152_v17 = vmul.f32 %v5955_v19, %v4151_v53  ;;  %5958 = vrsqrt.f32 %v8525_v32  ;;  %vm4157_vm9 = vweird.f32 %v5955_v19 }
 0x304   : > { %v5119_v24 = vmul.f32 0.81, %v4991_v22  ;;  %v4736_v46 = vmul.f32 %v4149_v3, %v4149_v3  ;;  %v2544_v15 = vsel %vm2543_vm5, %v8475_v10, %v2542_v55  ;;  %v2550_v62 = vmul.f32 %v5957_v61, %v2549_v8 }
 0x305   : > { %v4153_v30 = vmul.f32 0.5, %v4152_v17  ;;  %v2547_v12 = vsel %vm2545_vm6, %v2546_v26, %v2544_v15  ;;  %5960 = vrsqrt.f32 %v8534_v27  ;;  %v1414_v49 = vsub.f32 %v1158_v34, %v1286_v23  ;;  %v615_v15 = vpop.f32.mrf.mxu1 }
 0x306   : > { %5247 = vst [vmem:[%s6712_s22 + $0x258] sm:$0xff] %v5119_v24  ;;  %v4864_v2 = vmul.f32 %v4736_v46, %v4736_v46  ;;  %v3203_v40 = vmul.f32 1.1085125, %v2547_v12  ;;  %v2551_v28 = vmul.f32 0.5, %v2550_v62  ;;  %v1415_v14 = vsub.f32 %v1159_v42, %v1287_v7 }
 0x307   : > { %v4154_v36 = vsub.f32 1.5, %v4153_v30  ;;  %vm4156_vm10 = vweird.f32 %v8501_v45  ;;  %v8549_v44 = vmax.f32 %v1414_v49, 0.0  ;;  %v1160_v56 = vadd.f32 %v6471_v51, %v8546_v11 }
 0x308   : > { %v4992_v31 = vmul.f32 %v4864_v2, %v4149_v3  ;;  %v8544_v35 = vadd.f32 1.0, %v3203_v40  ;;  %v2552_v6 = vsub.f32 1.5, %v2551_v28  ;;  %v8551_v20 = vmax.f32 %v1415_v14, 0.0  ;;  %vm4158_vm11 = vmor %vm4156_vm10, %vm4157_vm9 }
 0x309   : > { %v5959_v59 = vpop.eup %5958  ;;  %v4155_v10 = vmul.f32 %v5955_v19, %v4154_v36  ;;  %v1288_v25 = vmul.f32 2.0, %v502_v9  ;;  %vm2555_vm12 = vcmp.eq.f32.partialorder %v8504_v0, inf  ;;  %vm2557_vm13 = vcmp.eq.f32.partialorder %v8504_v0, 0.0 }
 0x30a   : > { %v5120_v41 = vmul.f32 0.81, %v4992_v31  ;;  %v4161_v5 = vmul.f32 %v5959_v59, %v8525_v32  ;;  %5962 = vrsqrt.f32 %v8544_v35  ;;  %v2553_v58 = vmul.f32 %v5957_v61, %v2552_v6 }
 0x30b   : > { %v5961_v48 = vpop.eup %5960  ;;  %v4159_v43 = vsel %vm4158_vm11, %v5955_v19, %v4155_v10  ;;  %5964 = vrsqrt.f32 %v8549_v44  ;;  %v2558_v4 = vand.u32 2147483648, %v8504_v0  ;;  %vm4166_vm14 = vweird.f32 %v8525_v32 }
 0x30c   : > { %5248 = vst [vmem:[%s6712_s22 + $0x260] sm:$0xff] %v5120_v41  ;;  %v4737_v45 = vmul.f32 %v4159_v43, %v4159_v43  ;;  %v4162_v16 = vmul.f32 %v5959_v59, %v4161_v5  ;;  %v2561_v47 = vmul.f32 %v5961_v48, %v8534_v27  ;;  %v2554_v33 = vmul.f32 %v2553_v58, %v8504_v0 }
 0x30d   : > { %5966 = vrsqrt.f32 %v8551_v20  ;;  %vm4167_vm15 = vweird.f32 %v5959_v59  ;;  %v1416_v21 = vsub.f32 %v1160_v56, %v1288_v25  ;;  %vm2567_vm0 = vcmp.eq.f32.partialorder %v8534_v27, inf }
 0x30e   : > { %v4865_v26 = vmul.f32 %v4737_v45, %v4737_v45  ;;  %v4163_v1 = vmul.f32 0.5, %v4162_v16  ;;  %v2562_v54 = vmul.f32 %v5961_v48, %v2561_v47  ;;  %v2556_v50 = vsel %vm2555_vm12, %v8504_v0, %v2554_v33  ;;  %vm4168_vm1 = vmor %vm4166_vm14, %vm4167_vm15 }
 0x30f   : > { %v2559_v19 = vsel %vm2557_vm13, %v2558_v4, %v2556_v50  ;;  %v8569_v37 = vmax.f32 %v1416_v21, 0.0  ;;  %vm2569_vm2 = vcmp.eq.f32.partialorder %v8534_v27, 0.0  ;;  %v2570_v32 = vand.u32 2147483648, %v8534_v27 }
 0x310   : > { %v5963_v18 = vpop.eup %5962  ;;  %v4993_v38 = vmul.f32 %v4865_v26, %v4159_v43  ;;  %v4164_v57 = vsub.f32 1.5, %v4163_v1  ;;  %v2563_v39 = vmul.f32 0.5, %v2562_v54  ;;  %v3204_v23 = vmul.f32 1.1085125, %v2559_v19 }
 0x311   : > { %v5965_v13 = vpop.eup %5964  ;;  %v4171_v34 = vmul.f32 %v5963_v18, %v8544_v35  ;;  %5968 = vrsqrt.f32 %v8569_v37  ;;  %vm4176_vm3 = vweird.f32 %v8544_v35  ;;  %vm4177_vm4 = vweird.f32 %v5963_v18 }
 0x312   : > { %v5121_v61 = vmul.f32 0.81, %v4993_v38  ;;  %v4165_v29 = vmul.f32 %v5959_v59, %v4164_v57  ;;  %v2564_v53 = vsub.f32 1.5, %v2563_v39  ;;  %v2573_v0 = vmul.f32 %v5965_v13, %v8549_v44  ;;  %vm4178_vm6 = vmor %vm4176_vm3, %vm4177_vm4 }
 0x313   : > { %v5967_v42 = vpop.eup %5966  ;;  %v4172_v22 = vmul.f32 %v5963_v18, %v4171_v34  ;;  %v8575_v55 = vadd.f32 1.0, %v3204_v23  ;;  %v1161_v28 = vadd.f32 %v6473_v52, %v8546_v11  ;;  %v1289_v31 = vmul.f32 2.0, %v615_v15 }
 0x314   : > { %5249 = vst [vmem:[%s6712_s22 + $0x268] sm:$0xff] %v5121_v61  ;;  %v4169_v8 = vsel %vm4168_vm1, %v5959_v59, %v4165_v29  ;;  %v2565_v3 = vmul.f32 %v5961_v48, %v2564_v53  ;;  %v2574_v17 = vmul.f32 %v5965_v13, %v2573_v0  ;;  %v2585_v7 = vmul.f32 %v5967_v42, %v8551_v20 }
 0x315   : > { %v4738_v24 = vmul.f32 %v4169_v8, %v4169_v8  ;;  %v4173_v46 = vmul.f32 0.5, %v4172_v22  ;;  %5970 = vrsqrt.f32 %v8575_v55  ;;  %vm2579_vm5 = vcmp.eq.f32.partialorder %v8549_v44, inf }
 0x316   : > { %v2566_v62 = vmul.f32 %v2565_v3, %v8534_v27  ;;  %v2575_v30 = vmul.f32 0.5, %v2574_v17  ;;  %v2586_v12 = vmul.f32 %v5967_v42, %v2585_v7  ;;  %vm2581_vm7 = vcmp.eq.f32.partialorder %v8549_v44, 0.0 }
 0x317   : > { %v4866_v2 = vmul.f32 %v4738_v24, %v4738_v24  ;;  %v4174_v40 = vsub.f32 1.5, %v4173_v46  ;;  %v5969_v6 = vpop.eup %5968  ;;  %v1417_v45 = vsub.f32 %v1161_v28, %v1289_v31  ;;  %v2582_v33 = vand.u32 2147483648, %v8549_v44 }
 0x318   : > { %v2568_v36 = vsel %vm2567_vm0, %v8534_v27, %v2566_v62  ;;  %v2576_v49 = vsub.f32 1.5, %v2575_v30  ;;  %v2587_v14 = vmul.f32 0.5, %v2586_v12  ;;  %v2597_v48 = vmul.f32 %v5969_v6, %v8569_v37 }
 0x319   : > { %v4994_v9 = vmul.f32 %v4866_v2, %v4169_v8  ;;  %v4175_v59 = vmul.f32 %v5963_v18, %v4174_v40  ;;  %v2571_v10 = vsel %vm2569_vm2, %v2570_v32, %v2568_v36  ;;  %v8603_v4 = vmax.f32 %v1417_v45, 0.0  ;;  %v841_v40 = vpop.f32.mrf.mxu3 }
 0x31a   : > { %v3205_v41 = vmul.f32 1.1085125, %v2571_v10  ;;  %v2577_v5 = vmul.f32 %v5965_v13, %v2576_v49  ;;  %v2588_v56 = vsub.f32 1.5, %v2587_v14  ;;  %v2598_v1 = vmul.f32 %v5969_v6, %v2597_v48 }
 0x31b   : > { %v5971_v43 = vpop.eup %5970  ;;  %v5122_v58 = vmul.f32 0.81, %v4994_v9  ;;  %v4179_v25 = vsel %vm4178_vm6, %v5963_v18, %v4175_v59  ;;  %vm2591_vm8 = vcmp.eq.f32.partialorder %v8551_v20, inf  ;;  %v2594_v13 = vand.u32 2147483648, %v8551_v20 }
 0x31c   : > { %v4739_v16 = vmul.f32 %v4179_v25, %v4179_v25  ;;  %v4181_v27 = vmul.f32 %v5971_v43, %v8575_v55  ;;  %v8598_v47 = vadd.f32 1.0, %v3205_v41  ;;  %v2578_v35 = vmul.f32 %v2577_v5, %v8549_v44 }
 0x31d   : > { %5250 = vst [vmem:[%s6712_s22 + $0x270] sm:$0xff] %v5122_v58  ;;  %v2589_v26 = vmul.f32 %v5967_v42, %v2588_v56  ;;  %v2599_v38 = vmul.f32 0.5, %v2598_v1  ;;  %vm2593_vm9 = vcmp.eq.f32.partialorder %v8551_v20, 0.0  ;;  %vm4187_vm10 = vweird.f32 %v5971_v43 }
 0x31e   : > { %v4867_v54 = vmul.f32 %v4739_v16, %v4739_v16  ;;  %v4182_v50 = vmul.f32 %v5971_v43, %v4181_v27  ;;  %5972 = vrsqrt.f32 %v8598_v47  ;;  %v2580_v21 = vsel %vm2579_vm5, %v8549_v44, %v2578_v35 }
 0x31f   : > { %v2590_v18 = vmul.f32 %v2589_v26, %v8551_v20  ;;  %5974 = vrsqrt.f32 %v8603_v4  ;;  %v2583_v39 = vsel %vm2581_vm7, %v2582_v33, %v2580_v21  ;;  %v2600_v61 = vsub.f32 1.5, %v2599_v38 }
 0x320   : > { %v4995_v57 = vmul.f32 %v4867_v54, %v4179_v25  ;;  %v4183_v19 = vmul.f32 0.5, %v4182_v50  ;;  %v3206_v34 = vmul.f32 1.1085125, %v2583_v39  ;;  %vm4186_vm11 = vweird.f32 %v8575_v55  ;;  %v728_v55 = vpop.f32.mrf.mxu2 }
 0x321   : > { %v2592_v23 = vsel %vm2591_vm8, %v8551_v20, %v2590_v18  ;;  %v2601_v8 = vmul.f32 %v5969_v6, %v2600_v61  ;;  %vm4188_vm12 = vmor %vm4186_vm11, %vm4187_vm10  ;;  %vm2603_vm13 = vcmp.eq.f32.partialorder %v8569_v37, inf  ;;  %v2606_v30 = vand.u32 2147483648, %v8569_v37 }
 0x322   : > { %v5123_v29 = vmul.f32 0.81, %v4995_v57  ;;  %v4184_v53 = vsub.f32 1.5, %v4183_v19  ;;  %v2595_v0 = vsel %vm2593_vm9, %v2594_v13, %v2592_v23  ;;  %v8617_v42 = vadd.f32 1.0, %v3206_v34  ;;  %v505_v23 = vpop.f32.mrf.mxu0 }
 0x323   : > { %v3207_v22 = vmul.f32 1.1085125, %v2595_v0  ;;  %v2602_v46 = vmul.f32 %v2601_v8, %v8569_v37  ;;  %vm2605_vm14 = vcmp.eq.f32.partialorder %v8569_v37, 0.0  ;;  %v1162_v14 = vadd.f32 %v6480_v60, %v8546_v11 }
 0x324   : > { %v5973_v3 = vpop.eup %5972  ;;  %5251 = vst [vmem:[%s6712_s22 + $0x278] sm:$0xff] %v5123_v29  ;;  %v4185_v44 = vmul.f32 %v5971_v43, %v4184_v53  ;;  %5976 = vrsqrt.f32 %v8617_v42  ;;  %v1290_v9 = vmul.f32 2.0, %v728_v55  ;;  %v1163_v59 = vadd.f32 %v6484_v63, %v8546_v11  ;;  %v8654_v29 = vpop.permute.xlu1 %1019 }
 0x325   : > { %v5975_v17 = vpop.eup %5974  ;;  %v4191_v7 = vmul.f32 %v5973_v3, %v8598_v47  ;;  %v8623_v24 = vadd.f32 1.0, %v3207_v22  ;;  %v2604_v12 = vsel %vm2603_vm13, %v8569_v37, %v2602_v46  ;;  %vm4197_vm15 = vweird.f32 %v5973_v3  ;;  %v618_v46 = vpop.f32.mrf.mxu1 }
 0x326   : > { %v4189_v20 = vsel %vm4188_vm12, %v5971_v43, %v4185_v44  ;;  %v2609_v32 = vmul.f32 %v5975_v17, %v8603_v4  ;;  %v2607_v49 = vsel %vm2605_vm14, %v2606_v30, %v2604_v12  ;;  %v1291_v37 = vmul.f32 2.0, %v841_v40 }
 0x327   : > { %v4740_v15 = vmul.f32 %v4189_v20, %v4189_v20  ;;  %v4192_v62 = vmul.f32 %v5973_v3, %v4191_v7  ;;  %5978 = vrsqrt.f32 %v8623_v24  ;;  %v3208_v31 = vmul.f32 1.1085125, %v2607_v49 }
 0x328   : > { %v2610_v2 = vmul.f32 %v5975_v17, %v2609_v32  ;;  %vm4196_vm0 = vweird.f32 %v8598_v47  ;;  %v1418_v45 = vsub.f32 %v1162_v14, %v1290_v9  ;;  %v1419_v16 = vsub.f32 %v1163_v59, %v1291_v37 }
 0x329   : > { %v4868_v28 = vmul.f32 %v4740_v15, %v4740_v15  ;;  %v4193_v36 = vmul.f32 0.5, %v4192_v62  ;;  %v8638_v48 = vadd.f32 1.0, %v3208_v31  ;;  %vm4198_vm1 = vmor %vm4196_vm0, %vm4197_vm15  ;;  %vm2615_vm2 = vcmp.eq.f32.partialorder %v8603_v4, inf }
 0x32a   : > { %v2611_v6 = vmul.f32 0.5, %v2610_v2  ;;  %v5977_v10 = vpop.eup %5976  ;;  %v8644_v47 = vmax.f32 %v1418_v45, 0.0  ;;  %v8647_v21 = vmax.f32 %v1419_v16, 0.0  ;;  %vm2617_vm3 = vcmp.eq.f32.partialorder %v8603_v4, 0.0 }
 0x32b   : > { %v4996_v41 = vmul.f32 %v4868_v28, %v4189_v20  ;;  %v4194_v5 = vsub.f32 1.5, %v4193_v36  ;;  %v4201_v56 = vmul.f32 %v5977_v10, %v8617_v42  ;;  %5980 = vrsqrt.f32 %v8638_v48 }
 0x32c   : > { %v2612_v43 = vsub.f32 1.5, %v2611_v6  ;;  %v2618_v38 = vand.u32 2147483648, %v8603_v4  ;;  %5982 = vrsqrt.f32 %v8644_v47  ;;  %vm4207_vm4 = vweird.f32 %v5977_v10 }
 0x32d   : > { %v5124_v58 = vmul.f32 0.81, %v4996_v41  ;;  %v4195_v25 = vmul.f32 %v5973_v3, %v4194_v5  ;;  %v5979_v27 = vpop.eup %5978  ;;  %v4202_v11 = vmul.f32 %v5977_v10, %v4201_v56  ;;  %5984 = vrsqrt.f32 %v8647_v21 }
 0x32e   : > { %v2613_v33 = vmul.f32 %v5975_v17, %v2612_v43  ;;  %v4211_v26 = vmul.f32 %v5979_v27, %v8623_v24  ;;  %vm4206_vm5 = vweird.f32 %v8617_v42  ;;  %vm4217_vm7 = vweird.f32 %v5979_v27 }
 0x32f   : > { %5252 = vst [vmem:[%s6712_s22 + $0x280] sm:$0xff] %v5124_v58  ;;  %v4199_v35 = vsel %vm4198_vm1, %v5973_v3, %v4195_v25  ;;  %v4203_v54 = vmul.f32 0.5, %v4202_v11  ;;  %vm4208_vm6 = vmor %vm4206_vm5, %vm4207_vm4  ;;  %v1292_v20 = vmul.f32 2.0, %v505_v23  ;;  %vm4216_vm8 = vweird.f32 %v8623_v24  ;;  %v731_v23 = vpop.f32.mrf.mxu2 }
 0x330   : > { %v4741_v1 = vmul.f32 %v4199_v35, %v4199_v35  ;;  %v2614_v50 = vmul.f32 %v2613_v33, %v8603_v4  ;;  %v4212_v18 = vmul.f32 %v5979_v27, %v4211_v26  ;;  %vm4218_vm9 = vmor %vm4216_vm8, %vm4217_vm7  ;;  %v1165_v12 = vadd.f32 %v6473_v52, %v8654_v29 }
 0x331   : > { %v4204_v19 = vsub.f32 1.5, %v4203_v54  ;;  %v5981_v61 = vpop.eup %5980  ;;  %v1293_v49 = vmul.f32 2.0, %v618_v46  ;;  %vm4226_vm11 = vweird.f32 %v8638_v48  ;;  %vm2627_vm13 = vcmp.eq.f32.partialorder %v8644_v47, inf }
 0x332   : > { %v4869_v57 = vmul.f32 %v4741_v1, %v4741_v1  ;;  %v2616_v39 = vsel %vm2615_vm2, %v8603_v4, %v2614_v50  ;;  %v4213_v13 = vmul.f32 0.5, %v4212_v18  ;;  %v4221_v3 = vmul.f32 %v5981_v61, %v8638_v48  ;;  %v5983_v32 = vpop.eup %5982 }
 0x333   : > { %v2619_v34 = vsel %vm2617_vm3, %v2618_v38, %v2616_v39  ;;  %v4205_v0 = vmul.f32 %v5977_v10, %v4204_v19  ;;  %v1164_v4 = vadd.f32 %v6471_v51, %v8654_v29  ;;  %v2621_v30 = vmul.f32 %v5983_v32, %v8644_v47  ;;  %v5985_v2 = vpop.eup %5984 }
 0x334   : > { %v4997_v53 = vmul.f32 %v4869_v57, %v4199_v35  ;;  %v3209_v22 = vmul.f32 1.1085125, %v2619_v34  ;;  %v4214_v8 = vsub.f32 1.5, %v4213_v13  ;;  %v4222_v42 = vmul.f32 %v5981_v61, %v4221_v3 }
 0x335   : > { %v4209_v17 = vsel %vm4208_vm6, %v5977_v10, %v4205_v0  ;;  %v1420_v55 = vsub.f32 %v1164_v4, %v1292_v20  ;;  %v2622_v31 = vmul.f32 %v5983_v32, %v2621_v30  ;;  %v2633_v24 = vmul.f32 %v5985_v2, %v8647_v21 }
 0x336   : > { %v5125_v44 = vmul.f32 0.81, %v4997_v53  ;;  %v8660_v7 = vadd.f32 1.0, %v3209_v22  ;;  %v4742_v15 = vmul.f32 %v4209_v17, %v4209_v17  ;;  %v4215_v62 = vmul.f32 %v5979_v27, %v4214_v8 }
 0x337   : > { %v4223_v36 = vmul.f32 0.5, %v4222_v42  ;;  %v8669_v6 = vmax.f32 %v1420_v55, 0.0  ;;  %vm4227_vm10 = vweird.f32 %v5981_v61  ;;  %v1421_v10 = vsub.f32 %v1165_v12, %v1293_v49 }
 0x338   : > { %5253 = vst [vmem:[%s6712_s22 + $0x288] sm:$0xff] %v5125_v44  ;;  %5986 = vrsqrt.f32 %v8660_v7  ;;  %v4870_v40 = vmul.f32 %v4742_v15, %v4742_v15  ;;  %v4219_v28 = vsel %vm4218_vm9, %v5979_v27, %v4215_v62  ;;  %v2623_v5 = vmul.f32 0.5, %v2622_v31  ;;  %vm4228_vm12 = vmor %vm4226_vm11, %vm4227_vm10 }
 0x339   : > { %v4743_v14 = vmul.f32 %v4219_v28, %v4219_v28  ;;  %v4224_v59 = vsub.f32 1.5, %v4223_v36  ;;  %v2634_v37 = vmul.f32 %v5985_v2, %v2633_v24  ;;  %5988 = vrsqrt.f32 %v8669_v6 }
 0x33a   : > { %v4998_v9 = vmul.f32 %v4870_v40, %v4209_v17  ;;  %v2624_v45 = vsub.f32 1.5, %v2623_v5  ;;  %v8676_v33 = vmax.f32 %v1421_v10, 0.0  ;;  %vm2629_vm14 = vcmp.eq.f32.partialorder %v8644_v47, 0.0  ;;  %v8713_v10 = vpop.permute.xlu2 %1024 }
 0x33b   : > { %v4871_v41 = vmul.f32 %v4743_v14, %v4743_v14  ;;  %v4225_v43 = vmul.f32 %v5981_v61, %v4224_v59  ;;  %v2635_v16 = vmul.f32 0.5, %v2634_v37  ;;  %v2630_v48 = vand.u32 2147483648, %v8644_v47 }
 0x33c   : > { %v5126_v56 = vmul.f32 0.81, %v4998_v9  ;;  %v2625_v1 = vmul.f32 %v5983_v32, %v2624_v45  ;;  %5990 = vrsqrt.f32 %v8676_v33  ;;  %vm2639_vm15 = vcmp.eq.f32.partialorder %v8647_v21, inf  ;;  %v844_v32 = vpop.f32.mrf.mxu3 }
 0x33d   : > { %v4999_v25 = vmul.f32 %v4871_v41, %v4219_v28  ;;  %v4229_v27 = vsel %vm4228_vm12, %v5981_v61, %v4225_v43  ;;  %v2636_v54 = vsub.f32 1.5, %v2635_v16  ;;  %vm2641_vm0 = vcmp.eq.f32.partialorder %v8647_v21, 0.0 }
 0x33e   : > { %v5987_v58 = vpop.eup %5986  ;;  %5254 = vst [vmem:[%s6712_s22 + $0x290] sm:$0xff] %v5126_v56  ;;  %v4744_v26 = vmul.f32 %v4229_v27, %v4229_v27  ;;  %v2626_v57 = vmul.f32 %v2625_v1, %v8644_v47  ;;  %v2642_v13 = vand.u32 2147483648, %v8647_v21  ;;  %v1166_v4 = vadd.f32 %v6480_v60, %v8654_v29 }
 0x33f   : > { %v4231_v11 = vmul.f32 %v5987_v58, %v8660_v7  ;;  %v5127_v35 = vmul.f32 0.81, %v4999_v25  ;;  %v5989_v18 = vpop.eup %5988  ;;  %v2637_v19 = vmul.f32 %v5985_v2, %v2636_v54  ;;  %vm4237_vm1 = vweird.f32 %v5987_v58 }
 0x340   : > { %v4872_v38 = vmul.f32 %v4744_v26, %v4744_v26  ;;  %v2645_v34 = vmul.f32 %v5989_v18, %v8669_v6  ;;  %v2628_v53 = vsel %vm2627_vm13, %v8644_v47, %v2626_v57  ;;  %v1294_v46 = vmul.f32 2.0, %v731_v23 }
 0x341   : > { %v4232_v50 = vmul.f32 %v5987_v58, %v4231_v11  ;;  %5255 = vst [vmem:[%s6712_s22 + $0x298] sm:$0xff] %v5127_v35  ;;  %v2638_v0 = vmul.f32 %v2637_v19, %v8647_v21  ;;  %v2631_v8 = vsel %vm2629_vm14, %v2630_v48, %v2628_v53  ;;  %vm4236_vm2 = vweird.f32 %v8660_v7  ;;  %v508_v7 = vpop.f32.mrf.mxu0  ;;  %v621_v48 = vpop.f32.mrf.mxu1 }
 0x342   : > { %v5000_v61 = vmul.f32 %v4872_v38, %v4229_v27  ;;  %v2646_v3 = vmul.f32 %v5989_v18, %v2645_v34  ;;  %v3210_v17 = vmul.f32 1.1085125, %v2631_v8  ;;  %v5991_v15 = vpop.eup %5990  ;;  %vm4238_vm3 = vmor %vm4236_vm2, %vm4237_vm1  ;;  %v1422_v2 = vsub.f32 %v1166_v4, %v1294_v46 }
 0x343   : > { %v4233_v39 = vmul.f32 0.5, %v4232_v50  ;;  %v2640_v20 = vsel %vm2639_vm15, %v8647_v21, %v2638_v0  ;;  %v2657_v12 = vmul.f32 %v5991_v15, %v8676_v33  ;;  %v1167_v36 = vadd.f32 %v6484_v63, %v8654_v29 }
 0x344   : > { %v5128_v44 = vmul.f32 0.81, %v5000_v61  ;;  %v2643_v47 = vsel %vm2641_vm0, %v2642_v13, %v2640_v20  ;;  %v2647_v42 = vmul.f32 0.5, %v2646_v3  ;;  %v8703_v30 = vadd.f32 1.0, %v3210_v17 }
 0x345   : > { %v4234_v22 = vsub.f32 1.5, %v4233_v39  ;;  %v3211_v55 = vmul.f32 1.1085125, %v2643_v47  ;;  %v1295_v49 = vmul.f32 2.0, %v844_v32  ;;  %v2658_v24 = vmul.f32 %v5991_v15, %v2657_v12 }
 0x346   : > { %5256 = vst [vmem:[%s6712_s22 + $0x2a0] sm:$0xff] %v5128_v44  ;;  %v2648_v28 = vsub.f32 1.5, %v2647_v42  ;;  %5992 = vrsqrt.f32 %v8703_v30  ;;  %v8711_v9 = vmax.f32 %v1422_v2, 0.0  ;;  %v1296_v5 = vmul.f32 2.0, %v508_v7 }
 0x347   : > { %v4235_v62 = vmul.f32 %v5987_v58, %v4234_v22  ;;  %v8709_v21 = vadd.f32 1.0, %v3211_v55  ;;  %v1423_v59 = vsub.f32 %v1167_v36, %v1295_v49  ;;  %v2659_v37 = vmul.f32 0.5, %v2658_v24 }
 0x348   : > { %v2649_v31 = vmul.f32 %v5989_v18, %v2648_v28  ;;  %v1168_v56 = vadd.f32 %v6471_v51, %v8713_v10  ;;  %vm2651_vm4 = vcmp.eq.f32.partialorder %v8669_v6, inf  ;;  %vm2653_vm5 = vcmp.eq.f32.partialorder %v8669_v6, 0.0 }
 0x349   : > { %v4239_v40 = vsel %vm4238_vm3, %v5987_v58, %v4235_v62  ;;  %5994 = vrsqrt.f32 %v8709_v21  ;;  %v2654_v58 = vand.u32 2147483648, %v8669_v6  ;;  %v8722_v25 = vmax.f32 %v1423_v59, 0.0 }
 0x34a   : > { %v4745_v14 = vmul.f32 %v4239_v40, %v4239_v40  ;;  %v2650_v29 = vmul.f32 %v2649_v31, %v8669_v6  ;;  %5996 = vrsqrt.f32 %v8711_v9  ;;  %v2660_v16 = vsub.f32 1.5, %v2659_v37 }
 0x34b   : > { %v1424_v27 = vsub.f32 %v1168_v56, %v1296_v5  ;;  %5998 = vrsqrt.f32 %v8722_v25  ;;  %vm2663_vm6 = vcmp.eq.f32.partialorder %v8676_v33, inf  ;;  %vm2665_vm7 = vcmp.eq.f32.partialorder %v8676_v33, 0.0 }
 0x34c   : > { %v4873_v41 = vmul.f32 %v4745_v14, %v4745_v14  ;;  %v2652_v45 = vsel %vm2651_vm4, %v8669_v6, %v2650_v29  ;;  %v5993_v11 = vpop.eup %5992  ;;  %v2661_v50 = vmul.f32 %v5991_v15, %v2660_v16  ;;  %v2666_v6 = vand.u32 2147483648, %v8676_v33 }
 0x34d   : > { %v2655_v26 = vsel %vm2653_vm5, %v2654_v58, %v2652_v45  ;;  %v4241_v1 = vmul.f32 %v5993_v11, %v8703_v30  ;;  %v8732_v38 = vmax.f32 %v1424_v27, 0.0  ;;  %vm4246_vm8 = vweird.f32 %v8703_v30  ;;  %v734_v45 = vpop.f32.mrf.mxu2 }
 0x34e   : > { %v5001_v43 = vmul.f32 %v4873_v41, %v4239_v40  ;;  %v3212_v54 = vmul.f32 1.1085125, %v2655_v26  ;;  %v2662_v34 = vmul.f32 %v2661_v50, %v8676_v33  ;;  %v1297_v61 = vmul.f32 2.0, %v621_v48 }
 0x34f   : > { %v5995_v18 = vpop.eup %5994  ;;  %v4242_v19 = vmul.f32 %v5993_v11, %v4241_v1  ;;  %6000 = vrsqrt.f32 %v8732_v38  ;;  %vm4256_vm9 = vweird.f32 %v8709_v21  ;;  %vm4247_vm10 = vweird.f32 %v5993_v11 }
 0x350   : > { %v5129_v35 = vmul.f32 0.81, %v5001_v43  ;;  %v5997_v57 = vpop.eup %5996  ;;  %v4251_v39 = vmul.f32 %v5995_v18, %v8709_v21  ;;  %v8736_v13 = vadd.f32 1.0, %v3212_v54  ;;  %v2664_v8 = vsel %vm2663_vm6, %v8676_v33, %v2662_v34  ;;  %vm4248_vm14 = vmor %vm4246_vm8, %vm4247_vm10 }
 0x351   : > { %v2669_v23 = vmul.f32 %v5997_v57, %v8711_v9  ;;  %v4243_v53 = vmul.f32 0.5, %v4242_v19  ;;  %v5999_v22 = vpop.eup %5998  ;;  %v1169_v4 = vadd.f32 %v6473_v52, %v8713_v10  ;;  %v2667_v20 = vsel %vm2665_vm7, %v2666_v6, %v2664_v8 }
 0x352   : > { %5257 = vst [vmem:[%s6712_s22 + $0x2a8] sm:$0xff] %v5129_v35  ;;  %v4252_v0 = vmul.f32 %v5995_v18, %v4251_v39  ;;  %6002 = vrsqrt.f32 %v8736_v13  ;;  %v2681_v46 = vmul.f32 %v5999_v22, %v8722_v25  ;;  %v3213_v32 = vmul.f32 1.1085125, %v2667_v20 }
 0x353   : > { %v2670_v3 = vmul.f32 %v5997_v57, %v2669_v23  ;;  %v4244_v44 = vsub.f32 1.5, %v4243_v53  ;;  %vm2675_vm11 = vcmp.eq.f32.partialorder %v8711_v9, inf  ;;  %v2678_v62 = vand.u32 2147483648, %v8711_v9 }
 0x354   : > { %v4253_v17 = vmul.f32 0.5, %v4252_v0  ;;  %v1425_v47 = vsub.f32 %v1169_v4, %v1297_v61  ;;  %vm4257_vm12 = vweird.f32 %v5995_v18  ;;  %vm2677_vm13 = vcmp.eq.f32.partialorder %v8711_v9, 0.0  ;;  %v847_v0 = vpop.f32.mrf.mxu3 }
 0x355   : > { %v2671_v15 = vmul.f32 0.5, %v2670_v3  ;;  %v4245_v42 = vmul.f32 %v5993_v11, %v4244_v44  ;;  %v2682_v12 = vmul.f32 %v5999_v22, %v2681_v46  ;;  %v8754_v2 = vpop.eup %6000  ;;  %v8759_v33 = vadd.f32 1.0, %v3213_v32  ;;  %vm4258_vm1 = vmor %vm4256_vm9, %vm4257_vm12 }
 0x356   : > { %v4254_v55 = vsub.f32 1.5, %v4253_v17  ;;  %vm2687_vm15 = vcmp.eq.f32.partialorder %v8722_v25, inf  ;;  %v8762_v28 = vmax.f32 %v1425_v47, 0.0  ;;  %vm2689_vm0 = vcmp.eq.f32.partialorder %v8722_v25, 0.0 }
 0x357   : > { %v2672_v40 = vsub.f32 1.5, %v2671_v15  ;;  %v4249_v49 = vsel %vm4248_vm14, %v5993_v11, %v4245_v42  ;;  %v2683_v14 = vmul.f32 0.5, %v2682_v12  ;;  %v2693_v31 = vmul.f32 %v8754_v2, %v8732_v38 }
 0x358   : > { %v6003_v36 = vpop.eup %6002  ;;  %v4255_v7 = vmul.f32 %v5995_v18, %v4254_v55  ;;  %v4746_v24 = vmul.f32 %v4249_v49, %v4249_v49  ;;  %6004 = vrsqrt.f32 %v8759_v33  ;;  %v2690_v59 = vand.u32 2147483648, %v8722_v25 }
 0x359   : > { %v4261_v30 = vmul.f32 %v6003_v36, %v8736_v13  ;;  %vm4266_vm2 = vweird.f32 %v8736_v13  ;;  %v2673_v5 = vmul.f32 %v5997_v57, %v2672_v40  ;;  %v2684_v29 = vsub.f32 1.5, %v2683_v14 }
 0x35a   : > { %v4259_v41 = vsel %vm4258_vm1, %v5995_v18, %v4255_v7  ;;  %v4874_v37 = vmul.f32 %v4746_v24, %v4746_v24  ;;  %v2694_v58 = vmul.f32 %v8754_v2, %v2693_v31  ;;  %v2702_v27 = vand.u32 2147483648, %v8732_v38 }
 0x35b   : > { %v4747_v56 = vmul.f32 %v4259_v41, %v4259_v41  ;;  %v4262_v43 = vmul.f32 %v6003_v36, %v4261_v30  ;;  %v2674_v21 = vmul.f32 %v2673_v5, %v8711_v9  ;;  %v2685_v16 = vmul.f32 %v5999_v22, %v2684_v29 }
 0x35c   : > { %6006 = vrsqrt.f32 %v8762_v28  ;;  %v5002_v11 = vmul.f32 %v4874_v37, %v4249_v49  ;;  %v2695_v1 = vmul.f32 0.5, %v2694_v58  ;;  %vm4267_vm3 = vweird.f32 %v6003_v36 }
 0x35d   : > { %v4875_v35 = vmul.f32 %v4747_v56, %v4747_v56  ;;  %v4263_v26 = vmul.f32 0.5, %v4262_v43  ;;  %v2676_v54 = vsel %vm2675_vm11, %v8711_v9, %v2674_v21  ;;  %v2686_v50 = vmul.f32 %v2685_v16, %v8722_v25  ;;  %vm4268_vm6 = vmor %vm4266_vm2, %vm4267_vm3  ;;  %v511_v21 = vpop.f32.mrf.mxu0 }
 0x35e   : > { %vm2699_vm4 = vcmp.eq.f32.partialorder %v8732_v38, inf  ;;  %v1298_v48 = vmul.f32 2.0, %v734_v45  ;;  %v6005_v18 = vpop.eup %6004  ;;  %v5130_v6 = vmul.f32 0.81, %v5002_v11  ;;  %v2679_v39 = vsel %vm2677_vm13, %v2678_v62, %v2676_v54 }
 0x35f   : > { %v5003_v57 = vmul.f32 %v4875_v35, %v4259_v41  ;;  %v4264_v19 = vsub.f32 1.5, %v4263_v26  ;;  %vm2701_vm5 = vcmp.eq.f32.partialorder %v8732_v38, 0.0  ;;  %v4271_v34 = vmul.f32 %v6005_v18, %v8759_v33  ;;  %v624_v26 = vpop.f32.mrf.mxu1 }
 0x360   : > { %v3214_v23 = vmul.f32 1.1085125, %v2679_v39  ;;  %v2688_v61 = vsel %vm2687_vm15, %v8722_v25, %v2686_v50  ;;  %v1170_v53 = vadd.f32 %v6480_v60, %v8713_v10  ;;  %5258 = vst [vmem:[%s6712_s22 + $0x2b0] sm:$0xff] %v5130_v6  ;;  %v2696_v3 = vsub.f32 1.5, %v2695_v1 }
 0x361   : > { %v5131_v22 = vmul.f32 0.81, %v5003_v57  ;;  %v4265_v8 = vmul.f32 %v6003_v36, %v4264_v19  ;;  %v2691_v9 = vsel %vm2689_vm0, %v2690_v59, %v2688_v61  ;;  %v4272_v44 = vmul.f32 %v6005_v18, %v4271_v34 }
 0x362   : > { %v6007_v4 = vpop.eup %6006  ;;  %v8798_v17 = vadd.f32 1.0, %v3214_v23  ;;  %v3215_v20 = vmul.f32 1.1085125, %v2691_v9  ;;  %v1426_v46 = vsub.f32 %v1170_v53, %v1298_v48  ;;  %v2697_v15 = vmul.f32 %v8754_v2, %v2696_v3 }
 0x363   : > { %5259 = vst [vmem:[%s6712_s22 + $0x2b8] sm:$0xff] %v5131_v22  ;;  %v4269_v32 = vsel %vm4268_vm6, %v6003_v36, %v4265_v8  ;;  %v2705_v62 = vmul.f32 %v6007_v4, %v8762_v28  ;;  %v1299_v47 = vmul.f32 2.0, %v847_v0  ;;  %v4273_v42 = vmul.f32 0.5, %v4272_v44 }
 0x364   : > { %v4748_v25 = vmul.f32 %v4269_v32, %v4269_v32  ;;  %6008 = vrsqrt.f32 %v8798_v17  ;;  %v1171_v13 = vadd.f32 %v6484_v63, %v8713_v10  ;;  %v8806_v55 = vadd.f32 1.0, %v3215_v20 }
 0x365   : > { %v2698_v12 = vmul.f32 %v2697_v15, %v8732_v38  ;;  %v2706_v40 = vmul.f32 %v6007_v4, %v2705_v62  ;;  %v8809_v49 = vmax.f32 %v1426_v46, 0.0  ;;  %v4274_v7 = vsub.f32 1.5, %v4273_v42 }
 0x366   : > { %v4876_v36 = vmul.f32 %v4748_v25, %v4748_v25  ;;  %vm4277_vm7 = vweird.f32 %v6005_v18  ;;  %v1427_v2 = vsub.f32 %v1171_v13, %v1299_v47  ;;  %vm4276_vm8 = vweird.f32 %v8759_v33 }
 0x367   : > { %6010 = vrsqrt.f32 %v8806_v55  ;;  %v2700_v14 = vsel %vm2699_vm4, %v8732_v38, %v2698_v12  ;;  %v2707_v10 = vmul.f32 0.5, %v2706_v40  ;;  %v4275_v24 = vmul.f32 %v6005_v18, %v4274_v7  ;;  %vm4278_vm9 = vmor %vm4276_vm8, %vm4277_vm7 }
 0x368   : > { %v5004_v31 = vmul.f32 %v4876_v36, %v4269_v32  ;;  %v2703_v30 = vsel %vm2701_vm5, %v2702_v27, %v2700_v14  ;;  %6012 = vrsqrt.f32 %v8809_v49  ;;  %v8819_v37 = vmax.f32 %v1427_v2, 0.0  ;;  %v8829_v27 = vpop.permute.xlu0 %1029 }
 0x369   : > { %v3216_v59 = vmul.f32 1.1085125, %v2703_v30  ;;  %v2708_v41 = vsub.f32 1.5, %v2707_v10  ;;  %v4279_v29 = vsel %vm4278_vm9, %v6005_v18, %v4275_v24  ;;  %vm2711_vm10 = vcmp.eq.f32.partialorder %v8762_v28, inf }
 0x36a   : > { %v6009_v5 = vpop.eup %6008  ;;  %v5132_v33 = vmul.f32 0.81, %v5004_v31  ;;  %v4749_v56 = vmul.f32 %v4279_v29, %v4279_v29  ;;  %vm2713_vm11 = vcmp.eq.f32.partialorder %v8762_v28, 0.0  ;;  %v2714_v45 = vand.u32 2147483648, %v8762_v28 }
 0x36b   : > { %v4281_v43 = vmul.f32 %v6009_v5, %v8798_v17  ;;  %v8822_v58 = vadd.f32 1.0, %v3216_v59  ;;  %v2709_v38 = vmul.f32 %v6007_v4, %v2708_v41  ;;  %6014 = vrsqrt.f32 %v8819_v37 }
 0x36c   : > { %5260 = vst [vmem:[%s6712_s22 + $0x2c0] sm:$0xff] %v5132_v33  ;;  %v4877_v11 = vmul.f32 %v4749_v56, %v4749_v56  ;;  %vm4286_vm12 = vweird.f32 %v8798_v17  ;;  %vm4296_vm13 = vweird.f32 %v8806_v55  ;;  %v1172_v48 = vadd.f32 %v6471_v51, %v8829_v27 }
 0x36d   : > { %v6011_v16 = vpop.eup %6010  ;;  %v4282_v35 = vmul.f32 %v6009_v5, %v4281_v43  ;;  %6016 = vrsqrt.f32 %v8822_v58  ;;  %v2710_v50 = vmul.f32 %v2709_v38, %v8762_v28  ;;  %v1300_v19 = vmul.f32 2.0, %v511_v21 }
 0x36e   : > { %v6013_v1 = vpop.eup %6012  ;;  %v4291_v54 = vmul.f32 %v6011_v16, %v8806_v55  ;;  %v5005_v18 = vmul.f32 %v4877_v11, %v4279_v29  ;;  %vm4287_vm14 = vweird.f32 %v6009_v5  ;;  %v1301_v23 = vmul.f32 2.0, %v624_v26 }
 0x36f   : > { %v4283_v6 = vmul.f32 0.5, %v4282_v35  ;;  %v2717_v57 = vmul.f32 %v6013_v1, %v8809_v49  ;;  %v2712_v34 = vsel %vm2711_vm10, %v8762_v28, %v2710_v50  ;;  %v1428_v4 = vsub.f32 %v1172_v48, %v1300_v19  ;;  %vm4288_vm0 = vmor %vm4286_vm12, %vm4287_vm14 }
 0x370   : > { %v4292_v39 = vmul.f32 %v6011_v16, %v4291_v54  ;;  %v5133_v61 = vmul.f32 0.81, %v5005_v18  ;;  %v2715_v0 = vsel %vm2713_vm11, %v2714_v45, %v2712_v34  ;;  %v1173_v44 = vadd.f32 %v6473_v52, %v8829_v27  ;;  %v737_v45 = vpop.f32.mrf.mxu2 }
 0x371   : > { %v4284_v53 = vsub.f32 1.5, %v4283_v6  ;;  %v2718_v22 = vmul.f32 %v6013_v1, %v2717_v57  ;;  %v6015_v8 = vpop.eup %6014  ;;  %v3217_v3 = vmul.f32 1.1085125, %v2715_v0  ;;  %vm4297_vm15 = vweird.f32 %v6011_v16 }
 0x372   : > { %v4293_v9 = vmul.f32 0.5, %v4292_v39  ;;  %5261 = vst [vmem:[%s6712_s22 + $0x2c8] sm:$0xff] %v5133_v61  ;;  %v2729_v15 = vmul.f32 %v6015_v8, %v8819_v37  ;;  %v1429_v25 = vsub.f32 %v1173_v44, %v1301_v23  ;;  %v8854_v40 = vmax.f32 %v1428_v4, 0.0  ;;  %vm4298_vm1 = vmor %vm4296_vm13, %vm4297_vm15 }
 0x373   : > { %v6017_v20 = vpop.eup %6016  ;;  %v4285_v46 = vmul.f32 %v6009_v5, %v4284_v53  ;;  %v2719_v32 = vmul.f32 0.5, %v2718_v22  ;;  %v8852_v47 = vadd.f32 1.0, %v3217_v3  ;;  %vm2723_vm2 = vcmp.eq.f32.partialorder %v8809_v49, inf }
 0x374   : > { %v4294_v28 = vsub.f32 1.5, %v4293_v9  ;;  %v4301_v62 = vmul.f32 %v6017_v20, %v8822_v58  ;;  %v2730_v12 = vmul.f32 %v6015_v8, %v2729_v15  ;;  %vm2725_vm3 = vcmp.eq.f32.partialorder %v8809_v49, 0.0 }
 0x375   : > { %v4289_v42 = vsel %vm4288_vm0, %v6009_v5, %v4285_v46  ;;  %v2720_v13 = vsub.f32 1.5, %v2719_v32  ;;  %6018 = vrsqrt.f32 %v8852_v47  ;;  %v2726_v41 = vand.u32 2147483648, %v8809_v49 }
 0x376   : > { %v4750_v36 = vmul.f32 %v4289_v42, %v4289_v42  ;;  %v4295_v7 = vmul.f32 %v6011_v16, %v4294_v28  ;;  %v4302_v2 = vmul.f32 %v6017_v20, %v4301_v62  ;;  %v2731_v14 = vmul.f32 0.5, %v2730_v12 }
 0x377   : > { %v2721_v17 = vmul.f32 %v6013_v1, %v2720_v13  ;;  %6020 = vrsqrt.f32 %v8854_v40  ;;  %vm4307_vm4 = vweird.f32 %v6017_v20  ;;  %v8865_v29 = vmax.f32 %v1429_v25, 0.0 }
 0x378   : > { %v4878_v10 = vmul.f32 %v4750_v36, %v4750_v36  ;;  %v4299_v31 = vsel %vm4298_vm1, %v6011_v16, %v4295_v7  ;;  %v4303_v24 = vmul.f32 0.5, %v4302_v2  ;;  %v2732_v5 = vsub.f32 1.5, %v2731_v14  ;;  %v514_v14 = vpop.f32.mrf.mxu0 }
 0x379   : > { %v4751_v30 = vmul.f32 %v4299_v31, %v4299_v31  ;;  %v2722_v59 = vmul.f32 %v2721_v17, %v8809_v49  ;;  %vm4306_vm5 = vweird.f32 %v8822_v58  ;;  %6022 = vrsqrt.f32 %v8865_v29 }
 0x37a   : > { %v5006_v33 = vmul.f32 %v4878_v10, %v4289_v42  ;;  %v4304_v55 = vsub.f32 1.5, %v4303_v24  ;;  %v2733_v38 = vmul.f32 %v6015_v8, %v2732_v5  ;;  %vm4308_vm6 = vmor %vm4306_vm5, %vm4307_vm4  ;;  %vm2735_vm7 = vcmp.eq.f32.partialorder %v8819_v37, inf  ;;  %v850_v8 = vpop.f32.mrf.mxu3 }
 0x37b   : > { %v4879_v56 = vmul.f32 %v4751_v30, %v4751_v30  ;;  %v2724_v43 = vsel %vm2723_vm2, %v8809_v49, %v2722_v59  ;;  %v6019_v21 = vpop.eup %6018  ;;  %v1302_v6 = vmul.f32 2.0, %v737_v45  ;;  %v2738_v23 = vand.u32 2147483648, %v8819_v37 }
 0x37c   : > { %v5134_v16 = vmul.f32 0.81, %v5006_v33  ;;  %v4305_v11 = vmul.f32 %v6017_v20, %v4304_v55  ;;  %v2727_v35 = vsel %vm2725_vm3, %v2726_v41, %v2724_v43  ;;  %v4311_v54 = vmul.f32 %v6019_v21, %v8852_v47 }
 0x37d   : > { %v6021_v26 = vpop.eup %6020  ;;  %v5007_v1 = vmul.f32 %v4879_v56, %v4299_v31  ;;  %v3218_v58 = vmul.f32 1.1085125, %v2727_v35  ;;  %v2734_v48 = vmul.f32 %v2733_v38, %v8819_v37  ;;  %v1174_v53 = vadd.f32 %v6480_v60, %v8829_v27  ;;  %v8910_v56 = vpop.permute.xlu1 %1034 }
 0x37e   : > { %5262 = vst [vmem:[%s6712_s22 + $0x2d0] sm:$0xff] %v5134_v16  ;;  %v4309_v50 = vsel %vm4308_vm6, %v6017_v20, %v4305_v11  ;;  %v2741_v18 = vmul.f32 %v6021_v26, %v8854_v40  ;;  %v4312_v19 = vmul.f32 %v6019_v21, %v4311_v54  ;;  %vm2737_vm8 = vcmp.eq.f32.partialorder %v8819_v37, 0.0  ;;  %v627_v54 = vpop.f32.mrf.mxu1 }
 0x37f   : > { %v5135_v49 = vmul.f32 0.81, %v5007_v1  ;;  %v4752_v57 = vmul.f32 %v4309_v50, %v4309_v50  ;;  %v8879_v39 = vadd.f32 1.0, %v3218_v58  ;;  %v2736_v34 = vsel %vm2735_vm7, %v8819_v37, %v2734_v48  ;;  %v6023_v9 = vpop.eup %6022 }
 0x380   : > { %v2742_v61 = vmul.f32 %v6021_v26, %v2741_v18  ;;  %v4313_v22 = vmul.f32 0.5, %v4312_v19  ;;  %vm4317_vm9 = vweird.f32 %v6019_v21  ;;  %v2739_v3 = vsel %vm2737_vm8, %v2738_v23, %v2736_v34 }
 0x381   : > { %5263 = vst [vmem:[%s6712_s22 + $0x2d8] sm:$0xff] %v5135_v49  ;;  %v4880_v0 = vmul.f32 %v4752_v57, %v4752_v57  ;;  %6024 = vrsqrt.f32 %v8879_v39  ;;  %v1430_v44 = vsub.f32 %v1174_v53, %v1302_v6  ;;  %v3219_v32 = vmul.f32 1.1085125, %v2739_v3 }
 0x382   : > { %v2743_v4 = vmul.f32 0.5, %v2742_v61  ;;  %v4314_v46 = vsub.f32 1.5, %v4313_v22  ;;  %v2753_v15 = vmul.f32 %v6023_v9, %v8865_v29  ;;  %vm4316_vm10 = vweird.f32 %v8852_v47 }
 0x383   : > { %v5008_v20 = vmul.f32 %v4880_v0, %v4309_v50  ;;  %v8890_v62 = vmax.f32 %v1430_v44, 0.0  ;;  %v1303_v25 = vmul.f32 2.0, %v850_v8  ;;  %v8892_v13 = vadd.f32 1.0, %v3219_v32  ;;  %vm4318_vm11 = vmor %vm4316_vm10, %vm4317_vm9 }
 0x384   : > { %v2744_v28 = vsub.f32 1.5, %v2743_v4  ;;  %v4315_v37 = vmul.f32 %v6019_v21, %v4314_v46  ;;  %v2754_v12 = vmul.f32 %v6023_v9, %v2753_v15  ;;  %vm2747_vm12 = vcmp.eq.f32.partialorder %v8854_v40, inf }
 0x385   : > { %v5136_v42 = vmul.f32 0.81, %v5008_v20  ;;  %vm2749_vm13 = vcmp.eq.f32.partialorder %v8854_v40, 0.0  ;;  %6026 = vrsqrt.f32 %v8890_v62  ;;  %v1175_v17 = vadd.f32 %v6484_v63, %v8829_v27 }
 0x386   : > { %v2745_v36 = vmul.f32 %v6021_v26, %v2744_v28  ;;  %v4319_v47 = vsel %vm4318_vm11, %v6019_v21, %v4315_v37  ;;  %6028 = vrsqrt.f32 %v8892_v13  ;;  %v2755_v2 = vmul.f32 0.5, %v2754_v12 }
 0x387   : > { %v6025_v7 = vpop.eup %6024  ;;  %5264 = vst [vmem:[%s6712_s22 + $0x2e0] sm:$0xff] %v5136_v42  ;;  %v4753_v10 = vmul.f32 %v4319_v47, %v4319_v47  ;;  %v2750_v30 = vand.u32 2147483648, %v8854_v40  ;;  %vm2759_vm14 = vcmp.eq.f32.partialorder %v8865_v29, inf  ;;  %vm2761_vm15 = vcmp.eq.f32.partialorder %v8865_v29, 0.0 }
 0x388   : > { %v4321_v31 = vmul.f32 %v6025_v7, %v8879_v39  ;;  %v2746_v24 = vmul.f32 %v2745_v36, %v8854_v40  ;;  %v2756_v59 = vsub.f32 1.5, %v2755_v2  ;;  %v1431_v41 = vsub.f32 %v1175_v17, %v1303_v25 }
 0x389   : > { %v4881_v5 = vmul.f32 %v4753_v10, %v4753_v10  ;;  %v1304_v55 = vmul.f32 2.0, %v514_v14  ;;  %v2762_v45 = vand.u32 2147483648, %v8865_v29  ;;  %v1176_v1 = vadd.f32 %v6471_v51, %v8910_v56  ;;  %v740_v14 = vpop.f32.mrf.mxu2 }
 0x38a   : > { %v4322_v33 = vmul.f32 %v6025_v7, %v4321_v31  ;;  %v2748_v27 = vsel %vm2747_vm12, %v8854_v40, %v2746_v24  ;;  %v2757_v38 = vmul.f32 %v6023_v9, %v2756_v59  ;;  %v8915_v21 = vmax.f32 %v1431_v41, 0.0 }
 0x38b   : > { %v2751_v43 = vsel %vm2749_vm13, %v2750_v30, %v2748_v27  ;;  %v6027_v16 = vpop.eup %6026  ;;  %v5009_v11 = vmul.f32 %v4881_v5, %v4319_v47  ;;  %vm4327_vm0 = vweird.f32 %v6025_v7  ;;  %v1432_v49 = vsub.f32 %v1176_v1, %v1304_v55 }
 0x38c   : > { %v4323_v35 = vmul.f32 0.5, %v4322_v33  ;;  %v3220_v26 = vmul.f32 1.1085125, %v2751_v43  ;;  %v6029_v58 = vpop.eup %6028  ;;  %v2758_v50 = vmul.f32 %v2757_v38, %v8865_v29  ;;  %v2765_v40 = vmul.f32 %v6027_v16, %v8890_v62 }
 0x38d   : > { %6030 = vrsqrt.f32 %v8915_v21  ;;  %v5137_v48 = vmul.f32 0.81, %v5009_v11  ;;  %v4331_v6 = vmul.f32 %v6029_v58, %v8892_v13  ;;  %v1305_v23 = vmul.f32 2.0, %v627_v54 }
 0x38e   : > { %v4324_v18 = vsub.f32 1.5, %v4323_v35  ;;  %v8923_v57 = vadd.f32 1.0, %v3220_v26  ;;  %v2760_v19 = vsel %vm2759_vm14, %v8865_v29, %v2758_v50  ;;  %v2766_v34 = vmul.f32 %v6027_v16, %v2765_v40 }
 0x38f   : > { %5265 = vst [vmem:[%s6712_s22 + $0x2e8] sm:$0xff] %v5137_v48  ;;  %vm4326_vm1 = vweird.f32 %v8879_v39  ;;  %v4332_v53 = vmul.f32 %v6029_v58, %v4331_v6  ;;  %v2763_v0 = vsel %vm2761_vm15, %v2762_v45, %v2760_v19  ;;  %v1177_v9 = vadd.f32 %v6473_v52, %v8910_v56 }
 0x390   : > { %v4325_v61 = vmul.f32 %v6025_v7, %v4324_v18  ;;  %vm4328_vm2 = vmor %vm4326_vm1, %vm4327_vm0  ;;  %6032 = vrsqrt.f32 %v8923_v57  ;;  %v3221_v22 = vmul.f32 1.1085125, %v2763_v0  ;;  %v2767_v8 = vmul.f32 0.5, %v2766_v34 }
 0x391   : > { %v4333_v4 = vmul.f32 0.5, %v4332_v53  ;;  %vm2771_vm3 = vcmp.eq.f32.partialorder %v8890_v62, inf  ;;  %v8937_v44 = vmax.f32 %v1432_v49, 0.0  ;;  %v1433_v32 = vsub.f32 %v1177_v9, %v1305_v23 }
 0x392   : > { %v4329_v3 = vsel %vm4328_vm2, %v6025_v7, %v4325_v61  ;;  %v8939_v46 = vadd.f32 1.0, %v3221_v22  ;;  %v2768_v29 = vsub.f32 1.5, %v2767_v8  ;;  %vm4337_vm4 = vweird.f32 %v6029_v58 }
 0x393   : > { %v6031_v39 = vpop.eup %6030  ;;  %v4754_v20 = vmul.f32 %v4329_v3, %v4329_v3  ;;  %v4334_v15 = vsub.f32 1.5, %v4333_v4  ;;  %6034 = vrsqrt.f32 %v8937_v44  ;;  %vm2773_vm5 = vcmp.eq.f32.partialorder %v8890_v62, 0.0 }
 0x394   : > { %v2777_v28 = vmul.f32 %v6031_v39, %v8915_v21  ;;  %6036 = vrsqrt.f32 %v8939_v46  ;;  %v2769_v42 = vmul.f32 %v6027_v16, %v2768_v29  ;;  %vm4336_vm6 = vweird.f32 %v8892_v13  ;;  %v853_v29 = vpop.f32.mrf.mxu3 }
 0x395   : > { %v4882_v25 = vmul.f32 %v4754_v20, %v4754_v20  ;;  %v4335_v37 = vmul.f32 %v6029_v58, %v4334_v15  ;;  %v2774_v12 = vand.u32 2147483648, %v8890_v62  ;;  %vm4338_vm7 = vmor %vm4336_vm6, %vm4337_vm4  ;;  %vm2783_vm8 = vcmp.eq.f32.partialorder %v8915_v21, inf }
 0x396   : > { %v2778_v36 = vmul.f32 %v6031_v39, %v2777_v28  ;;  %v6033_v7 = vpop.eup %6032  ;;  %v2770_v2 = vmul.f32 %v2769_v42, %v8890_v62  ;;  %v8949_v17 = vmax.f32 %v1433_v32, 0.0  ;;  %vm2785_vm9 = vcmp.eq.f32.partialorder %v8915_v21, 0.0 }
 0x397   : > { %v5010_v47 = vmul.f32 %v4882_v25, %v4329_v3  ;;  %v4339_v10 = vsel %vm4338_vm7, %v6029_v58, %v4335_v37  ;;  %v4341_v31 = vmul.f32 %v6033_v7, %v8923_v57  ;;  %v2786_v13 = vand.u32 2147483648, %v8915_v21 }
 0x398   : > { %v2779_v24 = vmul.f32 0.5, %v2778_v36  ;;  %v4755_v59 = vmul.f32 %v4339_v10, %v4339_v10  ;;  %v2772_v41 = vsel %vm2771_vm3, %v8890_v62, %v2770_v2  ;;  %6038 = vrsqrt.f32 %v8949_v17 }
 0x399   : > { %v5138_v30 = vmul.f32 0.81, %v5010_v47  ;;  %v6035_v5 = vpop.eup %6034  ;;  %v4342_v33 = vmul.f32 %v6033_v7, %v4341_v31  ;;  %v2775_v27 = vsel %vm2773_vm5, %v2774_v12, %v2772_v41  ;;  %v1306_v43 = vmul.f32 2.0, %v740_v14 }
 0x39a   : > { %v2780_v55 = vsub.f32 1.5, %v2779_v24  ;;  %v6037_v38 = vpop.eup %6036  ;;  %v4883_v45 = vmul.f32 %v4755_v59, %v4755_v59  ;;  %vm4346_vm10 = vweird.f32 %v8923_v57  ;;  %v3222_v16 = vmul.f32 1.1085125, %v2775_v27 }
 0x39b   : > { %5266 = vst [vmem:[%s6712_s22 + $0x2f0] sm:$0xff] %v5138_v30  ;;  %v2789_v11 = vmul.f32 %v6035_v5, %v8937_v44  ;;  %v4343_v35 = vmul.f32 0.5, %v4342_v33  ;;  %v4351_v26 = vmul.f32 %v6037_v38, %v8939_v46  ;;  %v1178_v54 = vadd.f32 %v6480_v60, %v8910_v56 }
 0x39c   : > { %v2781_v1 = vmul.f32 %v6031_v39, %v2780_v55  ;;  %v5011_v58 = vmul.f32 %v4883_v45, %v4339_v10  ;;  %vm4347_vm11 = vweird.f32 %v6033_v7  ;;  %v8966_v62 = vadd.f32 1.0, %v3222_v16 }
 0x39d   : > { %v2790_v50 = vmul.f32 %v6035_v5, %v2789_v11  ;;  %v4344_v40 = vsub.f32 1.5, %v4343_v35  ;;  %v4352_v48 = vmul.f32 %v6037_v38, %v4351_v26  ;;  %v1434_v6 = vsub.f32 %v1178_v54, %v1306_v43  ;;  %vm4348_vm13 = vmor %vm4346_vm10, %vm4347_vm11 }
 0x39e   : > { %v2782_v18 = vmul.f32 %v2781_v1, %v8915_v21  ;;  %v6039_v49 = vpop.eup %6038  ;;  %v5139_v19 = vmul.f32 0.81, %v5011_v58  ;;  %6040 = vrsqrt.f32 %v8966_v62  ;;  %vm2795_vm12 = vcmp.eq.f32.partialorder %v8937_v44, inf }
 0x39f   : > { %v2791_v34 = vmul.f32 0.5, %v2790_v50  ;;  %v4345_v23 = vmul.f32 %v6033_v7, %v4344_v40  ;;  %v4353_v61 = vmul.f32 0.5, %v4352_v48  ;;  %v2801_v0 = vmul.f32 %v6039_v49, %v8949_v17  ;;  %v9013_v40 = vpop.permute.xlu2 %1039 }
 0x3a0   : > { %v2784_v53 = vsel %vm2783_vm8, %v8915_v21, %v2782_v18  ;;  %5267 = vst [vmem:[%s6712_s22 + $0x2f8] sm:$0xff] %v5139_v19  ;;  %vm4357_vm14 = vweird.f32 %v6037_v38  ;;  %v8981_v9 = vmax.f32 %v1434_v6, 0.0  ;;  %vm4356_vm15 = vweird.f32 %v8939_v46 }
 0x3a1   : > { %v2787_v22 = vsel %vm2785_vm9, %v2786_v13, %v2784_v53  ;;  %v2792_v8 = vsub.f32 1.5, %v2791_v34  ;;  %v4349_v3 = vsel %vm4348_vm13, %v6033_v7, %v4345_v23  ;;  %v4354_v4 = vsub.f32 1.5, %v4353_v61  ;;  %vm4358_vm1 = vmor %vm4356_vm15, %vm4357_vm14 }
 0x3a2   : > { %v3223_v39 = vmul.f32 1.1085125, %v2787_v22  ;;  %v2802_v20 = vmul.f32 %v6039_v49, %v2801_v0  ;;  %v4756_v32 = vmul.f32 %v4349_v3, %v4349_v3  ;;  %6042 = vrsqrt.f32 %v8981_v9 }
 0x3a3   : > { %v2793_v15 = vmul.f32 %v6035_v5, %v2792_v8  ;;  %v4355_v57 = vmul.f32 %v6037_v38, %v4354_v4  ;;  %vm2797_vm0 = vcmp.eq.f32.partialorder %v8937_v44, 0.0  ;;  %v2798_v12 = vand.u32 2147483648, %v8937_v44  ;;  %v743_v4 = vpop.f32.mrf.mxu2 }
 0x3a4   : > { %v8985_v28 = vadd.f32 1.0, %v3223_v39  ;;  %v2803_v21 = vmul.f32 0.5, %v2802_v20  ;;  %v6041_v25 = vpop.eup %6040  ;;  %v4884_v42 = vmul.f32 %v4756_v32, %v4756_v32  ;;  %v1307_v36 = vmul.f32 2.0, %v853_v29 }
 0x3a5   : > { %v2794_v37 = vmul.f32 %v2793_v15, %v8937_v44  ;;  %v4359_v7 = vsel %vm4358_vm1, %v6037_v38, %v4355_v57  ;;  %v4361_v46 = vmul.f32 %v6041_v25, %v8966_v62  ;;  %v1179_v47 = vadd.f32 %v6484_v63, %v8910_v56  ;;  %v517_v38 = vpop.f32.mrf.mxu0 }
 0x3a6   : > { %6044 = vrsqrt.f32 %v8985_v28  ;;  %v5012_v2 = vmul.f32 %v4884_v42, %v4349_v3  ;;  %v4757_v14 = vmul.f32 %v4359_v7, %v4359_v7  ;;  %vm2807_vm2 = vcmp.eq.f32.partialorder %v8949_v17, inf  ;;  %v630_v3 = vpop.f32.mrf.mxu1 }
 0x3a7   : > { %v2796_v10 = vsel %vm2795_vm12, %v8937_v44, %v2794_v37  ;;  %v4362_v31 = vmul.f32 %v6041_v25, %v4361_v46  ;;  %v2804_v13 = vsub.f32 1.5, %v2803_v21  ;;  %v1435_v30 = vsub.f32 %v1179_v47, %v1307_v36 }
 0x3a8   : > { %v2799_v24 = vsel %vm2797_vm0, %v2798_v12, %v2796_v10  ;;  %v6043_v59 = vpop.eup %6042  ;;  %v5140_v41 = vmul.f32 0.81, %v5012_v2  ;;  %v4885_v5 = vmul.f32 %v4757_v14, %v4757_v14  ;;  %vm2809_vm3 = vcmp.eq.f32.partialorder %v8949_v17, 0.0  ;;  %v9036_v12 = vpop.permute.xlu1 %1049 }
 0x3a9   : > { %v3224_v33 = vmul.f32 1.1085125, %v2799_v24  ;;  %v4363_v56 = vmul.f32 0.5, %v4362_v31  ;;  %v2805_v27 = vmul.f32 %v6039_v49, %v2804_v13  ;;  %v2813_v55 = vmul.f32 %v6043_v59, %v8981_v9  ;;  %v9047_v31 = vpop.permute.xlu0 %1044 }
 0x3aa   : > { %v9003_v43 = vmax.f32 %v1435_v30, 0.0  ;;  %5268 = vst [vmem:[%s6712_s22 + $0x300] sm:$0xff] %v5140_v41  ;;  %v5013_v45 = vmul.f32 %v4885_v5, %v4359_v7  ;;  %vm4367_vm4 = vweird.f32 %v6041_v25  ;;  %v2810_v16 = vand.u32 2147483648, %v8949_v17 }
 0x3ab   : > { %v9006_v44 = vadd.f32 1.0, %v3224_v33  ;;  %v4364_v35 = vsub.f32 1.5, %v4363_v56  ;;  %v2806_v26 = vmul.f32 %v2805_v27, %v8949_v17  ;;  %v2814_v1 = vmul.f32 %v6043_v59, %v2813_v55 }
 0x3ac   : > { %v6045_v11 = vpop.eup %6044  ;;  %6046 = vrsqrt.f32 %v9003_v43  ;;  %v5141_v54 = vmul.f32 0.81, %v5013_v45  ;;  %v1308_v50 = vmul.f32 2.0, %v517_v38  ;;  %vm4366_vm5 = vweird.f32 %v8966_v62 }
 0x3ad   : > { %v4371_v58 = vmul.f32 %v6045_v11, %v8985_v28  ;;  %6048 = vrsqrt.f32 %v9006_v44  ;;  %v4365_v48 = vmul.f32 %v6041_v25, %v4364_v35  ;;  %v2808_v18 = vsel %vm2807_vm2, %v8949_v17, %v2806_v26  ;;  %vm4368_vm6 = vmor %vm4366_vm5, %vm4367_vm4 }
 0x3ae   : > { %v2815_v6 = vmul.f32 0.5, %v2814_v1  ;;  %5269 = vst [vmem:[%s6712_s22 + $0x308] sm:$0xff] %v5141_v54  ;;  %v2811_v19 = vsel %vm2809_vm3, %v2810_v16, %v2808_v18  ;;  %vm2819_vm7 = vcmp.eq.f32.partialorder %v8981_v9, inf  ;;  %v1180_v34 = vadd.f32 %v6471_v51, %v9013_v40 }
 0x3af   : > { %v4372_v49 = vmul.f32 %v6045_v11, %v4371_v58  ;;  %v4369_v23 = vsel %vm4368_vm6, %v6041_v25, %v4365_v48  ;;  %v3225_v61 = vmul.f32 1.1085125, %v2811_v19  ;;  %vm2821_vm8 = vcmp.eq.f32.partialorder %v8981_v9, 0.0  ;;  %v856_v48 = vpop.f32.mrf.mxu3 }
 0x3b0   : > { %v2816_v62 = vsub.f32 1.5, %v2815_v6  ;;  %v4758_v53 = vmul.f32 %v4369_v23, %v4369_v23  ;;  %v2822_v22 = vand.u32 2147483648, %v8981_v9  ;;  %v1436_v8 = vsub.f32 %v1180_v34, %v1308_v50 }
 0x3b1   : > { %v4373_v0 = vmul.f32 0.5, %v4372_v49  ;;  %vm4376_vm9 = vweird.f32 %v8985_v28  ;;  %vm4377_vm10 = vweird.f32 %v6045_v11  ;;  %v9029_v17 = vadd.f32 1.0, %v3225_v61  ;;  %v9072_v61 = vpop.permute.xlu1 %1064 }
 0x3b2   : > { %v6047_v39 = vpop.eup %6046  ;;  %v2817_v20 = vmul.f32 %v6043_v59, %v2816_v62  ;;  %v4886_v32 = vmul.f32 %v4758_v53, %v4758_v53  ;;  %v9032_v21 = vmax.f32 %v1436_v8, 0.0  ;;  %v1309_v42 = vmul.f32 2.0, %v630_v3  ;;  %vm4378_vm11 = vmor %vm4376_vm9, %vm4377_vm10 }
 0x3b3   : > { %v6049_v29 = vpop.eup %6048  ;;  %v4374_v15 = vsub.f32 1.5, %v4373_v0  ;;  %v2825_v57 = vmul.f32 %v6047_v39, %v9003_v43  ;;  %6050 = vrsqrt.f32 %v9029_v17  ;;  %v1310_v37 = vmul.f32 2.0, %v743_v4  ;;  %v9082_v4 = vpop.permute.xlu0 %1059 }
 0x3b4   : > { %v4381_v25 = vmul.f32 %v6049_v29, %v9006_v44  ;;  %v5014_v36 = vmul.f32 %v4886_v32, %v4369_v23  ;;  %v2818_v46 = vmul.f32 %v2817_v20, %v8981_v9  ;;  %6052 = vrsqrt.f32 %v9032_v21 }
 0x3b5   : > { %v4375_v7 = vmul.f32 %v6045_v11, %v4374_v15  ;;  %v2826_v47 = vmul.f32 %v6047_v39, %v2825_v57  ;;  %v1181_v14 = vadd.f32 %v6473_v52, %v9013_v40  ;;  %v1182_v10 = vadd.f32 %v6480_v60, %v9013_v40 }
 0x3b6   : > { %v4382_v2 = vmul.f32 %v6049_v29, %v4381_v25  ;;  %v5142_v24 = vmul.f32 0.81, %v5014_v36  ;;  %v2820_v30 = vsel %vm2819_vm7, %v8981_v9, %v2818_v46  ;;  %vm4386_vm12 = vweird.f32 %v9006_v44 }
 0x3b7   : > { %v4379_v13 = vsel %vm4378_vm11, %v6045_v11, %v4375_v7  ;;  %v2827_v59 = vmul.f32 0.5, %v2826_v47  ;;  %v2823_v5 = vsel %vm2821_vm8, %v2822_v22, %v2820_v30  ;;  %v1437_v27 = vsub.f32 %v1181_v14, %v1309_v42 }
 0x3b8   : > { %v4759_v28 = vmul.f32 %v4379_v13, %v4379_v13  ;;  %v4383_v41 = vmul.f32 0.5, %v4382_v2  ;;  %5270 = vst [vmem:[%s6712_s22 + $0x310] sm:$0xff] %v5142_v24  ;;  %v3226_v33 = vmul.f32 1.1085125, %v2823_v5  ;;  %v1438_v55 = vsub.f32 %v1182_v10, %v1310_v37 }
 0x3b9   : > { %v2828_v56 = vsub.f32 1.5, %v2827_v59  ;;  %v6051_v38 = vpop.eup %6050  ;;  %vm4387_vm13 = vweird.f32 %v6049_v29  ;;  %vm2831_vm14 = vcmp.eq.f32.partialorder %v9003_v43, inf  ;;  %vm2833_vm15 = vcmp.eq.f32.partialorder %v9003_v43, 0.0 }
 0x3ba   : > { %v4887_v45 = vmul.f32 %v4759_v28, %v4759_v28  ;;  %v4384_v16 = vsub.f32 1.5, %v4383_v41  ;;  %v4391_v11 = vmul.f32 %v6051_v38, %v9029_v17  ;;  %v9058_v35 = vadd.f32 1.0, %v3226_v33  ;;  %v6053_v9 = vpop.eup %6052  ;;  %vm4388_vm0 = vmor %vm4386_vm12, %vm4387_vm13 }
 0x3bb   : > { %v2829_v26 = vmul.f32 %v6047_v39, %v2828_v56  ;;  %v2834_v58 = vand.u32 2147483648, %v9003_v43  ;;  %v9062_v50 = vmax.f32 %v1437_v27, 0.0  ;;  %v9068_v49 = vmax.f32 %v1438_v55, 0.0 }
 0x3bc   : > { %v5015_v1 = vmul.f32 %v4887_v45, %v4379_v13  ;;  %v4385_v54 = vmul.f32 %v6049_v29, %v4384_v16  ;;  %v4392_v18 = vmul.f32 %v6051_v38, %v4391_v11  ;;  %6054 = vrsqrt.f32 %v9058_v35 }
 0x3bd   : > { %v2830_v6 = vmul.f32 %v2829_v26, %v9003_v43  ;;  %v2837_v23 = vmul.f32 %v6053_v9, %v9032_v21  ;;  %6056 = vrsqrt.f32 %v9062_v50  ;;  %v1311_v0 = vmul.f32 2.0, %v856_v48 }
 0x3be   : > { %v5143_v19 = vmul.f32 0.81, %v5015_v1  ;;  %v4389_v34 = vsel %vm4388_vm0, %v6049_v29, %v4385_v54  ;;  %v4393_v53 = vmul.f32 0.5, %v4392_v18  ;;  %vm4397_vm1 = vweird.f32 %v6051_v38 }
 0x3bf   : > { %v4760_v62 = vmul.f32 %v4389_v34, %v4389_v34  ;;  %v2832_v44 = vsel %vm2831_vm14, %v9003_v43, %v2830_v6  ;;  %v2838_v8 = vmul.f32 %v6053_v9, %v2837_v23  ;;  %v1183_v3 = vadd.f32 %v6484_v63, %v9013_v40 }
 0x3c0   : > { %5271 = vst [vmem:[%s6712_s22 + $0x318] sm:$0xff] %v5143_v19  ;;  %v2835_v22 = vsel %vm2833_vm15, %v2834_v58, %v2832_v44  ;;  %v4394_v20 = vsub.f32 1.5, %v4393_v53  ;;  %6058 = vrsqrt.f32 %v9068_v49  ;;  %v9087_v32 = vadd.f32 %v6471_v51, %v9072_v61  ;;  %v520_v58 = vpop.f32.mrf.mxu0 }
 0x3c1   : > { %v4888_v39 = vmul.f32 %v4760_v62, %v4760_v62  ;;  %v3227_v29 = vmul.f32 1.1085125, %v2835_v22  ;;  %v9091_v15 = vadd.f32 %v6473_v52, %v9072_v61  ;;  %vm4396_vm2 = vweird.f32 %v9029_v17 }
 0x3c2   : > { %v2839_v43 = vmul.f32 0.5, %v2838_v8  ;;  %v6055_v57 = vpop.eup %6054  ;;  %v4395_v25 = vmul.f32 %v6051_v38, %v4394_v20  ;;  %v1439_v37 = vsub.f32 %v1183_v3, %v1311_v0  ;;  %v9098_v7 = vadd.f32 %v6471_v51, %v9082_v4  ;;  %vm4398_vm3 = vmor %vm4396_vm2, %vm4397_vm1 }
 0x3c3   : > { %v5016_v40 = vmul.f32 %v4888_v39, %v4389_v34  ;;  %v9094_v42 = vadd.f32 1.0, %v3227_v29  ;;  %v6057_v36 = vpop.eup %6056  ;;  %v9102_v46 = vadd.f32 %v6473_v52, %v9082_v4  ;;  %v4401_v17 = vmul.f32 %v6055_v57, %v9058_v35 }
 0x3c4   : > { %v2840_v47 = vsub.f32 1.5, %v2839_v43  ;;  %v9108_v2 = vadd.f32 %v6480_v60, %v9082_v4  ;;  %v4399_v10 = vsel %vm4398_vm3, %v6051_v38, %v4395_v25  ;;  %v2849_v59 = vmul.f32 %v6057_v36, %v9062_v50 }
 0x3c5   : > { %v5144_v14 = vmul.f32 0.81, %v5016_v40  ;;  %6060 = vrsqrt.f32 %v9094_v42  ;;  %v4761_v24 = vmul.f32 %v4399_v10, %v4399_v10  ;;  %v4402_v13 = vmul.f32 %v6055_v57, %v4401_v17 }
 0x3c6   : > { %v2841_v30 = vmul.f32 %v6053_v9, %v2840_v47  ;;  %v6059_v28 = vpop.eup %6058  ;;  %vm2843_vm4 = vcmp.eq.f32.partialorder %v9032_v21, inf  ;;  %vm2845_vm5 = vcmp.eq.f32.partialorder %v9032_v21, 0.0  ;;  %v2846_v41 = vand.u32 2147483648, %v9032_v21 }
 0x3c7   : > { %5272 = vst [vmem:[%s6712_s22 + $0x320] sm:$0xff] %v5144_v14  ;;  %v9116_v5 = vmax.f32 %v1439_v37, 0.0  ;;  %v4889_v33 = vmul.f32 %v4761_v24, %v4761_v24  ;;  %v4403_v56 = vmul.f32 0.5, %v4402_v13  ;;  %v2850_v55 = vmul.f32 %v6057_v36, %v2849_v59 }
 0x3c8   : > { %v2842_v27 = vmul.f32 %v2841_v30, %v9032_v21  ;;  %vm4406_vm6 = vweird.f32 %v9058_v35  ;;  %vm4407_vm7 = vweird.f32 %v6055_v57  ;;  %v2861_v38 = vmul.f32 %v6059_v28, %v9068_v49 }
 0x3c9   : > { %6062 = vrsqrt.f32 %v9116_v5  ;;  %v5017_v45 = vmul.f32 %v4889_v33, %v4399_v10  ;;  %v4404_v16 = vsub.f32 1.5, %v4403_v56  ;;  %v2851_v26 = vmul.f32 0.5, %v2850_v55  ;;  %vm4408_vm10 = vmor %vm4406_vm6, %vm4407_vm7  ;;  %v633_v10 = vpop.f32.mrf.mxu1 }
 0x3ca   : > { %v2844_v11 = vsel %vm2843_vm4, %v9032_v21, %v2842_v27  ;;  %vm2855_vm8 = vcmp.eq.f32.partialorder %v9062_v50, inf  ;;  %vm2857_vm9 = vcmp.eq.f32.partialorder %v9062_v50, 0.0  ;;  %v2862_v54 = vmul.f32 %v6059_v28, %v2861_v38 }
 0x3cb   : > { %v6061_v9 = vpop.eup %6060  ;;  %v2847_v1 = vsel %vm2845_vm5, %v2846_v41, %v2844_v11  ;;  %v5145_v48 = vmul.f32 0.81, %v5017_v45  ;;  %v4405_v18 = vmul.f32 %v6055_v57, %v4404_v16  ;;  %v2858_v19 = vand.u32 2147483648, %v9062_v50 }
 0x3cc   : > { %v4411_v6 = vmul.f32 %v6061_v9, %v9094_v42  ;;  %v3228_v34 = vmul.f32 1.1085125, %v2847_v1  ;;  %v2852_v23 = vsub.f32 1.5, %v2851_v26  ;;  %v2863_v21 = vmul.f32 0.5, %v2862_v54 }
 0x3cd   : > { %vm2867_vm11 = vcmp.eq.f32.partialorder %v9068_v49, inf  ;;  %5273 = vst [vmem:[%s6712_s22 + $0x328] sm:$0xff] %v5145_v48  ;;  %v4409_v62 = vsel %vm4408_vm10, %v6055_v57, %v4405_v18  ;;  %vm2869_vm12 = vcmp.eq.f32.partialorder %v9068_v49, 0.0  ;;  %v1184_v44 = vadd.f32 %v6471_v51, %v9047_v31  ;;  %v746_v48 = vpop.f32.mrf.mxu2  ;;  %v859_v18 = vpop.f32.mrf.mxu3 }
 0x3ce   : > { %v4412_v53 = vmul.f32 %v6061_v9, %v4411_v6  ;;  %v1312_v0 = vmul.f32 2.0, %v520_v58  ;;  %v4762_v8 = vmul.f32 %v4409_v62, %v4409_v62  ;;  %v9137_v3 = vadd.f32 1.0, %v3228_v34 }
 0x3cf   : > { %v6063_v22 = vpop.eup %6062  ;;  %v2853_v35 = vmul.f32 %v6057_v36, %v2852_v23  ;;  %v2864_v39 = vsub.f32 1.5, %v2863_v21  ;;  %v2870_v29 = vand.u32 2147483648, %v9068_v49  ;;  %vm4417_vm13 = vweird.f32 %v6061_v9 }
 0x3d0   : > { %v4413_v20 = vmul.f32 0.5, %v4412_v53  ;;  %v2873_v43 = vmul.f32 %v6063_v22, %v9116_v5  ;;  %v1440_v40 = vsub.f32 %v1184_v44, %v1312_v0  ;;  %v4890_v57 = vmul.f32 %v4762_v8, %v4762_v8 }
 0x3d1   : > { %6064 = vrsqrt.f32 %v9137_v3  ;;  %v2854_v25 = vmul.f32 %v2853_v35, %v9062_v50  ;;  %v2865_v17 = vmul.f32 %v6059_v28, %v2864_v39  ;;  %vm4416_vm14 = vweird.f32 %v9094_v42 }
 0x3d2   : > { %v4414_v37 = vsub.f32 1.5, %v4413_v20  ;;  %v2874_v47 = vmul.f32 %v6063_v22, %v2873_v43  ;;  %v9143_v14 = vmax.f32 %v1440_v40, 0.0  ;;  %v5018_v36 = vmul.f32 %v4890_v57, %v4409_v62  ;;  %vm4418_vm15 = vmor %vm4416_vm14, %vm4417_vm13 }
 0x3d3   : > { %v2856_v24 = vsel %vm2855_vm8, %v9062_v50, %v2854_v25  ;;  %v1185_v13 = vadd.f32 %v6473_v52, %v9047_v31  ;;  %v2866_v28 = vmul.f32 %v2865_v17, %v9068_v49  ;;  %v1313_v42 = vmul.f32 2.0, %v633_v10 }
 0x3d4   : > { %v4415_v30 = vmul.f32 %v6061_v9, %v4414_v37  ;;  %v2859_v59 = vsel %vm2857_vm9, %v2858_v19, %v2856_v24  ;;  %v2875_v41 = vmul.f32 0.5, %v2874_v47  ;;  %v5146_v33 = vmul.f32 0.81, %v5018_v36 }
 0x3d5   : > { %v3229_v56 = vmul.f32 1.1085125, %v2859_v59  ;;  %6066 = vrsqrt.f32 %v9143_v14  ;;  %v2868_v55 = vsel %vm2867_vm11, %v9068_v49, %v2866_v28  ;;  %v1186_v50 = vadd.f32 %v6480_v60, %v9047_v31 }
 0x3d6   : > { %v4419_v27 = vsel %vm4418_vm15, %v6061_v9, %v4415_v30  ;;  %v2876_v38 = vsub.f32 1.5, %v2875_v41  ;;  %5274 = vst [vmem:[%s6712_s22 + $0x330] sm:$0xff] %v5146_v33  ;;  %v2871_v26 = vsel %vm2869_vm12, %v2870_v29, %v2868_v55  ;;  %v1187_v1 = vadd.f32 %v6484_v63, %v9047_v31 }
 0x3d7   : > { %v6065_v45 = vpop.eup %6064  ;;  %v4763_v16 = vmul.f32 %v4419_v27, %v4419_v27  ;;  %v9162_v11 = vadd.f32 1.0, %v3229_v56  ;;  %v3230_v54 = vmul.f32 1.1085125, %v2871_v26  ;;  %vm2879_vm0 = vcmp.eq.f32.partialorder %v9116_v5, inf }
 0x3d8   : > { %v4421_v9 = vmul.f32 %v6065_v45, %v9137_v3  ;;  %v2877_v58 = vmul.f32 %v6063_v22, %v2876_v38  ;;  %vm2881_vm1 = vcmp.eq.f32.partialorder %v9116_v5, 0.0  ;;  %v1441_v19 = vsub.f32 %v1185_v13, %v1313_v42  ;;  %v523_v38 = vpop.f32.mrf.mxu0 }
 0x3d9   : > { %v4891_v6 = vmul.f32 %v4763_v16, %v4763_v16  ;;  %6068 = vrsqrt.f32 %v9162_v11  ;;  %v9172_v49 = vadd.f32 1.0, %v3230_v54  ;;  %v2882_v31 = vand.u32 2147483648, %v9116_v5 }
 0x3da   : > { %v4422_v34 = vmul.f32 %v6065_v45, %v4421_v9  ;;  %v2878_v23 = vmul.f32 %v2877_v58, %v9116_v5  ;;  %v9176_v53 = vmax.f32 %v1441_v19, 0.0  ;;  %v1314_v44 = vmul.f32 2.0, %v746_v48 }
 0x3db   : > { %v6067_v21 = vpop.eup %6066  ;;  %v5019_v62 = vmul.f32 %v4891_v6, %v4419_v27  ;;  %v1315_v0 = vmul.f32 2.0, %v859_v18  ;;  %6070 = vrsqrt.f32 %v9172_v49  ;;  %v9184_v35 = vadd.f32 %v6471_v51, %v9036_v12 }
 0x3dc   : > { %v4423_v22 = vmul.f32 0.5, %v4422_v34  ;;  %v2880_v8 = vsel %vm2879_vm0, %v9116_v5, %v2878_v23  ;;  %v2885_v29 = vmul.f32 %v6067_v21, %v9143_v14  ;;  %6072 = vrsqrt.f32 %v9176_v53 }
 0x3dd   : > { %v5147_v39 = vmul.f32 0.81, %v5019_v62  ;;  %v2883_v20 = vsel %vm2881_vm1, %v2882_v31, %v2880_v8  ;;  %vm4427_vm2 = vweird.f32 %v6065_v45  ;;  %v9192_v57 = vadd.f32 %v6473_v52, %v9036_v12 }
 0x3de   : > { %v4424_v43 = vsub.f32 1.5, %v4423_v22  ;;  %v3231_v40 = vmul.f32 1.1085125, %v2883_v20  ;;  %v2886_v37 = vmul.f32 %v6067_v21, %v2885_v29  ;;  %v1442_v17 = vsub.f32 %v1186_v50, %v1314_v44 }
 0x3df   : > { %v6069_v25 = vpop.eup %6068  ;;  %5275 = vst [vmem:[%s6712_s22 + $0x338] sm:$0xff] %v5147_v39  ;;  %v1443_v47 = vsub.f32 %v1187_v1, %v1315_v0  ;;  %v9197_v5 = vadd.f32 %v6480_v60, %v9036_v12  ;;  %vm4426_vm3 = vweird.f32 %v9137_v3  ;;  %vm2891_vm5 = vcmp.eq.f32.partialorder %v9143_v14, inf }
 0x3e0   : > { %v4425_v10 = vmul.f32 %v6065_v45, %v4424_v43  ;;  %v4431_v36 = vmul.f32 %v6069_v25, %v9162_v11  ;;  %v9201_v24 = vadd.f32 1.0, %v3231_v40  ;;  %vm4428_vm4 = vmor %vm4426_vm3, %vm4427_vm2  ;;  %v2887_v13 = vmul.f32 0.5, %v2886_v37 }
 0x3e1   : > { %v2894_v30 = vand.u32 2147483648, %v9143_v14  ;;  %v9205_v59 = vmax.f32 %v1442_v17, 0.0  ;;  %v6071_v28 = vpop.eup %6070  ;;  %vm2893_vm6 = vcmp.eq.f32.partialorder %v9143_v14, 0.0  ;;  %v9209_v3 = vmax.f32 %v1443_v47, 0.0 }
 0x3e2   : > { %v4429_v41 = vsel %vm4428_vm4, %v6065_v45, %v4425_v10  ;;  %v4432_v33 = vmul.f32 %v6069_v25, %v4431_v36  ;;  %6074 = vrsqrt.f32 %v9201_v24  ;;  %v6073_v56 = vpop.eup %6072  ;;  %vm4436_vm7 = vweird.f32 %v9162_v11 }
 0x3e3   : > { %v4764_v42 = vmul.f32 %v4429_v41, %v4429_v41  ;;  %v4441_v27 = vmul.f32 %v6071_v28, %v9172_v49  ;;  %v2888_v55 = vsub.f32 1.5, %v2887_v13  ;;  %vm4446_vm8 = vweird.f32 %v9172_v49 }
 0x3e4   : > { %v4433_v50 = vmul.f32 0.5, %v4432_v33  ;;  %v2897_v45 = vmul.f32 %v6073_v56, %v9176_v53  ;;  %6076 = vrsqrt.f32 %v9205_v59  ;;  %vm4437_vm9 = vweird.f32 %v6069_v25 }
 0x3e5   : > { %v4892_v16 = vmul.f32 %v4764_v42, %v4764_v42  ;;  %v4442_v26 = vmul.f32 %v6071_v28, %v4441_v27  ;;  %v2889_v1 = vmul.f32 %v6067_v21, %v2888_v55  ;;  %6078 = vrsqrt.f32 %v9209_v3  ;;  %vm4438_vm13 = vmor %vm4436_vm7, %vm4437_vm9 }
 0x3e6   : > { %v4434_v9 = vsub.f32 1.5, %v4433_v50  ;;  %v2898_v54 = vmul.f32 %v6073_v56, %v2897_v45  ;;  %v1316_v58 = vmul.f32 2.0, %v523_v38  ;;  %vm2903_vm10 = vcmp.eq.f32.partialorder %v9176_v53, inf }
 0x3e7   : > { %v5020_v48 = vmul.f32 %v4892_v16, %v4429_v41  ;;  %v4443_v18 = vmul.f32 0.5, %v4442_v26  ;;  %v2890_v6 = vmul.f32 %v2889_v1, %v9143_v14  ;;  %vm4447_vm11 = vweird.f32 %v6071_v28 }
 0x3e8   : > { %v6075_v19 = vpop.eup %6074  ;;  %v4435_v34 = vmul.f32 %v6069_v25, %v4434_v9  ;;  %v2899_v23 = vmul.f32 0.5, %v2898_v54  ;;  %vm2905_vm12 = vcmp.eq.f32.partialorder %v9176_v53, 0.0  ;;  %v2906_v31 = vand.u32 2147483648, %v9176_v53  ;;  %vm4448_vm15 = vmor %vm4446_vm8, %vm4447_vm11  ;;  %v749_v54 = vpop.f32.mrf.mxu2 }
 0x3e9   : > { %v5148_v21 = vmul.f32 0.81, %v5020_v48  ;;  %v4444_v62 = vsub.f32 1.5, %v4443_v18  ;;  %v4451_v44 = vmul.f32 %v6075_v19, %v9201_v24  ;;  %vm4457_vm14 = vweird.f32 %v6075_v19 }
 0x3ea   : > { %v6077_v0 = vpop.eup %6076  ;;  %v4439_v22 = vsel %vm4438_vm13, %v6069_v25, %v4435_v34  ;;  %v2892_v8 = vsel %vm2891_vm5, %v9143_v14, %v2890_v6  ;;  %v2900_v39 = vsub.f32 1.5, %v2899_v23  ;;  %v1444_v20 = vsub.f32 %v9184_v35, %v1316_v58 }
 0x3eb   : > { %5276 = vst [vmem:[%s6712_s22 + $0x340] sm:$0xff] %v5148_v21  ;;  %v4765_v29 = vmul.f32 %v4439_v22, %v4439_v22  ;;  %v4445_v43 = vmul.f32 %v6071_v28, %v4444_v62  ;;  %v4452_v40 = vmul.f32 %v6075_v19, %v4451_v44  ;;  %v2895_v11 = vsel %vm2893_vm6, %v2894_v30, %v2892_v8  ;;  %v6079_v37 = vpop.eup %6078 }
 0x3ec   : > { %v3232_v25 = vmul.f32 1.1085125, %v2895_v11  ;;  %v2901_v17 = vmul.f32 %v6073_v56, %v2900_v39  ;;  %v2909_v47 = vmul.f32 %v6077_v0, %v9205_v59  ;;  %v9236_v10 = vmax.f32 %v1444_v20, 0.0 }
 0x3ed   : > { %v4893_v36 = vmul.f32 %v4765_v29, %v4765_v29  ;;  %v4449_v35 = vsel %vm4448_vm15, %v6071_v28, %v4445_v43  ;;  %v4453_v13 = vmul.f32 0.5, %v4452_v40  ;;  %v2921_v41 = vmul.f32 %v6079_v37, %v9209_v3 }
 0x3ee   : > { %v4766_v33 = vmul.f32 %v4449_v35, %v4449_v35  ;;  %v9239_v42 = vadd.f32 1.0, %v3232_v25  ;;  %v2902_v14 = vmul.f32 %v2901_v17, %v9176_v53  ;;  %v2910_v30 = vmul.f32 %v6077_v0, %v2909_v47  ;;  %v9267_v47 = vpop.permute.xlu2 %1054 }
 0x3ef   : > { %v5021_v27 = vmul.f32 %v4893_v36, %v4439_v22  ;;  %v4454_v49 = vsub.f32 1.5, %v4453_v13  ;;  %v2922_v55 = vmul.f32 %v6079_v37, %v2921_v41  ;;  %6080 = vrsqrt.f32 %v9236_v10  ;;  %v862_v22 = vpop.f32.mrf.mxu3 }
 0x3f0   : > { %v4894_v56 = vmul.f32 %v4766_v33, %v4766_v33  ;;  %vm4456_vm0 = vweird.f32 %v9201_v24  ;;  %6082 = vrsqrt.f32 %v9239_v42  ;;  %v2904_v28 = vsel %vm2903_vm10, %v9176_v53, %v2902_v14  ;;  %v636_v24 = vpop.f32.mrf.mxu1 }
 0x3f1   : > { %v5149_v38 = vmul.f32 0.81, %v5021_v27  ;;  %v4455_v50 = vmul.f32 %v6075_v19, %v4454_v49  ;;  %v2907_v45 = vsel %vm2905_vm12, %v2906_v31, %v2904_v28  ;;  %v2911_v16 = vmul.f32 0.5, %v2910_v30  ;;  %vm4458_vm1 = vmor %vm4456_vm0, %vm4457_vm14 }
 0x3f2   : > { %v5022_v26 = vmul.f32 %v4894_v56, %v4449_v35  ;;  %v3233_v1 = vmul.f32 1.1085125, %v2907_v45  ;;  %vm2915_vm2 = vcmp.eq.f32.partialorder %v9205_v59, inf  ;;  %v2923_v9 = vmul.f32 0.5, %v2922_v55 }
 0x3f3   : > { %5277 = vst [vmem:[%s6712_s22 + $0x348] sm:$0xff] %v5149_v38  ;;  %v4459_v58 = vsel %vm4458_vm1, %v6075_v19, %v4455_v50  ;;  %v2912_v48 = vsub.f32 1.5, %v2911_v16  ;;  %vm2917_vm3 = vcmp.eq.f32.partialorder %v9205_v59, 0.0  ;;  %v2918_v18 = vand.u32 2147483648, %v9205_v59 }
 0x3f4   : > { %v5150_v53 = vmul.f32 0.81, %v5022_v26  ;;  %v4767_v6 = vmul.f32 %v4459_v58, %v4459_v58  ;;  %v9255_v34 = vadd.f32 1.0, %v3233_v1  ;;  %v2924_v23 = vsub.f32 1.5, %v2923_v9 }
 0x3f5   : > { %v6081_v31 = vpop.eup %6080  ;;  %v2913_v21 = vmul.f32 %v6077_v0, %v2912_v48  ;;  %vm2927_vm4 = vcmp.eq.f32.partialorder %v9209_v3, inf  ;;  %v1317_v62 = vmul.f32 2.0, %v636_v24  ;;  %v1318_v44 = vmul.f32 2.0, %v749_v54 }
 0x3f6   : > { %v6083_v8 = vpop.eup %6082  ;;  %5278 = vst [vmem:[%s6712_s22 + $0x350] sm:$0xff] %v5150_v53  ;;  %v4895_v19 = vmul.f32 %v4767_v6, %v4767_v6  ;;  %6084 = vrsqrt.f32 %v9255_v34  ;;  %v2925_v39 = vmul.f32 %v6079_v37, %v2924_v23  ;;  %vm2929_vm5 = vcmp.eq.f32.partialorder %v9209_v3, 0.0 }
 0x3f7   : > { %v4461_v20 = vmul.f32 %v6083_v8, %v9239_v42  ;;  %v2914_v29 = vmul.f32 %v2913_v21, %v9205_v59  ;;  %v2930_v43 = vand.u32 2147483648, %v9209_v3  ;;  %v2933_v0 = vmul.f32 %v6081_v31, %v9236_v10  ;;  %v526_v21 = vpop.f32.mrf.mxu0 }
 0x3f8   : > { %v5023_v40 = vmul.f32 %v4895_v19, %v4459_v58  ;;  %v2926_v11 = vmul.f32 %v2925_v39, %v9209_v3  ;;  %v1445_v25 = vsub.f32 %v9192_v57, %v1317_v62  ;;  %v1319_v17 = vmul.f32 2.0, %v862_v22  ;;  %v639_v22 = vpop.f32.mrf.mxu1 }
 0x3f9   : > { %v4462_v37 = vmul.f32 %v6083_v8, %v4461_v20  ;;  %v2916_v36 = vsel %vm2915_vm2, %v9205_v59, %v2914_v29  ;;  %v2934_v35 = vmul.f32 %v6081_v31, %v2933_v0  ;;  %v1446_v13 = vsub.f32 %v9197_v5, %v1318_v44 }
 0x3fa   : > { %v5151_v41 = vmul.f32 0.81, %v5023_v40  ;;  %v2919_v33 = vsel %vm2917_vm3, %v2918_v18, %v2916_v36  ;;  %v2928_v57 = vsel %vm2927_vm4, %v9209_v3, %v2926_v11  ;;  %v9278_v14 = vmax.f32 %v1445_v25, 0.0 }
 0x3fb   : > { %v4463_v30 = vmul.f32 0.5, %v4462_v37  ;;  %v3234_v27 = vmul.f32 1.1085125, %v2919_v33  ;;  %v2931_v49 = vsel %vm2929_vm5, %v2930_v43, %v2928_v57  ;;  %v2935_v55 = vmul.f32 0.5, %v2934_v35 }
 0x3fc   : > { %v6085_v56 = vpop.eup %6084  ;;  %v9284_v5 = vadd.f32 %v6471_v51, %v9267_v47  ;;  %5279 = vst [vmem:[%s6712_s22 + $0x358] sm:$0xff] %v5151_v41  ;;  %v3235_v59 = vmul.f32 1.1085125, %v2931_v49  ;;  %6086 = vrsqrt.f32 %v9278_v14  ;;  %v1191_v28 = vadd.f32 %v6484_v63, %v9036_v12 }
 0x3fd   : > { %v4464_v38 = vsub.f32 1.5, %v4463_v30  ;;  %vm4467_vm6 = vweird.f32 %v6083_v8  ;;  %v4471_v50 = vmul.f32 %v6085_v56, %v9255_v34  ;;  %v9291_v45 = vadd.f32 1.0, %v3234_v27 }
 0x3fe   : > { %v9293_v3 = vadd.f32 1.0, %v3235_v59  ;;  %v2936_v16 = vsub.f32 1.5, %v2935_v55  ;;  %v9295_v26 = vmax.f32 %v1446_v13, 0.0  ;;  %v1447_v51 = vsub.f32 %v1191_v28, %v1319_v17 }
 0x3ff   : > { %v4465_v1 = vmul.f32 %v6083_v8, %v4464_v38  ;;  %vm4466_vm7 = vweird.f32 %v9239_v42  ;;  %v4472_v9 = vmul.f32 %v6085_v56, %v4471_v50  ;;  %6088 = vrsqrt.f32 %v9291_v45 }
 0x400   : > { %v9301_v12 = vadd.f32 %v6473_v52, %v9267_v47  ;;  %v9305_v24 = vadd.f32 %v6480_v60, %v9267_v47  ;;  %vm4468_vm8 = vmor %vm4466_vm7, %vm4467_vm6  ;;  %6090 = vrsqrt.f32 %v9293_v3  ;;  %v2937_v54 = vmul.f32 %v6081_v31, %v2936_v16 }
 0x401   : > { %v4469_v58 = vsel %vm4468_vm8, %v6083_v8, %v4465_v1  ;;  %v4473_v48 = vmul.f32 0.5, %v4472_v9  ;;  %vm2939_vm9 = vcmp.eq.f32.partialorder %v9236_v10, inf  ;;  %6092 = vrsqrt.f32 %v9295_v26 }
 0x402   : > { %v6087_v42 = vpop.eup %6086  ;;  %v4768_v18 = vmul.f32 %v4469_v58, %v4469_v58  ;;  %v2938_v53 = vmul.f32 %v2937_v54, %v9236_v10  ;;  %vm2941_vm10 = vcmp.eq.f32.partialorder %v9236_v10, 0.0  ;;  %v9312_v52 = vmax.f32 %v1447_v51, 0.0 }
 0x403   : > { %v4474_v6 = vsub.f32 1.5, %v4473_v48  ;;  %vm4477_vm11 = vweird.f32 %v6085_v56  ;;  %v2942_v23 = vand.u32 2147483648, %v9236_v10  ;;  %v2945_v31 = vmul.f32 %v6087_v42, %v9278_v14 }
 0x404   : > { %v4896_v62 = vmul.f32 %v4768_v18, %v4768_v18  ;;  %vm4476_vm12 = vweird.f32 %v9255_v34  ;;  %v2940_v44 = vsel %vm2939_vm9, %v9236_v10, %v2938_v53  ;;  %6094 = vrsqrt.f32 %v9312_v52 }
 0x405   : > { %v6089_v8 = vpop.eup %6088  ;;  %v4475_v19 = vmul.f32 %v6085_v56, %v4474_v6  ;;  %v2943_v39 = vsel %vm2941_vm10, %v2942_v23, %v2940_v44  ;;  %v2946_v20 = vmul.f32 %v6087_v42, %v2945_v31  ;;  %v2954_v29 = vand.u32 2147483648, %v9278_v14  ;;  %vm4478_vm13 = vmor %vm4476_vm12, %vm4477_vm11 }
 0x406   : > { %v6091_v43 = vpop.eup %6090  ;;  %v5024_v0 = vmul.f32 %v4896_v62, %v4469_v58  ;;  %v4481_v40 = vmul.f32 %v6089_v8, %v9291_v45  ;;  %vm4486_vm14 = vweird.f32 %v9291_v45  ;;  %v3236_v34 = vmul.f32 1.1085125, %v2943_v39 }
 0x407   : > { %vm2951_vm15 = vcmp.eq.f32.partialorder %v9278_v14, inf  ;;  %v1320_v10 = vmul.f32 2.0, %v526_v21  ;;  %v6093_v11 = vpop.eup %6092  ;;  %v4479_v25 = vsel %vm4478_vm13, %v6085_v56, %v4475_v19  ;;  %v4491_v17 = vmul.f32 %v6091_v43, %v9293_v3 }
 0x408   : > { %vm4496_vm0 = vweird.f32 %v9293_v3  ;;  %v2947_v37 = vmul.f32 0.5, %v2946_v20  ;;  %vm2953_vm1 = vcmp.eq.f32.partialorder %v9278_v14, 0.0  ;;  %v1321_v36 = vmul.f32 2.0, %v639_v22 }
 0x409   : > { %v5152_v35 = vmul.f32 0.81, %v5024_v0  ;;  %v4769_v13 = vmul.f32 %v4479_v25, %v4479_v25  ;;  %v4482_v41 = vmul.f32 %v6089_v8, %v4481_v40  ;;  %v9327_v33 = vadd.f32 1.0, %v3236_v34 }
 0x40a   : > { %vm4487_vm2 = vweird.f32 %v6089_v8  ;;  %v4492_v57 = vmul.f32 %v6091_v43, %v4491_v17  ;;  %v2948_v30 = vsub.f32 1.5, %v2947_v37  ;;  %v2957_v27 = vmul.f32 %v6093_v11, %v9295_v26  ;;  %v6095_v49 = vpop.eup %6094 }
 0x40b   : > { %5280 = vst [vmem:[%s6712_s22 + $0x360] sm:$0xff] %v5152_v35  ;;  %v4897_v55 = vmul.f32 %v4769_v13, %v4769_v13  ;;  %v4483_v56 = vmul.f32 0.5, %v4482_v41  ;;  %vm4497_vm3 = vweird.f32 %v6091_v43  ;;  %6096 = vrsqrt.f32 %v9327_v33  ;;  %vm4488_vm5 = vmor %vm4486_vm14, %vm4487_vm2  ;;  %v752_v13 = vpop.f32.mrf.mxu2 }
 0x40c   : > { %v4493_v59 = vmul.f32 0.5, %v4492_v57  ;;  %v2949_v28 = vmul.f32 %v6087_v42, %v2948_v30  ;;  %v2958_v38 = vmul.f32 %v6093_v11, %v2957_v27  ;;  %v2969_v50 = vmul.f32 %v6095_v49, %v9312_v52  ;;  %vm4498_vm6 = vmor %vm4496_vm0, %vm4497_vm3 }
 0x40d   : > { %v5025_v16 = vmul.f32 %v4897_v55, %v4479_v25  ;;  %v4484_v51 = vsub.f32 1.5, %v4483_v56  ;;  %v1448_v1 = vsub.f32 %v9284_v5, %v1320_v10  ;;  %v1449_v9 = vsub.f32 %v9301_v12, %v1321_v36 }
 0x40e   : > { %v4494_v54 = vsub.f32 1.5, %v4493_v59  ;;  %v2950_v58 = vmul.f32 %v2949_v28, %v9278_v14  ;;  %v2959_v48 = vmul.f32 0.5, %v2958_v38  ;;  %v2970_v18 = vmul.f32 %v6095_v49, %v2969_v50 }
 0x40f   : > { %v5153_v53 = vmul.f32 0.81, %v5025_v16  ;;  %v4485_v6 = vmul.f32 %v6089_v8, %v4484_v51  ;;  %vm2963_vm4 = vcmp.eq.f32.partialorder %v9295_v26, inf  ;;  %v9337_v42 = vmax.f32 %v1448_v1, 0.0 }
 0x410   : > { %v4495_v23 = vmul.f32 %v6091_v43, %v4494_v54  ;;  %v2952_v5 = vsel %vm2951_vm15, %v9278_v14, %v2950_v58  ;;  %v2960_v12 = vsub.f32 1.5, %v2959_v48  ;;  %v2971_v31 = vmul.f32 0.5, %v2970_v18 }
 0x411   : > { %v6097_v21 = vpop.eup %6096  ;;  %5281 = vst [vmem:[%s6712_s22 + $0x368] sm:$0xff] %v5153_v53  ;;  %v4489_v62 = vsel %vm4488_vm5, %v6089_v8, %v4485_v6  ;;  %v2955_v44 = vsel %vm2953_vm1, %v2954_v29, %v2952_v5  ;;  %vm2965_vm7 = vcmp.eq.f32.partialorder %v9295_v26, 0.0  ;;  %6098 = vrsqrt.f32 %v9337_v42 }
 0x412   : > { %v4770_v45 = vmul.f32 %v4489_v62, %v4489_v62  ;;  %v4499_v22 = vsel %vm4498_vm6, %v6091_v43, %v4495_v23  ;;  %v4501_v19 = vmul.f32 %v6097_v21, %v9327_v33  ;;  %v9354_v39 = vmax.f32 %v1449_v9, 0.0 }
 0x413   : > { %v4771_v20 = vmul.f32 %v4499_v22, %v4499_v22  ;;  %v3237_v0 = vmul.f32 1.1085125, %v2955_v44  ;;  %v2961_v8 = vmul.f32 %v6093_v11, %v2960_v12  ;;  %v2972_v40 = vsub.f32 1.5, %v2971_v31 }
 0x414   : > { %v4898_v34 = vmul.f32 %v4770_v45, %v4770_v45  ;;  %v4502_v3 = vmul.f32 %v6097_v21, %v4501_v19  ;;  %v2966_v10 = vand.u32 2147483648, %v9295_v26  ;;  %vm2975_vm8 = vcmp.eq.f32.partialorder %v9312_v52, inf }
 0x415   : > { %v4899_v14 = vmul.f32 %v4771_v20, %v4771_v20  ;;  %v9358_v29 = vadd.f32 1.0, %v3237_v0  ;;  %v2962_v25 = vmul.f32 %v2961_v8, %v9295_v26  ;;  %v2973_v43 = vmul.f32 %v6095_v49, %v2972_v40  ;;  %v865_v49 = vpop.f32.mrf.mxu3 }
 0x416   : > { %v5026_v17 = vmul.f32 %v4898_v34, %v4489_v62  ;;  %v4503_v37 = vmul.f32 0.5, %v4502_v3  ;;  %vm2977_vm9 = vcmp.eq.f32.partialorder %v9312_v52, 0.0  ;;  %6100 = vrsqrt.f32 %v9354_v39 }
 0x417   : > { %v6099_v11 = vpop.eup %6098  ;;  %v5027_v36 = vmul.f32 %v4899_v14, %v4499_v22  ;;  %vm4507_vm10 = vweird.f32 %v6097_v21  ;;  %6102 = vrsqrt.f32 %v9358_v29  ;;  %v2964_v35 = vsel %vm2963_vm4, %v9295_v26, %v2962_v25 }
 0x418   : > { %v5154_v41 = vmul.f32 0.81, %v5026_v17  ;;  %v4504_v57 = vsub.f32 1.5, %v4503_v37  ;;  %v2967_v30 = vsel %vm2965_vm7, %v2966_v10, %v2964_v35  ;;  %v2974_v27 = vmul.f32 %v2973_v43, %v9312_v52 }
 0x419   : > { %v5155_v55 = vmul.f32 0.81, %v5027_v36  ;;  %v3238_v56 = vmul.f32 1.1085125, %v2967_v30  ;;  %v2978_v59 = vand.u32 2147483648, %v9312_v52  ;;  %v2981_v28 = vmul.f32 %v6099_v11, %v9337_v42 }
 0x41a   : > { %5282 = vst [vmem:[%s6712_s22 + $0x370] sm:$0xff] %v5154_v41  ;;  %v4505_v38 = vmul.f32 %v6097_v21, %v4504_v57  ;;  %vm4506_vm11 = vweird.f32 %v9327_v33  ;;  %v2976_v50 = vsel %vm2975_vm8, %v9312_v52, %v2974_v27  ;;  %v1322_v16 = vmul.f32 2.0, %v752_v13 }
 0x41b   : > { %5283 = vst [vmem:[%s6712_s22 + $0x378] sm:$0xff] %v5155_v55  ;;  %vm4508_vm12 = vmor %vm4506_vm11, %vm4507_vm10  ;;  %v9379_v26 = vadd.f32 1.0, %v3238_v56  ;;  %v2979_v51 = vsel %vm2977_vm9, %v2978_v59, %v2976_v50  ;;  %v2982_v1 = vmul.f32 %v6099_v11, %v2981_v28  ;;  %v1323_v9 = vmul.f32 2.0, %v865_v49 }
 0x41c   : > { %v6101_v54 = vpop.eup %6100  ;;  %v1195_v58 = vadd.f32 %v6484_v63, %v9267_v47  ;;  %v4509_v33 = vsel %vm4508_vm12, %v6097_v21, %v4505_v38  ;;  %v3239_v48 = vmul.f32 1.1085125, %v2979_v51  ;;  %v1450_v18 = vsub.f32 %v9305_v24, %v1322_v16  ;;  %v529_v47 = vpop.f32.mrf.mxu0 }
 0x41d   : > { %v6103_v53 = vpop.eup %6102  ;;  %v4772_v6 = vmul.f32 %v4509_v33, %v4509_v33  ;;  %6104 = vrsqrt.f32 %v9379_v26  ;;  %v2983_v23 = vmul.f32 0.5, %v2982_v1  ;;  %vm2987_vm13 = vcmp.eq.f32.partialorder %v9337_v42, inf }
 0x41e   : > { %v4511_v52 = vmul.f32 %v6103_v53, %v9358_v29  ;;  %v9389_v5 = vadd.f32 1.0, %v3239_v48  ;;  %vm2989_vm14 = vcmp.eq.f32.partialorder %v9337_v42, 0.0  ;;  %v2993_v12 = vmul.f32 %v6101_v54, %v9354_v39 }
 0x41f   : > { %v4900_v31 = vmul.f32 %v4772_v6, %v4772_v6  ;;  %v2984_v21 = vsub.f32 1.5, %v2983_v23  ;;  %v9393_v62 = vmax.f32 %v1450_v18, 0.0  ;;  %v1451_v24 = vsub.f32 %v1195_v58, %v1323_v9 }
 0x420   : > { %v4512_v44 = vmul.f32 %v6103_v53, %v4511_v52  ;;  %6106 = vrsqrt.f32 %v9389_v5  ;;  %v2990_v45 = vand.u32 2147483648, %v9337_v42  ;;  %v2994_v22 = vmul.f32 %v6101_v54, %v2993_v12 }
 0x421   : > { %v5028_v19 = vmul.f32 %v4900_v31, %v4509_v33  ;;  %v2985_v20 = vmul.f32 %v6099_v11, %v2984_v21  ;;  %6108 = vrsqrt.f32 %v9393_v62  ;;  %v1324_v0 = vmul.f32 2.0, %v529_v47  ;;  %v642_v33 = vpop.f32.mrf.mxu1 }
 0x422   : > { %v4513_v8 = vmul.f32 0.5, %v4512_v44  ;;  %vm4516_vm15 = vweird.f32 %v9358_v29  ;;  %v2995_v40 = vmul.f32 0.5, %v2994_v22  ;;  %vm2999_vm0 = vcmp.eq.f32.partialorder %v9354_v39, inf }
 0x423   : > { %v6105_v34 = vpop.eup %6104  ;;  %v5156_v3 = vmul.f32 0.81, %v5028_v19  ;;  %v2986_v10 = vmul.f32 %v2985_v20, %v9337_v42  ;;  %vm3001_vm1 = vcmp.eq.f32.partialorder %v9354_v39, 0.0  ;;  %v9402_v14 = vmax.f32 %v1451_v24, 0.0  ;;  %v755_v20 = vpop.f32.mrf.mxu2 }
 0x424   : > { %v4514_v25 = vsub.f32 1.5, %v4513_v8  ;;  %vm4517_vm2 = vweird.f32 %v6103_v53  ;;  %v4521_v43 = vmul.f32 %v6105_v34, %v9379_v26  ;;  %v2996_v17 = vsub.f32 1.5, %v2995_v40 }
 0x425   : > { %5284 = vst [vmem:[%s6712_s22 + $0x380] sm:$0xff] %v5156_v3  ;;  %v2988_v37 = vsel %vm2987_vm13, %v9337_v42, %v2986_v10  ;;  %v3002_v11 = vand.u32 2147483648, %v9354_v39  ;;  %6110 = vrsqrt.f32 %v9402_v14  ;;  %v1452_v36 = vsub.f32 %v9098_v7, %v1324_v0  ;;  %vm4518_vm3 = vmor %vm4516_vm15, %vm4517_vm2 }
 0x426   : > { %v6107_v35 = vpop.eup %6106  ;;  %v4515_v13 = vmul.f32 %v6103_v53, %v4514_v25  ;;  %v4522_v41 = vmul.f32 %v6105_v34, %v4521_v43  ;;  %v2991_v57 = vsel %vm2989_vm14, %v2990_v45, %v2988_v37  ;;  %v2997_v30 = vmul.f32 %v6101_v54, %v2996_v17 }
 0x427   : > { %v6109_v27 = vpop.eup %6108  ;;  %vm4526_vm4 = vweird.f32 %v9379_v26  ;;  %v4531_v49 = vmul.f32 %v6107_v35, %v9389_v5  ;;  %vm4536_vm5 = vweird.f32 %v9389_v5  ;;  %v3240_v55 = vmul.f32 1.1085125, %v2991_v57 }
 0x428   : > { %v4519_v56 = vsel %vm4518_vm3, %v6103_v53, %v4515_v13  ;;  %v4523_v7 = vmul.f32 0.5, %v4522_v41  ;;  %v2998_v59 = vmul.f32 %v2997_v30, %v9354_v39  ;;  %v3005_v28 = vmul.f32 %v6109_v27, %v9393_v62 }
 0x429   : > { %v4773_v42 = vmul.f32 %v4519_v56, %v4519_v56  ;;  %v4532_v38 = vmul.f32 %v6107_v35, %v4531_v49  ;;  %v9421_v50 = vadd.f32 1.0, %v3240_v55  ;;  %v9423_v16 = vmax.f32 %v1452_v36, 0.0 }
 0x42a   : > { %v4524_v29 = vsub.f32 1.5, %v4523_v7  ;;  %vm4527_vm6 = vweird.f32 %v6105_v34  ;;  %v3000_v51 = vsel %vm2999_vm0, %v9354_v39, %v2998_v59  ;;  %v3006_v1 = vmul.f32 %v6109_v27, %v3005_v28 }
 0x42b   : > { %v6111_v9 = vpop.eup %6110  ;;  %v4901_v54 = vmul.f32 %v4773_v42, %v4773_v42  ;;  %v4533_v58 = vmul.f32 0.5, %v4532_v38  ;;  %vm4537_vm7 = vweird.f32 %v6107_v35  ;;  %6112 = vrsqrt.f32 %v9421_v50  ;;  %vm4528_vm8 = vmor %vm4526_vm4, %vm4527_vm6 }
 0x42c   : > { %v4525_v48 = vmul.f32 %v6105_v34, %v4524_v29  ;;  %v3003_v18 = vsel %vm3001_vm1, %v3002_v11, %v3000_v51  ;;  %v3007_v53 = vmul.f32 0.5, %v3006_v1  ;;  %v3017_v6 = vmul.f32 %v6111_v9, %v9402_v14  ;;  %vm4538_vm9 = vmor %vm4536_vm5, %vm4537_vm7 }
 0x42d   : > { %v5029_v23 = vmul.f32 %v4901_v54, %v4519_v56  ;;  %v4534_v52 = vsub.f32 1.5, %v4533_v58  ;;  %v3241_v12 = vmul.f32 1.1085125, %v3003_v18  ;;  %6114 = vrsqrt.f32 %v9423_v16  ;;  %v868_v18 = vpop.f32.mrf.mxu3 }
 0x42e   : > { %v4529_v47 = vsel %vm4528_vm8, %v6105_v34, %v4525_v48  ;;  %v3008_v31 = vsub.f32 1.5, %v3007_v53  ;;  %v3018_v21 = vmul.f32 %v6111_v9, %v3017_v6  ;;  %v1325_v24 = vmul.f32 2.0, %v642_v33 }
 0x42f   : > { %v5157_v44 = vmul.f32 0.81, %v5029_v23  ;;  %v4774_v45 = vmul.f32 %v4529_v47, %v4529_v47  ;;  %v4535_v39 = vmul.f32 %v6107_v35, %v4534_v52  ;;  %v9435_v22 = vadd.f32 1.0, %v3241_v12  ;;  %v532_v23 = vpop.f32.mrf.mxu0 }
 0x430   : > { %v3009_v26 = vmul.f32 %v6109_v27, %v3008_v31  ;;  %vm3011_vm10 = vcmp.eq.f32.partialorder %v9393_v62, inf  ;;  %vm3013_vm11 = vcmp.eq.f32.partialorder %v9393_v62, 0.0  ;;  %v3019_v19 = vmul.f32 0.5, %v3018_v21 }
 0x431   : > { %v6113_v0 = vpop.eup %6112  ;;  %5285 = vst [vmem:[%s6712_s22 + $0x388] sm:$0xff] %v5157_v44  ;;  %v4902_v8 = vmul.f32 %v4774_v45, %v4774_v45  ;;  %v4539_v40 = vsel %vm4538_vm9, %v6107_v35, %v4535_v39  ;;  %6116 = vrsqrt.f32 %v9435_v22  ;;  %v3014_v34 = vand.u32 2147483648, %v9393_v62 }
 0x432   : > { %v4775_v3 = vmul.f32 %v4539_v40, %v4539_v40  ;;  %v4541_v10 = vmul.f32 %v6113_v0, %v9421_v50  ;;  %v3010_v5 = vmul.f32 %v3009_v26, %v9393_v62  ;;  %vm3023_vm12 = vcmp.eq.f32.partialorder %v9402_v14, inf }
 0x433   : > { %v6115_v25 = vpop.eup %6114  ;;  %v5030_v43 = vmul.f32 %v4902_v8, %v4529_v47  ;;  %v3020_v17 = vsub.f32 1.5, %v3019_v19  ;;  %v1453_v37 = vsub.f32 %v9102_v46, %v1325_v24  ;;  %v1326_v11 = vmul.f32 2.0, %v755_v20 }
 0x434   : > { %v4903_v36 = vmul.f32 %v4775_v3, %v4775_v3  ;;  %v4542_v35 = vmul.f32 %v6113_v0, %v4541_v10  ;;  %v3012_v13 = vsel %vm3011_vm10, %v9393_v62, %v3010_v5  ;;  %v3029_v41 = vmul.f32 %v6115_v25, %v9423_v16 }
 0x435   : > { %v5158_v57 = vmul.f32 0.81, %v5030_v43  ;;  %v3015_v30 = vsel %vm3013_vm11, %v3014_v34, %v3012_v13  ;;  %v3021_v27 = vmul.f32 %v6111_v9, %v3020_v17  ;;  %v9455_v49 = vmax.f32 %v1453_v37, 0.0 }
 0x436   : > { %v5031_v55 = vmul.f32 %v4903_v36, %v4539_v40  ;;  %v4543_v56 = vmul.f32 0.5, %v4542_v35  ;;  %v3242_v7 = vmul.f32 1.1085125, %v3015_v30  ;;  %v3030_v46 = vmul.f32 %v6115_v25, %v3029_v41 }
 0x437   : > { %v6117_v59 = vpop.eup %6116  ;;  %5286 = vst [vmem:[%s6712_s22 + $0x390] sm:$0xff] %v5158_v57  ;;  %v3022_v28 = vmul.f32 %v3021_v27, %v9402_v14  ;;  %vm3025_vm13 = vcmp.eq.f32.partialorder %v9402_v14, 0.0  ;;  %v3026_v42 = vand.u32 2147483648, %v9402_v14  ;;  %6118 = vrsqrt.f32 %v9455_v49 }
 0x438   : > { %v5159_v62 = vmul.f32 0.81, %v5031_v55  ;;  %v4544_v38 = vsub.f32 1.5, %v4543_v56  ;;  %vm4547_vm14 = vweird.f32 %v6113_v0  ;;  %v4551_v29 = vmul.f32 %v6117_v59, %v9435_v22 }
 0x439   : > { %vm4546_vm15 = vweird.f32 %v9421_v50  ;;  %v9464_v51 = vadd.f32 1.0, %v3242_v7  ;;  %v3024_v1 = vsel %vm3023_vm12, %v9402_v14, %v3022_v28  ;;  %v3031_v9 = vmul.f32 0.5, %v3030_v46  ;;  %v645_v46 = vpop.f32.mrf.mxu1 }
 0x43a   : > { %5287 = vst [vmem:[%s6712_s22 + $0x398] sm:$0xff] %v5159_v62  ;;  %v4545_v54 = vmul.f32 %v6113_v0, %v4544_v38  ;;  %v4552_v58 = vmul.f32 %v6117_v59, %v4551_v29  ;;  %v3027_v33 = vsel %vm3025_vm13, %v3026_v42, %v3024_v1  ;;  %v1454_v48 = vsub.f32 %v9108_v2, %v1326_v11  ;;  %vm4548_vm0 = vmor %vm4546_vm15, %vm4547_vm14 }
 0x43b   : > { %v1199_v53 = vadd.f32 %v6484_v63, %v9082_v4  ;;  %6120 = vrsqrt.f32 %v9464_v51  ;;  %v3243_v50 = vmul.f32 1.1085125, %v3027_v33  ;;  %v3032_v6 = vsub.f32 1.5, %v3031_v9 }
 0x43c   : > { %v4549_v52 = vsel %vm4548_vm0, %v6113_v0, %v4545_v54  ;;  %v4553_v12 = vmul.f32 0.5, %v4552_v58  ;;  %vm4557_vm1 = vweird.f32 %v6117_v59  ;;  %v9474_v14 = vmax.f32 %v1454_v48, 0.0 }
 0x43d   : > { %v6119_v47 = vpop.eup %6118  ;;  %v4776_v31 = vmul.f32 %v4549_v52, %v4549_v52  ;;  %v9476_v21 = vadd.f32 1.0, %v3243_v50  ;;  %v3033_v2 = vmul.f32 %v6115_v25, %v3032_v6  ;;  %v1327_v24 = vmul.f32 2.0, %v868_v18 }
 0x43e   : > { %v4554_v44 = vsub.f32 1.5, %v4553_v12  ;;  %v3041_v4 = vmul.f32 %v6119_v47, %v9455_v49  ;;  %6122 = vrsqrt.f32 %v9474_v14  ;;  %v1328_v45 = vmul.f32 2.0, %v532_v23 }
 0x43f   : > { %v4904_v39 = vmul.f32 %v4776_v31, %v4776_v31  ;;  %6124 = vrsqrt.f32 %v9476_v21  ;;  %v3034_v26 = vmul.f32 %v3033_v2, %v9423_v16  ;;  %vm3035_vm2 = vcmp.eq.f32.partialorder %v9423_v16, inf }
 0x440   : > { %v4555_v19 = vmul.f32 %v6117_v59, %v4554_v44  ;;  %vm4556_vm3 = vweird.f32 %v9435_v22  ;;  %v3038_v20 = vand.u32 2147483648, %v9423_v16  ;;  %v3042_v0 = vmul.f32 %v6119_v47, %v3041_v4 }
 0x441   : > { %v6121_v8 = vpop.eup %6120  ;;  %v5032_v40 = vmul.f32 %v4904_v39, %v4549_v52  ;;  %vm4558_vm4 = vmor %vm4556_vm3, %vm4557_vm1  ;;  %v3036_v34 = vsel %vm3035_vm2, %v9423_v16, %v3034_v26  ;;  %vm3037_vm5 = vcmp.eq.f32.partialorder %v9423_v16, 0.0  ;;  %v1455_v3 = vsub.f32 %v1199_v53, %v1327_v24 }
 0x442   : > { %v4559_v10 = vsel %vm4558_vm4, %v6117_v59, %v4555_v19  ;;  %v4561_v5 = vmul.f32 %v6121_v8, %v9464_v51  ;;  %v3039_v25 = vsel %vm3037_vm5, %v3038_v20, %v3036_v34  ;;  %vm3047_vm6 = vcmp.eq.f32.partialorder %v9455_v49, inf }
 0x443   : > { %v1456_v22 = vsub.f32 %v9087_v32, %v1328_v45  ;;  %v5160_v43 = vmul.f32 0.81, %v5032_v40  ;;  %v4777_v17 = vmul.f32 %v4559_v10, %v4559_v10  ;;  %v3244_v37 = vmul.f32 1.1085125, %v3039_v25  ;;  %v758_v45 = vpop.f32.mrf.mxu2 }
 0x444   : > { %v3043_v11 = vmul.f32 0.5, %v3042_v0  ;;  %v6123_v36 = vpop.eup %6122  ;;  %v4562_v35 = vmul.f32 %v6121_v8, %v4561_v5  ;;  %vm3049_vm7 = vcmp.eq.f32.partialorder %v9455_v49, 0.0  ;;  %v3050_v16 = vand.u32 2147483648, %v9455_v49 }
 0x445   : > { %v9493_v13 = vmax.f32 %v1455_v3, 0.0  ;;  %v6125_v41 = vpop.eup %6124  ;;  %5288 = vst [vmem:[%s6712_s22 + $0x3a0] sm:$0xff] %v5160_v43  ;;  %v4905_v57 = vmul.f32 %v4777_v17, %v4777_v17  ;;  %v9496_v30 = vadd.f32 1.0, %v3244_v37  ;;  %v3053_v32 = vmul.f32 %v6123_v36, %v9474_v14 }
 0x446   : > { %v3044_v27 = vsub.f32 1.5, %v3043_v11  ;;  %v4563_v55 = vmul.f32 0.5, %v4562_v35  ;;  %v4571_v56 = vmul.f32 %v6125_v41, %v9476_v21  ;;  %v9501_v7 = vmax.f32 %v1456_v22, 0.0 }
 0x447   : > { %6126 = vrsqrt.f32 %v9493_v13  ;;  %v5033_v59 = vmul.f32 %v4905_v57, %v4559_v10  ;;  %vm4566_vm8 = vweird.f32 %v9464_v51  ;;  %vm4567_vm9 = vweird.f32 %v6121_v8 }
 0x448   : > { %6128 = vrsqrt.f32 %v9496_v30  ;;  %v3045_v28 = vmul.f32 %v6119_v47, %v3044_v27  ;;  %v4564_v42 = vsub.f32 1.5, %v4563_v55  ;;  %v4572_v62 = vmul.f32 %v6125_v41, %v4571_v56  ;;  %vm4568_vm11 = vmor %vm4566_vm8, %vm4567_vm9 }
 0x449   : > { %v3054_v38 = vmul.f32 %v6123_v36, %v3053_v32  ;;  %v5161_v29 = vmul.f32 0.81, %v5033_v59  ;;  %vm3059_vm10 = vcmp.eq.f32.partialorder %v9474_v14, inf  ;;  %v1329_v9 = vmul.f32 2.0, %v645_v46 }
 0x44a   : > { %v3046_v1 = vmul.f32 %v3045_v28, %v9455_v49  ;;  %v4565_v54 = vmul.f32 %v6121_v8, %v4564_v42  ;;  %v4573_v58 = vmul.f32 0.5, %v4572_v62  ;;  %6130 = vrsqrt.f32 %v9501_v7 }
 0x44b   : > { %v3055_v33 = vmul.f32 0.5, %v3054_v38  ;;  %5289 = vst [vmem:[%s6712_s22 + $0x3a8] sm:$0xff] %v5161_v29  ;;  %vm4576_vm12 = vweird.f32 %v9476_v21  ;;  %vm4577_vm13 = vweird.f32 %v6125_v41  ;;  %vm3061_vm14 = vcmp.eq.f32.partialorder %v9474_v14, 0.0 }
 0x44c   : > { %v3048_v48 = vsel %vm3047_vm6, %v9455_v49, %v3046_v1  ;;  %v4569_v53 = vsel %vm4568_vm11, %v6121_v8, %v4565_v54  ;;  %v4574_v50 = vsub.f32 1.5, %v4573_v58  ;;  %v1457_v31 = vsub.f32 %v9091_v15, %v1329_v9  ;;  %vm4578_vm15 = vmor %vm4576_vm12, %vm4577_vm13 }
 0x44d   : > { %v6127_v18 = vpop.eup %6126  ;;  %v3051_v6 = vsel %vm3049_vm7, %v3050_v16, %v3048_v48  ;;  %v3056_v23 = vsub.f32 1.5, %v3055_v33  ;;  %v4778_v12 = vmul.f32 %v4569_v53, %v4569_v53  ;;  %v3062_v4 = vand.u32 2147483648, %v9474_v14  ;;  %v871_v16 = vpop.f32.mrf.mxu3 }
 0x44e   : > { %v6129_v52 = vpop.eup %6128  ;;  %v3245_v51 = vmul.f32 1.1085125, %v3051_v6  ;;  %v3065_v47 = vmul.f32 %v6127_v18, %v9493_v13  ;;  %v4575_v2 = vmul.f32 %v6125_v41, %v4574_v50  ;;  %v9527_v19 = vmax.f32 %v1457_v31, 0.0 }
 0x44f   : > { %v4581_v24 = vmul.f32 %v6129_v52, %v9496_v30  ;;  %v3057_v44 = vmul.f32 %v6123_v36, %v3056_v23  ;;  %v4906_v39 = vmul.f32 %v4778_v12, %v4778_v12  ;;  %vm4587_vm0 = vweird.f32 %v6129_v52 }
 0x450   : > { %v9525_v49 = vadd.f32 1.0, %v3245_v51  ;;  %v3066_v26 = vmul.f32 %v6127_v18, %v3065_v47  ;;  %v6131_v20 = vpop.eup %6130  ;;  %v4579_v0 = vsel %vm4578_vm15, %v6125_v41, %v4575_v2  ;;  %v1330_v3 = vmul.f32 2.0, %v758_v45 }
 0x451   : > { %v4582_v15 = vmul.f32 %v6129_v52, %v4581_v24  ;;  %v3058_v8 = vmul.f32 %v3057_v44, %v9474_v14  ;;  %v5034_v40 = vmul.f32 %v4906_v39, %v4569_v53  ;;  %v4779_v34 = vmul.f32 %v4579_v0, %v4579_v0 }
 0x452   : > { %6132 = vrsqrt.f32 %v9525_v49  ;;  %v3067_v5 = vmul.f32 0.5, %v3066_v26  ;;  %v3077_v25 = vmul.f32 %v6131_v20, %v9501_v7  ;;  %v1202_v41 = vadd.f32 %v6480_v60, %v9072_v61 }
 0x453   : > { %v4583_v10 = vmul.f32 0.5, %v4582_v15  ;;  %v3060_v21 = vsel %vm3059_vm10, %v9474_v14, %v3058_v8  ;;  %v5162_v22 = vmul.f32 0.81, %v5034_v40  ;;  %v4907_v43 = vmul.f32 %v4779_v34, %v4779_v34 }
 0x454   : > { %v3063_v17 = vsel %vm3061_vm14, %v3062_v4, %v3060_v21  ;;  %6134 = vrsqrt.f32 %v9527_v19  ;;  %v3068_v36 = vsub.f32 1.5, %v3067_v5  ;;  %v3078_v35 = vmul.f32 %v6131_v20, %v3077_v25 }
 0x455   : > { %v4584_v37 = vsub.f32 1.5, %v4583_v10  ;;  %v3246_v11 = vmul.f32 1.1085125, %v3063_v17  ;;  %v1203_v57 = vadd.f32 %v6484_v63, %v9072_v61  ;;  %5290 = vst [vmem:[%s6712_s22 + $0x3b0] sm:$0xff] %v5162_v22  ;;  %v5035_v27 = vmul.f32 %v4907_v43, %v4579_v0 }
 0x456   : > { %vm4586_vm1 = vweird.f32 %v9496_v30  ;;  %v3069_v55 = vmul.f32 %v6127_v18, %v3068_v36  ;;  %v3079_v56 = vmul.f32 0.5, %v3078_v35  ;;  %vm3071_vm3 = vcmp.eq.f32.partialorder %v9493_v13, inf }
 0x457   : > { %v4585_v14 = vmul.f32 %v6129_v52, %v4584_v37  ;;  %v9544_v32 = vadd.f32 1.0, %v3246_v11  ;;  %v5163_v59 = vmul.f32 0.81, %v5035_v27  ;;  %vm4588_vm2 = vmor %vm4586_vm1, %vm4587_vm0  ;;  %v1458_v60 = vsub.f32 %v1202_v41, %v1330_v3 }
 0x458   : > { %v6133_v46 = vpop.eup %6132  ;;  %v1331_v28 = vmul.f32 2.0, %v871_v16  ;;  %vm3073_vm4 = vcmp.eq.f32.partialorder %v9493_v13, 0.0  ;;  %v3070_v62 = vmul.f32 %v3069_v55, %v9493_v13  ;;  %v3074_v38 = vand.u32 2147483648, %v9493_v13 }
 0x459   : > { %v4589_v42 = vsel %vm4588_vm2, %v6129_v52, %v4585_v14  ;;  %v4591_v63 = vmul.f32 %v6133_v46, %v9525_v49  ;;  %6136 = vrsqrt.f32 %v9544_v32  ;;  %5291 = vst [vmem:[%s6712_s22 + $0x3b8] sm:$0xff] %v5163_v59  ;;  %v3080_v29 = vsub.f32 1.5, %v3079_v56 }
 0x45a   : > { %v6135_v61 = vpop.eup %6134  ;;  %v4780_v30 = vmul.f32 %v4589_v42, %v4589_v42  ;;  %vm3083_vm5 = vcmp.eq.f32.partialorder %v9501_v7, inf  ;;  %v9556_v54 = vmax.f32 %v1458_v60, 0.0  ;;  %v3072_v33 = vsel %vm3071_vm3, %v9493_v13, %v3070_v62 }
 0x45b   : > { %v4592_v1 = vmul.f32 %v6133_v46, %v4591_v63  ;;  %v3089_v9 = vmul.f32 %v6135_v61, %v9527_v19  ;;  %v3081_v48 = vmul.f32 %v6131_v20, %v3080_v29  ;;  %v1459_v18 = vsub.f32 %v1203_v57, %v1331_v28 }
 0x45c   : > { %v4908_v58 = vmul.f32 %v4780_v30, %v4780_v30  ;;  %v3075_v50 = vsel %vm3073_vm4, %v3074_v38, %v3072_v33  ;;  %6138 = vrsqrt.f32 %v9556_v54  ;;  %vm3085_vm6 = vcmp.eq.f32.partialorder %v9501_v7, 0.0 }
 0x45d   : > { %v4593_v53 = vmul.f32 0.5, %v4592_v1  ;;  %v3090_v6 = vmul.f32 %v6135_v61, %v3089_v9  ;;  %v3247_v52 = vmul.f32 1.1085125, %v3075_v50  ;;  %v3082_v12 = vmul.f32 %v3081_v48, %v9501_v7 }
 0x45e   : > { %v5036_v23 = vmul.f32 %v4908_v58, %v4589_v42  ;;  %vm4597_vm7 = vweird.f32 %v6133_v46  ;;  %v3086_v31 = vand.u32 2147483648, %v9501_v7  ;;  %vm4596_vm8 = vweird.f32 %v9525_v49 }
 0x45f   : > { %v6137_v51 = vpop.eup %6136  ;;  %v4594_v47 = vsub.f32 1.5, %v4593_v53  ;;  %v3091_v2 = vmul.f32 0.5, %v3090_v6  ;;  %v9569_v44 = vadd.f32 1.0, %v3247_v52  ;;  %v3084_v45 = vsel %vm3083_vm5, %v9501_v7, %v3082_v12  ;;  %vm4598_vm9 = vmor %vm4596_vm8, %vm4597_vm7 }
 0x460   : > { %v5164_v24 = vmul.f32 0.81, %v5036_v23  ;;  %v4601_v13 = vmul.f32 %v6137_v51, %v9544_v32  ;;  %v9574_v26 = vmax.f32 %v1459_v18, 0.0  ;;  %v3087_v49 = vsel %vm3085_vm6, %v3086_v31, %v3084_v45 }
 0x461   : > { %v4595_v4 = vmul.f32 %v6133_v46, %v4594_v47  ;;  %v3092_v39 = vsub.f32 1.5, %v3091_v2  ;;  %6140 = vrsqrt.f32 %v9569_v44  ;;  %v3248_v8 = vmul.f32 1.1085125, %v3087_v49 }
 0x462   : > { %5292 = vst [vmem:[%s6712_s22 + $0x3c0] sm:$0xff] %v5164_v24  ;;  %v4602_v20 = vmul.f32 %v6137_v51, %v4601_v13  ;;  %v6139_v0 = vpop.eup %6138  ;;  %6142 = vrsqrt.f32 %v9574_v26  ;;  %vm3095_vm10 = vcmp.eq.f32.partialorder %v9527_v19, inf  ;;  %v3098_v25 = vand.u32 2147483648, %v9527_v19 }
 0x463   : > { %v4599_v15 = vsel %vm4598_vm9, %v6133_v46, %v4595_v4  ;;  %v3093_v40 = vmul.f32 %v6135_v61, %v3092_v39  ;;  %v3101_v10 = vmul.f32 %v6139_v0, %v9556_v54  ;;  %v9582_v21 = vadd.f32 1.0, %v3248_v8 }
 0x464   : > { %v4781_v34 = vmul.f32 %v4599_v15, %v4599_v15  ;;  %v4603_v3 = vmul.f32 0.5, %v4602_v20  ;;  %vm4607_vm11 = vweird.f32 %v6137_v51  ;;  %vm4606_vm12 = vweird.f32 %v9544_v32 }
 0x465   : > { %v3094_v5 = vmul.f32 %v3093_v40, %v9527_v19  ;;  %v3102_v43 = vmul.f32 %v6139_v0, %v3101_v10  ;;  %6144 = vrsqrt.f32 %v9582_v21  ;;  %vm3097_vm13 = vcmp.eq.f32.partialorder %v9527_v19, 0.0  ;;  %vm4608_vm14 = vmor %vm4606_vm12, %vm4607_vm11 }
 0x466   : > { %v4909_v7 = vmul.f32 %v4781_v34, %v4781_v34  ;;  %v4604_v22 = vsub.f32 1.5, %v4603_v3  ;;  %vm3107_vm15 = vcmp.eq.f32.partialorder %v9556_v54, inf  ;;  %v3110_v9 = vand.u32 2147483648, %v9556_v54 }
 0x467   : > { %v3096_v17 = vsel %vm3095_vm10, %v9527_v19, %v3094_v5  ;;  %v6141_v37 = vpop.eup %6140  ;;  %v3103_v16 = vmul.f32 0.5, %v3102_v43  ;;  %vm3109_vm1 = vcmp.eq.f32.partialorder %v9556_v54, 0.0  ;;  %vm4616_vm2 = vweird.f32 %v9569_v44 }
 0x468   : > { %v5037_v11 = vmul.f32 %v4909_v7, %v4599_v15  ;;  %v4605_v36 = vmul.f32 %v6137_v51, %v4604_v22  ;;  %v3099_v35 = vsel %vm3097_vm13, %v3098_v25, %v3096_v17  ;;  %v6143_v41 = vpop.eup %6142  ;;  %v4611_v57 = vmul.f32 %v6141_v37, %v9569_v44 }
 0x469   : > { %v3249_v27 = vmul.f32 1.1085125, %v3099_v35  ;;  %v3104_v32 = vsub.f32 1.5, %v3103_v16  ;;  %v3113_v56 = vmul.f32 %v6143_v41, %v9574_v26  ;;  %vm4617_vm0 = vweird.f32 %v6141_v37 }
 0x46a   : > { %v5165_v14 = vmul.f32 0.81, %v5037_v11  ;;  %v4609_v55 = vsel %vm4608_vm14, %v6137_v51, %v4605_v36  ;;  %v4612_v59 = vmul.f32 %v6141_v37, %v4611_v57  ;;  %vm4618_vm3 = vmor %vm4616_vm2, %vm4617_vm0  ;;  %vm3119_vm5 = vcmp.eq.f32.partialorder %v9574_v26, inf }
 0x46b   : > { %v4782_v46 = vmul.f32 %v4609_v55, %v4609_v55  ;;  %v9593_v60 = vadd.f32 1.0, %v3249_v27  ;;  %v3105_v19 = vmul.f32 %v6139_v0, %v3104_v32  ;;  %v3114_v28 = vmul.f32 %v6143_v41, %v3113_v56  ;;  %v6145_v42 = vpop.eup %6144 }
 0x46c   : > { %5293 = vst [vmem:[%s6712_s22 + $0x3c8] sm:$0xff] %v5165_v14  ;;  %v4613_v61 = vmul.f32 0.5, %v4612_v59  ;;  %v4621_v30 = vmul.f32 %v6145_v42, %v9582_v21  ;;  %vm4627_vm4 = vweird.f32 %v6145_v42  ;;  %v3122_v13 = vand.u32 2147483648, %v9574_v26 }
 0x46d   : > { %v4910_v63 = vmul.f32 %v4782_v46, %v4782_v46  ;;  %6146 = vrsqrt.f32 %v9593_v60  ;;  %v3106_v62 = vmul.f32 %v3105_v19, %v9556_v54  ;;  %v3115_v38 = vmul.f32 0.5, %v3114_v28 }
 0x46e   : > { %v4614_v1 = vsub.f32 1.5, %v4613_v61  ;;  %v4622_v58 = vmul.f32 %v6145_v42, %v4621_v30  ;;  %vm4626_vm6 = vweird.f32 %v9582_v21  ;;  %vm3121_vm8 = vcmp.eq.f32.partialorder %v9574_v26, 0.0 }
 0x46f   : > { %v5038_v29 = vmul.f32 %v4910_v63, %v4609_v55  ;;  %v3108_v33 = vsel %vm3107_vm15, %v9556_v54, %v3106_v62  ;;  %v3116_v48 = vsub.f32 1.5, %v3115_v38  ;;  %vm4628_vm7 = vmor %vm4626_vm6, %vm4627_vm4  ;;  %vm4636_vm10 = vweird.f32 %v9593_v60 }
 0x470   : > { %v4615_v53 = vmul.f32 %v6141_v37, %v4614_v1  ;;  %v3111_v50 = vsel %vm3109_vm1, %v3110_v9, %v3108_v33  ;;  %v4623_v6 = vmul.f32 0.5, %v4622_v58 }
 0x471   : > { %v5166_v18 = vmul.f32 0.81, %v5038_v29  ;;  %v3250_v23 = vmul.f32 1.1085125, %v3111_v50  ;;  %v3117_v52 = vmul.f32 %v6143_v41, %v3116_v48 }
 0x472   : > { %v4619_v51 = vsel %vm4618_vm3, %v6141_v37, %v4615_v53  ;;  %v4624_v31 = vsub.f32 1.5, %v4623_v6 }
 0x473   : > { %v6147_v12 = vpop.eup %6146  ;;  %5294 = vst [vmem:[%s6712_s22 + $0x3d0] sm:$0xff] %v5166_v18  ;;  %v4783_v47 = vmul.f32 %v4619_v51, %v4619_v51  ;;  %v3378_v24 = vadd.f32 1.0, %v3250_v23  ;;  %v3118_v54 = vmul.f32 %v3117_v52, %v9574_v26 }
 0x474   : > { %v4631_v2 = vmul.f32 %v6147_v12, %v9593_v60  ;;  %v4625_v4 = vmul.f32 %v6145_v42, %v4624_v31  ;;  %vm4637_vm9 = vweird.f32 %v6147_v12 }
 0x475   : > { %v4911_v44 = vmul.f32 %v4783_v47, %v4783_v47  ;;  %6148 = vrsqrt.f32 %v3378_v24  ;;  %v3120_v39 = vsel %vm3119_vm5, %v9574_v26, %v3118_v54  ;;  %vm4638_vm11 = vmor %vm4636_vm10, %vm4637_vm9  ;;  %vm4646_vm13 = vweird.f32 %v3378_v24 }
 0x476   : > { %v4632_v45 = vmul.f32 %v6147_v12, %v4631_v2  ;;  %v4629_v49 = vsel %vm4628_vm7, %v6145_v42, %v4625_v4  ;;  %v3123_v15 = vsel %vm3121_vm8, %v3122_v13, %v3120_v39 }
 0x477   : > { %v5039_v20 = vmul.f32 %v4911_v44, %v4619_v51  ;;  %v4784_v8 = vmul.f32 %v4629_v49, %v4629_v49  ;;  %v3251_v40 = vmul.f32 1.1085125, %v3123_v15 }
 0x478   : > { %v4633_v0 = vmul.f32 0.5, %v4632_v45 }
 0x479   : > { %v5167_v34 = vmul.f32 0.81, %v5039_v20  ;;  %v4912_v10 = vmul.f32 %v4784_v8, %v4784_v8  ;;  %v3379_v21 = vadd.f32 1.0, %v3251_v40 }
 0x47a   : > { %v4634_v3 = vsub.f32 1.5, %v4633_v0 }
 0x47b   : > { %5295 = vst [vmem:[%s6712_s22 + $0x3d8] sm:$0xff] %v5167_v34  ;;  %v6149_v25 = vpop.eup %6148  ;;  %v5040_v7 = vmul.f32 %v4912_v10, %v4629_v49  ;;  %6150 = vrsqrt.f32 %v3379_v21  ;;  %vm4656_vm0 = vweird.f32 %v3379_v21 }
 0x47c   : > { %v4635_v5 = vmul.f32 %v6147_v12, %v4634_v3  ;;  %v4641_v22 = vmul.f32 %v6149_v25, %v3378_v24  ;;  %vm4647_vm12 = vweird.f32 %v6149_v25 }
 0x47d   : > { %v5168_v43 = vmul.f32 0.81, %v5040_v7  ;;  %vm4648_vm14 = vmor %vm4646_vm13, %vm4647_vm12 }
 0x47e   : > { %v4639_v26 = vsel %vm4638_vm11, %v6147_v12, %v4635_v5  ;;  %v4642_v37 = vmul.f32 %v6149_v25, %v4641_v22 }
 0x47f   : > { %v4785_v17 = vmul.f32 %v4639_v26, %v4639_v26  ;;  %5296 = vst [vmem:[%s6712_s22 + $0x3e0] sm:$0xff] %v5168_v43 }
 0x480   : > { %v4643_v36 = vmul.f32 0.5, %v4642_v37 }
 0x481   : > { %v4913_v11 = vmul.f32 %v4785_v17, %v4785_v17  ;;  %v6151_v35 = vpop.eup %6150 }
 0x482   : > { %v4644_v41 = vsub.f32 1.5, %v4643_v36  ;;  %v4651_v57 = vmul.f32 %v6151_v35, %v3379_v21  ;;  %vm4657_vm15 = vweird.f32 %v6151_v35 }
 0x483   : > { %v5041_v16 = vmul.f32 %v4913_v11, %v4639_v26  ;;  %vm4658_vm1 = vmor %vm4656_vm0, %vm4657_vm15 }
 0x484   : > { %v4645_v14 = vmul.f32 %v6149_v25, %v4644_v41  ;;  %v4652_v55 = vmul.f32 %v6151_v35, %v4651_v57 }
 0x485   : > { %v5169_v27 = vmul.f32 0.81, %v5041_v16 }
 0x486   : > { %v4649_v32 = vsel %vm4648_vm14, %v6149_v25, %v4645_v14  ;;  %v4653_v56 = vmul.f32 0.5, %v4652_v55 }
 0x487   : > { %5297 = vst [vmem:[%s6712_s22 + $0x3e8] sm:$0xff] %v5169_v27  ;;  %v4786_v46 = vmul.f32 %v4649_v32, %v4649_v32 }
 0x488   : > { %v4654_v59 = vsub.f32 1.5, %v4653_v56 }
 0x489   : > { %v4914_v60 = vmul.f32 %v4786_v46, %v4786_v46 }
 0x48a   : > { %v4655_v19 = vmul.f32 %v6151_v35, %v4654_v59 }
 0x48b   : > { %v5042_v28 = vmul.f32 %v4914_v60, %v4649_v32 }
 0x48c   : > { %v4659_v42 = vsel %vm4658_vm1, %v6151_v35, %v4655_v19 }
 0x48d   : > { %v5170_v63 = vmul.f32 0.81, %v5042_v28  ;;  %v4787_v61 = vmul.f32 %v4659_v42, %v4659_v42 }
 0x48f   : > { %5298 = vst [vmem:[%s6712_s22 + $0x3f0] sm:$0xff] %v5170_v63  ;;  %v4915_v30 = vmul.f32 %v4787_v61, %v4787_v61 }
 0x491   : > { %v5043_v62 = vmul.f32 %v4915_v30, %v4659_v42 }
 0x493   : > { %v5171_v38 = vmul.f32 0.81, %v5043_v62 }
 0x495   : > { %5299 = vst [vmem:[%s6712_s22 + $0x3f8] sm:$0xff] %v5171_v38 }
 0x496   : > { %6179 = shalt.err (!%p6176_p5)
}
 0x497   : > { %s6233_s14 = smov 512   ;;  %s6234_s21 = smov 32  }
 0x498   : > { %5579 = dma.vmem_to_hbm [thread:$0]  (%p6300_p4), %s5317_s5, 16384, %s5319_s6, %s5301_s18, %s6233_s14, %s6233_s14, %s6234_s21  }
 0x499 PF: > { %p5585_p6 = scmp.ge.s32.totalorder %s6230_s20, 2  ;;  %s5333_s22 = sand.u32 1, %s6210_s15  }
 0x49a   : > { %s5334_s24 = scalar_lea.sflag [#allocation3], %s5333_s22 }
 0x49b   : > { %p5582_p7 = pnand %p5585_p6, %p6307_p8 }
 0x49d   : > { %p5583_p9 = pneg %p5582_p7 }
 0x49f   : > { %6205 = dma.done.wait (%p5583_p9), %s5334_s24, 16384  }
 0x4a0   : > { %6207 = vsyncadd (%p5583_p9), %s5334_s24, 4294950912  ;;  %s17_s20 = sadd.s32 1, %s6230_s20   ;;  %s9664_s15 = smov %s6214_s16 }
 0x4a1   : > { %p14_p10 = scmp.ge.s32.totalorder %s17_s20, 4   ;;  %s9665_s16 = smov %s6218_s17 }
 0x4a2   : > { %s9666_s17 = smov %s6313_s28  ;;  %s9667_s18 = smov %s6226_s19 }
 0x4a3   : > { %s9668_s19 = smov %s9670_s23  ;;  %16 = sbr.rel (!%p14_p10) target bundleno = 4 (0x4), region = 80 }
 0x4a8   :  { %5340 = vsyncpa [#allocation3], 1 }
 0x4a9   :  { %5342 = vsyncpa [#allocation3 + $0x1], 1 }

</bundles_post_ra>
